<compile_context>
chip_gen: v6e
topology: v6e:2x2x1
jax: 0.10.0
libtpu: 0.0.40
codegen_flags: <defaults>
</compile_context>

<pallas_src>
import functools

import jax
import jax.numpy as jnp
from jax.experimental import pallas as pl
from jax.experimental.pallas import tpu as pltpu

BN_EPS = 1e-5
VMEM_LIMIT = 48 * 1024 * 1024  # explicit scoped-VMEM budget (safe on v5e/v6e/v7x)


def _round_up(x, m):
    return (x + m - 1) // m * m


# ----------------------------------------------------------------------------
# Pallas kernel 1: fused multi-segment matmul  sum_i(X_i @ W_i) + bias [+ReLU]
# (classifier 1x1 conv over the "concat" input without materializing it)
# ----------------------------------------------------------------------------
def _concat_matmul_kernel(*refs, nseg, relu):
    xs = refs[:nseg]
    ws = refs[nseg:2 * nseg]
    b_ref = refs[2 * nseg]
    o_ref = refs[2 * nseg + 1]
    acc = jnp.dot(xs[0][...], ws[0][...], preferred_element_type=jnp.float32)
    for i in range(1, nseg):
        acc = acc + jnp.dot(xs[i][...], ws[i][...],
                            preferred_element_type=jnp.float32)
    acc = acc + b_ref[...]
    if relu:
        acc = jnp.maximum(acc, 0.0)
    o_ref[...] = acc.astype(o_ref.dtype)


def fused_concat_matmul(xs, ws, bias, *, relu, out_dtype, tm=1024):
    """xs[i]: (M, K_i), ws[i]: (K_i, Np) bf16 (scale folded), bias: (Np,) f32."""
    nseg = len(xs)
    assert nseg == len(ws)
    M = xs[0].shape[0]
    Np = ws[0].shape[1]
    for x, w in zip(xs, ws):
        assert x.shape[0] == M and w.shape[0] == x.shape[1] and w.shape[1] == Np

    tm_eff = min(tm, _round_up(M, 16))          # 16-row (bf16 sublane) alignment
    Mp = _round_up(M, tm_eff)
    xs = [x.astype(jnp.bfloat16) for x in xs]
    if Mp != M:
        xs = [jnp.pad(x, ((0, Mp - M), (0, 0))) for x in xs]
    ws = [w.astype(jnp.bfloat16) for w in ws]
    bias2 = bias.reshape(1, Np).astype(jnp.float32)

    in_specs = []
    for x in xs:
        in_specs.append(pl.BlockSpec((tm_eff, x.shape[1]), lambda i: (i, 0)))
    for w in ws:
        in_specs.append(pl.BlockSpec((w.shape[0], Np), lambda i: (0, 0)))
    in_specs.append(pl.BlockSpec((1, Np), lambda i: (0, 0)))

    out = pl.pallas_call(
        functools.partial(_concat_matmul_kernel, nseg=nseg, relu=relu),
        out_shape=jax.ShapeDtypeStruct((Mp, Np), out_dtype),
        grid=(Mp // tm_eff,),
        in_specs=in_specs,
        out_specs=pl.BlockSpec((tm_eff, Np), lambda i: (i, 0)),
        compiler_params=pltpu.CompilerParams(
            dimension_semantics=("parallel",),
            vmem_limit_bytes=VMEM_LIMIT),
    )(*xs, *ws, bias2)
    return out[:M] if Mp != M else out


# ----------------------------------------------------------------------------
# Pallas kernel 2: one fused DenseASPP branch per grid step (one image):
#   phase 1: 1x1 conv (+folded BN+ReLU) over packed input segments, written
#            directly into the middle of a halo'd VMEM scratch (row tiled)
#   phase 2: 3x3 dilated conv as shifted-tap matmuls accumulated in-kernel,
#            taps grouped by column offset dx (<=2 column selects per tile),
#            out-of-image rows handled by zeroed halo rows
#   output:  P_k = [y_k | y_{k-1}] packed 128-lane buffer (lane-dense store)
# ----------------------------------------------------------------------------
def _dense_branch_kernel(*refs, nseg, dx_groups, pad, hw, w_img, c1,
                         tile_rows, has_prev):
    segs = refs[:nseg]                 # (1, HW, C_i) bf16
    w1s = refs[nseg:2 * nseg]          # (C_i, 256)   bf16
    b1_ref = refs[2 * nseg]            # (1, 256)     f32
    w2_ref = refs[2 * nseg + 1]        # (9, 256, 128) bf16 (upper 64 out lanes 0)
    b2_ref = refs[2 * nseg + 2]        # (1, 128)     f32
    o_ref = refs[2 * nseg + 3]         # (1, HW, 128) bf16
    ypad_ref = refs[2 * nseg + 4]      # (HW + 2*pad, 256) bf16 scratch

    # Zero halo rows so every out-of-image (dy) read contributes exactly 0.
    if pad > 0:
        ypad_ref[:pad, :] = jnp.zeros((pad, c1), jnp.bfloat16)
        ypad_ref[pad + hw:, :] = jnp.zeros((pad, c1), jnp.bfloat16)

    nt = hw // tile_rows

    # ---- phase 1: 1x1 conv + ReLU into the scratch middle region ----
    for t in range(nt):
        r0 = t * tile_rows
        acc = jnp.dot(segs[0][0, r0:r0 + tile_rows, :], w1s[0][...],
                      preferred_element_type=jnp.float32)
        for i in range(1, nseg):
            acc = acc + jnp.dot(segs[i][0, r0:r0 + tile_rows, :], w1s[i][...],
                                preferred_element_type=jnp.float32)
        acc = jnp.maximum(acc + b1_ref[...], 0.0)
        ypad_ref[pad + r0:pad + r0 + tile_rows, :] = acc.astype(jnp.bfloat16)

    # ---- phase 2: dilated 3x3 conv, taps grouped by dx ----
    for t in range(nt):
        r0 = t * tile_rows
        col = (jax.lax.broadcasted_iota(jnp.int32, (tile_rows, 1), 0) + r0) % w_img
        acc = None
        for dx, taps in dx_groups:
            part = None
            for (tap_idx, s) in taps:
                p = jnp.dot(ypad_ref[pad + s + r0:pad + s + r0 + tile_rows, :],
                            w2_ref[tap_idx],
                            preferred_element_type=jnp.float32)
                part = p if part is None else part + p
            if dx != 0:
                ok = jnp.logical_and(col + dx >= 0, col + dx < w_img)
                part = jnp.where(ok, part, 0.0)
            acc = part if acc is None else acc + part

        ynew = jnp.maximum(acc + b2_ref[...], 0.0)       # (tile, 128), upper 64 = 0
        if has_prev:
            # Pack y_{k-1} (lanes 0..63 of the first input segment) into the
            # upper 64 lanes of the output -> P_k = [y_k | y_{k-1}].
            prev = segs[0][0, r0:r0 + tile_rows, :]
            out_tile = jnp.concatenate(
                [ynew[:, :64].astype(jnp.bfloat16), prev[:, :64]], axis=-1)
        else:
            out_tile = ynew.astype(jnp.bfloat16)          # P_1 = [y_1 | 0]
        o_ref[0, r0:r0 + tile_rows, :] = out_tile


def dense_aspp_branch(segs, w1_segs, b1, w2_taps, b2, *, H, W, rate, has_prev):
    """segs[i]: (N, HW, C_i) bf16; w1_segs[i]: (C_i, 256) bf16;
    w2_taps: (9, 256, 128) bf16; b1: (256,), b2: (128,) f32.
    Returns packed branch output (N, HW, 128) bf16."""
    N, HW, _ = segs[0].shape
    assert HW == H * W
    C1 = w1_segs[0].shape[1]
    C2p = w2_taps.shape[-1]

    # Surviving taps grouped by column offset dx (taps fully outside the image
    # contribute nothing and are skipped at trace time).
    groups = {}
    max_s = 0
    for ky in range(3):
        for kx in range(3):
            dy, dx = (ky - 1) * rate, (kx - 1) * rate
            if abs(dy) >= H or abs(dx) >= W:
                continue
            s = dy * W + dx
            groups.setdefault(dx, []).append((ky * 3 + kx, s))
            max_s = max(max_s, abs(s))
    dx_groups = tuple((dx, tuple(tp)) for dx, tp in sorted(groups.items()))
    pad = _round_up(max_s, 16) if max_s > 0 else 0

    tile_rows = HW
    for cand in (512, 256, 128):
        if HW % cand == 0 and HW > cand:
            tile_rows = cand
            break

    b1_2 = b1.reshape(1, C1).astype(jnp.float32)
    b2_2 = b2.reshape(1, C2p).astype(jnp.float32)

    in_specs = []
    for s_arr in segs:
        in_specs.append(pl.BlockSpec((1, HW, s_arr.shape[-1]), lambda n: (n, 0, 0)))
    for w in w1_segs:
        in_specs.append(pl.BlockSpec((w.shape[0], C1), lambda n: (0, 0)))
    in_specs.append(pl.BlockSpec((1, C1), lambda n: (0, 0)))
    in_specs.append(pl.BlockSpec((9, C1, C2p), lambda n: (0, 0, 0)))
    in_specs.append(pl.BlockSpec((1, C2p), lambda n: (0, 0)))

    return pl.pallas_call(
        functools.partial(_dense_branch_kernel, nseg=len(segs),
                          dx_groups=dx_groups, pad=pad, hw=HW, w_img=W, c1=C1,
                          tile_rows=tile_rows, has_prev=has_prev),
        out_shape=jax.ShapeDtypeStruct((N, HW, C2p), jnp.bfloat16),
        grid=(N,),
        in_specs=in_specs,
        out_specs=pl.BlockSpec((1, HW, C2p), lambda n: (n, 0, 0)),
        scratch_shapes=[pltpu.VMEM((HW + 2 * pad, C1), jnp.bfloat16)],
        compiler_params=pltpu.CompilerParams(
            dimension_semantics=("parallel",),
            vmem_limit_bytes=VMEM_LIMIT),
    )(*segs, *w1_segs, b1_2, w2_taps, b2_2)


# ----------------------------------------------------------------------------
# Parameter initialization (deterministic, synthetic) with BN folding into the
# weights, bf16 casting and packed-buffer weight segments.
# ----------------------------------------------------------------------------
def _fold_bn(conv_bias, gamma, beta, mean, var):
    scale = gamma / jnp.sqrt(var + BN_EPS)
    bias = scale * (conv_bias - mean) + beta
    return scale, bias


def _pack_segments(w_full, m, inter2, in_channels, n_out):
    """Split a (64*m + in_channels, n_out) matrix whose rows follow the torch
    concat order [y_m, ..., y_1, x] into segment matrices matching the packed
    buffer inputs [P_m, P_{m-2}, ..., (P_2 or P_1), x] where P_j = [y_j|y_{j-1}]
    and P_1 = [y_1 | 0]."""
    def rows_of(i):                       # weight rows of y_i (i in 1..m)
        off = inter2 * (m - i)
        return w_full[off:off + inter2]

    segs = []
    j = m
    while j >= 2:
        segs.append(jnp.concatenate([rows_of(j), rows_of(j - 1)], axis=0))
        j -= 2
    if j == 1:
        segs.append(jnp.concatenate(
            [rows_of(1), jnp.zeros((inter2, n_out), w_full.dtype)], axis=0))
    segs.append(w_full[inter2 * m: inter2 * m + in_channels])
    return segs


def init_params(key, in_channels, class_num, inter1=256, inter2=64):
    rates = (3, 6, 12, 18, 24)
    i2p = _round_up(inter2, 128)      # lane-padded conv2 output channels (128)
    aspp = []
    for idx, rate in enumerate(rates):
        m = idx                        # number of previous branches
        in_c_k = in_channels + m * inter2
        ks = jax.random.split(jax.random.fold_in(key, idx), 12)
        # conv1: 1x1, in_c_k -> inter1 (rows ordered [y_m, ..., y_1, x])
        w1 = jax.random.normal(ks[0], (in_c_k, inter1), jnp.float32) * 0.05
        b1 = jax.random.normal(ks[1], (inter1,), jnp.float32) * 0.05
        g1 = 1.0 + 0.1 * jax.random.normal(ks[2], (inter1,), jnp.float32)
        be1 = 0.1 * jax.random.normal(ks[3], (inter1,), jnp.float32)
        m1 = 0.1 * jax.random.normal(ks[4], (inter1,), jnp.float32)
        v1 = jnp.abs(jax.random.normal(ks[5], (inter1,), jnp.float32)) + 0.5
        s1, bias1 = _fold_bn(b1, g1, be1, m1, v1)
        w1f = (w1 * s1[None, :]).astype(jnp.bfloat16)     # BN scale folded, bf16
        w1_segs = _pack_segments(w1f, m, inter2, in_channels, inter1)
        # conv2: 3x3 dilated, inter1 -> inter2 (torch layout (Cout, Cin, kh, kw))
        w2t = jax.random.normal(ks[6], (inter2, inter1, 3, 3), jnp.float32) * 0.05
        b2 = jax.random.normal(ks[7], (inter2,), jnp.float32) * 0.05
        g2 = 1.0 + 0.1 * jax.random.normal(ks[8], (inter2,), jnp.float32)
        be2 = 0.1 * jax.random.normal(ks[9], (inter2,), jnp.float32)
        m2 = 0.1 * jax.random.normal(ks[10], (inter2,), jnp.float32)
        v2 = jnp.abs(jax.random.normal(ks[11], (inter2,), jnp.float32)) + 0.5
        s2, bias2 = _fold_bn(b2, g2, be2, m2, v2)
        w2_hwio = jnp.transpose(w2t, (2, 3, 1, 0)) * s2          # (3,3,Cin,Cout)
        w2_hwio_bf = w2_hwio.astype(jnp.bfloat16)
        w2_taps = w2_hwio_bf.reshape(9, inter1, inter2)          # t = ky*3 + kx
        w2_taps = jnp.concatenate(
            [w2_taps, jnp.zeros((9, inter1, i2p - inter2), jnp.bfloat16)], axis=-1)
        bias2_p = jnp.concatenate([bias2, jnp.zeros((i2p - inter2,), jnp.float32)])
        aspp.append(dict(rate=rate, w1_segs=w1_segs, b1=bias1,
                         w2_taps=w2_taps, b2=bias2_p,
                         ref_w1=w1f.astype(jnp.float32),
                         ref_w2_hwio=w2_hwio_bf.astype(jnp.float32)))

    # final classifier: 1x1, (in_channels + 5*64) -> class_num, lane padded to 128
    kf = jax.random.split(jax.random.fold_in(key, 100), 2)
    c_final = in_channels + 5 * inter2
    cnp = _round_up(class_num, 128)
    wf = jax.random.normal(kf[0], (c_final, class_num), jnp.float32) * 0.05
    bfb = jax.random.normal(kf[1], (class_num,), jnp.float32) * 0.05
    wf_bf = wf.astype(jnp.bfloat16)
    wf_p = jnp.concatenate(
        [wf_bf, jnp.zeros((c_final, cnp - class_num), jnp.bfloat16)], axis=1)
    wf_segs = _pack_segments(wf_p, 5, inter2, in_channels, cnp)
    bf_p = jnp.concatenate([bfb, jnp.zeros((cnp - class_num,), jnp.float32)])
    return dict(aspp=aspp, wf_segs=wf_segs, bf=bf_p,
                ref_wf=wf_bf.astype(jnp.float32), class_num=class_num)


# ----------------------------------------------------------------------------
# Forward pass (Pallas) — mirrors _DenseASPPHead.forward in eval mode
# ----------------------------------------------------------------------------
def dense_aspp_head_forward(x_nchw, params):
    # TODO(synk): dropout (p=0.1 in each branch and before the classifier) is
    # identity here (eval/inference semantics).
    N, Cin, H, W = x_nchw.shape
    HW = H * W
    M = N * HW
    x_nhwc = jnp.transpose(x_nchw, (0, 2, 3, 1)).astype(jnp.bfloat16)
    x_img = x_nhwc.reshape(N, HW, Cin)        # per-image segment for branch kernels
    x_flat = x_nhwc.reshape(M, Cin)           # flat segment for the classifier

    packs = []    # packs[j-1] = P_j = [y_j | y_{j-1}] (P_1 = [y_1 | 0]), (N, HW, 128)
    for idx, p in enumerate(params["aspp"]):
        m = idx
        segs = []
        j = m
        while j >= 2:                         # [P_m, P_{m-2}, ...]
            segs.append(packs[j - 1])
            j -= 2
        if j == 1:
            segs.append(packs[0])
        segs.append(x_img)
        pk = dense_aspp_branch(segs, p["w1_segs"], p["b1"], p["w2_taps"], p["b2"],
                               H=H, W=W, rate=p["rate"], has_prev=(m >= 1))
        packs.append(pk)

    # classifier input segments: [P5, P3, P1, x]
    cls_segs = [packs[4].reshape(M, -1), packs[2].reshape(M, -1),
                packs[0].reshape(M, -1), x_flat]
    out = fused_concat_matmul(cls_segs, params["wf_segs"], params["bf"],
                              relu=False, out_dtype=jnp.float32)      # (M, 128)
    out = out[:, :params["class_num"]].reshape(N, H, W, -1)
    return jnp.transpose(out, (0, 3, 1, 2))   # NHWC -> NCHW


# ----------------------------------------------------------------------------
# Pure-JAX reference (same bf16 operand rounding as the kernels)
# ----------------------------------------------------------------------------
def ref_forward(x_nchw, params):
    bf = lambda a: a.astype(jnp.bfloat16).astype(jnp.float32)
    x = jnp.transpose(x_nchw, (0, 2, 3, 1)).astype(jnp.float32)
    feat = bf(x)
    for p in params["aspp"]:
        r = p["rate"]
        y = jnp.einsum("nhwc,cd->nhwd", bf(feat), p["ref_w1"],
                       precision="highest") + p["b1"]
        y = bf(jnp.maximum(y, 0.0))
        y2 = jax.lax.conv_general_dilated(
            y, p["ref_w2_hwio"], window_strides=(1, 1),
            padding=[(r, r), (r, r)], rhs_dilation=(r, r),
            dimension_numbers=("NHWC", "HWIO", "NHWC"), precision="highest")
        y2 = y2 + p["b2"][: y2.shape[-1]]
        y2 = bf(jnp.maximum(y2, 0.0))
        feat = jnp.concatenate([y2, feat], axis=-1)
    out = jnp.einsum("nhwc,cd->nhwd", bf(feat), params["ref_wf"],
                     precision="highest")
    out = out + params["bf"][: out.shape[-1]]
    return jnp.transpose(out, (0, 3, 1, 2))


if __name__ == "__main__":
    key = jax.random.PRNGKey(0)
    in_channels, class_num = 8, 5
    N, H, W = 2, 16, 16

    x = jax.random.normal(jax.random.fold_in(key, 999),
                          (N, in_channels, H, W), jnp.float32)
    params = init_params(key, in_channels, class_num)

    out = dense_aspp_head_forward(x, params)
    out = jax.block_until_ready(out)
    assert out.shape == (N, class_num, H, W), out.shape

    ref = jax.block_until_ready(ref_forward(x, params))
    max_err = float(jnp.max(jnp.abs(out - ref)))
    assert max_err < 1e-2, f"mismatch vs reference: max_err={max_err}"

    print("KERNEL_OK")
</pallas_src>

<mosaic_0001>
module attributes {stable_mosaic.version = 11 : i64} {
  func.func @_dense_branch_kernel(%arg0: i32, %arg1: memref<1x256x8xbf16, #tpu.memory_space<vmem>>, %arg2: memref<8x256xbf16, #tpu.memory_space<vmem>>, %arg3: memref<1x256xf32, #tpu.memory_space<vmem>>, %arg4: memref<9x256x128xbf16, #tpu.memory_space<vmem>>, %arg5: memref<1x128xf32, #tpu.memory_space<vmem>>, %arg6: memref<1x256x128xbf16, #tpu.memory_space<vmem>>, %arg7: memref<384x256xbf16, #tpu.memory_space<vmem>>) attributes {dimension_semantics = [#tpu.dimension_semantics<parallel>], iteration_bounds = array<i64: 2>, scalar_prefetch = 0 : i64, scratch_operands = 1 : i64, tpu.core_type = #tpu.core_type<tc>, window_params = [{transform_indices = @transform_0, window_bounds = array<i64: 1, 256, 8>}, {pipeline_mode = #tpu.pipeline_mode<synchronous>, transform_indices = @transform_1, window_bounds = array<i64: 8, 256>}, {pipeline_mode = #tpu.pipeline_mode<synchronous>, transform_indices = @transform_2, window_bounds = array<i64: 1, 256>}, {pipeline_mode = #tpu.pipeline_mode<synchronous>, transform_indices = @transform_3, window_bounds = array<i64: 9, 256, 128>}, {pipeline_mode = #tpu.pipeline_mode<synchronous>, transform_indices = @transform_4, window_bounds = array<i64: 1, 128>}, {transform_indices = @transform_5, window_bounds = array<i64: 1, 256, 128>}]} {
    %cst = arith.constant 0.000000e+00 : bf16
    %0 = vector.broadcast %cst : bf16 to vector<64x256xbf16>
    %c0 = arith.constant 0 : index
    %c0_0 = arith.constant 0 : index
    %1 = vector.load %arg7[%c0, %c0_0] : memref<384x256xbf16, #tpu.memory_space<vmem>>, vector<64x256xbf16>
    tpu.vector_store %arg7[%c0, %c0_0], %0 {strides = array<i32>} : memref<384x256xbf16, #tpu.memory_space<vmem>>, vector<64x256xbf16>,
    %cst_1 = arith.constant 0.000000e+00 : bf16
    %2 = vector.broadcast %cst_1 : bf16 to vector<64x256xbf16>
    %c320 = arith.constant 320 : index
    %c0_2 = arith.constant 0 : index
    %3 = vector.load %arg7[%c320, %c0_2] : memref<384x256xbf16, #tpu.memory_space<vmem>>, vector<64x256xbf16>
    tpu.vector_store %arg7[%c320, %c0_2], %2 {strides = array<i32>} : memref<384x256xbf16, #tpu.memory_space<vmem>>, vector<64x256xbf16>,
    %c0_3 = arith.constant 0 : index
    %c0_4 = arith.constant 0 : index
    %c0_5 = arith.constant 0 : index
    %4 = vector.load %arg1[%c0_3, %c0_4, %c0_5] : memref<1x256x8xbf16, #tpu.memory_space<vmem>>, vector<1x128x8xbf16>
    %5 = vector.shape_cast %4 : vector<1x128x8xbf16> to vector<128x8xbf16>
    %c0_6 = arith.constant 0 : index
    %c0_7 = arith.constant 0 : index
    %6 = vector.load %arg2[%c0_6, %c0_7] : memref<8x256xbf16, #tpu.memory_space<vmem>>, vector<8x256xbf16>
    %cst_8 = arith.constant dense<0.000000e+00> : vector<128x256xf32>
    %7 = tpu.matmul %5, %6, %cst_8 {dimension_numbers = #tpu.dot_dimension_numbers<[1], [0], [0], [1], [0, 0, 1, 1], [], []>} : vector<128x8xbf16>, vector<8x256xbf16>, vector<128x256xf32> -> vector<128x256xf32>
    %c0_9 = arith.constant 0 : index
    %c0_10 = arith.constant 0 : index
    %8 = vector.load %arg3[%c0_9, %c0_10] : memref<1x256xf32, #tpu.memory_space<vmem>>, vector<1x256xf32>
    %9 = vector.broadcast %8 : vector<1x256xf32> to vector<128x256xf32>
    %10 = arith.addf %7, %9 : vector<128x256xf32>
    %cst_11 = arith.constant 0.000000e+00 : f32
    %11 = vector.broadcast %cst_11 : f32 to vector<128x256xf32>
    %12 = arith.maximumf %10, %11 : vector<128x256xf32>
    %13 = arith.truncf %12 : vector<128x256xf32> to vector<128x256xbf16>
    %c64 = arith.constant 64 : index
    %c0_12 = arith.constant 0 : index
    %14 = vector.load %arg7[%c64, %c0_12] : memref<384x256xbf16, #tpu.memory_space<vmem>>, vector<128x256xbf16>
    tpu.vector_store %arg7[%c64, %c0_12], %13 {strides = array<i32>} : memref<384x256xbf16, #tpu.memory_space<vmem>>, vector<128x256xbf16>,
    %c0_13 = arith.constant 0 : index
    %c128 = arith.constant 128 : index
    %c0_14 = arith.constant 0 : index
    %15 = vector.load %arg1[%c0_13, %c128, %c0_14] : memref<1x256x8xbf16, #tpu.memory_space<vmem>>, vector<1x128x8xbf16>
    %16 = vector.shape_cast %15 : vector<1x128x8xbf16> to vector<128x8xbf16>
    %c0_15 = arith.constant 0 : index
    %c0_16 = arith.constant 0 : index
    %17 = vector.load %arg2[%c0_15, %c0_16] : memref<8x256xbf16, #tpu.memory_space<vmem>>, vector<8x256xbf16>
    %cst_17 = arith.constant dense<0.000000e+00> : vector<128x256xf32>
    %18 = tpu.matmul %16, %17, %cst_17 {dimension_numbers = #tpu.dot_dimension_numbers<[1], [0], [0], [1], [0, 0, 1, 1], [], []>} : vector<128x8xbf16>, vector<8x256xbf16>, vector<128x256xf32> -> vector<128x256xf32>
    %c0_18 = arith.constant 0 : index
    %c0_19 = arith.constant 0 : index
    %19 = vector.load %arg3[%c0_18, %c0_19] : memref<1x256xf32, #tpu.memory_space<vmem>>, vector<1x256xf32>
    %20 = vector.broadcast %19 : vector<1x256xf32> to vector<128x256xf32>
    %21 = arith.addf %18, %20 : vector<128x256xf32>
    %cst_20 = arith.constant 0.000000e+00 : f32
    %22 = vector.broadcast %cst_20 : f32 to vector<128x256xf32>
    %23 = arith.maximumf %21, %22 : vector<128x256xf32>
    %24 = arith.truncf %23 : vector<128x256xf32> to vector<128x256xbf16>
    %c192 = arith.constant 192 : index
    %c0_21 = arith.constant 0 : index
    %25 = vector.load %arg7[%c192, %c0_21] : memref<384x256xbf16, #tpu.memory_space<vmem>>, vector<128x256xbf16>
    tpu.vector_store %arg7[%c192, %c0_21], %24 {strides = array<i32>} : memref<384x256xbf16, #tpu.memory_space<vmem>>, vector<128x256xbf16>,
    %26 = tpu.iota {dimensions = array<i32: 0>} : vector<128x1xi32>
    %c0_i32 = arith.constant 0 : i32
    %27 = vector.broadcast %c0_i32 : i32 to vector<128x1xi32>
    %28 = arith.addi %26, %27 : vector<128x1xi32>
    %c16_i32 = arith.constant 16 : i32
    %c0_i32_22 = arith.constant 0 : i32
    %29 = arith.cmpi eq, %c16_i32, %c0_i32_22 : i32
    %c1_i32 = arith.constant 1 : i32
    %30 = arith.select %29, %c1_i32, %c16_i32 : i32
    %31 = vector.broadcast %30 : i32 to vector<128x1xi32>
    %32 = arith.remsi %28, %31 : vector<128x1xi32>
    %c0_i32_23 = arith.constant 0 : i32
    %33 = vector.broadcast %c0_i32_23 : i32 to vector<128x1xi32>
    %34 = arith.cmpi ne, %32, %33 : vector<128x1xi32>
    %c0_i32_24 = arith.constant 0 : i32
    %35 = vector.broadcast %c0_i32_24 : i32 to vector<128x1xi32>
    %36 = arith.cmpi slt, %32, %35 : vector<128x1xi32>
    %c0_i32_25 = arith.constant 0 : i32
    %37 = arith.cmpi slt, %30, %c0_i32_25 : i32
    %38 = vector.broadcast %37 : i1 to vector<128x1xi1>
    %39 = vector.broadcast %38 : vector<128x1xi1> to vector<128x1xi1>
    %40 = arith.xori %36, %39 : vector<128x1xi1>
    %41 = arith.andi %40, %34 : vector<128x1xi1>
    %42 = vector.broadcast %30 : i32 to vector<128x1xi32>
    %43 = arith.addi %32, %42 : vector<128x1xi32>
    %44 = arith.select %41, %43, %32 : vector<128x1xi1>, vector<128x1xi32>
    %c13 = arith.constant 13 : index
    %c0_26 = arith.constant 0 : index
    %45 = vector.load %arg7[%c13, %c0_26] : memref<384x256xbf16, #tpu.memory_space<vmem>>, vector<128x256xbf16>
    %c0_27 = arith.constant 0 : index
    %c0_28 = arith.constant 0 : index
    %c0_29 = arith.constant 0 : index
    %46 = vector.load %arg4[%c0_27, %c0_28, %c0_29] : memref<9x256x128xbf16, #tpu.memory_space<vmem>>, vector<1x256x128xbf16>
    %47 = vector.shape_cast %46 : vector<1x256x128xbf16> to vector<256x128xbf16>
    %cst_30 = arith.constant dense<0.000000e+00> : vector<128x128xf32>
    %48 = tpu.matmul %45, %47, %cst_30 {dimension_numbers = #tpu.dot_dimension_numbers<[1], [0], [0], [1], [0, 0, 1, 1], [], []>} : vector<128x256xbf16>, vector<256x128xbf16>, vector<128x128xf32> -> vector<128x128xf32>
    %c61 = arith.constant 61 : index
    %c0_31 = arith.constant 0 : index
    %49 = vector.load %arg7[%c61, %c0_31] : memref<384x256xbf16, #tpu.memory_space<vmem>>, vector<128x256xbf16>
    %c3 = arith.constant 3 : index
    %c0_32 = arith.constant 0 : index
    %c0_33 = arith.constant 0 : index
    %50 = vector.load %arg4[%c3, %c0_32, %c0_33] : memref<9x256x128xbf16, #tpu.memory_space<vmem>>, vector<1x256x128xbf16>
    %51 = vector.shape_cast %50 : vector<1x256x128xbf16> to vector<256x128xbf16>
    %cst_34 = arith.constant dense<0.000000e+00> : vector<128x128xf32>
    %52 = tpu.matmul %49, %51, %cst_34 {dimension_numbers = #tpu.dot_dimension_numbers<[1], [0], [0], [1], [0, 0, 1, 1], [], []>} : vector<128x256xbf16>, vector<256x128xbf16>, vector<128x128xf32> -> vector<128x128xf32>
    %53 = arith.addf %48, %52 : vector<128x128xf32>
    %c109 = arith.constant 109 : index
    %c0_35 = arith.constant 0 : index
    %54 = vector.load %arg7[%c109, %c0_35] : memref<384x256xbf16, #tpu.memory_space<vmem>>, vector<128x256xbf16>
    %c6 = arith.constant 6 : index
    %c0_36 = arith.constant 0 : index
    %c0_37 = arith.constant 0 : index
    %55 = vector.load %arg4[%c6, %c0_36, %c0_37] : memref<9x256x128xbf16, #tpu.memory_space<vmem>>, vector<1x256x128xbf16>
    %56 = vector.shape_cast %55 : vector<1x256x128xbf16> to vector<256x128xbf16>
    %cst_38 = arith.constant dense<0.000000e+00> : vector<128x128xf32>
    %57 = tpu.matmul %54, %56, %cst_38 {dimension_numbers = #tpu.dot_dimension_numbers<[1], [0], [0], [1], [0, 0, 1, 1], [], []>} : vector<128x256xbf16>, vector<256x128xbf16>, vector<128x128xf32> -> vector<128x128xf32>
    %58 = arith.addf %53, %57 : vector<128x128xf32>
    %c-3_i32 = arith.constant -3 : i32
    %59 = vector.broadcast %c-3_i32 : i32 to vector<128x1xi32>
    %60 = arith.addi %44, %59 : vector<128x1xi32>
    %c0_i32_39 = arith.constant 0 : i32
    %61 = vector.broadcast %c0_i32_39 : i32 to vector<128x1xi32>
    %62 = arith.cmpi sge, %60, %61 : vector<128x1xi32>
    %c-3_i32_40 = arith.constant -3 : i32
    %63 = vector.broadcast %c-3_i32_40 : i32 to vector<128x1xi32>
    %64 = arith.addi %44, %63 : vector<128x1xi32>
    %c16_i32_41 = arith.constant 16 : i32
    %65 = vector.broadcast %c16_i32_41 : i32 to vector<128x1xi32>
    %66 = arith.cmpi slt, %64, %65 : vector<128x1xi32>
    %67 = arith.andi %62, %66 : vector<128x1xi1>
    %cst_42 = arith.constant 0.000000e+00 : f32
    %68 = vector.shape_cast %67 : vector<128x1xi1> to vector<128x1xi1>
    %69 = vector.broadcast %68 : vector<128x1xi1> to vector<128x128xi1>
    %70 = vector.broadcast %cst_42 : f32 to vector<128x128xf32>
    %71 = arith.select %69, %58, %70 : vector<128x128xi1>, vector<128x128xf32>
    %c16 = arith.constant 16 : index
    %c0_43 = arith.constant 0 : index
    %72 = vector.load %arg7[%c16, %c0_43] : memref<384x256xbf16, #tpu.memory_space<vmem>>, vector<128x256xbf16>
    %c1 = arith.constant 1 : index
    %c0_44 = arith.constant 0 : index
    %c0_45 = arith.constant 0 : index
    %73 = vector.load %arg4[%c1, %c0_44, %c0_45] : memref<9x256x128xbf16, #tpu.memory_space<vmem>>, vector<1x256x128xbf16>
    %74 = vector.shape_cast %73 : vector<1x256x128xbf16> to vector<256x128xbf16>
    %cst_46 = arith.constant dense<0.000000e+00> : vector<128x128xf32>
    %75 = tpu.matmul %72, %74, %cst_46 {dimension_numbers = #tpu.dot_dimension_numbers<[1], [0], [0], [1], [0, 0, 1, 1], [], []>} : vector<128x256xbf16>, vector<256x128xbf16>, vector<128x128xf32> -> vector<128x128xf32>
    %c64_47 = arith.constant 64 : index
    %c0_48 = arith.constant 0 : index
    %76 = vector.load %arg7[%c64_47, %c0_48] : memref<384x256xbf16, #tpu.memory_space<vmem>>, vector<128x256xbf16>
    %c4 = arith.constant 4 : index
    %c0_49 = arith.constant 0 : index
    %c0_50 = arith.constant 0 : index
    %77 = vector.load %arg4[%c4, %c0_49, %c0_50] : memref<9x256x128xbf16, #tpu.memory_space<vmem>>, vector<1x256x128xbf16>
    %78 = vector.shape_cast %77 : vector<1x256x128xbf16> to vector<256x128xbf16>
    %cst_51 = arith.constant dense<0.000000e+00> : vector<128x128xf32>
    %79 = tpu.matmul %76, %78, %cst_51 {dimension_numbers = #tpu.dot_dimension_numbers<[1], [0], [0], [1], [0, 0, 1, 1], [], []>} : vector<128x256xbf16>, vector<256x128xbf16>, vector<128x128xf32> -> vector<128x128xf32>
    %80 = arith.addf %75, %79 : vector<128x128xf32>
    %c112 = arith.constant 112 : index
    %c0_52 = arith.constant 0 : index
    %81 = vector.load %arg7[%c112, %c0_52] : memref<384x256xbf16, #tpu.memory_space<vmem>>, vector<128x256xbf16>
    %c7 = arith.constant 7 : index
    %c0_53 = arith.constant 0 : index
    %c0_54 = arith.constant 0 : index
    %82 = vector.load %arg4[%c7, %c0_53, %c0_54] : memref<9x256x128xbf16, #tpu.memory_space<vmem>>, vector<1x256x128xbf16>
    %83 = vector.shape_cast %82 : vector<1x256x128xbf16> to vector<256x128xbf16>
    %cst_55 = arith.constant dense<0.000000e+00> : vector<128x128xf32>
    %84 = tpu.matmul %81, %83, %cst_55 {dimension_numbers = #tpu.dot_dimension_numbers<[1], [0], [0], [1], [0, 0, 1, 1], [], []>} : vector<128x256xbf16>, vector<256x128xbf16>, vector<128x128xf32> -> vector<128x128xf32>
    %85 = arith.addf %80, %84 : vector<128x128xf32>
    %86 = arith.addf %71, %85 : vector<128x128xf32>
    %c19 = arith.constant 19 : index
    %c0_56 = arith.constant 0 : index
    %87 = vector.load %arg7[%c19, %c0_56] : memref<384x256xbf16, #tpu.memory_space<vmem>>, vector<128x256xbf16>
    %c2 = arith.constant 2 : index
    %c0_57 = arith.constant 0 : index
    %c0_58 = arith.constant 0 : index
    %88 = vector.load %arg4[%c2, %c0_57, %c0_58] : memref<9x256x128xbf16, #tpu.memory_space<vmem>>, vector<1x256x128xbf16>
    %89 = vector.shape_cast %88 : vector<1x256x128xbf16> to vector<256x128xbf16>
    %cst_59 = arith.constant dense<0.000000e+00> : vector<128x128xf32>
    %90 = tpu.matmul %87, %89, %cst_59 {dimension_numbers = #tpu.dot_dimension_numbers<[1], [0], [0], [1], [0, 0, 1, 1], [], []>} : vector<128x256xbf16>, vector<256x128xbf16>, vector<128x128xf32> -> vector<128x128xf32>
    %c67 = arith.constant 67 : index
    %c0_60 = arith.constant 0 : index
    %91 = vector.load %arg7[%c67, %c0_60] : memref<384x256xbf16, #tpu.memory_space<vmem>>, vector<128x256xbf16>
    %c5 = arith.constant 5 : index
    %c0_61 = arith.constant 0 : index
    %c0_62 = arith.constant 0 : index
    %92 = vector.load %arg4[%c5, %c0_61, %c0_62] : memref<9x256x128xbf16, #tpu.memory_space<vmem>>, vector<1x256x128xbf16>
    %93 = vector.shape_cast %92 : vector<1x256x128xbf16> to vector<256x128xbf16>
    %cst_63 = arith.constant dense<0.000000e+00> : vector<128x128xf32>
    %94 = tpu.matmul %91, %93, %cst_63 {dimension_numbers = #tpu.dot_dimension_numbers<[1], [0], [0], [1], [0, 0, 1, 1], [], []>} : vector<128x256xbf16>, vector<256x128xbf16>, vector<128x128xf32> -> vector<128x128xf32>
    %95 = arith.addf %90, %94 : vector<128x128xf32>
    %c115 = arith.constant 115 : index
    %c0_64 = arith.constant 0 : index
    %96 = vector.load %arg7[%c115, %c0_64] : memref<384x256xbf16, #tpu.memory_space<vmem>>, vector<128x256xbf16>
    %c8 = arith.constant 8 : index
    %c0_65 = arith.constant 0 : index
    %c0_66 = arith.constant 0 : index
    %97 = vector.load %arg4[%c8, %c0_65, %c0_66] : memref<9x256x128xbf16, #tpu.memory_space<vmem>>, vector<1x256x128xbf16>
    %98 = vector.shape_cast %97 : vector<1x256x128xbf16> to vector<256x128xbf16>
    %cst_67 = arith.constant dense<0.000000e+00> : vector<128x128xf32>
    %99 = tpu.matmul %96, %98, %cst_67 {dimension_numbers = #tpu.dot_dimension_numbers<[1], [0], [0], [1], [0, 0, 1, 1], [], []>} : vector<128x256xbf16>, vector<256x128xbf16>, vector<128x128xf32> -> vector<128x128xf32>
    %100 = arith.addf %95, %99 : vector<128x128xf32>
    %c3_i32 = arith.constant 3 : i32
    %101 = vector.broadcast %c3_i32 : i32 to vector<128x1xi32>
    %102 = arith.addi %44, %101 : vector<128x1xi32>
    %c0_i32_68 = arith.constant 0 : i32
    %103 = vector.broadcast %c0_i32_68 : i32 to vector<128x1xi32>
    %104 = arith.cmpi sge, %102, %103 : vector<128x1xi32>
    %c3_i32_69 = arith.constant 3 : i32
    %105 = vector.broadcast %c3_i32_69 : i32 to vector<128x1xi32>
    %106 = arith.addi %44, %105 : vector<128x1xi32>
    %c16_i32_70 = arith.constant 16 : i32
    %107 = vector.broadcast %c16_i32_70 : i32 to vector<128x1xi32>
    %108 = arith.cmpi slt, %106, %107 : vector<128x1xi32>
    %109 = arith.andi %104, %108 : vector<128x1xi1>
    %cst_71 = arith.constant 0.000000e+00 : f32
    %110 = vector.shape_cast %109 : vector<128x1xi1> to vector<128x1xi1>
    %111 = vector.broadcast %110 : vector<128x1xi1> to vector<128x128xi1>
    %112 = vector.broadcast %cst_71 : f32 to vector<128x128xf32>
    %113 = arith.select %111, %100, %112 : vector<128x128xi1>, vector<128x128xf32>
    %114 = arith.addf %86, %113 : vector<128x128xf32>
    %c0_72 = arith.constant 0 : index
    %c0_73 = arith.constant 0 : index
    %115 = vector.load %arg5[%c0_72, %c0_73] : memref<1x128xf32, #tpu.memory_space<vmem>>, vector<1x128xf32>
    %116 = vector.broadcast %115 : vector<1x128xf32> to vector<128x128xf32>
    %117 = arith.addf %114, %116 : vector<128x128xf32>
    %cst_74 = arith.constant 0.000000e+00 : f32
    %118 = vector.broadcast %cst_74 : f32 to vector<128x128xf32>
    %119 = arith.maximumf %117, %118 : vector<128x128xf32>
    %120 = arith.truncf %119 : vector<128x128xf32> to vector<128x128xbf16>
    %c0_75 = arith.constant 0 : index
    %c0_76 = arith.constant 0 : index
    %c0_77 = arith.constant 0 : index
    %121 = vector.load %arg6[%c0_75, %c0_76, %c0_77] : memref<1x256x128xbf16, #tpu.memory_space<vmem>>, vector<1x128x128xbf16>
    %122 = vector.shape_cast %121 : vector<1x128x128xbf16> to vector<128x128xbf16>
    %123 = vector.shape_cast %120 : vector<128x128xbf16> to vector<1x128x128xbf16>
    tpu.vector_store %arg6[%c0_75, %c0_76, %c0_77], %123 {strides = array<i32>} : memref<1x256x128xbf16, #tpu.memory_space<vmem>>, vector<1x128x128xbf16>,
    %124 = tpu.iota {dimensions = array<i32: 0>} : vector<128x1xi32>
    %c128_i32 = arith.constant 128 : i32
    %125 = vector.broadcast %c128_i32 : i32 to vector<128x1xi32>
    %126 = arith.addi %124, %125 : vector<128x1xi32>
    %c16_i32_78 = arith.constant 16 : i32
    %c0_i32_79 = arith.constant 0 : i32
    %127 = arith.cmpi eq, %c16_i32_78, %c0_i32_79 : i32
    %c1_i32_80 = arith.constant 1 : i32
    %128 = arith.select %127, %c1_i32_80, %c16_i32_78 : i32
    %129 = vector.broadcast %128 : i32 to vector<128x1xi32>
    %130 = arith.remsi %126, %129 : vector<128x1xi32>
    %c0_i32_81 = arith.constant 0 : i32
    %131 = vector.broadcast %c0_i32_81 : i32 to vector<128x1xi32>
    %132 = arith.cmpi ne, %130, %131 : vector<128x1xi32>
    %c0_i32_82 = arith.constant 0 : i32
    %133 = vector.broadcast %c0_i32_82 : i32 to vector<128x1xi32>
    %134 = arith.cmpi slt, %130, %133 : vector<128x1xi32>
    %c0_i32_83 = arith.constant 0 : i32
    %135 = arith.cmpi slt, %128, %c0_i32_83 : i32
    %136 = vector.broadcast %135 : i1 to vector<128x1xi1>
    %137 = vector.broadcast %136 : vector<128x1xi1> to vector<128x1xi1>
    %138 = arith.xori %134, %137 : vector<128x1xi1>
    %139 = arith.andi %138, %132 : vector<128x1xi1>
    %140 = vector.broadcast %128 : i32 to vector<128x1xi32>
    %141 = arith.addi %130, %140 : vector<128x1xi32>
    %142 = arith.select %139, %141, %130 : vector<128x1xi1>, vector<128x1xi32>
    %c141 = arith.constant 141 : index
    %c0_84 = arith.constant 0 : index
    %143 = vector.load %arg7[%c141, %c0_84] : memref<384x256xbf16, #tpu.memory_space<vmem>>, vector<128x256xbf16>
    %c0_85 = arith.constant 0 : index
    %c0_86 = arith.constant 0 : index
    %c0_87 = arith.constant 0 : index
    %144 = vector.load %arg4[%c0_85, %c0_86, %c0_87] : memref<9x256x128xbf16, #tpu.memory_space<vmem>>, vector<1x256x128xbf16>
    %145 = vector.shape_cast %144 : vector<1x256x128xbf16> to vector<256x128xbf16>
    %cst_88 = arith.constant dense<0.000000e+00> : vector<128x128xf32>
    %146 = tpu.matmul %143, %145, %cst_88 {dimension_numbers = #tpu.dot_dimension_numbers<[1], [0], [0], [1], [0, 0, 1, 1], [], []>} : vector<128x256xbf16>, vector<256x128xbf16>, vector<128x128xf32> -> vector<128x128xf32>
    %c189 = arith.constant 189 : index
    %c0_89 = arith.constant 0 : index
    %147 = vector.load %arg7[%c189, %c0_89] : memref<384x256xbf16, #tpu.memory_space<vmem>>, vector<128x256xbf16>
    %c3_90 = arith.constant 3 : index
    %c0_91 = arith.constant 0 : index
    %c0_92 = arith.constant 0 : index
    %148 = vector.load %arg4[%c3_90, %c0_91, %c0_92] : memref<9x256x128xbf16, #tpu.memory_space<vmem>>, vector<1x256x128xbf16>
    %149 = vector.shape_cast %148 : vector<1x256x128xbf16> to vector<256x128xbf16>
    %cst_93 = arith.constant dense<0.000000e+00> : vector<128x128xf32>
    %150 = tpu.matmul %147, %149, %cst_93 {dimension_numbers = #tpu.dot_dimension_numbers<[1], [0], [0], [1], [0, 0, 1, 1], [], []>} : vector<128x256xbf16>, vector<256x128xbf16>, vector<128x128xf32> -> vector<128x128xf32>
    %151 = arith.addf %146, %150 : vector<128x128xf32>
    %c237 = arith.constant 237 : index
    %c0_94 = arith.constant 0 : index
    %152 = vector.load %arg7[%c237, %c0_94] : memref<384x256xbf16, #tpu.memory_space<vmem>>, vector<128x256xbf16>
    %c6_95 = arith.constant 6 : index
    %c0_96 = arith.constant 0 : index
    %c0_97 = arith.constant 0 : index
    %153 = vector.load %arg4[%c6_95, %c0_96, %c0_97] : memref<9x256x128xbf16, #tpu.memory_space<vmem>>, vector<1x256x128xbf16>
    %154 = vector.shape_cast %153 : vector<1x256x128xbf16> to vector<256x128xbf16>
    %cst_98 = arith.constant dense<0.000000e+00> : vector<128x128xf32>
    %155 = tpu.matmul %152, %154, %cst_98 {dimension_numbers = #tpu.dot_dimension_numbers<[1], [0], [0], [1], [0, 0, 1, 1], [], []>} : vector<128x256xbf16>, vector<256x128xbf16>, vector<128x128xf32> -> vector<128x128xf32>
    %156 = arith.addf %151, %155 : vector<128x128xf32>
    %c-3_i32_99 = arith.constant -3 : i32
    %157 = vector.broadcast %c-3_i32_99 : i32 to vector<128x1xi32>
    %158 = arith.addi %142, %157 : vector<128x1xi32>
    %c0_i32_100 = arith.constant 0 : i32
    %159 = vector.broadcast %c0_i32_100 : i32 to vector<128x1xi32>
    %160 = arith.cmpi sge, %158, %159 : vector<128x1xi32>
    %c-3_i32_101 = arith.constant -3 : i32
    %161 = vector.broadcast %c-3_i32_101 : i32 to vector<128x1xi32>
    %162 = arith.addi %142, %161 : vector<128x1xi32>
    %c16_i32_102 = arith.constant 16 : i32
    %163 = vector.broadcast %c16_i32_102 : i32 to vector<128x1xi32>
    %164 = arith.cmpi slt, %162, %163 : vector<128x1xi32>
    %165 = arith.andi %160, %164 : vector<128x1xi1>
    %cst_103 = arith.constant 0.000000e+00 : f32
    %166 = vector.shape_cast %165 : vector<128x1xi1> to vector<128x1xi1>
    %167 = vector.broadcast %166 : vector<128x1xi1> to vector<128x128xi1>
    %168 = vector.broadcast %cst_103 : f32 to vector<128x128xf32>
    %169 = arith.select %167, %156, %168 : vector<128x128xi1>, vector<128x128xf32>
    %c144 = arith.constant 144 : index
    %c0_104 = arith.constant 0 : index
    %170 = vector.load %arg7[%c144, %c0_104] : memref<384x256xbf16, #tpu.memory_space<vmem>>, vector<128x256xbf16>
    %c1_105 = arith.constant 1 : index
    %c0_106 = arith.constant 0 : index
    %c0_107 = arith.constant 0 : index
    %171 = vector.load %arg4[%c1_105, %c0_106, %c0_107] : memref<9x256x128xbf16, #tpu.memory_space<vmem>>, vector<1x256x128xbf16>
    %172 = vector.shape_cast %171 : vector<1x256x128xbf16> to vector<256x128xbf16>
    %cst_108 = arith.constant dense<0.000000e+00> : vector<128x128xf32>
    %173 = tpu.matmul %170, %172, %cst_108 {dimension_numbers = #tpu.dot_dimension_numbers<[1], [0], [0], [1], [0, 0, 1, 1], [], []>} : vector<128x256xbf16>, vector<256x128xbf16>, vector<128x128xf32> -> vector<128x128xf32>
    %c192_109 = arith.constant 192 : index
    %c0_110 = arith.constant 0 : index
    %174 = vector.load %arg7[%c192_109, %c0_110] : memref<384x256xbf16, #tpu.memory_space<vmem>>, vector<128x256xbf16>
    %c4_111 = arith.constant 4 : index
    %c0_112 = arith.constant 0 : index
    %c0_113 = arith.constant 0 : index
    %175 = vector.load %arg4[%c4_111, %c0_112, %c0_113] : memref<9x256x128xbf16, #tpu.memory_space<vmem>>, vector<1x256x128xbf16>
    %176 = vector.shape_cast %175 : vector<1x256x128xbf16> to vector<256x128xbf16>
    %cst_114 = arith.constant dense<0.000000e+00> : vector<128x128xf32>
    %177 = tpu.matmul %174, %176, %cst_114 {dimension_numbers = #tpu.dot_dimension_numbers<[1], [0], [0], [1], [0, 0, 1, 1], [], []>} : vector<128x256xbf16>, vector<256x128xbf16>, vector<128x128xf32> -> vector<128x128xf32>
    %178 = arith.addf %173, %177 : vector<128x128xf32>
    %c240 = arith.constant 240 : index
    %c0_115 = arith.constant 0 : index
    %179 = vector.load %arg7[%c240, %c0_115] : memref<384x256xbf16, #tpu.memory_space<vmem>>, vector<128x256xbf16>
    %c7_116 = arith.constant 7 : index
    %c0_117 = arith.constant 0 : index
    %c0_118 = arith.constant 0 : index
    %180 = vector.load %arg4[%c7_116, %c0_117, %c0_118] : memref<9x256x128xbf16, #tpu.memory_space<vmem>>, vector<1x256x128xbf16>
    %181 = vector.shape_cast %180 : vector<1x256x128xbf16> to vector<256x128xbf16>
    %cst_119 = arith.constant dense<0.000000e+00> : vector<128x128xf32>
    %182 = tpu.matmul %179, %181, %cst_119 {dimension_numbers = #tpu.dot_dimension_numbers<[1], [0], [0], [1], [0, 0, 1, 1], [], []>} : vector<128x256xbf16>, vector<256x128xbf16>, vector<128x128xf32> -> vector<128x128xf32>
    %183 = arith.addf %178, %182 : vector<128x128xf32>
    %184 = arith.addf %169, %183 : vector<128x128xf32>
    %c147 = arith.constant 147 : index
    %c0_120 = arith.constant 0 : index
    %185 = vector.load %arg7[%c147, %c0_120] : memref<384x256xbf16, #tpu.memory_space<vmem>>, vector<128x256xbf16>
    %c2_121 = arith.constant 2 : index
    %c0_122 = arith.constant 0 : index
    %c0_123 = arith.constant 0 : index
    %186 = vector.load %arg4[%c2_121, %c0_122, %c0_123] : memref<9x256x128xbf16, #tpu.memory_space<vmem>>, vector<1x256x128xbf16>
    %187 = vector.shape_cast %186 : vector<1x256x128xbf16> to vector<256x128xbf16>
    %cst_124 = arith.constant dense<0.000000e+00> : vector<128x128xf32>
    %188 = tpu.matmul %185, %187, %cst_124 {dimension_numbers = #tpu.dot_dimension_numbers<[1], [0], [0], [1], [0, 0, 1, 1], [], []>} : vector<128x256xbf16>, vector<256x128xbf16>, vector<128x128xf32> -> vector<128x128xf32>
    %c195 = arith.constant 195 : index
    %c0_125 = arith.constant 0 : index
    %189 = vector.load %arg7[%c195, %c0_125] : memref<384x256xbf16, #tpu.memory_space<vmem>>, vector<128x256xbf16>
    %c5_126 = arith.constant 5 : index
    %c0_127 = arith.constant 0 : index
    %c0_128 = arith.constant 0 : index
    %190 = vector.load %arg4[%c5_126, %c0_127, %c0_128] : memref<9x256x128xbf16, #tpu.memory_space<vmem>>, vector<1x256x128xbf16>
    %191 = vector.shape_cast %190 : vector<1x256x128xbf16> to vector<256x128xbf16>
    %cst_129 = arith.constant dense<0.000000e+00> : vector<128x128xf32>
    %192 = tpu.matmul %189, %191, %cst_129 {dimension_numbers = #tpu.dot_dimension_numbers<[1], [0], [0], [1], [0, 0, 1, 1], [], []>} : vector<128x256xbf16>, vector<256x128xbf16>, vector<128x128xf32> -> vector<128x128xf32>
    %193 = arith.addf %188, %192 : vector<128x128xf32>
    %c243 = arith.constant 243 : index
    %c0_130 = arith.constant 0 : index
    %194 = vector.load %arg7[%c243, %c0_130] : memref<384x256xbf16, #tpu.memory_space<vmem>>, vector<128x256xbf16>
    %c8_131 = arith.constant 8 : index
    %c0_132 = arith.constant 0 : index
    %c0_133 = arith.constant 0 : index
    %195 = vector.load %arg4[%c8_131, %c0_132, %c0_133] : memref<9x256x128xbf16, #tpu.memory_space<vmem>>, vector<1x256x128xbf16>
    %196 = vector.shape_cast %195 : vector<1x256x128xbf16> to vector<256x128xbf16>
    %cst_134 = arith.constant dense<0.000000e+00> : vector<128x128xf32>
    %197 = tpu.matmul %194, %196, %cst_134 {dimension_numbers = #tpu.dot_dimension_numbers<[1], [0], [0], [1], [0, 0, 1, 1], [], []>} : vector<128x256xbf16>, vector<256x128xbf16>, vector<128x128xf32> -> vector<128x128xf32>
    %198 = arith.addf %193, %197 : vector<128x128xf32>
    %c3_i32_135 = arith.constant 3 : i32
    %199 = vector.broadcast %c3_i32_135 : i32 to vector<128x1xi32>
    %200 = arith.addi %142, %199 : vector<128x1xi32>
    %c0_i32_136 = arith.constant 0 : i32
    %201 = vector.broadcast %c0_i32_136 : i32 to vector<128x1xi32>
    %202 = arith.cmpi sge, %200, %201 : vector<128x1xi32>
    %c3_i32_137 = arith.constant 3 : i32
    %203 = vector.broadcast %c3_i32_137 : i32 to vector<128x1xi32>
    %204 = arith.addi %142, %203 : vector<128x1xi32>
    %c16_i32_138 = arith.constant 16 : i32
    %205 = vector.broadcast %c16_i32_138 : i32 to vector<128x1xi32>
    %206 = arith.cmpi slt, %204, %205 : vector<128x1xi32>
    %207 = arith.andi %202, %206 : vector<128x1xi1>
    %cst_139 = arith.constant 0.000000e+00 : f32
    %208 = vector.shape_cast %207 : vector<128x1xi1> to vector<128x1xi1>
    %209 = vector.broadcast %208 : vector<128x1xi1> to vector<128x128xi1>
    %210 = vector.broadcast %cst_139 : f32 to vector<128x128xf32>
    %211 = arith.select %209, %198, %210 : vector<128x128xi1>, vector<128x128xf32>
    %212 = arith.addf %184, %211 : vector<128x128xf32>
    %c0_140 = arith.constant 0 : index
    %c0_141 = arith.constant 0 : index
    %213 = vector.load %arg5[%c0_140, %c0_141] : memref<1x128xf32, #tpu.memory_space<vmem>>, vector<1x128xf32>
    %214 = vector.broadcast %213 : vector<1x128xf32> to vector<128x128xf32>
    %215 = arith.addf %212, %214 : vector<128x128xf32>
    %cst_142 = arith.constant 0.000000e+00 : f32
    %216 = vector.broadcast %cst_142 : f32 to vector<128x128xf32>
    %217 = arith.maximumf %215, %216 : vector<128x128xf32>
    %218 = arith.truncf %217 : vector<128x128xf32> to vector<128x128xbf16>
    %c0_143 = arith.constant 0 : index
    %c128_144 = arith.constant 128 : index
    %c0_145 = arith.constant 0 : index
    %219 = vector.load %arg6[%c0_143, %c128_144, %c0_145] : memref<1x256x128xbf16, #tpu.memory_space<vmem>>, vector<1x128x128xbf16>
    %220 = vector.shape_cast %219 : vector<1x128x128xbf16> to vector<128x128xbf16>
    %221 = vector.shape_cast %218 : vector<128x128xbf16> to vector<1x128x128xbf16>
    tpu.vector_store %arg6[%c0_143, %c128_144, %c0_145], %221 {strides = array<i32>} : memref<1x256x128xbf16, #tpu.memory_space<vmem>>, vector<1x128x128xbf16>,
    return
  }
  func.func @transform_0(%arg0: i32) -> (i32, i32, i32) {
    %c0_i32 = arith.constant 0 : i32
    %c0_i32_0 = arith.constant 0 : i32
    %c0_i32_1 = arith.constant 0 : i32
    return %arg0, %c0_i32, %c0_i32_0 : i32, i32, i32
  }
  func.func @transform_1(%arg0: i32) -> (i32, i32) {
    %c0_i32 = arith.constant 0 : i32
    %c0_i32_0 = arith.constant 0 : i32
    %c0_i32_1 = arith.constant 0 : i32
    return %c0_i32, %c0_i32_0 : i32, i32
  }
  func.func @transform_2(%arg0: i32) -> (i32, i32) {
    %c0_i32 = arith.constant 0 : i32
    %c0_i32_0 = arith.constant 0 : i32
    %c0_i32_1 = arith.constant 0 : i32
    return %c0_i32, %c0_i32_0 : i32, i32
  }
  func.func @transform_3(%arg0: i32) -> (i32, i32, i32) {
    %c0_i32 = arith.constant 0 : i32
    %c0_i32_0 = arith.constant 0 : i32
    %c0_i32_1 = arith.constant 0 : i32
    %c0_i32_2 = arith.constant 0 : i32
    return %c0_i32, %c0_i32_0, %c0_i32_1 : i32, i32, i32
  }
  func.func @transform_4(%arg0: i32) -> (i32, i32) {
    %c0_i32 = arith.constant 0 : i32
    %c0_i32_0 = arith.constant 0 : i32
    %c0_i32_1 = arith.constant 0 : i32
    return %c0_i32, %c0_i32_0 : i32, i32
  }
  func.func @transform_5(%arg0: i32) -> (i32, i32, i32) {
    %c0_i32 = arith.constant 0 : i32
    %c0_i32_0 = arith.constant 0 : i32
    %c0_i32_1 = arith.constant 0 : i32
    return %arg0, %c0_i32, %c0_i32_0 : i32, i32, i32
  }
}

</mosaic_0001>

<bundles_post_ra>
// kernel: tpu_custom_call.1
= control target key start
LH: loop header
LB: loop body
LE: loop exit
PB: predicated region body
PF: predicated region fallthrough
CT: control target
= control target key end

     0   :  { %10 = vsyncpa [#allocation4], 0  ;;  %s14861_s0 = inlined_call_operand.vmem [shape: bf16[2,256,8], index: 0, kind: input, shape index: {}]   ;;  %s14862_s1 = inlined_call_operand.vmem [shape: bf16[8,256], index: 1, kind: input, shape index: {}]   ;;  %s14863_s2 = inlined_call_operand.vmem [shape: f32[1,256], index: 2, kind: input, shape index: {}]   ;;  %s14864_s3 = inlined_call_operand.hbm [shape: bf16[9,256,128], index: 3, kind: input, shape index: {}]   ;;  %s14865_s4 = inlined_call_operand.vmem [shape: f32[1,128], index: 4, kind: input, shape index: {}]   ;;  %s14866_s5 = inlined_call_operand.hbm [shape: bf16[2,256,128], index: 5, kind: output, shape index: {}]  }
   0x1   :  { %11 = vsyncpa [#allocation5], 0 }
   0x2   :  { %13 = vsyncpa [#allocation5 + $0x1], 0  ;;  %s11900_s18 = smov 0   ;;  %s11902_s19 = smov 0  }
   0x3   :  { %s11904_s20 = smov 0   ;;  %s11906_s21 = smov 0  }
   0x4 LB: > { %s11921_s22 = sadd.s32 4294967295, %s11861_s21   ;;  %s9238_s23 = sadd.s32 4294967294, %s11861_s21   ;;  %s11861_s21 = sphi %s11906_s21, %s15365_s21   ;;  %s11857_s20 = sphi %s11904_s20, %s15364_s20   ;;  %s11853_s19 = sphi %s11902_s19, %s15363_s19   ;;  %s11849_s18 = sphi %s11900_s18, %s15362_s18  }
   0x5   : > { %s11925_s24 = sadd.s32 1, %s11861_s21   ;;  %s136_s25 = sadd.s32 1, %s11857_s20 }
   0x6   : > { %s133_s26 = ssub.s32 %s11861_s21, %s11925_s24  ;;  %p146_p0 = scmp.ne.s32.totalorder %s11857_s20, %s11853_s19 }
   0x7   : > { %p134_p1 = scmp.eq.s32.totalorder %s133_s26, 0  ;;  %p147_p2 = scmp.eq.s32.totalorder %s11921_s22, 1 }
   0x8   : > { %p152_p3 = scmp.ne.s32.totalorder %s11853_s19, %s11849_s18  ;;  %p153_p4 = scmp.eq.s32.totalorder %s9238_s23, 1 }
   0x9   : > { %s11936_s27 = scalar_select %p134_p1, %s11857_s20, %s136_s25  }
   0xa   : > { %p11938_p5 = por %p147_p2, %p146_p0  ;;  %p11942_p6 = por %p153_p4, %p152_p3 }
   0xb   : > { %p9239_p7 = scmp.ge.s32.totalorder %s11861_s21, 1  ;;  %p160_p8 = scmp.lt.s32.totalorder %s11861_s21, 3 }
   0xc   : > { %s14963_s29 = scalar_select %p11942_p6, 1, 0 }
   0xd   : > { %p11235_p9 = scmp.eq.s32.totalorder %s11921_s22, 0  ;;  %p11949_p10 = pnand %p9239_p7, %p160_p8 }
   0xe   : > { %s11863_s6 = smov [#allocation3]  }
   0xf   : > { %s178_s7 = sshll.u32 %s11863_s6, 4  ;;  %p11227_p11 = pneg %p11949_p10  ;;  %s179_s7 = int_to_ptr.vmem [resolvable:$true] %s178_s7 }
  0x10   : > { %s11782_s8 = scalar_lea.vmem %s179_s7, 18432  ;;  %p11790_p3 = scmp.lt.s32.totalorder %s179_s7, %s179_s7 }
  0x11   : > { %p11228_p12 = pnand %p11235_p9, %p11227_p11  ;;  %p11783_p0 = scmp.ne.s32.totalorder %s179_s7, %s11782_s8 }
  0x12   : > { %p11791_p4 = scmp.lt.s32.totalorder %s11782_s8, %s11782_s8 }
  0x13   : > { %p11773_p13 = pneg %p11228_p12 }
  0x14   : > { %p11792_p6 = por %p11791_p4, %p11790_p3 }
  0x15   : > { %p11785_p1 = pnand %p11783_p0, %p11773_p13 }
  0x17   : > { %p11786_p2 = pneg %p11785_p1 }
  0x19   : > { %p11793_p7 = pnand %p11792_p6, %p11786_p2 }
  0x1b   : > { %11796 = shalt.err (!%p11793_p7)
}
  0x1c   : > { %s11864_s9 = smov 64   ;;  %s11865_s10 = smov 4  }
  0x1d   : > { %11230 = dma.hbm_to_vmem [thread:$0]  (!%p11228_p12), %s14864_s3, 18432, %s179_s7, [#allocation4], %s11864_s9, %s11864_s9, %s11865_s10  }
  0x1e   : > { %205 = sbr.rel (%p11949_p10) target bundleno = 1063 (0x427), region = 40 }
  0x23   : > { %11840 = dma.done.wait (%p11235_p9), [#allocation4], 18432  }
  0x24   : > { %11842 = vsyncadd (%p11235_p9), [#allocation4], 4294948864  ;;  %p233_p8 = scmp.lt.s32.totalorder %s11921_s22, 1  ;;  %v11866_v0 = vmov 0   ;;  %v271_v1 = vld [vmem:[%s14862_s1] sm:$0xff]  ;;  %vm354_vm0 = vcmask 1043456  }
  0x25   : > { %239 = vst [vmem:[#allocation2 + $0x70] sm:$0xff] %v11866_v0  ;;  %393 = vmatprep.mubr.bf16.mxu0 %v11866_v0  ;;  %240 = vst [vmem:[#allocation2 + $0x90] sm:$0xff] %v11866_v0  ;;  %754 = vmatprep.mubr.bf16.mxu1 %v11866_v0  ;;  %v9256_v2 = vcombine.high %v271_v1, %v271_v1  ;;  %v9255_v3 = vcombine.low %v271_v1, %v271_v1  ;;  %vm329_vm1 = vcmask 64512   ;;  %v11291_v9 = vld [vmem:[#allocation3 + $0x1f8] sm:$0xff]   ;;  %v11295_v14 = vld [vmem:[#allocation3 + $0x1f0] sm:$0xff]   ;;  %s230_s10 = sand.u32 1, %s11853_s19  }
  0x26   : > { %241 = vst [vmem:[#allocation2 + $0x10] sm:$0xff] %v11866_v0  ;;  %246 = vst [vmem:[#allocation2 + $0x138] sm:$0xff] %v11866_v0  ;;  %s234_s13 = scalar_select %p233_p8, %s11921_s22, 1  ;;  %v11292_v10 = vld [vmem:[#allocation3 + $0x1b8] sm:$0xff]   ;;  %v11296_v15 = vld [vmem:[#allocation3 + $0x1b0] sm:$0xff]   ;;  %v9354_v44 = vcombine.high %v11866_v0, %v11866_v0  ;;  %v9353_v47 = vcombine.low %v11866_v0, %v11866_v0 }
  0x27   : > { %247 = vst [vmem:[#allocation2 + $0xc8] sm:$0xff] %v11866_v0  ;;  %252 = vst [vmem:[#allocation2 + $0xc0] sm:$0xff] %v11866_v0  ;;  %9257 = vmatprep.subr.msk.bf16.mxu0 %vm354_vm0, %v9256_v2  ;;  %v356_v4 = vsel %vm354_vm0, %v9255_v3, 0  ;;  %9292 = vmatprep.subr.msk.bf16.mxu1 %vm354_vm0, %v9256_v2  ;;  %v11293_v11 = vld [vmem:[#allocation3 + $0x78] sm:$0xff]   ;;  %v11297_v17 = vld [vmem:[#allocation3 + $0x70] sm:$0xff]   ;;  %s13865_s11 = sshll.u32 %s230_s10, 7 }
  0x28   : > { %253 = vst [vmem:[#allocation2 + $0x158] sm:$0xff] %v11866_v0  ;;  %s9908_s14 = sshll.u32 %s234_s13, 7  ;;  %376 = vmatpush1.bf16.msra.mxu0 %v356_v4  ;;  %737 = vmatpush1.bf16.msra.mxu1 %v356_v4  ;;  %v11294_v13 = vld [vmem:[#allocation3 + $0x38] sm:$0xff]   ;;  %v11298_v18 = vld [vmem:[#allocation3 + $0x30] sm:$0xff]   ;;  %v11299_v19 = vld [vmem:[#allocation3 + $0x1e8] sm:$0xff]   ;;  %v1777_v50 = vshrl.u32 %v9354_v44, 16 }
  0x29   : > { %s11980_s17 = scalar_lea.vmem %s14861_s0, %s9908_s14  ;;  %10069 = vmatprep.subr.bf16.mxu0 %v11291_v9  ;;  %10133 = vmatprep.subr.bf16.mxu1 %v11293_v11  ;;  %v11301_v20 = vld [vmem:[#allocation3 + $0x1a8] sm:$0xff]   ;;  %v11304_v24 = vld [vmem:[#allocation3 + $0x60] sm:$0xff]   ;;  %v11309_v29 = vld [vmem:[#allocation3 + $0x58] sm:$0xff]   ;;  %v1780_v51 = vshll.u32 %v9354_v44, 16  ;;  %v1760_v54 = vshrl.u32 %v9353_v47, 16  ;;  %v1763_v55 = vshll.u32 %v9353_v47, 16 }
  0x2a   : > { %v11278_v5 = vld [vmem:[%s11980_s17] sm:$0xff]   ;;  %v11279_v7 = vld [vmem:[%s11980_s17 + $0x8] sm:$0xff]   ;;  %v11280_v12 = vld [vmem:[%s11980_s17 + $0x10] sm:$0xff]   ;;  %v1779_v59 = vrot.slane %v1777_v50, 2  ;;  %vm1347_vm2 = vsmask.f32 5376 }
  0x2b   : > { %9258 = vmatmul.mubr.msk.bf16.vlgmr.msra.gmra.mxu0 %vm329_vm1, %v11278_v5  ;;  %v11285_v6 = vld [vmem:[%s11980_s17 + $0x40] sm:$0xff]   ;;  %v11287_v8 = vld [vmem:[%s11980_s17 + $0x48] sm:$0xff]   ;;  %v11288_v16 = vld [vmem:[%s11980_s17 + $0x50] sm:$0xff]   ;;  %v1782_v60 = vrot.slane %v1780_v51, 3  ;;  %v1765_v1 = vrot.slane %v1763_v55, 3  ;;  %s13896_s12 = scalar_lea.vmem [#allocation6], %s13865_s11 }
  0x2c   : > { %403 = vmatprep.mubr.bf16.mxu0 %v11866_v0  ;;  %9293 = vmatmul.mubr.msk.bf16.vlgmr.msra.gmra.mxu1 %vm329_vm1, %v11285_v6  ;;  %v11281_v21 = vld [vmem:[%s11980_s17 + $0x18] sm:$0xff]   ;;  %v11302_v22 = vld [vmem:[#allocation3 + $0x68] sm:$0xff]   ;;  %v11305_v25 = vld [vmem:[#allocation3 + $0x20] sm:$0xff]   ;;  %vm3622_vm3 = vsmask.f32 6400  ;;  %s9973_s15 = sshll.u32 %s11921_s22, 11 }
  0x2d   : > { %764 = vmatprep.mubr.bf16.mxu1 %v11866_v0  ;;  %10070 = vmatpush3.bf16.msra.mxu0 %v11292_v10  ;;  %v11303_v23 = vld [vmem:[#allocation3 + $0x28] sm:$0xff]   ;;  %v11306_v26 = vld [vmem:[#allocation3 + $0x1e0] sm:$0xff]   ;;  %v11289_v27 = vld [vmem:[%s11980_s17 + $0x58] sm:$0xff]   ;;  %v12037_v3 = vor.u32 %v1782_v60, %v1779_v59  ;;  %s9164_s16 = sshll.u32 %s13896_s12, 4  ;;  %s14814_s25 = scalar_lea.hbm %s14866_s5, %s9973_s15  ;;  %s14816_s16 = int_to_ptr.vmem [resolvable:$true] %s9164_s16 }
  0x2e   : > { %10134 = vmatpush3.bf16.msra.mxu1 %v11294_v13  ;;  %10071 = vmatprep.subr.bf16.mxu0 %v11295_v14  ;;  %v11308_v28 = vld [vmem:[#allocation3 + $0x1a0] sm:$0xff]   ;;  %v11310_v30 = vld [vmem:[#allocation3 + $0x18] sm:$0xff]   ;;  %v11311_v32 = vld [vmem:[#allocation3 + $0x50] sm:$0xff]   ;;  %s14821_s26 = scalar_lea.sflag [#allocation5], %s230_s10  ;;  %s11797_s30 = scalar_lea.vmem %s14816_s16, 2048 }
  0x2f   : > { %10135 = vmatprep.subr.bf16.mxu1 %v11297_v17  ;;  %v11282_v31 = vld [vmem:[%s11980_s17 + $0x20] sm:$0xff]   ;;  %v11283_v34 = vld [vmem:[%s11980_s17 + $0x28] sm:$0xff]   ;;  %v11284_v36 = vld [vmem:[%s11980_s17 + $0x30] sm:$0xff]   ;;  %p11798_p6 = scmp.ne.s32.totalorder %s14816_s16, %s11797_s30  ;;  %s11867_s22 = smov [#allocation6]  }
  0x30   : > { %v11290_v33 = vld [vmem:[%s11980_s17 + $0x60] sm:$0xff]   ;;  %v11300_v35 = vld [vmem:[%s11980_s17 + $0x68] sm:$0xff]   ;;  %v11307_v37 = vld [vmem:[%s11980_s17 + $0x70] sm:$0xff]   ;;  %s11801_s6 = sshll.u32 %s11867_s22, 4  ;;  %s11802_s6 = int_to_ptr.vmem [resolvable:$false] %s11801_s6 }
  0x31   : > { %10072 = vmatpush3.bf16.msra.mxu0 %v11296_v15  ;;  %v11286_v38 = vld [vmem:[%s11980_s17 + $0x38] sm:$0xff]   ;;  %v11312_v39 = vld [vmem:[#allocation3 + $0x10] sm:$0xff]   ;;  %v11316_v42 = vld [vmem:[#allocation3 + $0x48] sm:$0xff]   ;;  %p11799_p9 = pnand %p11798_p6, %p11938_p5  ;;  %s11803_s7 = scalar_lea.vmem %s11802_s6, 4096 }
  0x32   : > { %10136 = vmatpush3.bf16.msra.mxu1 %v11298_v18  ;;  %10073 = vmatprep.subr.bf16.mxu0 %v11299_v19  ;;  %v1188_v40 = vld [vmem:[#allocation2 + $0x90] sm:$0xcc]  ;;  %v11314_v41 = vld [vmem:[%s11980_s17 + $0x78] sm:$0xff]   ;;  %v11317_v45 = vld [vmem:[#allocation3 + $0x8] sm:$0xff]   ;;  %p11804_p11 = scmp.lt.s32.totalorder %s14816_s16, %s11802_s6  ;;  %p11805_p12 = scmp.lt.s32.totalorder %s11803_s7, %s11797_s30 }
  0x33   : > { %9259 = vmatmul.mubr.msk.bf16.gmra.mxu0 %vm329_vm1, %v11279_v7  ;;  %10137 = vmatprep.subr.bf16.mxu1 %v11302_v22  ;;  %v9352_v43 = vcombine.high %v1188_v40, %v11866_v0  ;;  %v9351_v46 = vcombine.low %v1188_v40, %v11866_v0  ;;  %v11318_v56 = vld [vmem:[#allocation3 + $0x40] sm:$0xff]   ;;  %v11315_v9 = vld [vmem:[#allocation3 + $0x198] sm:$0xff]   ;;  %v11320_v10 = vld [vmem:[#allocation3 + $0x1d0] sm:$0xff]   ;;  %p11800_p10 = pneg %p11799_p9 }
  0x34   : > { %413 = vmatprep.mubr.bf16.mxu0 %v11866_v0  ;;  %9294 = vmatmul.mubr.msk.bf16.gmra.mxu1 %vm329_vm1, %v11287_v8  ;;  %v11319_v61 = vld [vmem:[#allocation3] sm:$0xff]   ;;  %v11313_v8 = vld [vmem:[#allocation3 + $0x1d8] sm:$0xff]   ;;  %v11321_v11 = vld [vmem:[#allocation3 + $0x190] sm:$0xff]   ;;  %p11806_p13 = por %p11805_p12, %p11804_p11 }
  0x35   : > { %774 = vmatprep.mubr.bf16.mxu1 %v11866_v0  ;;  %10074 = vmatpush3.bf16.msra.mxu0 %v11301_v20  ;;  %v1769_v48 = vshrl.u32 %v9352_v43, 16  ;;  %v1772_v49 = vshll.u32 %v9352_v43, 16  ;;  %v1752_v52 = vshrl.u32 %v9351_v46, 16  ;;  %v1755_v53 = vshll.u32 %v9351_v46, 16  ;;  %v11323_v13 = vld [vmem:[#allocation3 + $0x188] sm:$0xff]   ;;  %v11324_v14 = vld [vmem:[#allocation3 + $0x1c0] sm:$0xff]  }
  0x36   : > { %10138 = vmatpush3.bf16.msra.mxu1 %v11303_v23  ;;  %10075 = vmatprep.subr.bf16.mxu0 %v11306_v26  ;;  %v11325_v15 = vld [vmem:[#allocation3 + $0x180] sm:$0xff]   ;;  %v11328_v17 = vld [vmem:[#allocation3 + $0x278] sm:$0xff]   ;;  %v11332_v19 = vld [vmem:[#allocation3 + $0x270] sm:$0xff]   ;;  %p11807_p0 = pnand %p11806_p13, %p11800_p10 }
  0x37   : > { %10139 = vmatprep.subr.bf16.mxu1 %v11304_v24  ;;  %v1771_v57 = vrot.slane %v1769_v48, 2  ;;  %v1774_v58 = vrot.slane %v1772_v49, 3  ;;  %v1754_v62 = vrot.slane %v1752_v52, 2  ;;  %v1757_v63 = vrot.slane %v1755_v53, 3  ;;  %v11329_v18 = vld [vmem:[#allocation3 + $0x238] sm:$0xff]   ;;  %v11333_v20 = vld [vmem:[#allocation3 + $0x230] sm:$0xff]  }
  0x38   : > { %v11337_v22 = vld [vmem:[#allocation3 + $0x228] sm:$0xff]   ;;  %v11338_v23 = vld [vmem:[#allocation3 + $0x260] sm:$0xff]   ;;  %v11343_v26 = vld [vmem:[#allocation3 + $0x218] sm:$0xff]  }
  0x39   : > { %10076 = vmatpush3.bf16.msra.mxu0 %v11308_v28  ;;  %v1775_v2 = vor.u32 %v1774_v58, %v1771_v57  ;;  %v1758_v4 = vor.u32 %v1757_v63, %v1754_v62  ;;  %v11339_v24 = vld [vmem:[#allocation3 + $0x220] sm:$0xff]   ;;  %v11346_v28 = vld [vmem:[#allocation3 + $0x210] sm:$0xff]   ;;  %v1237_v60 = vld [vmem:[#allocation2 + $0x138] sm:$0xcc] }
  0x3a   : > { %10140 = vmatpush3.bf16.msra.mxu1 %v11305_v25  ;;  %10077 = vmatprep.subr.bf16.mxu0 %v11313_v8  ;;  %v11342_v25 = vld [vmem:[#allocation3 + $0x258] sm:$0xff]  }
  0x3b   : > { %9260 = vmatmul.mubr.msk.bf16.gmra.mxu0 %vm329_vm1, %v11280_v12  ;;  %10141 = vmatprep.subr.bf16.mxu1 %v11309_v29  ;;  %v1784_v6 = vsel %vm1347_vm2, %v1775_v2, %v12037_v3  ;;  %v11322_v12 = vld [vmem:[#allocation3 + $0x1c8] sm:$0xff]  }
  0x3c   : > { %423 = vmatprep.mubr.bf16.mxu0 %v11866_v0  ;;  %9295 = vmatmul.mubr.msk.bf16.gmra.mxu1 %vm329_vm1, %v11288_v16  ;;  %v11326_v16 = vld [vmem:[#allocation3 + $0x378] sm:$0xff]   ;;  %v11350_v29 = vld [vmem:[#allocation3 + $0x248] sm:$0xff]  }
  0x3d   : > { %784 = vmatprep.mubr.bf16.mxu1 %v11866_v0  ;;  %10078 = vmatpush3.bf16.msra.mxu0 %v11315_v9 }
  0x3e   : > { %10142 = vmatpush3.bf16.msra.mxu1 %v11310_v30  ;;  %10079 = vmatprep.subr.bf16.mxu0 %v11320_v10  ;;  %v11351_v30 = vld [vmem:[#allocation3 + $0x208] sm:$0xff]  }
  0x3f   : > { %10143 = vmatprep.subr.bf16.mxu1 %v11311_v32  ;;  %v11353_v32 = vld [vmem:[#allocation3 + $0x200] sm:$0xff]  }
  0x41   : > { %10080 = vmatpush3.bf16.msra.mxu0 %v11321_v11 }
  0x42   : > { %10144 = vmatpush3.bf16.msra.mxu1 %v11312_v39  ;;  %10081 = vmatprep.subr.bf16.mxu0 %v11322_v12  ;;  %v635_v39 = vld [vmem:[%s14863_s2] sm:$0x3] }
  0x43   : > { %9261 = vmatmul.mubr.msk.bf16.gmra.mxu0 %vm329_vm1, %v11281_v21  ;;  %10145 = vmatprep.subr.bf16.mxu1 %v11316_v42  ;;  %v11336_v21 = vld [vmem:[#allocation3 + $0x268] sm:$0xff]  }
  0x44   : > { %433 = vmatprep.mubr.bf16.mxu0 %v11866_v0  ;;  %9296 = vmatmul.mubr.msk.bf16.gmra.mxu1 %vm329_vm1, %v11289_v27  ;;  %v11345_v27 = vld [vmem:[#allocation3 + $0x250] sm:$0xff]  }
  0x45   : > { %794 = vmatprep.mubr.bf16.mxu1 %v11866_v0  ;;  %10082 = vmatpush3.bf16.msra.mxu0 %v11323_v13 }
  0x46   : > { %10146 = vmatpush3.bf16.msra.mxu1 %v11317_v45  ;;  %10083 = vmatprep.subr.bf16.mxu0 %v11324_v14 }
  0x47   : > { %10147 = vmatprep.subr.bf16.mxu1 %v11318_v56 }
  0x49   : > { %10084 = vmatpush3.bf16.msra.mxu0 %v11325_v15 }
  0x4a   : > { %10148 = vmatpush3.bf16.msra.mxu1 %v11319_v61  ;;  %10197 = vmatprep.subr.bf16.mxu0 %v11326_v16 }
  0x4b   : > { %9262 = vmatmul.mubr.msk.bf16.gmra.mxu0 %vm329_vm1, %v11282_v31  ;;  %10261 = vmatprep.subr.bf16.mxu1 %v11328_v17  ;;  %v11352_v31 = vld [vmem:[#allocation3 + $0x240] sm:$0xff]  }
  0x4c   : > { %443 = vmatprep.mubr.bf16.mxu0 %v11866_v0  ;;  %9297 = vmatmul.mubr.msk.bf16.gmra.mxu1 %vm329_vm1, %v11290_v33  ;;  %v11364_v33 = vld [vmem:[#allocation3 + $0x3f8] sm:$0xff]  }
  0x4d   : > { %804 = vmatprep.mubr.bf16.mxu1 %v11866_v0 }
  0x53   : > { %9263 = vmatmul.mubr.msk.bf16.gmra.mxu0 %vm329_vm1, %v11283_v34  ;;  %v274_v34 = vlaneseq }
  0x54   : > { %453 = vmatprep.mubr.bf16.mxu0 %v11866_v0  ;;  %9298 = vmatmul.mubr.msk.bf16.gmra.mxu1 %vm329_vm1, %v11300_v35 }
  0x55   : > { %814 = vmatprep.mubr.bf16.mxu1 %v11866_v0  ;;  %v12047_v35 = vshrl.u32 %v274_v34, 7 }
  0x57   : > { %14965 = vst [vmem:[#allocation9_spill] sm:$0xff] %v12047_v35 }
  0x5b   : > { %9264 = vmatmul.mubr.msk.bf16.gmra.mxu0 %vm329_vm1, %v11284_v36  ;;  %v272_v36 = vld [vmem:[%s14863_s2] sm:$0x3] }
  0x5c   : > { %463 = vmatprep.mubr.bf16.mxu0 %v11866_v0  ;;  %9299 = vmatmul.mubr.msk.bf16.gmra.mxu1 %vm329_vm1, %v11307_v37  ;;  %v276_v37 = vsub.s32 0, %v12047_v35 }
  0x5d   : > { %824 = vmatprep.mubr.bf16.mxu1 %v11866_v0  ;;  %v1762_v0 = vrot.slane %v1760_v54, 2 }
  0x5e   : > { %v12057_v40 = vrot.slane %v272_v36, %v276_v37  ;;  %v12061_v43 = vrot.slane %v635_v39, %v276_v37 }
  0x5f   : > { %v12039_v5 = vor.u32 %v1765_v1, %v1762_v0 }
  0x61   : > { %v1767_v7 = vsel %vm1347_vm2, %v1758_v4, %v12039_v5 }
  0x63   : > { %9265 = vmatmul.mubr.msk.bf16.gmra.mxu0 %vm329_vm1, %v11286_v38  ;;  %v280_v38 = vsub.s32 1, %v12047_v35 }
  0x64   : > { %9300 = vmatmul.mubr.msk.bf16.gmra.mxu1 %vm329_vm1, %v11314_v41 }
  0x65   : > { %1979 = vmatprep.mubr.bf16.mxu1 %v1784_v6  ;;  %v12059_v41 = vrot.slane %v272_v36, %v280_v38  ;;  %v12066_v46 = vrot.slane %v635_v39, %v280_v38  ;;  %v11712_v6 = vld [vmem:[#allocation2 + $0x70] sm:$0xff] }
  0x6c   : > { %1980 = vmatmul.mubr.bf16.vlgmr.msra.gmra.mxu1 %v1767_v7 }
  0x6d   : > { %1987 = vmatprep.mubr.bf16.mxu1 %v12037_v3  ;;  %10262 = vmatpush3.bf16.msra.mxu1 %v11329_v18 }
  0x6e   : > { %10263 = vmatprep.subr.bf16.mxu1 %v11332_v19 }
  0x71   : > { %10264 = vmatpush3.bf16.msra.mxu1 %v11333_v20 }
  0x72   : > { %10265 = vmatprep.subr.bf16.mxu1 %v11336_v21 }
  0x74   : > { %1988 = vmatmul.mubr.bf16.gmra.mxu1 %v12039_v5 }
  0x75   : > { %10266 = vmatpush3.bf16.msra.mxu1 %v11337_v22 }
  0x76   : > { %10267 = vmatprep.subr.bf16.mxu1 %v11338_v23 }
  0x79   : > { %10268 = vmatpush3.bf16.msra.mxu1 %v11339_v24 }
  0x7a   : > { %10269 = vmatprep.subr.bf16.mxu1 %v11342_v25 }
  0x7d   : > { %10270 = vmatpush3.bf16.msra.mxu1 %v11343_v26 }
  0x7e   : > { %10271 = vmatprep.subr.bf16.mxu1 %v11345_v27 }
  0x81   : > { %10272 = vmatpush3.bf16.msra.mxu1 %v11346_v28 }
  0x82   : > { %10273 = vmatprep.subr.bf16.mxu1 %v11350_v29 }
  0x85   : > { %10274 = vmatpush3.bf16.msra.mxu1 %v11351_v30 }
  0x86   : > { %10275 = vmatprep.subr.bf16.mxu1 %v11352_v31 }
  0x89   : > { %10276 = vmatpush3.bf16.msra.mxu1 %v11353_v32 }
  0x8a   : > { %10389 = vmatprep.subr.bf16.mxu1 %v11364_v33 }
  0xeb   : > { %v395_v42 = vpop.f32.mrf.mxu0 }
  0xec   : > { %v12064_v44 = vadd.f32 %v395_v42, %v12057_v40  ;;  %v756_v48 = vpop.f32.mrf.mxu1 }
  0xed   : > { %v397_v45 = vpop.f32.mrf.mxu0  ;;  %v757_v50 = vadd.f32 %v756_v48, %v12061_v43 }
  0xee   : > { %v12069_v47 = vadd.f32 %v397_v45, %v12059_v41  ;;  %v14867_v51 = vmax.f32 %v12064_v44, 0.0  ;;  %v758_v54 = vpop.f32.mrf.mxu1 }
  0xef   : > { %v399_v49 = vpop.f32.mrf.mxu0  ;;  %v835_v56 = vmax.f32 %v757_v50, 0.0  ;;  %v759_v57 = vadd.f32 %v758_v54, %v12066_v46 }
  0xf0   : > { %v14868_v52 = vmax.f32 %v12069_v47, 0.0  ;;  %v400_v53 = vadd.f32 %v399_v49, %v12057_v40  ;;  %v760_v61 = vpop.f32.mrf.mxu1 }
  0xf1   : > { %v401_v55 = vpop.f32.mrf.mxu0  ;;  %v836_v0 = vmax.f32 %v759_v57, 0.0  ;;  %v12084_v1 = vadd.f32 %v760_v61, %v12061_v43 }
  0xf2   : > { %v9909_v58 = vpack.c.bf16 %v14868_v52, %v14867_v51  ;;  %v402_v59 = vadd.f32 %v401_v55, %v12059_v41  ;;  %v12081_v62 = vmax.f32 %v400_v53, 0.0  ;;  %v12089_v9 = vpop.f32.mrf.mxu1 }
  0xf3   : > { %v405_v63 = vpop.f32.mrf.mxu0  ;;  %v9925_v13 = vpack.c.bf16 %v836_v0, %v835_v56  ;;  %v837_v14 = vmax.f32 %v12084_v1, 0.0 }
  0xf4   : > { %602 = vst [vmem:[#allocation2 + $0x40] sm:$0xff] %v9909_v58  ;;  %v12086_v2 = vmax.f32 %v402_v59, 0.0  ;;  %v406_v4 = vadd.f32 %v405_v63, %v12057_v40  ;;  %v9358_v7 = vcombine.high %v11712_v6, %v9909_v58  ;;  %v9357_v8 = vcombine.low %v11712_v6, %v9909_v58  ;;  %v12097_v19 = vpop.f32.mrf.mxu1 }
  0xf5   : > { %v407_v10 = vpop.f32.mrf.mxu0  ;;  %v9317_v11 = vcombine.low %v1237_v60, %v9909_v58  ;;  %v9318_v12 = vcombine.high %v1237_v60, %v9909_v58  ;;  %963 = vst [vmem:[#allocation2 + $0x160] sm:$0xff] %v9925_v13 }
  0xf6   : > { %v9910_v15 = vpack.c.bf16 %v12086_v2, %v12081_v62  ;;  %v12094_v16 = vmax.f32 %v406_v4, 0.0  ;;  %v408_v17 = vadd.f32 %v407_v10, %v12059_v41  ;;  %v1813_v18 = vshrl.u32 %v9358_v7, 16  ;;  %v768_v29 = vpop.f32.mrf.mxu1 }
  0xf7   : > { %v409_v20 = vpop.f32.mrf.mxu0  ;;  %v1816_v21 = vshll.u32 %v9358_v7, 16  ;;  %v1804_v22 = vshrl.u32 %v9357_v8, 16  ;;  %v1807_v23 = vshll.u32 %v9357_v8, 16  ;;  %v1366_v24 = vshrl.u32 %v9318_v12, 16 }
  0xf8   : > { %603 = vst [vmem:[#allocation2 + $0xf0] sm:$0xff] %v9910_v15  ;;  %v12099_v25 = vmax.f32 %v408_v17, 0.0  ;;  %v410_v26 = vadd.f32 %v409_v20, %v12057_v40  ;;  %v1815_v27 = vrot.slane %v1813_v18, 2  ;;  %v1369_v28 = vshll.u32 %v9318_v12, 16  ;;  %v12109_v42 = vpop.f32.mrf.mxu1 }
  0xf9   : > { %v411_v30 = vpop.f32.mrf.mxu0  ;;  %v1818_v31 = vrot.slane %v1816_v21, 3  ;;  %v1806_v32 = vrot.slane %v1804_v22, 2  ;;  %v1809_v33 = vrot.slane %v1807_v23, 3  ;;  %v12102_v34 = vrot.slane %v1366_v24, 2 }
  0xfa   : > { %v9911_v36 = vpack.c.bf16 %v12099_v25, %v12094_v16  ;;  %v12106_v37 = vmax.f32 %v410_v26, 0.0  ;;  %v412_v38 = vadd.f32 %v411_v30, %v12059_v41  ;;  %v1371_v39 = vrot.slane %v1369_v28, 3  ;;  %v12117_v58 = vpop.f32.mrf.mxu1 }
  0xfb   : > { %v415_v45 = vpop.f32.mrf.mxu0  ;;  %v1819_v48 = vor.u32 %v1818_v31, %v1815_v27  ;;  %v1810_v49 = vor.u32 %v1809_v33, %v1806_v32  ;;  %v1349_v50 = vshrl.u32 %v9317_v11, 16  ;;  %v1352_v53 = vshll.u32 %v9317_v11, 16  ;;  %v11327_v32 = vld [vmem:[#allocation3 + $0x338] sm:$0xff]  }
  0xfc   : > { %604 = vst [vmem:[#allocation2 + $0xf8] sm:$0xff] %v9911_v36  ;;  %v12111_v54 = vmax.f32 %v412_v38, 0.0  ;;  %v416_v55 = vadd.f32 %v415_v45, %v12057_v40  ;;  %v11737_v56 = vpack.c.bf16 %v12099_v25, %v12086_v2  ;;  %v1372_v57 = vor.u32 %v1371_v39, %v12102_v34  ;;  %v12130_v10 = vpop.f32.mrf.mxu1 }
  0xfd   : > { %v417_v59 = vpop.f32.mrf.mxu0  ;;  %v1820_v60 = vsel %vm1347_vm2, %v12037_v3, %v1819_v48  ;;  %v1811_v61 = vsel %vm1347_vm2, %v12039_v5, %v1810_v49  ;;  %v11738_v63 = vpack.c.bf16 %v12094_v16, %v12081_v62  ;;  %v1351_v0 = vrot.slane %v1349_v50, 2 }
  0xfe   : > { %v9912_v4 = vpack.c.bf16 %v12111_v54, %v12106_v37  ;;  %v12127_v6 = vmax.f32 %v416_v55, 0.0  ;;  %v418_v7 = vadd.f32 %v417_v59, %v12059_v41  ;;  %1995 = vmatprep.mubr.bf16.mxu1 %v1820_v60  ;;  %v1374_v8 = vshrl.u32 %v11737_v56, 16  ;;  %v12137_v21 = vpop.f32.mrf.mxu1 }
  0xff   : > { %v419_v11 = vpop.f32.mrf.mxu0  ;;  %1996 = vmatmul.mubr.bf16.gmra.mxu1 %v1811_v61  ;;  %v1377_v3 = vshll.u32 %v11737_v56, 16  ;;  %v1354_v12 = vrot.slane %v1352_v53, 3  ;;  %v1357_v5 = vshrl.u32 %v11738_v63, 16  ;;  %v1360_v13 = vshll.u32 %v11738_v63, 16  ;;  %v11330_v56 = vld [vmem:[#allocation3 + $0x370] sm:$0xff]  }
 0x100   : > { %605 = vst [vmem:[#allocation2 + $0xe0] sm:$0xff] %v9912_v4  ;;  %v12132_v15 = vmax.f32 %v418_v7, 0.0  ;;  %v420_v17 = vadd.f32 %v419_v11, %v12057_v40  ;;  %v1376_v18 = vrot.slane %v1374_v8, 2  ;;  %v763_v20 = vadd.f32 %v12089_v9, %v12066_v46  ;;  %v12144_v34 = vpop.f32.mrf.mxu1 }
 0x101   : > { %v421_v22 = vpop.f32.mrf.mxu0  ;;  %v1379_v23 = vrot.slane %v1377_v3, 3  ;;  %v1355_v24 = vor.u32 %v1354_v12, %v1351_v0  ;;  %v1359_v26 = vrot.slane %v1357_v5, 2  ;;  %v1362_v27 = vrot.slane %v1360_v13, 3 }
 0x102   : > { %v9913_v28 = vpack.c.bf16 %v12132_v15, %v12127_v6  ;;  %v12141_v30 = vmax.f32 %v420_v17, 0.0  ;;  %v422_v31 = vadd.f32 %v421_v22, %v12059_v41  ;;  %v838_v33 = vmax.f32 %v763_v20, 0.0  ;;  %v12160_v60 = vpop.f32.mrf.mxu1  ;;  %v11331_v20 = vld [vmem:[#allocation3 + $0x330] sm:$0xff]   ;;  %v11334_v22 = vld [vmem:[#allocation3 + $0x368] sm:$0xff]  }
 0x103   : > { %v425_v36 = vpop.f32.mrf.mxu0  ;;  %v12146_v9 = vor.u32 %v1379_v23, %v1376_v18  ;;  %v12148_v38 = vor.u32 %v1362_v27, %v1359_v26  ;;  %v767_v39 = vadd.f32 %v12097_v19, %v12061_v43  ;;  %v769_v45 = vadd.f32 %v768_v29, %v12066_v46 }
 0x104   : > { %606 = vst [vmem:[#allocation2 + $0xa0] sm:$0xff] %v9913_v28  ;;  %v12153_v50 = vmax.f32 %v422_v31, 0.0  ;;  %v426_v53 = vadd.f32 %v425_v36, %v12057_v40  ;;  %v11739_v55 = vpack.c.bf16 %v12132_v15, %v12111_v54  ;;  %v11740_v59 = vpack.c.bf16 %v12127_v6, %v12106_v37 }
 0x105   : > { %v427_v61 = vpop.f32.mrf.mxu0  ;;  %v1381_v19 = vsel %vm1347_vm2, %v1372_v57, %v12146_v9  ;;  %v1822_v29 = vsel %vm1347_vm2, %v1819_v48, %v12146_v9  ;;  %v1364_v63 = vsel %vm1347_vm2, %v1355_v24, %v12148_v38  ;;  %v1821_v0 = vsel %vm1347_vm2, %v1810_v49, %v12148_v38  ;;  %v12175_v57 = vpop.f32.mrf.mxu1 }
 0x106   : > { %v9914_v4 = vpack.c.bf16 %v12153_v50, %v12141_v30  ;;  %v12172_v7 = vmax.f32 %v426_v53, 0.0  ;;  %v428_v8 = vadd.f32 %v427_v61, %v12059_v41  ;;  %1652 = vmatprep.mubr.bf16.mxu0 %v1381_v19  ;;  %2003 = vmatprep.mubr.bf16.mxu1 %v1822_v29  ;;  %v1392_v11 = vshrl.u32 %v11739_v55, 16  ;;  %v11335_v29 = vld [vmem:[#allocation3 + $0x328] sm:$0xff]  }
 0x107   : > { %v429_v3 = vpop.f32.mrf.mxu0  ;;  %1653 = vmatmul.mubr.bf16.vlgmr.msra.gmra.mxu0 %v1364_v63  ;;  %2004 = vmatmul.mubr.bf16.gmra.mxu1 %v1821_v0  ;;  %v1395_v48 = vshll.u32 %v11739_v55, 16  ;;  %v1383_v12 = vshrl.u32 %v11740_v59, 16  ;;  %v1386_v5 = vshll.u32 %v11740_v59, 16  ;;  %v9926_v49 = vpack.c.bf16 %v838_v33, %v837_v14  ;;  %v12182_v24 = vpop.f32.mrf.mxu1  ;;  %v11340_v63 = vld [vmem:[#allocation3 + $0x360] sm:$0xff]  }
 0x108   : > { %607 = vst [vmem:[#allocation2 + $0x68] sm:$0xff] %v9914_v4  ;;  %v12179_v13 = vmax.f32 %v428_v8, 0.0  ;;  %v430_v17 = vadd.f32 %v429_v3, %v12057_v40  ;;  %10198 = vmatpush3.bf16.msra.mxu0 %v11327_v32  ;;  %v1394_v18 = vrot.slane %v1392_v11, 2  ;;  %v839_v23 = vmax.f32 %v767_v39, 0.0 }
 0x109   : > { %v431_v26 = vpop.f32.mrf.mxu0  ;;  %v1397_v27 = vrot.slane %v1395_v48, 3  ;;  %10199 = vmatprep.subr.bf16.mxu0 %v11330_v56  ;;  %v1385_v28 = vrot.slane %v1383_v12, 2  ;;  %v1388_v31 = vrot.slane %v1386_v5, 3  ;;  %964 = vst [vmem:[#allocation2 + $0x88] sm:$0xff] %v9926_v49  ;;  %v840_v1 = vmax.f32 %v769_v45, 0.0  ;;  %v12189_v32 = vpop.f32.mrf.mxu1 }
 0x10a   : > { %v12186_v14 = vpack.c.bf16 %v12179_v13, %v12172_v7  ;;  %v432_v33 = vadd.f32 %v431_v26, %v12059_v41  ;;  %v12191_v36 = vmax.f32 %v430_v17, 0.0  ;;  %v11741_v61 = vpack.c.bf16 %v12179_v13, %v12153_v50  ;;  %v11341_v26 = vld [vmem:[#allocation3 + $0x320] sm:$0xff]  }
 0x10b   : > { %v435_v39 = vpop.f32.mrf.mxu0  ;;  %v1398_v53 = vor.u32 %v1397_v27, %v1394_v18  ;;  %v1389_v55 = vor.u32 %v1388_v31, %v1385_v28  ;;  %v12193_v59 = vpack.c.bf16 %v840_v1, %v839_v23  ;;  %v11742_v19 = vpack.c.bf16 %v12172_v7, %v12141_v30  ;;  %v12203_v0 = vpop.f32.mrf.mxu1 }
 0x10c   : > { %608 = vst [vmem:[#allocation2 + $0x78] sm:$0xff] %v12186_v14  ;;  %v12196_v56 = vmax.f32 %v432_v33, 0.0  ;;  %v436_v45 = vadd.f32 %v435_v39, %v12057_v40  ;;  %10200 = vmatpush3.bf16.msra.mxu0 %v11331_v20  ;;  %v1410_v12 = vshrl.u32 %v11741_v61, 16  ;;  %v11347_v33 = vld [vmem:[#allocation3 + $0x358] sm:$0xff]  }
 0x10d   : > { %14966 = vst [vmem:[#allocation10_spill] sm:$0xff] %v12193_v59  ;;  %v437_v4 = vpop.f32.mrf.mxu0  ;;  %v1399_v8 = vsel %vm1347_vm2, %v12146_v9, %v1398_v53  ;;  %v1390_v11 = vsel %vm1347_vm2, %v12148_v38, %v1389_v55  ;;  %10201 = vmatprep.subr.bf16.mxu0 %v11334_v22  ;;  %965 = vst [vmem:[#allocation2 + $0x28] sm:$0xff] %v12193_v59  ;;  %v12213_v5 = vpop.f32.mrf.mxu1  ;;  %v1413_v9 = vshll.u32 %v11741_v61, 16  ;;  %v1401_v17 = vshrl.u32 %v11742_v19, 16 }
 0x10e   : > { %v9916_v3 = vpack.c.bf16 %v12196_v56, %v12191_v36  ;;  %v438_v48 = vadd.f32 %v437_v4, %v12059_v41  ;;  %1660 = vmatprep.mubr.bf16.mxu0 %v1399_v8  ;;  %2011 = vmatprep.mubr.bf16.mxu1 %v1399_v8  ;;  %v1404_v18 = vshll.u32 %v11742_v19, 16  ;;  %v12215_v38 = vmax.f32 %v436_v45, 0.0 }
 0x10f   : > { %v439_v49 = vpop.f32.mrf.mxu0  ;;  %1661 = vmatmul.mubr.bf16.gmra.mxu0 %v1390_v11  ;;  %2012 = vmatmul.mubr.bf16.gmra.mxu1 %v1390_v11  ;;  %v1412_v23 = vrot.slane %v1410_v12, 2  ;;  %v1415_v28 = vrot.slane %v1413_v9, 3  ;;  %v1403_v31 = vrot.slane %v1401_v17, 2  ;;  %v12223_v45 = vpop.f32.mrf.mxu1  ;;  %v11349_v12 = vld [vmem:[#allocation3 + $0x318] sm:$0xff]  }
 0x110   : > { %609 = vst [vmem:[#allocation2 + $0x128] sm:$0xff] %v9916_v3  ;;  %14967 = vst [vmem:[#allocation11_spill] sm:$0xff] %v12215_v38  ;;  %v12217_v20 = vmax.f32 %v438_v48, 0.0  ;;  %v440_v22 = vadd.f32 %v439_v49, %v12057_v40  ;;  %10202 = vmatpush3.bf16.msra.mxu0 %v11335_v29  ;;  %v1406_v1 = vrot.slane %v1404_v18, 3  ;;  %v11744_v48 = vpack.c.bf16 %v12215_v38, %v12191_v36 }
 0x111   : > { %v441_v27 = vpop.f32.mrf.mxu0  ;;  %10203 = vmatprep.subr.bf16.mxu0 %v11340_v63  ;;  %v1416_v8 = vor.u32 %v1415_v28, %v1412_v23  ;;  %v12234_v49 = vpop.f32.mrf.mxu1 }
 0x112   : > { %v9917_v39 = vpack.c.bf16 %v12217_v20, %v12215_v38  ;;  %v442_v61 = vadd.f32 %v441_v27, %v12059_v41  ;;  %v12225_v19 = vmax.f32 %v440_v22, 0.0  ;;  %v1407_v11 = vor.u32 %v1406_v1, %v1403_v31  ;;  %14969 = vst [vmem:[#allocation13_spill] sm:$0xff] %v12234_v49  ;;  %v11354_v22 = vld [vmem:[#allocation3 + $0x350] sm:$0xff]  }
 0x113   : > { %v445_v4 = vpop.f32.mrf.mxu0  ;;  %v11743_v63 = vpack.c.bf16 %v12217_v20, %v12196_v56  ;;  %v1417_v17 = vsel %vm1347_vm2, %v1398_v53, %v1416_v8  ;;  %v12241_v31 = vpop.f32.mrf.mxu1  ;;  %v1422_v53 = vshll.u32 %v11744_v48, 16 }
 0x114   : > { %14968 = vst [vmem:[#allocation12_spill] sm:$0xff] %v12225_v19  ;;  %610 = vst [vmem:[#allocation2 + $0xa8] sm:$0xff] %v9917_v39  ;;  %v12227_v29 = vmax.f32 %v442_v61, 0.0  ;;  %v446_v3 = vadd.f32 %v445_v4, %v12057_v40  ;;  %10204 = vmatpush3.bf16.msra.mxu0 %v11341_v26  ;;  %v1408_v18 = vsel %vm1347_vm2, %v1389_v55, %v1407_v11  ;;  %1668 = vmatprep.mubr.bf16.mxu0 %v1417_v17 }
 0x115   : > { %v447_v9 = vpop.f32.mrf.mxu0  ;;  %10205 = vmatprep.subr.bf16.mxu0 %v11347_v33  ;;  %2019 = vmatprep.mubr.bf16.mxu1 %v1417_v17  ;;  %v1428_v28 = vshrl.u32 %v11743_v63, 16  ;;  %14970 = vst [vmem:[#allocation14_spill] sm:$0xff] %v12241_v31  ;;  %v1431_v1 = vshll.u32 %v11743_v63, 16  ;;  %v1419_v39 = vshrl.u32 %v11744_v48, 16  ;;  %v12248_v17 = vpop.f32.mrf.mxu1  ;;  %v1424_v59 = vrot.slane %v1422_v53, 3  ;;  %v11356_v63 = vld [vmem:[#allocation3 + $0x348] sm:$0xff]  }
 0x116   : > { %v9918_v23 = vpack.c.bf16 %v12227_v29, %v12225_v19  ;;  %v448_v27 = vadd.f32 %v447_v9, %v12059_v41  ;;  %v12243_v55 = vmax.f32 %v446_v3, 0.0  ;;  %v11355_v9 = vld [vmem:[#allocation3 + $0x310] sm:$0xff]   ;;  %14973 = vst [vmem:[#allocation17_spill] sm:$0xff] %v12248_v17 }
 0x117   : > { %v449_v26 = vpop.f32.mrf.mxu0  ;;  %1669 = vmatmul.mubr.bf16.gmra.mxu0 %v1408_v18  ;;  %2020 = vmatmul.mubr.bf16.gmra.mxu1 %v1408_v18  ;;  %v1430_v4 = vrot.slane %v1428_v28, 2  ;;  %v1433_v52 = vrot.slane %v1431_v1, 3  ;;  %v1421_v35 = vrot.slane %v1419_v39, 2  ;;  %v12266_v39 = vpop.f32.mrf.mxu1 }
 0x118   : > { %611 = vst [vmem:[#allocation2 + $0xb8] sm:$0xff] %v9918_v23  ;;  %14971 = vst [vmem:[#allocation15_spill] sm:$0xff] %v12243_v55  ;;  %v12245_v33 = vmax.f32 %v448_v27, 0.0  ;;  %v450_v61 = vadd.f32 %v449_v26, %v12057_v40  ;;  %10206 = vmatpush3.bf16.msra.mxu0 %v11349_v12  ;;  %v11746_v1 = vpack.c.bf16 %v12243_v55, %v12225_v19 }
 0x119   : > { %v451_v51 = vpop.f32.mrf.mxu0  ;;  %10207 = vmatprep.subr.bf16.mxu0 %v11354_v22  ;;  %v12255_v27 = vor.u32 %v1433_v52, %v1430_v4  ;;  %v12257_v12 = vor.u32 %v1424_v59, %v1421_v35  ;;  %14975 = vst [vmem:[#allocation19_spill] sm:$0xff] %v12266_v39  ;;  %v11359_v59 = vld [vmem:[#allocation3 + $0x340] sm:$0xff]  }
 0x11a   : > { %14972 = vst [vmem:[#allocation16_spill] sm:$0xff] %v12245_v33  ;;  %v9919_v48 = vpack.c.bf16 %v12245_v33, %v12243_v55  ;;  %v452_v3 = vadd.f32 %v451_v51, %v12059_v41  ;;  %v12253_v18 = vmax.f32 %v450_v61, 0.0  ;;  %v11745_v22 = vpack.c.bf16 %v12245_v33, %v12227_v29  ;;  %v11357_v51 = vld [vmem:[#allocation3 + $0x308] sm:$0xff]  }
 0x11b   : > { %v455_v23 = vpop.f32.mrf.mxu0  ;;  %v1435_v35 = vsel %vm1347_vm2, %v1416_v8, %v12255_v27  ;;  %v1426_v52 = vsel %vm1347_vm2, %v1407_v11, %v12257_v12  ;;  %v1437_v55 = vshrl.u32 %v11746_v1, 16  ;;  %v1440_v33 = vshll.u32 %v11746_v1, 16 }
 0x11c   : > { %14974 = vst [vmem:[#allocation18_spill] sm:$0xff] %v12253_v18  ;;  %612 = vst [vmem:[#allocation2 + $0x20] sm:$0xff] %v9919_v48  ;;  %v12259_v28 = vmax.f32 %v452_v3, 0.0  ;;  %v456_v26 = vadd.f32 %v455_v23, %v12057_v40  ;;  %10208 = vmatpush3.bf16.msra.mxu0 %v11355_v9  ;;  %1676 = vmatprep.mubr.bf16.mxu0 %v1435_v35  ;;  %v1446_v9 = vshrl.u32 %v11745_v22, 16  ;;  %v14976_v48 = vmax.f32 %v12069_v47, 0.0  ;;  %v11361_v47 = vld [vmem:[#allocation3 + $0x300] sm:$0xff]  }
 0x11d   : > { %v457_v53 = vpop.f32.mrf.mxu0  ;;  %10209 = vmatprep.subr.bf16.mxu0 %v11356_v63  ;;  %2027 = vmatprep.mubr.bf16.mxu1 %v1435_v35  ;;  %v1449_v63 = vshll.u32 %v11745_v22, 16  ;;  %v1439_v38 = vrot.slane %v1437_v55, 2  ;;  %v1442_v17 = vrot.slane %v1440_v33, 3  ;;  %v11362_v22 = vld [vmem:[#allocation3 + $0xf8] sm:$0xff]  }
 0x11e   : > { %v9920_v61 = vpack.c.bf16 %v12259_v28, %v12253_v18  ;;  %v458_v4 = vadd.f32 %v457_v53, %v12059_v41  ;;  %v12278_v3 = vpack.c.bf16 %v12086_v2, %v14976_v48  ;;  %v12280_v23 = vmax.f32 %v456_v26, 0.0  ;;  %v12285_v2 = vpop.f32.mrf.mxu1 }
 0x11f   : > { %v459_v8 = vpop.f32.mrf.mxu0  ;;  %1677 = vmatmul.mubr.bf16.gmra.mxu0 %v1426_v52  ;;  %2028 = vmatmul.mubr.bf16.gmra.mxu1 %v1426_v52  ;;  %v1204_v11 = vld [vmem:[#allocation2 + $0xb8] sm:$0x77]  ;;  %v1448_v19 = vrot.slane %v1446_v9, 2  ;;  %14980 = vst [vmem:[#allocation23_spill] sm:$0xff] %v12285_v2  ;;  %v1451_v48 = vrot.slane %v1449_v63, 3  ;;  %v12294_v2 = vor.u32 %v1442_v17, %v1439_v38 }
 0x120   : > { %14977 = vst [vmem:[#allocation20_spill] sm:$0xff] %v12278_v3  ;;  %14978 = vst [vmem:[#allocation21_spill] sm:$0xff] %v12280_v23  ;;  %v12282_v39 = vmax.f32 %v458_v4, 0.0  ;;  %v460_v53 = vadd.f32 %v459_v8, %v12057_v40  ;;  %v9360_v35 = vcombine.high %v1204_v11, %v1204_v11  ;;  %10210 = vmatpush3.bf16.msra.mxu0 %v11357_v51 }
 0x121   : > { %613 = vst [vmem:[#allocation2 + $0x48] sm:$0xff] %v9920_v61  ;;  %v461_v26 = vpop.f32.mrf.mxu0  ;;  %v9359_v52 = vcombine.low %v1204_v11, %v1204_v11  ;;  %10211 = vmatprep.subr.bf16.mxu0 %v11359_v59  ;;  %v12292_v31 = vor.u32 %v1451_v48, %v1448_v19  ;;  %v12309_v38 = vsel %vm1347_vm2, %v12257_v12, %v12294_v2 }
 0x122   : > { %14979 = vst [vmem:[#allocation22_spill] sm:$0xff] %v12282_v39  ;;  %v9921_v1 = vpack.c.bf16 %v12282_v39, %v12280_v23  ;;  %v12289_v61 = vmax.f32 %v460_v53, 0.0  ;;  %v462_v4 = vadd.f32 %v461_v26, %v12059_v41  ;;  %v1833_v8 = vshrl.u32 %v9360_v35, 16  ;;  %v12299_v53 = vpop.f32.mrf.mxu1 }
 0x123   : > { %v465_v9 = vpop.f32.mrf.mxu0  ;;  %v1836_v51 = vshll.u32 %v9360_v35, 16  ;;  %v1824_v63 = vshrl.u32 %v9359_v52, 16  ;;  %v1827_v11 = vshll.u32 %v9359_v52, 16  ;;  %v12304_v19 = vsel %vm1347_vm2, %v12255_v27, %v12292_v31 }
 0x124   : > { %614 = vst [vmem:[#allocation2 + $0x60] sm:$0xff] %v9921_v1  ;;  %v12296_v55 = vmax.f32 %v462_v4, 0.0  ;;  %v466_v33 = vadd.f32 %v465_v9, %v12057_v40  ;;  %v1835_v59 = vrot.slane %v1833_v8, 2  ;;  %10212 = vmatpush3.bf16.msra.mxu0 %v11361_v47  ;;  %1684 = vmatprep.mubr.bf16.mxu0 %v12304_v19  ;;  %v14981_v52 = vmax.f32 %v12064_v44, 0.0 }
 0x125   : > { %v467_v49 = vpop.f32.mrf.mxu0  ;;  %v1838_v26 = vrot.slane %v1836_v51, 3  ;;  %v1826_v17 = vrot.slane %v1824_v63, 2  ;;  %10325 = vmatprep.subr.bf16.mxu0 %v11362_v22  ;;  %v1829_v48 = vrot.slane %v1827_v11, 3  ;;  %v11749_v22 = vpack.c.bf16 %v12282_v39, %v12259_v28  ;;  %v12325_v51 = vld [vmem:[#allocation2 + $0x68] sm:$0xcc]  ;;  %v12338_v11 = vpop.f32.mrf.mxu1 }
 0x126   : > { %v9922_v35 = vpack.c.bf16 %v12296_v55, %v12289_v61  ;;  %v468_v47 = vadd.f32 %v467_v49, %v12059_v41  ;;  %v12318_v1 = vpack.c.bf16 %v12081_v62, %v14981_v52  ;;  %v11750_v9 = vpack.c.bf16 %v12280_v23, %v12253_v18 }
 0x127   : > { %v469_v4 = vpop.f32.mrf.mxu0  ;;  %v1839_v8 = vor.u32 %v1838_v26, %v1835_v59  ;;  %1685 = vmatmul.mubr.bf16.gmra.mxu0 %v12309_v38  ;;  %v12329_v49 = vadd.f32 %v12109_v42, %v12061_v43  ;;  %v12331_v44 = vmax.f32 %v466_v33, 0.0  ;;  %v1830_v59 = vor.u32 %v1829_v48, %v1826_v17 }
 0x128   : > { %14982 = vst [vmem:[#allocation24_spill] sm:$0xff] %v12318_v1  ;;  %615 = vst [vmem:[#allocation2 + $0x130] sm:$0xff] %v9922_v35  ;;  %v12333_v62 = vmax.f32 %v468_v47, 0.0  ;;  %v12336_v63 = vadd.f32 %v469_v4, %v12057_v40  ;;  %v1464_v23 = vshrl.u32 %v11749_v22, 16  ;;  %v1467_v39 = vshll.u32 %v11749_v22, 16 }
 0x129   : > { %14983 = vst [vmem:[#allocation25_spill] sm:$0xff] %v12329_v49  ;;  %14984 = vst [vmem:[#allocation26_spill] sm:$0xff] %v12331_v44  ;;  %v471_v26 = vpop.f32.mrf.mxu0  ;;  %v1840_v52 = vsel %vm1347_vm2, %v12255_v27, %v1839_v8  ;;  %v1455_v18 = vshrl.u32 %v11750_v9, 16  ;;  %v1831_v40 = vsel %vm1347_vm2, %v12257_v12, %v1830_v59  ;;  %v12351_v17 = vcombine.high %v12325_v51, %v12186_v14 }
 0x12a   : > { %14985 = vst [vmem:[#allocation27_spill] sm:$0xff] %v12336_v63  ;;  %v9923_v42 = vpack.c.bf16 %v12333_v62, %v12331_v44  ;;  %v12345_v33 = vadd.f32 %v471_v26, %v12059_v41  ;;  %2035 = vmatprep.mubr.bf16.mxu1 %v1840_v52  ;;  %v1466_v35 = vrot.slane %v1464_v23, 2  ;;  %v1469_v47 = vrot.slane %v1467_v39, 3  ;;  %v12360_v26 = vpop.f32.mrf.mxu1 }
 0x12b   : > { %2036 = vmatmul.mubr.bf16.gmra.mxu1 %v1831_v40  ;;  %v1457_v48 = vrot.slane %v1455_v18, 2  ;;  %v1458_v4 = vshll.u32 %v11750_v9, 16  ;;  %v14882_v8 = vmax.f32 %v12336_v63, 0.0  ;;  %v11751_v41 = vpack.c.bf16 %v12333_v62, %v12296_v55 }
 0x12c   : > { %616 = vst [vmem:[#allocation2 + $0xb0] sm:$0xff] %v9923_v42  ;;  %v14883_v22 = vmax.f32 %v12345_v33, 0.0  ;;  %2891 = vmatprep.mubr.bf16.mxu1 %v12278_v3  ;;  %v11752_v59 = vpack.c.bf16 %v12331_v44, %v12289_v61  ;;  %v1470_v52 = vor.u32 %v1469_v47, %v1466_v35  ;;  %v12365_v39 = vadd.f32 %v12117_v58, %v12066_v46 }
 0x12d   : > { %v1460_v23 = vrot.slane %v1458_v4, 3  ;;  %v1482_v42 = vshrl.u32 %v11751_v41, 16  ;;  %v1485_v40 = vshll.u32 %v11751_v41, 16  ;;  %v777_v41 = vadd.f32 %v12130_v10, %v12061_v43 }
 0x12e   : > { %14986 = vst [vmem:[#allocation28_spill] sm:$0xff] %v12365_v39  ;;  %v12371_v9 = vpack.c.bf16 %v14883_v22, %v14882_v8  ;;  %v1473_v3 = vshrl.u32 %v11752_v59, 16  ;;  %v12375_v44 = vsel %vm1347_vm2, %v12292_v31, %v1470_v52  ;;  %v1476_v47 = vshll.u32 %v11752_v59, 16  ;;  %v11365_v8 = vld [vmem:[#allocation3 + $0x3b8] sm:$0xff]   ;;  %v12382_v22 = vpop.f32.mrf.mxu1 }
 0x12f   : > { %v1461_v35 = vor.u32 %v1460_v23, %v1457_v48  ;;  %v14884_v4 = vmax.f32 %v12365_v39, 0.0  ;;  %1692 = vmatprep.mubr.bf16.mxu0 %v12375_v44  ;;  %v1484_v58 = vrot.slane %v1482_v42, 2  ;;  %v1487_v18 = vrot.slane %v1485_v40, 3  ;;  %v11368_v42 = vld [vmem:[#allocation3 + $0x3f0] sm:$0xff]  }
 0x130   : > { %617 = vst [vmem:[#allocation2 + $0x100] sm:$0xff] %v12371_v9  ;;  %v1475_v63 = vrot.slane %v1473_v3, 2  ;;  %v1478_v48 = vrot.slane %v1476_v47, 3  ;;  %v14987_v59 = vmax.f32 %v12329_v49, 0.0  ;;  %v779_v3 = vadd.f32 %v12137_v21, %v12066_v46 }
 0x131   : > { %v12386_v31 = vsel %vm1347_vm2, %v12294_v2, %v1461_v35  ;;  %v12399_v10 = vpack.c.bf16 %v12111_v54, %v12099_v25  ;;  %v12401_v40 = vor.u32 %v1487_v18, %v1484_v58  ;;  %v12403_v2 = vmax.f32 %v777_v41, 0.0  ;;  %v11372_v54 = vld [vmem:[#allocation3 + $0x3e8] sm:$0xff]   ;;  %v12430_v41 = vpop.f32.mrf.mxu1 }
 0x132   : > { %v12392_v23 = vpack.c.bf16 %v14884_v4, %v14987_v59  ;;  %1693 = vmatmul.mubr.bf16.gmra.mxu0 %v12386_v31  ;;  %v12407_v47 = vadd.f32 %v12144_v34, %v12061_v43  ;;  %v11369_v59 = vld [vmem:[#allocation3 + $0x3b0] sm:$0xff]   ;;  %v12410_v4 = vor.u32 %v1478_v48, %v1475_v63  ;;  %v2181_v21 = vshrl.u32 %v12351_v17, 16 }
 0x133   : > { %14989 = vst [vmem:[#allocation30_spill] sm:$0xff] %v12399_v10  ;;  %2892 = vmatmul.mubr.bf16.vlgmr.msra.gmra.mxu1 %v12318_v1  ;;  %v12414_v49 = vmax.f32 %v779_v3, 0.0  ;;  %v12418_v25 = vadd.f32 %v12160_v60, %v12066_v46  ;;  %v12423_v34 = vsel %vm1347_vm2, %v1470_v52, %v12401_v40  ;;  %v787_v18 = vadd.f32 %v12175_v57, %v12061_v43  ;;  %v12455_v39 = vpop.f32.mrf.mxu1 }
 0x134   : > { %14988 = vst [vmem:[#allocation29_spill] sm:$0xff] %v12392_v23  ;;  %966 = vst [vmem:[#allocation2 + $0x38] sm:$0xff] %v12392_v23  ;;  %2899 = vmatprep.mubr.bf16.mxu1 %v12399_v10  ;;  %10390 = vmatpush3.bf16.msra.mxu1 %v11365_v8  ;;  %v789_v58 = vadd.f32 %v12182_v24, %v12066_v46  ;;  %v2184_v60 = vshll.u32 %v12351_v17, 16  ;;  %v791_v8 = vadd.f32 %v12189_v32, %v12061_v43  ;;  %v11373_v23 = vld [vmem:[#allocation3 + $0x3a8] sm:$0xff]  }
 0x135   : > { %1700 = vmatprep.mubr.bf16.mxu0 %v12423_v34  ;;  %v9929_v48 = vpack.c.bf16 %v12414_v49, %v12403_v2  ;;  %v14891_v52 = vmax.f32 %v12418_v25, 0.0  ;;  %10391 = vmatprep.subr.bf16.mxu1 %v11368_v42  ;;  %v12441_v57 = vpack.c.bf16 %v12106_v37, %v12094_v16  ;;  %v847_v24 = vmax.f32 %v787_v18, 0.0 }
 0x136   : > { %v848_v3 = vmax.f32 %v789_v58, 0.0  ;;  %v793_v63 = vadd.f32 %v12203_v0, %v12066_v46  ;;  %v12447_v17 = vsel %vm1347_vm2, %v1461_v35, %v12410_v4  ;;  %v14991_v42 = vmax.f32 %v12407_v47, 0.0 }
 0x137   : > { %14990 = vst [vmem:[#allocation31_spill] sm:$0xff] %v12441_v57  ;;  %v1244_v10 = vld [vmem:[#allocation2 + $0x100] sm:$0x77]  ;;  %967 = vst [vmem:[#allocation2 + $0x80] sm:$0xff] %v9929_v48  ;;  %v849_v1 = vmax.f32 %v791_v8, 0.0  ;;  %v797_v16 = vadd.f32 %v12213_v5, %v12061_v43  ;;  %v12459_v35 = vpack.c.bf16 %v12153_v50, %v12132_v15  ;;  %v9377_v48 = vcombine.low %v12325_v51, %v12186_v14 }
 0x138   : > { %v9930_v32 = vpack.c.bf16 %v14891_v52, %v14991_v42  ;;  %v9334_v37 = vcombine.high %v1244_v10, %v1244_v10  ;;  %v9333_v18 = vcombine.low %v1244_v10, %v1244_v10  ;;  %10392 = vmatpush3.bf16.msra.mxu1 %v11369_v59  ;;  %v9931_v58 = vpack.c.bf16 %v848_v3, %v847_v24  ;;  %v11374_v42 = vld [vmem:[#allocation3 + $0x3e0] sm:$0xff]   ;;  %v12468_v52 = vpop.f32.mrf.mxu1 }
 0x139   : > { %v850_v0 = vmax.f32 %v793_v63, 0.0  ;;  %10393 = vmatprep.subr.bf16.mxu1 %v11372_v54  ;;  %v851_v8 = vmax.f32 %v797_v16, 0.0  ;;  %v799_v5 = vadd.f32 %v12223_v45, %v12066_v46  ;;  %v2183_v15 = vrot.slane %v2181_v21, 2  ;;  %v11375_v45 = vld [vmem:[#allocation3 + $0x3a0] sm:$0xff]  }
 0x13a   : > { %968 = vst [vmem:[#allocation2 + $0x18] sm:$0xff] %v9930_v32  ;;  %1701 = vmatmul.mubr.bf16.gmra.mxu0 %v12447_v17  ;;  %v1500_v10 = vshrl.u32 %v9334_v37, 16  ;;  %v1503_v59 = vshll.u32 %v9334_v37, 16  ;;  %v1491_v63 = vshrl.u32 %v9333_v18, 16  ;;  %v1494_v24 = vshll.u32 %v9333_v18, 16  ;;  %969 = vst [vmem:[#allocation2 + $0x58] sm:$0xff] %v9931_v58 }
 0x13b   : > { %2900 = vmatmul.mubr.bf16.gmra.mxu1 %v12441_v57  ;;  %v2186_v50 = vrot.slane %v2184_v60, 3  ;;  %v9932_v3 = vpack.c.bf16 %v850_v0, %v849_v1  ;;  %v852_v14 = vmax.f32 %v799_v5, 0.0  ;;  %v11378_v18 = vld [vmem:[#allocation3 + $0x3d8] sm:$0xff]   ;;  %v2164_v21 = vshrl.u32 %v9377_v48, 16 }
 0x13c   : > { %2907 = vmatprep.mubr.bf16.mxu1 %v12459_v35  ;;  %v1502_v51 = vrot.slane %v1500_v10, 2  ;;  %v1505_v54 = vrot.slane %v1503_v59, 3  ;;  %v1493_v32 = vrot.slane %v1491_v63, 2  ;;  %v1496_v16 = vrot.slane %v1494_v24, 3  ;;  %10394 = vmatpush3.bf16.msra.mxu1 %v11373_v23  ;;  %v11379_v23 = vld [vmem:[#allocation3 + $0x398] sm:$0xff]   ;;  %v12474_v10 = vpop.f32.mrf.mxu1  ;;  %v11384_v24 = vld [vmem:[#allocation3 + $0x3c8] sm:$0xff]  }
 0x13d   : > { %970 = vst [vmem:[#allocation2 + $0x8] sm:$0xff] %v9932_v3  ;;  %10395 = vmatprep.subr.bf16.mxu1 %v11374_v42  ;;  %v9933_v37 = vpack.c.bf16 %v852_v14, %v851_v8  ;;  %v2167_v60 = vshll.u32 %v9377_v48, 16  ;;  %v2187_v5 = vor.u32 %v2186_v50, %v2183_v15  ;;  %v12478_v8 = vpack.c.bf16 %v12141_v30, %v12127_v6  ;;  %v11380_v42 = vld [vmem:[#allocation3 + $0x3d0] sm:$0xff]   ;;  %v11363_v50 = vld [vmem:[#allocation3 + $0xb8] sm:$0xff]   ;;  %v11385_v14 = vld [vmem:[#allocation3 + $0x388] sm:$0xff]  }
 0x13e   : > { %v1506_v58 = vor.u32 %v1505_v54, %v1502_v51  ;;  %v1497_v57 = vor.u32 %v1496_v16, %v1493_v32  ;;  %v12484_v59 = vpack.c.bf16 %v12196_v56, %v12179_v13  ;;  %v11381_v6 = vld [vmem:[#allocation3 + $0x390] sm:$0xff]   ;;  %v12488_v30 = vpop.f32.mrf.mxu1  ;;  %v12496_v56 = vpack.c.bf16 %v12191_v36, %v12172_v7  ;;  %v11386_v54 = vld [vmem:[#allocation3 + $0x3c0] sm:$0xff]  }
 0x13f   : > { %971 = vst [vmem:[#allocation2] sm:$0xff] %v9933_v37  ;;  %v2196_v48 = vsel %vm1347_vm2, %v2187_v5, %v12255_v27  ;;  %v2169_v63 = vrot.slane %v2167_v60, 3  ;;  %v11366_v3 = vld [vmem:[#allocation3 + $0xf0] sm:$0xff]   ;;  %v12500_v51 = vpack.c.bf16 %v12227_v29, %v12217_v20  ;;  %v14992_v32 = vld [vmem:[#allocation13_spill] sm:$0xff]  ;;  %v11370_v20 = vld [vmem:[#allocation3 + $0xe8] sm:$0xff]  }
 0x140   : > { %v1507_v1 = vsel %vm1347_vm2, %v12401_v40, %v1506_v58  ;;  %v1498_v0 = vsel %vm1347_vm2, %v12410_v4, %v1497_v57  ;;  %10396 = vmatpush3.bf16.msra.mxu1 %v11375_v45  ;;  %v2166_v57 = vrot.slane %v2164_v21, 2  ;;  %v12490_v27 = vpop.f32.mrf.mxu1  ;;  %v801_v16 = vadd.f32 %v14992_v32, %v12061_v43  ;;  %v14993_v45 = vld [vmem:[#allocation14_spill] sm:$0xff]  ;;  %v14994_v36 = vld [vmem:[#allocation17_spill] sm:$0xff]  ;;  %v14995_v21 = vld [vmem:[#allocation11_spill] sm:$0xff] }
 0x141   : > { %1708 = vmatprep.mubr.bf16.mxu0 %v1507_v1  ;;  %10397 = vmatprep.subr.bf16.mxu1 %v11378_v18  ;;  %v803_v7 = vadd.f32 %v14993_v45, %v12066_v46  ;;  %v807_v37 = vadd.f32 %v14994_v36, %v12061_v43  ;;  %v11387_v29 = vld [vmem:[#allocation3 + $0x380] sm:$0xff]   ;;  %v14996_v60 = vld [vmem:[#allocation12_spill] sm:$0xff] }
 0x142   : > { %1709 = vmatmul.mubr.bf16.gmra.mxu0 %v1498_v0  ;;  %v2170_v15 = vor.u32 %v2169_v63, %v2166_v57  ;;  %v853_v18 = vmax.f32 %v801_v16, 0.0  ;;  %v12511_v58 = vpop.f32.mrf.mxu1  ;;  %v12515_v1 = vpack.c.bf16 %v14996_v60, %v14995_v21  ;;  %v813_v63 = vadd.f32 %v12299_v53, %v12066_v46  ;;  %v11371_v53 = vld [vmem:[#allocation3 + $0xa8] sm:$0xff]   ;;  %v11376_v32 = vld [vmem:[#allocation3 + $0xe0] sm:$0xff]  }
 0x143   : > { %2908 = vmatmul.mubr.bf16.gmra.mxu1 %v12478_v8  ;;  %2467 = vmatprep.mubr.bf16.mxu0 %v2196_v48  ;;  %v854_v0 = vmax.f32 %v803_v7, 0.0  ;;  %v855_v5 = vmax.f32 %v807_v37, 0.0  ;;  %v14998_v48 = vld [vmem:[#allocation23_spill] sm:$0xff]  ;;  %v15001_v7 = vmax.f32 %v12418_v25, 0.0  ;;  %v821_v37 = vadd.f32 %v12382_v22, %v12061_v43 }
 0x144   : > { %2915 = vmatprep.mubr.bf16.mxu1 %v12484_v59  ;;  %10398 = vmatpush3.bf16.msra.mxu1 %v11379_v23  ;;  %v2179_v13 = vsel %vm1347_vm2, %v2170_v15, %v12257_v12  ;;  %v11367_v12 = vld [vmem:[#allocation3 + $0xb0] sm:$0xff]   ;;  %v11398_v23 = vld [vmem:[#allocation3 + $0x178] sm:$0xff]   ;;  %v811_v57 = vadd.f32 %v14998_v48, %v12061_v43  ;;  %v827_v21 = vadd.f32 %v12455_v39, %v12061_v43 }
 0x145   : > { %10399 = vmatprep.subr.bf16.mxu1 %v11380_v42  ;;  %v14997_v42 = vld [vmem:[#allocation19_spill] sm:$0xff]  ;;  %v12543_v36 = vpack.c.bf16 %v15001_v7, %v12414_v49  ;;  %v829_v22 = vadd.f32 %v12468_v52, %v12066_v46  ;;  %v831_v39 = vadd.f32 %v12474_v10, %v12061_v43  ;;  %v11383_v10 = vld [vmem:[#allocation3 + $0x98] sm:$0xff]   ;;  %v12582_v7 = vadd.f32 %v12511_v58, %v12490_v27  ;;  %v15006_v27 = vld [vmem:[#allocation21_spill] sm:$0xff] }
 0x146   : > { %v857_v16 = vmax.f32 %v811_v57, 0.0  ;;  %v12591_v58 = vpack.c.bf16 %v12289_v61, %v15006_v27  ;;  %v11399_v27 = vld [vmem:[#allocation3 + $0x138] sm:$0xff]  }
 0x147   : > { %v864_v52 = vmax.f32 %v829_v22, 0.0  ;;  %v865_v57 = vmax.f32 %v831_v39, 0.0 }
 0x148   : > { %10400 = vmatpush3.bf16.msra.mxu1 %v11381_v6  ;;  %v817_v6 = vadd.f32 %v12338_v11, %v12061_v43 }
 0x149   : > { %10401 = vmatprep.subr.bf16.mxu1 %v11384_v24  ;;  %v14999_v24 = vld [vmem:[#allocation16_spill] sm:$0xff] }
 0x14a   : > { %2468 = vmatmul.mubr.bf16.vlgmr.msra.gmra.mxu0 %v2179_v13  ;;  %v12527_v15 = vpack.c.bf16 %v12259_v28, %v14999_v24  ;;  %v859_v45 = vmax.f32 %v817_v6, 0.0  ;;  %v12538_v28 = vpop.f32.mrf.mxu1  ;;  %v15002_v24 = vld [vmem:[#allocation15_spill] sm:$0xff] }
 0x14b   : > { %2916 = vmatmul.mubr.bf16.gmra.mxu1 %v12496_v56  ;;  %10326 = vmatpush3.bf16.msra.mxu0 %v11363_v50  ;;  %v12529_v50 = vld [vmem:[#allocation2 + $0x160] sm:$0xff] }
 0x14c   : > { %2475 = vmatprep.mubr.bf16.mxu0 %v12304_v19  ;;  %2923 = vmatprep.mubr.bf16.mxu1 %v12500_v51  ;;  %v809_v19 = vadd.f32 %v14997_v42, %v12066_v46  ;;  %v9388_v13 = vcombine.high %v12371_v9, %v12529_v50  ;;  %v9387_v43 = vcombine.low %v12371_v9, %v12529_v50  ;;  %v15005_v9 = vld [vmem:[#allocation10_spill] sm:$0xff] }
 0x14d   : > { %10327 = vmatprep.subr.bf16.mxu0 %v11366_v3  ;;  %10402 = vmatpush3.bf16.msra.mxu1 %v11385_v14  ;;  %v9934_v3 = vpack.c.bf16 %v854_v0, %v853_v18  ;;  %v15000_v14 = vmax.f32 %v12407_v47, 0.0  ;;  %v819_v47 = vadd.f32 %v12360_v26, %v12066_v46  ;;  %v861_v26 = vmax.f32 %v821_v37, 0.0 }
 0x14e   : > { %10403 = vmatprep.subr.bf16.mxu1 %v11386_v54  ;;  %v856_v11 = vmax.f32 %v809_v19, 0.0  ;;  %v833_v0 = vadd.f32 %v12488_v30, %v12066_v46  ;;  %v2261_v19 = vshrl.u32 %v9388_v13, 16  ;;  %v2264_v48 = vshll.u32 %v9388_v13, 16  ;;  %v11388_v13 = vld [vmem:[#allocation3 + $0xd0] sm:$0xff]  }
 0x14f   : > { %10328 = vmatpush3.bf16.msra.mxu0 %v11367_v12  ;;  %v12536_v54 = vpack.c.bf16 %v15000_v14, %v12403_v2  ;;  %v858_v12 = vmax.f32 %v813_v63, 0.0  ;;  %972 = vst [vmem:[#allocation2 + $0x178] sm:$0xff] %v9934_v3  ;;  %v860_v25 = vmax.f32 %v819_v47, 0.0  ;;  %v15003_v3 = vld [vmem:[#allocation18_spill] sm:$0xff] }
 0x150   : > { %10329 = vmatprep.subr.bf16.mxu0 %v11370_v20  ;;  %v823_v20 = vadd.f32 %v12430_v41, %v12066_v46  ;;  %v9935_v18 = vpack.c.bf16 %v856_v11, %v855_v5  ;;  %v863_v41 = vmax.f32 %v827_v21, 0.0  ;;  %v11382_v5 = vld [vmem:[#allocation3 + $0xd8] sm:$0xff]   ;;  %v866_v63 = vmax.f32 %v833_v0, 0.0  ;;  %v11390_v47 = vld [vmem:[#allocation3 + $0xc8] sm:$0xff]   ;;  %v11393_v0 = vld [vmem:[#allocation3 + $0xc0] sm:$0xff]  }
 0x151   : > { %10404 = vmatpush3.bf16.msra.mxu1 %v11387_v29  ;;  %v9936_v29 = vpack.c.bf16 %v858_v12, %v857_v16  ;;  %v12569_v14 = vpack.c.bf16 %v15003_v3, %v15002_v24  ;;  %v2263_v11 = vrot.slane %v2261_v19, 2  ;;  %v2266_v16 = vrot.slane %v2264_v48, 3  ;;  %v12576_v12 = vld [vmem:[#allocation2 + $0x88] sm:$0xff] }
 0x152   : > { %2476 = vmatmul.mubr.bf16.gmra.mxu0 %v12309_v38  ;;  %10517 = vmatprep.subr.bf16.mxu1 %v11398_v23  ;;  %v862_v60 = vmax.f32 %v823_v20, 0.0  ;;  %v11377_v38 = vld [vmem:[#allocation3 + $0xa0] sm:$0xff]   ;;  %973 = vst [vmem:[#allocation2 + $0x150] sm:$0xff] %v9935_v18  ;;  %v9937_v23 = vpack.c.bf16 %v860_v25, %v859_v45  ;;  %v9939_v6 = vpack.c.bf16 %v864_v52, %v863_v41  ;;  %v2255_v20 = vshll.u32 %v9387_v43, 16  ;;  %v12598_v41 = vld [vmem:[#allocation2 + $0x28] sm:$0xff] }
 0x153   : > { %2924 = vmatmul.mubr.bf16.gmra.mxu1 %v12515_v1  ;;  %2483 = vmatprep.mubr.bf16.mxu0 %v12375_v44  ;;  %974 = vst [vmem:[#allocation2 + $0x168] sm:$0xff] %v9936_v29  ;;  %v12563_v44 = vpop.f32.mrf.mxu1  ;;  %v9940_v46 = vpack.c.bf16 %v866_v63, %v865_v57  ;;  %v9390_v45 = vcombine.high %v12576_v12, %v15005_v9  ;;  %v11395_v52 = vld [vmem:[#allocation3 + $0x80] sm:$0xff]  }
 0x154   : > { %2931 = vmatprep.mubr.bf16.mxu1 %v12527_v15  ;;  %10330 = vmatpush3.bf16.msra.mxu0 %v11371_v53  ;;  %v9938_v42 = vpack.c.bf16 %v862_v60, %v861_v26  ;;  %975 = vst [vmem:[#allocation2 + $0x170] sm:$0xff] %v9937_v23  ;;  %v15004_v53 = vld [vmem:[#allocation22_spill] sm:$0xff]  ;;  %977 = vst [vmem:[#allocation2 + $0x118] sm:$0xff] %v9939_v6  ;;  %v2267_v29 = vor.u32 %v2266_v16, %v2263_v11  ;;  %v15007_v26 = vmax.f32 %v12345_v33, 0.0 }
 0x155   : > { %10331 = vmatprep.subr.bf16.mxu0 %v11376_v32  ;;  %v10155_v30 = vpop.f32.mrf.mxu1  ;;  %v12573_v32 = vpack.c.bf16 %v12296_v55, %v15004_v53  ;;  %978 = vst [vmem:[#allocation2 + $0x110] sm:$0xff] %v9940_v46  ;;  %v2252_v55 = vshrl.u32 %v9387_v43, 16  ;;  %v2279_v21 = vshrl.u32 %v9390_v45, 16  ;;  %v2282_v25 = vshll.u32 %v9390_v45, 16  ;;  %v2060_v43 = vld [vmem:[#allocation2 + $0x18] sm:$0x77] }
 0x156   : > { %976 = vst [vmem:[#allocation2 + $0x30] sm:$0xff] %v9938_v42  ;;  %v12596_v60 = vpack.c.bf16 %v15007_v26, %v12333_v62  ;;  %v9389_v39 = vcombine.low %v12576_v12, %v12598_v41  ;;  %v2268_v61 = vsel %vm1347_vm2, %v12401_v40, %v2267_v29  ;;  %v15008_v42 = vld [vmem:[#allocation28_spill] sm:$0xff]  ;;  %v15011_v46 = vld [vmem:[#allocation27_spill] sm:$0xff] }
 0x157   : > { %v10156_v37 = vpop.f32.mrf.mxu1  ;;  %v2254_v22 = vrot.slane %v2252_v55, 2  ;;  %v2284_v23 = vrot.slane %v2282_v25, 3  ;;  %v15009_v33 = vmax.f32 %v15008_v42, 0.0 }
 0x158   : > { %10332 = vmatpush3.bf16.msra.mxu0 %v11377_v38  ;;  %v12587_v18 = vadd.f32 %v10156_v37, %v10155_v30  ;;  %v2257_v38 = vrot.slane %v2255_v20, 3  ;;  %v2270_v48 = vshrl.u32 %v9389_v39, 16  ;;  %v2273_v57 = vshll.u32 %v9389_v39, 16 }
 0x159   : > { %10333 = vmatprep.subr.bf16.mxu0 %v11382_v5  ;;  %v2281_v5 = vrot.slane %v2279_v21, 2  ;;  %v11768_v62 = vpack.c.bf16 %v12414_v49, %v15009_v33  ;;  %v15012_v30 = vmax.f32 %v15011_v46, 0.0  ;;  %v11406_v33 = vld [vmem:[#allocation3 + $0x168] sm:$0xff]   ;;  %v12632_v46 = vld [vmem:[#allocation2 + $0x70] sm:$0xff] }
 0x15a   : > { %2484 = vmatmul.mubr.bf16.gmra.mxu0 %v12386_v31  ;;  %v11389_v31 = vld [vmem:[#allocation3 + $0x90] sm:$0xff]   ;;  %v2258_v19 = vor.u32 %v2257_v38, %v2254_v22  ;;  %v2272_v3 = vrot.slane %v2270_v48, 2  ;;  %v2275_v53 = vrot.slane %v2273_v57, 3 }
 0x15b   : > { %2932 = vmatmul.mubr.bf16.gmra.mxu1 %v12569_v14  ;;  %2491 = vmatprep.mubr.bf16.mxu0 %v12423_v34  ;;  %v11391_v34 = vld [vmem:[#allocation3 + $0x88] sm:$0xff]   ;;  %v2285_v63 = vor.u32 %v2284_v23, %v2281_v5  ;;  %v2297_v40 = vshrl.u32 %v11768_v62, 16  ;;  %v2300_v6 = vshll.u32 %v11768_v62, 16  ;;  %v11402_v22 = vld [vmem:[#allocation3 + $0x170] sm:$0xff]  }
 0x15c   : > { %2939 = vmatprep.mubr.bf16.mxu1 %v12573_v32  ;;  %10334 = vmatpush3.bf16.msra.mxu0 %v11383_v10  ;;  %v15010_v10 = vld [vmem:[#allocation26_spill] sm:$0xff]  ;;  %v2259_v24 = vsel %vm1347_vm2, %v12410_v4, %v2258_v19 }
 0x15d   : > { %10335 = vmatprep.subr.bf16.mxu0 %v11388_v13  ;;  %v12613_v49 = vpack.c.bf16 %v15012_v30, %v15010_v10  ;;  %v15013_v13 = vld [vmem:[#allocation25_spill] sm:$0xff]  ;;  %v2286_v9 = vsel %vm1347_vm2, %v2267_v29, %v2285_v63  ;;  %v2299_v45 = vrot.slane %v2297_v40, 2  ;;  %v2302_v55 = vrot.slane %v2300_v6, 3  ;;  %v11412_v6 = vld [vmem:[#allocation3 + $0x158] sm:$0xff]  }
 0x15e   : > { %v15014_v11 = vmax.f32 %v15013_v13, 0.0  ;;  %v9393_v29 = vcombine.low %v2060_v43, %v2060_v43  ;;  %v12636_v30 = vcombine.high %v12632_v46, %v12632_v46  ;;  %v11400_v13 = vld [vmem:[#allocation3 + $0x2f0] sm:$0xff]  }
 0x15f   : > { %v2303_v20 = vor.u32 %v2302_v55, %v2299_v45  ;;  %v11439_v45 = vld [vmem:[#allocation3 + $0x1f8] sm:$0xff]   ;;  %v11405_v55 = vld [vmem:[#allocation3 + $0x2a8] sm:$0xff]  }
 0x160   : > { %10336 = vmatpush3.bf16.msra.mxu0 %v11389_v31  ;;  %v11770_v16 = vpack.c.bf16 %v12403_v2, %v15014_v11  ;;  %v9394_v31 = vcombine.high %v2060_v43, %v2060_v43  ;;  %v2306_v23 = vshrl.u32 %v9393_v29, 16  ;;  %v2309_v42 = vshll.u32 %v9393_v29, 16  ;;  %v11413_v43 = vld [vmem:[#allocation3 + $0x118] sm:$0xff]   ;;  %v11419_v11 = vld [vmem:[#allocation3 + $0x108] sm:$0xff]  }
 0x161   : > { %10337 = vmatprep.subr.bf16.mxu0 %v11390_v47  ;;  %v2276_v47 = vor.u32 %v2275_v53, %v2272_v3  ;;  %v2304_v38 = vsel %vm1347_vm2, %v2285_v63, %v2303_v20  ;;  %v11397_v3 = vld [vmem:[#allocation3 + $0x2b8] sm:$0xff]   ;;  %v12643_v53 = vcombine.low %v12632_v46, %v12632_v46 }
 0x162   : > { %2492 = vmatmul.mubr.bf16.gmra.mxu0 %v12447_v17  ;;  %v11396_v17 = vld [vmem:[#allocation3 + $0x2f8] sm:$0xff]   ;;  %v2288_v4 = vshrl.u32 %v11770_v16, 16  ;;  %v2291_v37 = vshll.u32 %v11770_v16, 16  ;;  %v2315_v21 = vshrl.u32 %v9394_v31, 16  ;;  %v2318_v25 = vshll.u32 %v9394_v31, 16  ;;  %v11404_v16 = vld [vmem:[#allocation3 + $0x2e8] sm:$0xff]  }
 0x163   : > { %2940 = vmatmul.mubr.bf16.gmra.mxu1 %v12591_v58  ;;  %2499 = vmatprep.mubr.bf16.mxu0 %v2268_v61  ;;  %v2277_v2 = vsel %vm1347_vm2, %v2258_v19, %v2276_v47  ;;  %v11403_v61 = vld [vmem:[#allocation3 + $0x130] sm:$0xff]   ;;  %v2308_v48 = vrot.slane %v2306_v23, 2  ;;  %v2311_v57 = vrot.slane %v2309_v42, 3  ;;  %v11410_v31 = vld [vmem:[#allocation3 + $0x2e0] sm:$0xff]  }
 0x164   : > { %2947 = vmatprep.mubr.bf16.mxu1 %v12596_v60  ;;  %10338 = vmatpush3.bf16.msra.mxu0 %v11391_v34  ;;  %v2290_v34 = vrot.slane %v2288_v4, 2  ;;  %v2293_v26 = vrot.slane %v2291_v37, 3  ;;  %v2317_v39 = vrot.slane %v2315_v21, 2  ;;  %v3462_v4 = vld [vmem:[#allocation2 + $0x10] sm:$0xee]  ;;  %v11417_v37 = vld [vmem:[#allocation3 + $0x298] sm:$0xff]  }
 0x165   : > { %10339 = vmatprep.subr.bf16.mxu0 %v11393_v0  ;;  %v2320_v0 = vrot.slane %v2318_v25, 3  ;;  %v2312_v40 = vor.u32 %v2311_v57, %v2308_v48  ;;  %v11422_v21 = vld [vmem:[#allocation3 + $0x2d0] sm:$0xff]   ;;  %v9534_v25 = vcombine.high %v3462_v4, %v12632_v46  ;;  %v4038_v57 = vshll.u32 %v12643_v53, 16 }
 0x166   : > { %v2294_v5 = vor.u32 %v2293_v26, %v2290_v34  ;;  %v11423_v34 = vld [vmem:[#allocation3 + $0x290] sm:$0xff]  }
 0x167   : > { %v2321_v62 = vor.u32 %v2320_v0, %v2317_v39  ;;  %v4044_v26 = vshrl.u32 %v9534_v25, 16  ;;  %v4047_v29 = vshll.u32 %v9534_v25, 16  ;;  %v9533_v39 = vcombine.low %v3462_v4, %v12632_v46  ;;  %v11425_v0 = vld [vmem:[#allocation3 + $0x288] sm:$0xff]  }
 0x168   : > { %10340 = vmatpush3.bf16.msra.mxu0 %v11395_v52  ;;  %v11407_v52 = vld [vmem:[#allocation3 + $0x128] sm:$0xff]   ;;  %v2295_v19 = vsel %vm1347_vm2, %v2276_v47, %v2294_v5  ;;  %v2313_v10 = vsel %vm1347_vm2, %v2294_v5, %v2312_v40  ;;  %v11416_v47 = vld [vmem:[#allocation3 + $0x2d8] sm:$0xff]   ;;  %v4040_v46 = vrot.slane %v4038_v57, 2 }
 0x169   : > { %10453 = vmatprep.subr.bf16.mxu0 %v11396_v17  ;;  %v11408_v17 = vld [vmem:[#allocation3 + $0x160] sm:$0xff]   ;;  %v2322_v63 = vsel %vm1347_vm2, %v2303_v20, %v2321_v62  ;;  %v9477_v20 = vcombine.low %v12529_v50, %v12576_v12  ;;  %v4049_v5 = vrot.slane %v4047_v29, 2  ;;  %v15017_v62 = vld [vmem:[#allocation24_spill] sm:$0xff]  ;;  %v4030_v48 = vshll.u32 %v9533_v39, 16  ;;  %v11717_v29 = vld [vmem:[#allocation2 + $0xa8] sm:$0xff] }
 0x16a   : > { %2500 = vmatmul.mubr.bf16.gmra.mxu0 %v2259_v24  ;;  %v11418_v24 = vld [vmem:[#allocation3 + $0x148] sm:$0xff]   ;;  %v11435_v40 = vld [vmem:[#allocation3 + $0x478] sm:$0xff]  }
 0x16b   : > { %2948 = vmatmul.mubr.bf16.gmra.mxu1 %v12613_v49  ;;  %2507 = vmatprep.mubr.bf16.mxu0 %v2286_v9  ;;  %v11421_v9 = vld [vmem:[#allocation3 + $0x100] sm:$0xff]  }
 0x16c   : > { %3365 = vmatprep.mubr.bf16.mxu1 %v12484_v59 }
 0x172   : > { %2508 = vmatmul.mubr.bf16.gmra.mxu0 %v2277_v2  ;;  %v15016_v2 = vld [vmem:[#allocation20_spill] sm:$0xff] }
 0x173   : > { %3366 = vmatmul.mubr.bf16.vlgmr.msra.gmra.mxu1 %v12496_v56  ;;  %2515 = vmatprep.mubr.bf16.mxu0 %v2304_v38 }
 0x174   : > { %3373 = vmatprep.mubr.bf16.mxu1 %v12500_v51  ;;  %10518 = vmatpush3.bf16.msra.mxu1 %v11399_v27  ;;  %v11409_v51 = vld [vmem:[#allocation3 + $0x120] sm:$0xff]  }
 0x175   : > { %10519 = vmatprep.subr.bf16.mxu1 %v11402_v22  ;;  %v11424_v22 = vld [vmem:[#allocation3 + $0x2c8] sm:$0xff]  }
 0x178   : > { %10520 = vmatpush3.bf16.msra.mxu1 %v11403_v61  ;;  %v4046_v61 = vrot.slane %v4044_v26, 1  ;;  %v11452_v26 = vld [vmem:[#allocation3 + $0x1a8] sm:$0xff]  }
 0x179   : > { %10521 = vmatprep.subr.bf16.mxu1 %v11406_v33  ;;  %v11427_v33 = vld [vmem:[#allocation3 + $0x2c0] sm:$0xff]  }
 0x17a   : > { %2516 = vmatmul.mubr.bf16.gmra.mxu0 %v2295_v19  ;;  %v4027_v19 = vshrl.u32 %v9533_v39, 16  ;;  %v11453_v39 = vld [vmem:[#allocation3 + $0x1e0] sm:$0xff]  }
 0x17b   : > { %3374 = vmatmul.mubr.bf16.gmra.mxu1 %v12515_v1  ;;  %2523 = vmatprep.mubr.bf16.mxu0 %v2322_v63  ;;  %v11414_v1 = vld [vmem:[#allocation3 + $0x150] sm:$0xff]   ;;  %v4050_v63 = vor.u32 %v4049_v5, %v4046_v61 }
 0x17c   : > { %3381 = vmatprep.mubr.bf16.mxu1 %v12527_v15  ;;  %10522 = vmatpush3.bf16.msra.mxu1 %v11407_v52  ;;  %v11415_v15 = vld [vmem:[#allocation3 + $0x110] sm:$0xff]   ;;  %v15018_v52 = vld [vmem:[#allocation30_spill] sm:$0xff] }
 0x17d   : > { %10523 = vmatprep.subr.bf16.mxu1 %v11408_v17  ;;  %v11428_v17 = vld [vmem:[#allocation3 + $0x280] sm:$0xff]  }
 0x180   : > { %10524 = vmatpush3.bf16.msra.mxu1 %v11409_v51 }
 0x181   : > { %10525 = vmatprep.subr.bf16.mxu1 %v11412_v6  ;;  %v4029_v6 = vrot.slane %v4027_v19, 1 }
 0x182   : > { %2524 = vmatmul.mubr.bf16.gmra.mxu0 %v2313_v10 }
 0x183   : > { %3382 = vmatmul.mubr.bf16.gmra.mxu1 %v12569_v14  ;;  %3103 = vmatprep.mubr.bf16.mxu0 %v12636_v30  ;;  %v11420_v14 = vld [vmem:[#allocation3 + $0x140] sm:$0xff]  }
 0x184   : > { %3389 = vmatprep.mubr.bf16.mxu1 %v12573_v32  ;;  %10526 = vmatpush3.bf16.msra.mxu1 %v11413_v43  ;;  %v11401_v32 = vld [vmem:[#allocation3 + $0x2b0] sm:$0xff]   ;;  %v4032_v43 = vrot.slane %v4030_v48, 2  ;;  %v11454_v48 = vld [vmem:[#allocation3 + $0x1a0] sm:$0xff]  }
 0x185   : > { %10527 = vmatprep.subr.bf16.mxu1 %v11414_v1  ;;  %v15019_v1 = vld [vmem:[#allocation31_spill] sm:$0xff] }
 0x188   : > { %10528 = vmatpush3.bf16.msra.mxu1 %v11415_v15  ;;  %v3468_v15 = vld [vmem:[#allocation2 + $0x40] sm:$0xff] }
 0x189   : > { %10529 = vmatprep.subr.bf16.mxu1 %v11418_v24 }
 0x18a   : > { %3104 = vmatmul.mubr.bf16.vlgmr.msra.gmra.mxu0 %v12643_v53 }
 0x18b   : > { %3390 = vmatmul.mubr.bf16.gmra.mxu1 %v12591_v58  ;;  %10454 = vmatpush3.bf16.msra.mxu0 %v11397_v3  ;;  %v9478_v58 = vcombine.high %v12529_v50, %v12576_v12  ;;  %v4052_v50 = vshrl.u32 %v12636_v30, 16  ;;  %v4055_v12 = vshll.u32 %v12636_v30, 16  ;;  %v4033_v3 = vor.u32 %v4032_v43, %v4029_v6 }
 0x18c   : > { %3397 = vmatprep.mubr.bf16.mxu1 %v12596_v60  ;;  %3111 = vmatprep.mubr.bf16.mxu0 %v12636_v30  ;;  %v11411_v60 = vld [vmem:[#allocation3 + $0x2a0] sm:$0xff]  }
 0x18d   : > { %10455 = vmatprep.subr.bf16.mxu0 %v11400_v13  ;;  %10530 = vmatpush3.bf16.msra.mxu1 %v11419_v11  ;;  %v4054_v23 = vrot.slane %v4052_v50, 1  ;;  %v4057_v42 = vrot.slane %v4055_v12, 2 }
 0x18e   : > { %10531 = vmatprep.subr.bf16.mxu1 %v11420_v14 }
 0x18f   : > { %10456 = vmatpush3.bf16.msra.mxu0 %v11401_v32  ;;  %v12671_v51 = vor.u32 %v4057_v42, %v4054_v23  ;;  %v11440_v32 = vld [vmem:[#allocation3 + $0x1b8] sm:$0xff]   ;;  %v11437_v42 = vld [vmem:[#allocation2 + $0xa4] ss:$-56 sps:$4 sm:$0xff]  }
 0x190   : > { %10457 = vmatprep.subr.bf16.mxu0 %v11404_v16  ;;  %v3670_v43 = vshll.u32 %v11437_v42, 16 }
 0x191   : > { %10532 = vmatpush3.bf16.msra.mxu1 %v11421_v9  ;;  %v4077_v16 = vsel %vm3622_vm3, %v12671_v51, %v12671_v51 }
 0x192   : > { %3112 = vmatmul.mubr.bf16.gmra.mxu0 %v12643_v53  ;;  %10645 = vmatprep.subr.bf16.mxu1 %v11439_v45  ;;  %v11445_v45 = vld [vmem:[#allocation3 + $0x1f0] sm:$0xff]  }
 0x193   : > { %3398 = vmatmul.mubr.bf16.gmra.mxu1 %v12613_v49  ;;  %3119 = vmatprep.mubr.bf16.mxu0 %v12636_v30  ;;  %v15015_v49 = vld [vmem:[#allocation29_spill] sm:$0xff]  ;;  %v3469_v30 = vld [vmem:[#allocation2 + $0xf0] sm:$0xff] }
 0x194   : > { %3405 = vmatprep.mubr.bf16.mxu1 %v9478_v58  ;;  %10458 = vmatpush3.bf16.msra.mxu0 %v11405_v55  ;;  %v9480_v27 = vcombine.high %v12598_v41, %v15015_v49  ;;  %v9479_v38 = vcombine.low %v12598_v41, %v15015_v49  ;;  %v4035_v41 = vshrl.u32 %v12643_v53, 16  ;;  %v9540_v24 = vcombine.high %v3468_v15, %v3469_v30  ;;  %v12689_v49 = vpop.f32.mrf.mxu1 }
 0x195   : > { %10459 = vmatprep.subr.bf16.mxu0 %v11410_v31  ;;  %v9539_v9 = vcombine.low %v3468_v15, %v3469_v30  ;;  %v3512_v31 = vld [vmem:[#allocation2 + $0x40] sm:$0xee]  ;;  %v11462_v15 = vld [vmem:[#allocation3 + $0x198] sm:$0xff]  }
 0x196   : > { %v4037_v10 = vrot.slane %v4035_v41, 1  ;;  %v4088_v13 = vshrl.u32 %v9540_v24, 16  ;;  %v4091_v11 = vshll.u32 %v9540_v24, 16  ;;  %v9500_v58 = vcombine.high %v3512_v31, %v3469_v30  ;;  %v12698_v23 = vpop.f32.mrf.mxu1 }
 0x197   : > { %v4082_v4 = vshll.u32 %v9539_v9, 16 }
 0x198   : > { %10460 = vmatpush3.bf16.msra.mxu0 %v11411_v60  ;;  %v4093_v55 = vrot.slane %v4091_v11, 2  ;;  %v11446_v60 = vld [vmem:[#allocation3 + $0x1b0] sm:$0xff]  }
 0x199   : > { %10461 = vmatprep.subr.bf16.mxu0 %v11416_v47  ;;  %v4079_v47 = vshrl.u32 %v9539_v9, 16 }
 0x19a   : > { %3120 = vmatmul.mubr.bf16.gmra.mxu0 %v12643_v53  ;;  %v12678_v53 = vor.u32 %v4040_v46, %v4037_v10  ;;  %v12702_v10 = vld [vmem:[#allocation2 + $0x128] sm:$0xff] }
 0x19b   : > { %3406 = vmatmul.mubr.bf16.gmra.mxu1 %v9477_v20  ;;  %3127 = vmatprep.mubr.bf16.mxu0 %v15016_v2  ;;  %v12687_v20 = vld [vmem:[#allocation2 + $0xb8] sm:$0xff]  ;;  %v3641_v2 = vshrl.u32 %v9500_v58, 16  ;;  %v4081_v12 = vrot.slane %v4079_v47, 1  ;;  %v11464_v47 = vld [vmem:[#allocation3 + $0x190] sm:$0xff]  }
 0x19c   : > { %3413 = vmatprep.mubr.bf16.mxu1 %v9480_v27  ;;  %10462 = vmatpush3.bf16.msra.mxu0 %v11417_v37  ;;  %v4042_v14 = vsel %vm3622_vm3, %v4033_v3, %v12678_v53  ;;  %v11450_v37 = vld [vmem:[#allocation3 + $0x1e8] sm:$0xff]   ;;  %v11432_v27 = vld [vmem:[#allocation2 + $0xf8] ss:$-24 sps:$4 sm:$0xff]   ;;  %v9450_v50 = vcombine.high %v11717_v29, %v12687_v20  ;;  %v9449_v46 = vcombine.low %v11717_v29, %v12687_v20 }
 0x19d   : > { %10463 = vmatprep.subr.bf16.mxu0 %v11422_v21 }
 0x1a0   : > { %10464 = vmatpush3.bf16.msra.mxu0 %v11423_v34  ;;  %v3644_v34 = vshll.u32 %v9500_v58, 16 }
 0x1a1   : > { %10465 = vmatprep.subr.bf16.mxu0 %v11424_v22  ;;  %v4084_v22 = vrot.slane %v4082_v4, 2 }
 0x1a2   : > { %3128 = vmatmul.mubr.bf16.gmra.mxu0 %v15017_v62  ;;  %v3635_v62 = vshll.u32 %v11432_v27, 16  ;;  %v3646_v19 = vrot.slane %v3644_v34, 2 }
 0x1a3   : > { %3414 = vmatmul.mubr.bf16.gmra.mxu1 %v9479_v38  ;;  %3135 = vmatprep.mubr.bf16.mxu0 %v15018_v52  ;;  %v9499_v38 = vcombine.low %v3512_v31, %v3469_v30  ;;  %v3643_v52 = vrot.slane %v3641_v2, 1  ;;  %v4085_v41 = vor.u32 %v4084_v22, %v4081_v12  ;;  %v3672_v31 = vrot.slane %v3670_v43, 2 }
 0x1a4   : > { %3421 = vmatprep.mubr.bf16.mxu1 %v12543_v36  ;;  %10466 = vmatpush3.bf16.msra.mxu0 %v11425_v0  ;;  %v4059_v36 = vsel %vm3622_vm3, %v4050_v63, %v12671_v51 }
 0x1a5   : > { %10467 = vmatprep.subr.bf16.mxu0 %v11427_v33  ;;  %v3632_v33 = vshrl.u32 %v11432_v27, 16  ;;  %v3624_v57 = vshrl.u32 %v9499_v38, 16  ;;  %v3647_v30 = vor.u32 %v3646_v19, %v3643_v52  ;;  %v4086_v24 = vsel %vm3622_vm3, %v12678_v53, %v4085_v41  ;;  %v11472_v19 = vld [vmem:[#allocation3 + $0x188] sm:$0xff]  }
 0x1a8   : > { %10468 = vmatpush3.bf16.msra.mxu0 %v11428_v17  ;;  %v11458_v17 = vld [vmem:[#allocation3 + $0x1d8] sm:$0xff]  }
 0x1a9   : > { %10581 = vmatprep.subr.bf16.mxu0 %v11435_v40  ;;  %v11442_v40 = vld [vmem:[#allocation2 + $0xa0] ss:$-56 sps:$4 sm:$0xff]  }
 0x1aa   : > { %3136 = vmatmul.mubr.bf16.gmra.mxu0 %v15019_v1  ;;  %v3637_v1 = vrot.slane %v3635_v62, 2  ;;  %v3661_v58 = vshll.u32 %v11442_v40, 16 }
 0x1ab   : > { %3422 = vmatmul.mubr.bf16.gmra.mxu1 %v12536_v54  ;;  %3143 = vmatprep.mubr.bf16.mxu0 %v12459_v35  ;;  %v11434_v35 = vld [vmem:[#allocation2 + $0xfc] ss:$-24 sps:$4 sm:$0xff]   ;;  %v4090_v54 = vrot.slane %v4088_v13, 1  ;;  %v3626_v13 = vrot.slane %v3624_v57, 1 }
 0x1ac   : > { %4254 = vmatprep.mubr.bf16.mxu1 %v4059_v36  ;;  %v3649_v21 = vshrl.u32 %v11434_v35, 16  ;;  %v3652_v25 = vshll.u32 %v11434_v35, 16  ;;  %v3634_v36 = vrot.slane %v3632_v33, 1  ;;  %v3663_v12 = vrot.slane %v3661_v58, 2 }
 0x1ae   : > { %v3651_v0 = vrot.slane %v3649_v21, 1  ;;  %v3654_v61 = vrot.slane %v3652_v25, 2  ;;  %v11469_v21 = vld [vmem:[#allocation3 + $0x1c8] sm:$0xff]  }
 0x1b0   : > { %v12700_v63 = vor.u32 %v3654_v61, %v3651_v0 }
 0x1b2   : > { %3144 = vmatmul.mubr.bf16.gmra.mxu0 %v12478_v8  ;;  %v4094_v8 = vor.u32 %v4093_v55, %v4090_v54 }
 0x1b3   : > { %4255 = vmatmul.mubr.bf16.vlgmr.msra.gmra.mxu1 %v4042_v14  ;;  %3151 = vmatprep.mubr.bf16.mxu0 %v12484_v59  ;;  %v4068_v59 = vsel %vm3622_vm3, %v12678_v53, %v12678_v53  ;;  %v3474_v14 = vld [vmem:[#allocation2 + $0x78] sm:$0xff] }
 0x1b4   : > { %4262 = vmatprep.mubr.bf16.mxu1 %v4077_v16  ;;  %10646 = vmatpush3.bf16.msra.mxu1 %v11440_v32  ;;  %v4095_v5 = vsel %vm3622_vm3, %v12671_v51, %v4094_v8  ;;  %v3667_v51 = vshrl.u32 %v11437_v42, 16  ;;  %v11463_v32 = vld [vmem:[#allocation3 + $0x1d0] sm:$0xff]   ;;  %v3656_v16 = vsel %vm3622_vm3, %v3647_v30, %v12700_v63  ;;  %v9506_v35 = vcombine.high %v3474_v14, %v12702_v10 }
 0x1b5   : > { %10647 = vmatprep.subr.bf16.mxu1 %v11445_v45  ;;  %v3658_v45 = vshrl.u32 %v11442_v40, 16  ;;  %v4097_v53 = vsel %vm3622_vm3, %v4094_v8, %v12700_v63  ;;  %v10154_v30 = vadd.f32 %v12563_v44, %v12538_v28  ;;  %v11474_v28 = vld [vmem:[#allocation3 + $0x180] sm:$0xff]  }
 0x1b6   : > { %v3669_v55 = vrot.slane %v3667_v51, 1  ;;  %v3685_v27 = vshrl.u32 %v9506_v35, 16  ;;  %v3688_v2 = vshll.u32 %v9506_v35, 16 }
 0x1b8   : > { %10648 = vmatpush3.bf16.msra.mxu1 %v11446_v60  ;;  %v12714_v60 = vor.u32 %v3637_v1, %v3634_v36  ;;  %v12719_v29 = vor.u32 %v3672_v31, %v3669_v55  ;;  %v3687_v57 = vrot.slane %v3685_v27, 1  ;;  %v12744_v36 = vadd.f32 %v12698_v23, %v12689_v49 }
 0x1b9   : > { %10649 = vmatprep.subr.bf16.mxu1 %v11450_v37  ;;  %v9505_v37 = vcombine.low %v3474_v14, %v12702_v10 }
 0x1ba   : > { %3152 = vmatmul.mubr.bf16.gmra.mxu0 %v12496_v56  ;;  %v3627_v56 = vshll.u32 %v9499_v38, 16  ;;  %v4096_v38 = vsel %vm3622_vm3, %v4085_v41, %v12714_v60  ;;  %v3674_v40 = vsel %vm3622_vm3, %v12700_v63, %v12719_v29  ;;  %v3478_v63 = vld [vmem:[#allocation2 + $0x20] sm:$0x33] }
 0x1bb   : > { %4263 = vmatmul.mubr.bf16.gmra.mxu1 %v4068_v59  ;;  %3159 = vmatprep.mubr.bf16.mxu0 %v9450_v50  ;;  %v3660_v50 = vrot.slane %v3658_v45, 1  ;;  %v3676_v42 = vshrl.u32 %v9505_v37, 16  ;;  %v3679_v33 = vshll.u32 %v9505_v37, 16  ;;  %v11498_v45 = vld [vmem:[#allocation3 + $0x378] sm:$0xff]   ;;  %v9542_v58 = vcombine.high %v3478_v63, %v3478_v63 }
 0x1bc   : > { %4270 = vmatprep.mubr.bf16.mxu1 %v4095_v5  ;;  %10650 = vmatpush3.bf16.msra.mxu1 %v11452_v26  ;;  %v3629_v11 = vrot.slane %v3627_v56, 2  ;;  %v11436_v26 = vld [vmem:[#allocation3 + $0x438] sm:$0xff]   ;;  %v11441_v5 = vld [vmem:[#allocation3 + $0x470] sm:$0xff]   ;;  %v3690_v56 = vrot.slane %v3688_v2, 2 }
 0x1bd   : > { %10651 = vmatprep.subr.bf16.mxu1 %v11453_v39  ;;  %v12725_v39 = vld [vmem:[#allocation2 + $0xa8] sm:$0xff]  ;;  %v12738_v43 = vor.u32 %v3663_v12, %v3660_v50  ;;  %v3681_v14 = vrot.slane %v3679_v33, 2  ;;  %v11455_v50 = vld [vmem:[#allocation3 + $0x460] sm:$0xff]  }
 0x1be   : > { %v3630_v59 = vor.u32 %v3629_v11, %v3626_v13  ;;  %v9508_v62 = vcombine.high %v12725_v39, %v12687_v20  ;;  %v12731_v52 = vcombine.low %v12725_v39, %v12687_v20  ;;  %v11443_v20 = vld [vmem:[#allocation3 + $0x430] sm:$0xff]   ;;  %v3678_v11 = vrot.slane %v3676_v42, 1 }
 0x1bf   : > { %v10161_v6 = vpop.f32.mrf.mxu1  ;;  %v12751_v23 = vor.u32 %v3690_v56, %v3687_v57  ;;  %v11470_v12 = vld [vmem:[#allocation2 + $0x64] ss:$208 sps:$4 sm:$0xff]   ;;  %v12769_v57 = vld [vmem:[#allocation2 + $0x88] sm:$0xff] }
 0x1c0   : > { %10652 = vmatpush3.bf16.msra.mxu1 %v11454_v48  ;;  %v3639_v22 = vsel %vm3622_vm3, %v3630_v59, %v12714_v60  ;;  %v3697_v37 = vshll.u32 %v12731_v52, 16 }
 0x1c1   : > { %v10162_v3 = vpop.f32.mrf.mxu1  ;;  %10653 = vmatprep.subr.bf16.mxu1 %v11458_v17  ;;  %v11473_v17 = vld [vmem:[#allocation3 + $0x1c0] sm:$0xff]  }
 0x1c2   : > { %3160 = vmatmul.mubr.bf16.gmra.mxu0 %v9449_v46  ;;  %v12709_v9 = vadd.f32 %v10162_v3, %v10161_v6  ;;  %v11459_v46 = vld [vmem:[#allocation2 + $0x24] ss:$40 sps:$4 sm:$0xff]   ;;  %v3699_v56 = vrot.slane %v3697_v37, 2 }
 0x1c3   : > { %4271 = vmatmul.mubr.bf16.gmra.mxu1 %v4086_v24  ;;  %3927 = vmatprep.mubr.bf16.mxu0 %v3656_v16  ;;  %v10164_v54 = vpop.f32.mrf.mxu1  ;;  %v11466_v24 = vld [vmem:[#allocation2 + $0x20] ss:$40 sps:$4 sm:$0xff]   ;;  %v3706_v16 = vshll.u32 %v9508_v62, 16  ;;  %v3721_v55 = vshrl.u32 %v11459_v46, 16  ;;  %v3724_v31 = vshll.u32 %v11459_v46, 16 }
 0x1c4   : > { %4278 = vmatprep.mubr.bf16.mxu1 %v4097_v53  ;;  %10654 = vmatpush3.bf16.msra.mxu1 %v11462_v15  ;;  %v11447_v15 = vld [vmem:[#allocation3 + $0x468] sm:$0xff]   ;;  %v3715_v59 = vshll.u32 %v11466_v24, 16 }
 0x1c5   : > { %v10165_v4 = vpop.f32.mrf.mxu1  ;;  %10655 = vmatprep.subr.bf16.mxu1 %v11463_v32  ;;  %v3703_v32 = vshrl.u32 %v9508_v62, 16  ;;  %v3723_v33 = vrot.slane %v3721_v55, 1  ;;  %v3726_v62 = vrot.slane %v3724_v31, 2  ;;  %v11468_v31 = vld [vmem:[#allocation3 + $0x418] sm:$0xff]  }
 0x1c6   : > { %v12717_v25 = vadd.f32 %v10165_v4, %v10164_v54  ;;  %v3665_v54 = vsel %vm3622_vm3, %v12714_v60, %v12738_v43  ;;  %v11449_v4 = vld [vmem:[#allocation3 + $0x428] sm:$0xff]   ;;  %v9541_v60 = vcombine.low %v3478_v63, %v3478_v63 }
 0x1c7   : > { %v10085_v8 = vpop.f32.mrf.mxu0  ;;  %v10167_v34 = vpop.f32.mrf.mxu1 }
 0x1c8   : > { %10656 = vmatpush3.bf16.msra.mxu1 %v11464_v47  ;;  %v4102_v63 = vshll.u32 %v9541_v60, 16 }
 0x1c9   : > { %v10086_v0 = vpop.f32.mrf.mxu0  ;;  %v10168_v61 = vpop.f32.mrf.mxu1  ;;  %10657 = vmatprep.subr.bf16.mxu1 %v11469_v21  ;;  %v3712_v21 = vshrl.u32 %v11466_v24, 16  ;;  %v3739_v24 = vshrl.u32 %v11470_v12, 16 }
 0x1ca   : > { %3928 = vmatmul.mubr.bf16.vlgmr.msra.gmra.mxu0 %v3639_v22  ;;  %v10087_v48 = vadd.f32 %v10086_v0, %v10085_v8  ;;  %v12733_v41 = vadd.f32 %v10168_v61, %v10167_v34  ;;  %v12760_v8 = vor.u32 %v3681_v14, %v3678_v11  ;;  %v3705_v34 = vrot.slane %v3703_v32, 1 }
 0x1cb   : > { %4279 = vmatmul.mubr.bf16.gmra.mxu1 %v4096_v38  ;;  %10582 = vmatpush3.bf16.msra.mxu0 %v11436_v26  ;;  %v10088_v6 = vpop.f32.mrf.mxu0  ;;  %v10170_v51 = vpop.f32.mrf.mxu1  ;;  %v3708_v26 = vrot.slane %v3706_v16, 2  ;;  %v3692_v22 = vsel %vm3622_vm3, %v12719_v29, %v12751_v23 }
 0x1cc   : > { %3935 = vmatprep.mubr.bf16.mxu0 %v3674_v40  ;;  %4286 = vmatprep.mubr.bf16.mxu1 %v3674_v40  ;;  %v12747_v1 = vadd.f32 %v12582_v7, %v10087_v48  ;;  %v3694_v7 = vshrl.u32 %v12731_v52, 16  ;;  %v4108_v52 = vshrl.u32 %v9542_v58, 16  ;;  %v12767_v48 = vld [vmem:[#allocation2 + $0x160] sm:$0xff]  ;;  %v3714_v40 = vrot.slane %v3712_v21, 1 }
 0x1cd   : > { %v10089_v3 = vpop.f32.mrf.mxu0  ;;  %v10171_v13 = vpop.f32.mrf.mxu1  ;;  %10583 = vmatprep.subr.bf16.mxu0 %v11441_v5  ;;  %10658 = vmatpush3.bf16.msra.mxu1 %v11472_v19  ;;  %v4111_v19 = vshll.u32 %v9542_v58, 16  ;;  %v3709_v32 = vor.u32 %v3708_v26, %v3705_v34  ;;  %v4104_v21 = vrot.slane %v4102_v63, 2  ;;  %v12816_v63 = vld [vmem:[#allocation2 + $0x38] sm:$0xff] }
 0x1ce   : > { %v10090_v44 = vadd.f32 %v10089_v3, %v10088_v6  ;;  %v12749_v49 = vadd.f32 %v10171_v13, %v10170_v51  ;;  %10659 = vmatprep.subr.bf16.mxu1 %v11473_v17  ;;  %v3696_v61 = vrot.slane %v3694_v7, 1  ;;  %v11457_v17 = vld [vmem:[#allocation3 + $0x420] sm:$0xff]   ;;  %v3717_v6 = vrot.slane %v3715_v59, 2  ;;  %v5287_v13 = vld [vmem:[#allocation2 + $0x28] sm:$0xff] }
 0x1cf   : > { %v10091_v35 = vpop.f32.mrf.mxu0  ;;  %v10173_v53 = vpop.f32.mrf.mxu1  ;;  %10584 = vmatpush3.bf16.msra.mxu0 %v11443_v20  ;;  %v5327_v51 = vld [vmem:[#allocation2 + $0x100] sm:$0xcc]  ;;  %v3742_v3 = vshll.u32 %v11470_v12, 16  ;;  %v4110_v7 = vrot.slane %v4108_v52, 1  ;;  %v3741_v59 = vrot.slane %v3739_v24, 1 }
 0x1d0   : > { %v12757_v47 = vadd.f32 %v10154_v30, %v10090_v44  ;;  %10585 = vmatprep.subr.bf16.mxu0 %v11447_v15  ;;  %v11465_v30 = vld [vmem:[#allocation3 + $0x458] sm:$0xff]   ;;  %v4099_v15 = vshrl.u32 %v9541_v60, 16  ;;  %v12779_v44 = vor.u32 %v3726_v62, %v3723_v33  ;;  %v12787_v55 = vor.u32 %v3717_v6, %v3714_v40  ;;  %v11476_v60 = vld [vmem:[#allocation2 + $0x60] ss:$208 sps:$4 sm:$0xff]  }
 0x1d1   : > { %v10092_v27 = vpop.f32.mrf.mxu0  ;;  %v10174_v2 = vpop.f32.mrf.mxu1  ;;  %10660 = vmatpush3.bf16.msra.mxu1 %v11474_v28  ;;  %v5289_v24 = vld [vmem:[#allocation2 + $0x80] sm:$0xff] }
 0x1d2   : > { %3936 = vmatmul.mubr.bf16.gmra.mxu0 %v3665_v54  ;;  %v10093_v38 = vadd.f32 %v10092_v27, %v10091_v35  ;;  %v12765_v0 = vadd.f32 %v10174_v2, %v10173_v53  ;;  %10773 = vmatprep.subr.bf16.mxu1 %v11498_v45  ;;  %v4113_v45 = vrot.slane %v4111_v19, 2  ;;  %v9611_v35 = vcombine.high %v5327_v51, %v12767_v48  ;;  %v11475_v2 = vld [vmem:[#allocation3 + $0x450] sm:$0xff]  }
 0x1d3   : > { %4287 = vmatmul.mubr.bf16.gmra.mxu1 %v3665_v54  ;;  %3943 = vmatprep.mubr.bf16.mxu0 %v3692_v22  ;;  %v10094_v5 = vpop.f32.mrf.mxu0  ;;  %v10176_v42 = vpop.f32.mrf.mxu1  ;;  %v12785_v54 = vor.u32 %v3699_v56, %v3696_v61  ;;  %v4101_v37 = vrot.slane %v4099_v15, 1  ;;  %v3744_v27 = vrot.slane %v3742_v3, 2  ;;  %v11477_v19 = vld [vmem:[#allocation3 + $0x410] sm:$0xff]   ;;  %v3730_v15 = vshrl.u32 %v11476_v60, 16 }
 0x1d4   : > { %4294 = vmatprep.mubr.bf16.mxu1 %v3692_v22  ;;  %v12772_v29 = vadd.f32 %v12587_v18, %v10093_v38  ;;  %10586 = vmatpush3.bf16.msra.mxu0 %v11449_v4  ;;  %v3683_v18 = vsel %vm3622_vm3, %v12738_v43, %v12760_v8  ;;  %v9613_v43 = vcombine.high %v12769_v57, %v5287_v13 }
 0x1d5   : > { %v10095_v20 = vpop.f32.mrf.mxu0  ;;  %v10177_v46 = vpop.f32.mrf.mxu1  ;;  %10587 = vmatprep.subr.bf16.mxu0 %v11455_v50  ;;  %v12795_v50 = vcombine.low %v5327_v51, %v12767_v48  ;;  %v3728_v38 = vsel %vm3622_vm3, %v3709_v32, %v12779_v44  ;;  %v4114_v61 = vor.u32 %v4113_v45, %v4110_v7  ;;  %v3701_v33 = vsel %vm3622_vm3, %v12760_v8, %v12785_v54 }
 0x1d6   : > { %v10096_v11 = vadd.f32 %v10095_v20, %v10094_v5  ;;  %v12774_v14 = vadd.f32 %v10177_v46, %v10176_v42  ;;  %v5454_v5 = vshrl.u32 %v9611_v35, 16  ;;  %v5457_v42 = vshll.u32 %v9611_v35, 16  ;;  %v11481_v20 = vld [vmem:[#allocation3 + $0x448] sm:$0xff]  }
 0x1d7   : > { %v10097_v16 = vpop.f32.mrf.mxu0  ;;  %v10179_v28 = vpop.f32.mrf.mxu1  ;;  %v5462_v62 = vshrl.u32 %v9613_v43, 16  ;;  %v5465_v52 = vshll.u32 %v9613_v43, 16  ;;  %v12808_v40 = vsel %vm3622_vm3, %v12785_v54, %v12787_v55  ;;  %v4105_v6 = vor.u32 %v4104_v21, %v4101_v37  ;;  %v11478_v43 = vld [vmem:[#allocation2 + $0xb4] ss:$80 sps:$4 sm:$0xff]  }
 0x1d8   : > { %v12783_v53 = vadd.f32 %v12744_v36, %v10096_v11  ;;  %10588 = vmatpush3.bf16.msra.mxu0 %v11457_v17  ;;  %v3710_v36 = vsel %vm3622_vm3, %v12751_v23, %v3709_v32  ;;  %v12810_v51 = vor.u32 %v3744_v27, %v3741_v59  ;;  %v3733_v7 = vshll.u32 %v11476_v60, 16  ;;  %v11486_v27 = vld [vmem:[#allocation3 + $0x440] sm:$0xff]  }
 0x1d9   : > { %v10098_v58 = vpop.f32.mrf.mxu0  ;;  %v10180_v4 = vpop.f32.mrf.mxu1  ;;  %10589 = vmatprep.subr.bf16.mxu0 %v11465_v30  ;;  %v5437_v30 = vshrl.u32 %v12795_v50, 16  ;;  %v5464_v35 = vrot.slane %v5462_v62, 2  ;;  %v12825_v21 = vsel %vm3622_vm3, %v12785_v54, %v4105_v6  ;;  %v9615_v59 = vcombine.high %v12816_v63, %v5289_v24  ;;  %v11482_v60 = vld [vmem:[#allocation2 + $0xb0] ss:$80 sps:$4 sm:$0xff]  }
 0x1da   : > { %3944 = vmatmul.mubr.bf16.gmra.mxu0 %v3683_v18  ;;  %v10099_v34 = vadd.f32 %v10098_v58, %v10097_v16  ;;  %v12792_v26 = vadd.f32 %v10180_v4, %v10179_v28  ;;  %v5456_v16 = vrot.slane %v5454_v5, 2  ;;  %v5459_v28 = vrot.slane %v5457_v42, 3  ;;  %v11483_v58 = vld [vmem:[#allocation3 + $0x408] sm:$0xff]  }
 0x1db   : > { %4295 = vmatmul.mubr.bf16.gmra.mxu1 %v3683_v18  ;;  %3951 = vmatprep.mubr.bf16.mxu0 %v3710_v36  ;;  %v10100_v12 = vpop.f32.mrf.mxu0  ;;  %v10182_v22 = vpop.f32.mrf.mxu1  ;;  %v4115_v18 = vsel %vm3622_vm3, %v3709_v32, %v4114_v61  ;;  %v12830_v32 = vsel %vm3622_vm3, %v12779_v44, %v12810_v51  ;;  %v3735_v61 = vrot.slane %v3733_v7, 2  ;;  %v12835_v5 = vrot.slane %v5437_v30, 2 }
 0x1dc   : > { %4302 = vmatprep.mubr.bf16.mxu1 %v3710_v36  ;;  %v12800_v23 = vadd.f32 %v12709_v9, %v10099_v34  ;;  %10590 = vmatpush3.bf16.msra.mxu0 %v11468_v31  ;;  %v9612_v9 = vcombine.low %v12769_v57, %v5287_v13  ;;  %v5440_v13 = vshll.u32 %v12795_v50, 16  ;;  %v5467_v31 = vrot.slane %v5465_v52, 3 }
 0x1dd   : > { %v10101_v56 = vpop.f32.mrf.mxu0  ;;  %v10183_v17 = vpop.f32.mrf.mxu1  ;;  %10591 = vmatprep.subr.bf16.mxu0 %v11475_v2  ;;  %v3732_v34 = vrot.slane %v3730_v15, 1  ;;  %v9614_v42 = vcombine.low %v12816_v63, %v5289_v24  ;;  %v5483_v30 = vshll.u32 %v9615_v59, 16  ;;  %v11494_v15 = vld [vmem:[#allocation3 + $0x78] sm:$0xff]  }
 0x1de   : > { %v10102_v46 = vadd.f32 %v10101_v56, %v10100_v12  ;;  %v12813_v8 = vadd.f32 %v10183_v17, %v10182_v22  ;;  %v5448_v50 = vshll.u32 %v9612_v9, 16  ;;  %v5460_v22 = vor.u32 %v5459_v28, %v5456_v16 }
 0x1df   : > { %v10103_v3 = vpop.f32.mrf.mxu0  ;;  %v10185_v11 = vpop.f32.mrf.mxu1  ;;  %v12841_v52 = vor.u32 %v5467_v31, %v5464_v35  ;;  %v3757_v56 = vshrl.u32 %v11478_v43, 16  ;;  %v12847_v16 = vor.u32 %v3735_v61, %v3732_v34  ;;  %v3751_v28 = vshll.u32 %v11482_v60, 16  ;;  %v5290_v35 = vld [vmem:[#allocation2 + $0x18] sm:$0xff] }
 0x1e0   : > { %v12820_v45 = vadd.f32 %v12717_v25, %v10102_v46  ;;  %10592 = vmatpush3.bf16.msra.mxu0 %v11477_v19  ;;  %v5445_v25 = vshrl.u32 %v9612_v9, 16  ;;  %v12843_v19 = vrot.slane %v5440_v13, 3  ;;  %v5480_v46 = vshrl.u32 %v9615_v59, 16  ;;  %v12849_v31 = vld [vmem:[#allocation2 + $0x58] sm:$0xff] }
 0x1e1   : > { %v10104_v4 = vpop.f32.mrf.mxu0  ;;  %v10186_v37 = vpop.f32.mrf.mxu1  ;;  %10593 = vmatprep.subr.bf16.mxu0 %v11481_v20  ;;  %15020 = vst [vmem:[#allocation13_spill] sm:$0xff] %v12841_v52  ;;  %v3760_v20 = vshll.u32 %v11478_v43, 16  ;;  %v5471_v7 = vshrl.u32 %v9614_v42, 16  ;;  %v5474_v13 = vshll.u32 %v9614_v42, 16  ;;  %v3759_v59 = vrot.slane %v3757_v56, 1 }
 0x1e2   : > { %3952 = vmatmul.mubr.bf16.gmra.mxu0 %v3701_v33  ;;  %v10105_v2 = vadd.f32 %v10104_v4, %v10103_v3  ;;  %v12833_v36 = vadd.f32 %v10186_v37, %v10185_v11  ;;  %v5447_v9 = vrot.slane %v5445_v25, 2  ;;  %v3748_v11 = vshrl.u32 %v11482_v60, 16 }
 0x1e3   : > { %4303 = vmatmul.mubr.bf16.gmra.mxu1 %v3701_v33  ;;  %3959 = vmatprep.mubr.bf16.mxu0 %v3728_v38  ;;  %v10106_v54 = vpop.f32.mrf.mxu0  ;;  %v10188_v12 = vpop.f32.mrf.mxu1  ;;  %v3519_v33 = vld [vmem:[#allocation2 + $0x160] sm:$0x33]  ;;  %v5443_v4 = vor.u32 %v12843_v19, %v12835_v5  ;;  %v5485_v34 = vrot.slane %v5483_v30, 3  ;;  %v3753_v61 = vrot.slane %v3751_v28, 2  ;;  %v5473_v5 = vrot.slane %v5471_v7, 2 }
 0x1e4   : > { %4310 = vmatprep.mubr.bf16.mxu1 %v4115_v18  ;;  %v12839_v62 = vadd.f32 %v12733_v41, %v10105_v2  ;;  %10594 = vmatpush3.bf16.msra.mxu0 %v11483_v58  ;;  %v11488_v38 = vld [vmem:[#allocation3 + $0x400] sm:$0xff]   ;;  %v5450_v41 = vrot.slane %v5448_v50, 3  ;;  %v5469_v58 = vsel %vm1347_vm2, %v5460_v22, %v12841_v52  ;;  %v9516_v37 = vcombine.high %v3519_v33, %v3519_v33 }
 0x1e5   : > { %v10107_v17 = vpop.f32.mrf.mxu0  ;;  %v10189_v6 = vpop.f32.mrf.mxu1  ;;  %10595 = vmatprep.subr.bf16.mxu0 %v11486_v27  ;;  %v3762_v27 = vrot.slane %v3760_v20, 2  ;;  %v5482_v2 = vrot.slane %v5480_v46, 2  ;;  %v5476_v42 = vrot.slane %v5474_v13, 3  ;;  %v9515_v19 = vcombine.low %v3519_v33, %v3519_v33 }
 0x1e6   : > { %v10108_v24 = vadd.f32 %v10107_v17, %v10106_v54  ;;  %v12845_v3 = vadd.f32 %v10189_v6, %v10188_v12  ;;  %v12859_v60 = vor.u32 %v5450_v41, %v5447_v9  ;;  %v9617_v54 = vcombine.high %v5290_v35, %v12849_v31 }
 0x1e7   : > { %v10109_v18 = vpop.f32.mrf.mxu0  ;;  %v12870_v9 = vsel %vm3622_vm3, %v12787_v55, %v12847_v16  ;;  %v12874_v20 = vor.u32 %v5485_v34, %v5482_v2  ;;  %v12877_v46 = vcombine.low %v5290_v35, %v12849_v31  ;;  %v12887_v28 = vor.u32 %v5476_v42, %v5473_v5 }
 0x1e8   : > { %v12852_v43 = vadd.f32 %v12749_v49, %v10108_v24  ;;  %10596 = vmatpush3.bf16.msra.mxu0 %v11488_v38  ;;  %15022 = vst [vmem:[#allocation17_spill] sm:$0xff] %v12859_v60  ;;  %v3750_v49 = vrot.slane %v3748_v11, 1  ;;  %v3778_v38 = vshll.u32 %v9516_v37, 16  ;;  %v5498_v30 = vshrl.u32 %v9617_v54, 16  ;;  %v12881_v24 = vld [vmem:[#allocation2 + $0xb8] sm:$0xff] }
 0x1e9   : > { %v10110_v25 = vpop.f32.mrf.mxu0  ;;  %10709 = vmatprep.subr.bf16.mxu0 %v11494_v15  ;;  %v5501_v15 = vshll.u32 %v9617_v54, 16  ;;  %v5452_v11 = vsel %vm1347_vm2, %v5443_v4, %v12859_v60  ;;  %v3766_v7 = vshrl.u32 %v9515_v19, 16  ;;  %v12900_v4 = vsel %vm1347_vm2, %v12841_v52, %v12874_v20  ;;  %v11504_v54 = vld [vmem:[#allocation3 + $0x370] sm:$0xff]  }
 0x1ea   : > { %15021 = vst [vmem:[#allocation14_spill] sm:$0xff] %v12852_v43  ;;  %3960 = vmatmul.mubr.bf16.gmra.mxu0 %v12808_v40  ;;  %v10111_v50 = vadd.f32 %v10110_v25, %v10109_v18  ;;  %v3775_v40 = vshrl.u32 %v9516_v37, 16  ;;  %v12885_v18 = vor.u32 %v3753_v61, %v3750_v49  ;;  %v3769_v37 = vshll.u32 %v9515_v19, 16  ;;  %v5292_v25 = vld [vmem:[#allocation2 + $0x8] sm:$0xff]  ;;  %15025 = vst [vmem:[#allocation19_spill] sm:$0xff] %v12900_v4 }
 0x1eb   : > { %v10191_v12 = vpop.f32.mrf.mxu1  ;;  %4311 = vmatmul.mubr.bf16.gmra.mxu1 %v12825_v21  ;;  %3967 = vmatprep.mubr.bf16.mxu0 %v12830_v32  ;;  %v10112_v22 = vpop.f32.mrf.mxu0  ;;  %v12872_v21 = vor.u32 %v3762_v27, %v3759_v59  ;;  %v5293_v59 = vld [vmem:[#allocation2] sm:$0xff]  ;;  %v11499_v27 = vld [vmem:[#allocation3 + $0x338] sm:$0xff]   ;;  %v9562_v49 = vcombine.high %v12725_v39, %v12881_v24  ;;  %v5500_v61 = vrot.slane %v5498_v30, 2 }
 0x1ec   : > { %5740 = vmatprep.mubr.bf16.mxu1 %v5469_v58  ;;  %v12865_v56 = vadd.f32 %v12765_v0, %v10111_v50  ;;  %v3777_v35 = vrot.slane %v3775_v40, 1  ;;  %v3780_v58 = vrot.slane %v3778_v38, 2  ;;  %v4319_v50 = vld [vmem:[#allocation2 + $0x78] sm:$0xee]  ;;  %v12913_v19 = vsel %vm3622_vm3, %v12847_v16, %v12885_v18 }
 0x1ed   : > { %v10192_v17 = vpop.f32.mrf.mxu1  ;;  %v10113_v6 = vpop.f32.mrf.mxu0  ;;  %v12895_v34 = vsel %vm3622_vm3, %v12810_v51, %v12872_v21  ;;  %v5503_v51 = vrot.slane %v5501_v15, 3  ;;  %v9560_v5 = vcombine.high %v4319_v50, %v12702_v10  ;;  %v12918_v40 = vsel %vm1347_vm2, %v12859_v60, %v12887_v28  ;;  %v11509_v60 = vld [vmem:[#allocation3 + $0x368] sm:$0xff]  }
 0x1ee   : > { %15023 = vst [vmem:[#allocation11_spill] sm:$0xff] %v12865_v56  ;;  %v12879_v33 = vadd.f32 %v10192_v17, %v10191_v12  ;;  %v10114_v0 = vadd.f32 %v10113_v6, %v10112_v22  ;;  %15026 = vst [vmem:[#allocation23_spill] sm:$0xff] %v12918_v40  ;;  %v9619_v38 = vcombine.high %v5292_v25, %v5293_v59  ;;  %v12923_v30 = vrot.slane %v3769_v37, 2 }
 0x1ef   : > { %v10194_v41 = vpop.f32.mrf.mxu1  ;;  %v3781_v6 = vor.u32 %v3780_v58, %v3777_v35  ;;  %v5492_v15 = vshll.u32 %v12877_v46, 16  ;;  %v4464_v52 = vshrl.u32 %v9562_v49, 16  ;;  %v12928_v43 = vor.u32 %v5503_v51, %v5500_v61  ;;  %v11511_v51 = vld [vmem:[#allocation3 + $0x328] sm:$0xff]  }
 0x1f0   : > { %v12890_v13 = vadd.f32 %v12774_v14, %v10114_v0  ;;  %v5489_v14 = vshrl.u32 %v12877_v46, 16  ;;  %v12921_v0 = vrot.slane %v3766_v7, 1  ;;  %v12931_v7 = vcombine.low %v4319_v50, %v12702_v10 }
 0x1f1   : > { %v10195_v2 = vpop.f32.mrf.mxu1  ;;  %v4456_v35 = vshrl.u32 %v9560_v5, 16  ;;  %v4459_v37 = vshll.u32 %v9560_v5, 16  ;;  %v3782_v61 = vsel %vm3622_vm3, %v12872_v21, %v3781_v6  ;;  %v5494_v50 = vrot.slane %v5492_v15, 3 }
 0x1f2   : > { %15024 = vst [vmem:[#allocation12_spill] sm:$0xff] %v12890_v13  ;;  %v12905_v12 = vadd.f32 %v10195_v2, %v10194_v41  ;;  %v10115_v22 = vpop.f32.mrf.mxu0  ;;  %3968 = vmatmul.mubr.bf16.gmra.mxu0 %v12870_v9  ;;  %v11505_v41 = vld [vmem:[#allocation3 + $0x330] sm:$0xff]   ;;  %v5491_v2 = vrot.slane %v5489_v14, 2  ;;  %v4467_v13 = vshll.u32 %v9562_v49, 16  ;;  %v5519_v14 = vshll.u32 %v9619_v38, 16 }
 0x1f3   : > { %v10277_v42 = vpop.f32.mrf.mxu1  ;;  %5741 = vmatmul.mubr.bf16.vlgmr.msra.gmra.mxu1 %v5452_v11  ;;  %3975 = vmatprep.mubr.bf16.mxu0 %v12895_v34  ;;  %v12938_v49 = vld [vmem:[#allocation2 + $0x150] sm:$0xff]  ;;  %v3772_v10 = vor.u32 %v12923_v30, %v12921_v0  ;;  %v12952_v6 = vsel %vm1347_vm2, %v12874_v20, %v12928_v43  ;;  %v4439_v20 = vshrl.u32 %v12931_v7, 16 }
 0x1f4   : > { %5748 = vmatprep.mubr.bf16.mxu1 %v12900_v4  ;;  %v10116_v17 = vpop.f32.mrf.mxu0  ;;  %10774 = vmatpush3.bf16.msra.mxu1 %v11499_v27  ;;  %v5516_v27 = vshrl.u32 %v9619_v38, 16  ;;  %v4466_v38 = vrot.slane %v4464_v52, 1  ;;  %15029 = vst [vmem:[#allocation18_spill] sm:$0xff] %v12952_v6  ;;  %v12961_v0 = vor.u32 %v5494_v50, %v5491_v2  ;;  %v4442_v2 = vshll.u32 %v12931_v7, 16 }
 0x1f5   : > { %v10117_v16 = vadd.f32 %v10116_v17, %v10115_v22  ;;  %v10278_v11 = vpop.f32.mrf.mxu1  ;;  %10775 = vmatprep.subr.bf16.mxu1 %v11504_v54  ;;  %v12936_v22 = vld [vmem:[#allocation2 + $0x178] sm:$0xff]  ;;  %v4469_v17 = vrot.slane %v4467_v13, 2 }
 0x1f6   : > { %v12926_v56 = vadd.f32 %v10278_v11, %v10277_v42  ;;  %v10118_v4 = vpop.f32.mrf.mxu0  ;;  %v11512_v11 = vld [vmem:[#allocation3 + $0x360] sm:$0xff]  }
 0x1f7   : > { %v12934_v46 = vadd.f32 %v12792_v26, %v10117_v16  ;;  %v10280_v58 = vpop.f32.mrf.mxu1  ;;  %v9561_v26 = vcombine.low %v12725_v39, %v12881_v24  ;;  %v9618_v16 = vcombine.low %v5292_v25, %v5293_v59  ;;  %v4458_v39 = vrot.slane %v4456_v35, 1 }
 0x1f8   : > { %15027 = vst [vmem:[#allocation16_spill] sm:$0xff] %v12926_v56  ;;  %v10119_v54 = vpop.f32.mrf.mxu0  ;;  %10776 = vmatpush3.bf16.msra.mxu1 %v11505_v41  ;;  %v9621_v24 = vcombine.high %v12936_v22, %v12938_v49  ;;  %v5518_v25 = vrot.slane %v5516_v27, 2  ;;  %v5521_v59 = vrot.slane %v5519_v14, 3  ;;  %v11513_v41 = vld [vmem:[#allocation3 + $0x320] sm:$0xff]  }
 0x1f9   : > { %15028 = vst [vmem:[#allocation15_spill] sm:$0xff] %v12934_v46  ;;  %v10120_v5 = vadd.f32 %v10119_v54, %v10118_v4  ;;  %v10281_v42 = vpop.f32.mrf.mxu1  ;;  %10777 = vmatprep.subr.bf16.mxu1 %v11509_v60  ;;  %v4461_v60 = vrot.slane %v4459_v37, 2  ;;  %v4447_v30 = vshrl.u32 %v9561_v26, 16  ;;  %v4450_v15 = vshll.u32 %v9561_v26, 16  ;;  %v11517_v37 = vld [vmem:[#allocation3 + $0x358] sm:$0xff]  }
 0x1fa   : > { %v12946_v56 = vadd.f32 %v10281_v42, %v10280_v58  ;;  %v10121_v46 = vpop.f32.mrf.mxu0  ;;  %3976 = vmatmul.mubr.bf16.gmra.mxu0 %v12913_v19  ;;  %v12964_v58 = vor.u32 %v4469_v17, %v4466_v38  ;;  %v5507_v54 = vshrl.u32 %v9618_v16, 16  ;;  %v5534_v50 = vshrl.u32 %v9621_v24, 16 }
 0x1fb   : > { %v12957_v52 = vadd.f32 %v12813_v8, %v10120_v5  ;;  %v10283_v13 = vpop.f32.mrf.mxu1  ;;  %5749 = vmatmul.mubr.bf16.gmra.mxu1 %v12918_v40  ;;  %3983 = vmatprep.mubr.bf16.mxu0 %v3782_v61  ;;  %v5510_v61 = vshll.u32 %v9618_v16, 16  ;;  %v5537_v5 = vshll.u32 %v9621_v24, 16  ;;  %v12974_v38 = vor.u32 %v5521_v59, %v5518_v25  ;;  %v5330_v24 = vld [vmem:[#allocation2 + $0x168] sm:$0xff]  ;;  %v11521_v25 = vld [vmem:[#allocation3 + $0x350] sm:$0xff]  }
 0x1fc   : > { %5756 = vmatprep.mubr.bf16.mxu1 %v12952_v6  ;;  %v10122_v4 = vpop.f32.mrf.mxu0  ;;  %10778 = vmatpush3.bf16.msra.mxu1 %v11511_v51  ;;  %v4462_v51 = vor.u32 %v4461_v60, %v4458_v39  ;;  %v12979_v16 = vsel %vm1347_vm2, %v12887_v28, %v12961_v0  ;;  %v4449_v7 = vrot.slane %v4447_v30, 1  ;;  %v5509_v39 = vrot.slane %v5507_v54, 2 }
 0x1fd   : > { %v10123_v8 = vadd.f32 %v10122_v4, %v10121_v46  ;;  %v10284_v35 = vpop.f32.mrf.mxu1  ;;  %10779 = vmatprep.subr.bf16.mxu1 %v11512_v11  ;;  %v3773_v46 = vsel %vm3622_vm3, %v12885_v18, %v3772_v10  ;;  %15030 = vst [vmem:[#allocation22_spill] sm:$0xff] %v12974_v38  ;;  %15031 = vst [vmem:[#allocation10_spill] sm:$0xff] %v12979_v16  ;;  %v4441_v11 = vrot.slane %v4439_v20, 1  ;;  %v5331_v4 = vld [vmem:[#allocation2 + $0x170] sm:$0xff]  ;;  %v5512_v60 = vrot.slane %v5510_v61, 3 }
 0x1fe   : > { %v12966_v27 = vadd.f32 %v10284_v35, %v10283_v13  ;;  %v10124_v14 = vpop.f32.mrf.mxu0  ;;  %v4452_v13 = vrot.slane %v4450_v15, 2  ;;  %v4471_v10 = vsel %vm3622_vm3, %v4462_v51, %v12964_v58  ;;  %v5536_v20 = vrot.slane %v5534_v50, 2 }
 0x1ff   : > { %v12970_v42 = vadd.f32 %v12833_v36, %v10123_v8  ;;  %v10286_v26 = vpop.f32.mrf.mxu1  ;;  %v11520_v36 = vld [vmem:[#allocation3 + $0x318] sm:$0xff]   ;;  %v5539_v30 = vrot.slane %v5537_v5, 3  ;;  %v9620_v15 = vcombine.low %v12936_v22, %v12938_v49  ;;  %v12994_v54 = vsel %vm1347_vm2, %v12928_v43, %v12974_v38  ;;  %v11522_v5 = vld [vmem:[#allocation3 + $0x310] sm:$0xff]  }
 0x200   : > { %v10125_v17 = vpop.f32.mrf.mxu0  ;;  %10780 = vmatpush3.bf16.msra.mxu1 %v11513_v41  ;;  %15032 = vst [vmem:[#allocation21_spill] sm:$0xff] %v12994_v54  ;;  %v4444_v61 = vrot.slane %v4442_v2, 2 }
 0x201   : > { %v10126_v8 = vadd.f32 %v10125_v17, %v10124_v14  ;;  %v10287_v35 = vpop.f32.mrf.mxu1  ;;  %10781 = vmatprep.subr.bf16.mxu1 %v11517_v37  ;;  %v9623_v37 = vcombine.high %v5330_v24, %v5331_v4  ;;  %v13003_v43 = vor.u32 %v5539_v30, %v5536_v20  ;;  %v5525_v2 = vshrl.u32 %v9620_v15, 16  ;;  %v11500_v30 = vld [vmem:[#allocation3 + $0x70] sm:$0xff]  }
 0x202   : > { %v12983_v59 = vadd.f32 %v10287_v35, %v10286_v26  ;;  %v10127_v28 = vpop.f32.mrf.mxu0  ;;  %3984 = vmatmul.mubr.bf16.gmra.mxu0 %v3773_v46  ;;  %v12999_v26 = vor.u32 %v5512_v60, %v5509_v39  ;;  %v11527_v46 = vld [vmem:[#allocation3 + $0x348] sm:$0xff]   ;;  %v9622_v39 = vcombine.low %v5330_v24, %v5331_v4  ;;  %v5332_v60 = vld [vmem:[#allocation2 + $0x30] sm:$0xff] }
 0x203   : > { %v12988_v41 = vadd.f32 %v12845_v3, %v10126_v8  ;;  %v10289_v14 = vpop.f32.mrf.mxu1  ;;  %5757 = vmatmul.mubr.bf16.gmra.mxu1 %v12979_v16  ;;  %4742 = vmatprep.mubr.bf16.mxu0 %v4471_v10  ;;  %v12997_v3 = vor.u32 %v4452_v13, %v4449_v7  ;;  %v5528_v8 = vshll.u32 %v9620_v15, 16  ;;  %v4445_v10 = vor.u32 %v4444_v61, %v4441_v11  ;;  %v11529_v24 = vld [vmem:[#allocation3 + $0x308] sm:$0xff]  }
 0x204   : > { %5764 = vmatprep.mubr.bf16.mxu1 %v12994_v54  ;;  %v10128_v50 = vpop.f32.mrf.mxu0  ;;  %10782 = vmatpush3.bf16.msra.mxu1 %v11520_v36  ;;  %15033 = vst [vmem:[#allocation28_spill] sm:$0xff] %v12999_v26  ;;  %v5555_v7 = vshll.u32 %v9623_v37, 16  ;;  %v4489_v11 = vsel %vm3622_vm3, %v12964_v58, %v12779_v44  ;;  %v13023_v61 = vsel %vm1347_vm2, %v12974_v38, %v13003_v43  ;;  %v11502_v44 = vld [vmem:[#allocation3 + $0x30] sm:$0xff]  }
 0x205   : > { %v10129_v22 = vadd.f32 %v10128_v50, %v10127_v28  ;;  %v10290_v49 = vpop.f32.mrf.mxu1  ;;  %10783 = vmatprep.subr.bf16.mxu1 %v11521_v25  ;;  %v11496_v28 = vld [vmem:[#allocation3 + $0x38] sm:$0xff]   ;;  %v5552_v50 = vshrl.u32 %v9623_v37, 16  ;;  %v4454_v20 = vsel %vm3622_vm3, %v4445_v10, %v12997_v3  ;;  %v5527_v37 = vrot.slane %v5525_v2, 2 }
 0x206   : > { %v13001_v51 = vadd.f32 %v10290_v49, %v10289_v14  ;;  %v10130_v17 = vpop.f32.mrf.mxu0  ;;  %v5333_v25 = vld [vmem:[#allocation2 + $0x118] sm:$0xff]  ;;  %v5546_v2 = vshll.u32 %v9622_v39, 16 }
 0x207   : > { %v13006_v35 = vadd.f32 %v12879_v33, %v10129_v22  ;;  %v10292_v36 = vpop.f32.mrf.mxu1  ;;  %v13013_v33 = vsel %vm1347_vm2, %v12961_v0, %v12999_v26  ;;  %v11530_v0 = vld [vmem:[#allocation3 + $0x340] sm:$0xff]   ;;  %v5554_v58 = vrot.slane %v5552_v50, 2  ;;  %v11550_v50 = vld [vmem:[#allocation3 + $0xf8] sm:$0xff]  }
 0x208   : > { %v10131_v13 = vpop.f32.mrf.mxu0  ;;  %10784 = vmatpush3.bf16.msra.mxu1 %v11522_v5  ;;  %15034 = vst [vmem:[#allocation26_spill] sm:$0xff] %v13013_v33  ;;  %v5530_v5 = vrot.slane %v5528_v8, 3 }
 0x209   : > { %v10132_v14 = vadd.f32 %v10131_v13, %v10130_v17  ;;  %v10293_v49 = vpop.f32.mrf.mxu1  ;;  %10785 = vmatprep.subr.bf16.mxu1 %v11527_v46  ;;  %v5557_v46 = vrot.slane %v5555_v7, 3  ;;  %v11506_v13 = vld [vmem:[#allocation3 + $0x68] sm:$0xff]  }
 0x20a   : > { %v13018_v4 = vadd.f32 %v10293_v49, %v10292_v36  ;;  %v10213_v15 = vpop.f32.mrf.mxu0  ;;  %4743 = vmatmul.mubr.bf16.vlgmr.msra.gmra.mxu0 %v4454_v20  ;;  %v9625_v36 = vcombine.high %v5332_v60, %v5333_v25  ;;  %v5543_v49 = vshrl.u32 %v9622_v39, 16 }
 0x20b   : > { %v13026_v22 = vadd.f32 %v12905_v12, %v10132_v14  ;;  %v10295_v17 = vpop.f32.mrf.mxu1  ;;  %5765 = vmatmul.mubr.bf16.gmra.mxu1 %v13013_v33  ;;  %10710 = vmatpush3.bf16.msra.mxu0 %v11496_v28  ;;  %v11531_v12 = vld [vmem:[#allocation3 + $0x300] sm:$0xff]   ;;  %v5531_v28 = vor.u32 %v5530_v5, %v5527_v37  ;;  %v13035_v54 = vor.u32 %v5557_v46, %v5554_v58 }
 0x20c   : > { %4750 = vmatprep.mubr.bf16.mxu0 %v4489_v11  ;;  %5772 = vmatprep.mubr.bf16.mxu1 %v13023_v61  ;;  %v10214_v10 = vpop.f32.mrf.mxu0  ;;  %v5570_v16 = vshrl.u32 %v9625_v36, 16  ;;  %v5573_v39 = vshll.u32 %v9625_v36, 16  ;;  %v11514_v5 = vld [vmem:[#allocation3 + $0x60] sm:$0xff]  }
 0x20d   : > { %v10215_v8 = vadd.f32 %v10214_v10, %v10213_v15  ;;  %v10296_v20 = vpop.f32.mrf.mxu1  ;;  %10711 = vmatprep.subr.bf16.mxu0 %v11500_v30  ;;  %10786 = vmatpush3.bf16.msra.mxu1 %v11529_v24  ;;  %v5334_v15 = vld [vmem:[#allocation2 + $0x110] sm:$0x77]  ;;  %v5545_v30 = vrot.slane %v5543_v49, 2  ;;  %v5548_v24 = vrot.slane %v5546_v2, 3  ;;  %v13046_v46 = vsel %vm1347_vm2, %v12999_v26, %v5531_v28 }
 0x20e   : > { %v13030_v14 = vadd.f32 %v10296_v20, %v10295_v17  ;;  %v10216_v33 = vpop.f32.mrf.mxu0  ;;  %10787 = vmatprep.subr.bf16.mxu1 %v11530_v0  ;;  %v11508_v17 = vld [vmem:[#allocation3 + $0x28] sm:$0xff]   ;;  %v9624_v20 = vcombine.low %v5332_v60, %v5333_v25  ;;  %v9570_v0 = vcombine.high %v12767_v48, %v12769_v57  ;;  %v9627_v60 = vcombine.high %v5334_v15, %v5334_v15 }
 0x20f   : > { %v13033_v7 = vadd.f32 %v10215_v8, %v12747_v1  ;;  %v10298_v11 = vpop.f32.mrf.mxu1  ;;  %10712 = vmatpush3.bf16.msra.mxu0 %v11502_v44  ;;  %v4480_v1 = vsel %vm3622_vm3, %v12997_v3, %v12787_v55  ;;  %v13056_v55 = vsel %vm1347_vm2, %v13003_v43, %v13035_v54  ;;  %v5572_v3 = vrot.slane %v5570_v16, 2 }
 0x210   : > { %15035 = vst [vmem:[#allocation27_spill] sm:$0xff] %v13030_v14  ;;  %v10217_v10 = vpop.f32.mrf.mxu0  ;;  %10713 = vmatprep.subr.bf16.mxu0 %v11506_v13  ;;  %v5575_v36 = vrot.slane %v5573_v39, 3  ;;  %v13059_v49 = vor.u32 %v5548_v24, %v5545_v30  ;;  %v5588_v16 = vshrl.u32 %v9627_v60, 16  ;;  %v5591_v39 = vshll.u32 %v9627_v60, 16  ;;  %v6132_v60 = vld [vmem:[#allocation2 + $0x18] sm:$0xcc] }
 0x211   : > { %v10218_v6 = vadd.f32 %v10217_v10, %v10216_v33  ;;  %v10299_v37 = vpop.f32.mrf.mxu1  ;;  %10788 = vmatpush3.bf16.msra.mxu1 %v11531_v12  ;;  %v5564_v12 = vshll.u32 %v9624_v20, 16 }
 0x212   : > { %v13042_v44 = vadd.f32 %v10299_v37, %v10298_v11  ;;  %v10219_v58 = vpop.f32.mrf.mxu0  ;;  %4751 = vmatmul.mubr.bf16.gmra.mxu0 %v4480_v1  ;;  %10901 = vmatprep.subr.bf16.mxu1 %v11550_v50  ;;  %v4539_v50 = vshll.u32 %v9570_v0, 16  ;;  %v11523_v11 = vld [vmem:[#allocation3 + $0x58] sm:$0xff]   ;;  %v13066_v24 = vor.u32 %v5575_v36, %v5572_v3  ;;  %v4331_v1 = vld [vmem:[#allocation2 + $0x28] sm:$0xff]  ;;  %v11532_v36 = vld [vmem:[#allocation3 + $0x50] sm:$0xff]  }
 0x213   : > { %v13049_v25 = vadd.f32 %v10218_v6, %v12757_v47  ;;  %v10301_v33 = vpop.f32.mrf.mxu1  ;;  %5773 = vmatmul.mubr.bf16.gmra.mxu1 %v13046_v46  ;;  %4758 = vmatprep.mubr.bf16.mxu0 %v12830_v32  ;;  %v5561_v47 = vshrl.u32 %v9624_v20, 16  ;;  %v11516_v6 = vld [vmem:[#allocation3 + $0x20] sm:$0xff]   ;;  %v4536_v32 = vshrl.u32 %v9570_v0, 16  ;;  %v13072_v20 = vsel %vm1347_vm2, %v5531_v28, %v13059_v49 }
 0x214   : > { %15036 = vst [vmem:[#allocation25_spill] sm:$0xff] %v13042_v44  ;;  %5780 = vmatprep.mubr.bf16.mxu1 %v13056_v55  ;;  %v10220_v13 = vpop.f32.mrf.mxu0  ;;  %10714 = vmatpush3.bf16.msra.mxu0 %v11508_v17  ;;  %v9569_v17 = vcombine.low %v12767_v48, %v12769_v57  ;;  %v4541_v3 = vrot.slane %v4539_v50, 2  ;;  %v5590_v57 = vrot.slane %v5588_v16, 2  ;;  %v5593_v28 = vrot.slane %v5591_v39, 3  ;;  %v11534_v16 = vld [vmem:[#allocation3 + $0x10] sm:$0xff]  }
 0x215   : > { %v10221_v2 = vadd.f32 %v10220_v13, %v10219_v58  ;;  %v10302_v8 = vpop.f32.mrf.mxu1  ;;  %10715 = vmatprep.subr.bf16.mxu0 %v11514_v5  ;;  %v5563_v0 = vrot.slane %v5561_v47, 2  ;;  %v9626_v58 = vcombine.low %v5334_v15, %v5334_v15  ;;  %v9572_v47 = vcombine.high %v4331_v1, %v12816_v63 }
 0x216   : > { %v13061_v10 = vadd.f32 %v10302_v8, %v10301_v33  ;;  %v10222_v43 = vpop.f32.mrf.mxu0  ;;  %v11526_v33 = vld [vmem:[#allocation3 + $0x18] sm:$0xff]   ;;  %v4538_v8 = vrot.slane %v4536_v32, 1  ;;  %v4527_v32 = vshrl.u32 %v9569_v17, 16 }
 0x217   : > { %v13064_v37 = vadd.f32 %v10221_v2, %v12772_v29  ;;  %v10304_v30 = vpop.f32.mrf.mxu1  ;;  %v5566_v2 = vrot.slane %v5564_v12, 3  ;;  %v13086_v12 = vsel %vm1347_vm2, %v13035_v54, %v13066_v24  ;;  %v11537_v54 = vld [vmem:[#allocation3 + $0x48] sm:$0xff]   ;;  %v4554_v44 = vshrl.u32 %v9572_v47, 16 }
 0x218   : > { %15037 = vst [vmem:[#allocation29_spill] sm:$0xff] %v13061_v10  ;;  %v10223_v5 = vpop.f32.mrf.mxu0  ;;  %10716 = vmatpush3.bf16.msra.mxu0 %v11516_v6  ;;  %v4557_v40 = vshll.u32 %v9572_v47, 16 }
 0x219   : > { %v10224_v13 = vadd.f32 %v10223_v5, %v10222_v43  ;;  %v10305_v29 = vpop.f32.mrf.mxu1  ;;  %10717 = vmatprep.subr.bf16.mxu0 %v11523_v11  ;;  %v4530_v11 = vshll.u32 %v9569_v17, 16  ;;  %v5579_v43 = vshrl.u32 %v9626_v58, 16  ;;  %v13090_v5 = vor.u32 %v5566_v2, %v5563_v0 }
 0x21a   : > { %v13074_v10 = vadd.f32 %v10305_v29, %v10304_v30  ;;  %v10225_v48 = vpop.f32.mrf.mxu0  ;;  %4759 = vmatmul.mubr.bf16.gmra.mxu0 %v12870_v9  ;;  %v9671_v9 = vcombine.high %v6132_v60, %v12849_v31 }
 0x21b   : > { %v13079_v15 = vadd.f32 %v10224_v13, %v12783_v53  ;;  %v10307_v6 = vpop.f32.mrf.mxu1  ;;  %5781 = vmatmul.mubr.bf16.gmra.mxu1 %v13072_v20  ;;  %4766 = vmatprep.mubr.bf16.mxu0 %v12895_v34  ;;  %v5582_v53 = vshll.u32 %v9626_v58, 16  ;;  %v13092_v34 = vor.u32 %v4541_v3, %v4538_v8  ;;  %v4532_v0 = vrot.slane %v4530_v11, 2  ;;  %v11535_v11 = vld [vmem:[#allocation2 + $0x84] ss:$-104 sps:$4 sm:$0xff]  }
 0x21c   : > { %15038 = vst [vmem:[#allocation20_spill] sm:$0xff] %v13074_v10  ;;  %5788 = vmatprep.mubr.bf16.mxu1 %v13086_v12  ;;  %v10226_v50 = vpop.f32.mrf.mxu0  ;;  %10718 = vmatpush3.bf16.msra.mxu0 %v11526_v33  ;;  %v5594_v10 = vor.u32 %v5593_v28, %v5590_v57  ;;  %v4529_v33 = vrot.slane %v4527_v32, 1  ;;  %v6268_v14 = vshrl.u32 %v9671_v9, 16  ;;  %v5581_v2 = vrot.slane %v5579_v43, 2  ;;  %v11541_v28 = vld [vmem:[#allocation3 + $0x40] sm:$0xff]  }
 0x21d   : > { %v10227_v39 = vadd.f32 %v10226_v50, %v10225_v48  ;;  %v10308_v30 = vpop.f32.mrf.mxu1  ;;  %10719 = vmatprep.subr.bf16.mxu0 %v11532_v36  ;;  %v6271_v48 = vshll.u32 %v9671_v9, 16  ;;  %v5584_v8 = vrot.slane %v5582_v53, 3  ;;  %v9670_v3 = vcombine.low %v6132_v60, %v12849_v31  ;;  %v11539_v36 = vld [vmem:[#allocation3 + $0x8] sm:$0xff]  }
 0x21e   : > { %v13094_v13 = vadd.f32 %v10308_v30, %v10307_v6  ;;  %v10228_v29 = vpop.f32.mrf.mxu0  ;;  %v13103_v57 = vsel %vm1347_vm2, %v13059_v49, %v13090_v5  ;;  %v4543_v31 = vsel %vm3622_vm3, %v12872_v21, %v13092_v34  ;;  %v4556_v60 = vrot.slane %v4554_v44, 1 }
 0x21f   : > { %v13097_v17 = vadd.f32 %v10227_v39, %v12800_v23  ;;  %v10310_v58 = vpop.f32.mrf.mxu1  ;;  %v9571_v23 = vcombine.low %v4331_v1, %v12816_v63  ;;  %v4559_v9 = vrot.slane %v4557_v40, 2  ;;  %v5595_v63 = vsel %vm1347_vm2, %v13066_v24, %v5594_v10  ;;  %v11543_v39 = vld [vmem:[#allocation3] sm:$0xff]  }
 0x220   : > { %15039 = vst [vmem:[#allocation24_spill] sm:$0xff] %v13094_v13  ;;  %v10229_v50 = vpop.f32.mrf.mxu0  ;;  %10720 = vmatpush3.bf16.msra.mxu0 %v11534_v16  ;;  %v6270_v1 = vrot.slane %v6268_v14, 2  ;;  %v6273_v53 = vrot.slane %v6271_v48, 3  ;;  %v13118_v16 = vor.u32 %v4532_v0, %v4529_v33  ;;  %v5585_v21 = vor.u32 %v5584_v8, %v5581_v2  ;;  %v4335_v33 = vld [vmem:[#allocation2 + $0x58] sm:$0x33] }
 0x221   : > { %v10230_v6 = vadd.f32 %v10229_v50, %v10228_v29  ;;  %v10311_v30 = vpop.f32.mrf.mxu1  ;;  %10721 = vmatprep.subr.bf16.mxu0 %v11537_v54  ;;  %v6251_v44 = vshrl.u32 %v9670_v3, 16  ;;  %v6254_v40 = vshll.u32 %v9670_v3, 16  ;;  %v4545_v29 = vshrl.u32 %v9571_v23, 16  ;;  %v11547_v50 = vld [vmem:[#allocation3 + $0x278] sm:$0xff]  }
 0x222   : > { %v13106_v47 = vadd.f32 %v10311_v30, %v10310_v58  ;;  %v10231_v32 = vpop.f32.mrf.mxu0  ;;  %4767 = vmatmul.mubr.bf16.gmra.mxu0 %v12913_v19  ;;  %v4548_v58 = vshll.u32 %v9571_v23, 16  ;;  %v13122_v14 = vor.u32 %v4559_v9, %v4556_v60  ;;  %v4572_v48 = vshrl.u32 %v11535_v11, 16 }
 0x223   : > { %v13113_v43 = vadd.f32 %v10230_v6, %v12820_v45  ;;  %v10313_v49 = vpop.f32.mrf.mxu1  ;;  %5789 = vmatmul.mubr.bf16.gmra.mxu1 %v13103_v57  ;;  %4774 = vmatprep.mubr.bf16.mxu0 %v4543_v31  ;;  %v4575_v30 = vshll.u32 %v11535_v11, 16  ;;  %v6274_v8 = vor.u32 %v6273_v53, %v6270_v1  ;;  %v5586_v23 = vsel %vm1347_vm2, %v13090_v5, %v5585_v21  ;;  %v11538_v31 = vld [vmem:[#allocation2 + $0x80] ss:$-104 sps:$4 sm:$0xff]   ;;  %v15043_v21 = vld [vmem:[#allocation14_spill] sm:$0xff] }
 0x224   : > { %15040 = vst [vmem:[#allocation30_spill] sm:$0xff] %v13106_v47  ;;  %5796 = vmatprep.mubr.bf16.mxu1 %v5595_v63  ;;  %v10232_v19 = vpop.f32.mrf.mxu0  ;;  %10722 = vmatpush3.bf16.msra.mxu0 %v11539_v36  ;;  %v4534_v36 = vsel %vm3622_vm3, %v12885_v18, %v13118_v16  ;;  %v4547_v11 = vrot.slane %v4545_v29, 1  ;;  %v4561_v18 = vsel %vm3622_vm3, %v13092_v34, %v13122_v14  ;;  %v4574_v53 = vrot.slane %v4572_v48, 1 }
 0x225   : > { %v10233_v45 = vadd.f32 %v10232_v19, %v10231_v32  ;;  %v10314_v54 = vpop.f32.mrf.mxu1  ;;  %10723 = vmatprep.subr.bf16.mxu0 %v11541_v28  ;;  %v6253_v28 = vrot.slane %v6251_v44, 2  ;;  %v6256_v32 = vrot.slane %v6254_v40, 3  ;;  %v4577_v19 = vrot.slane %v4575_v30, 2 }
 0x226   : > { %v13120_v6 = vadd.f32 %v10314_v54, %v10313_v49  ;;  %v10234_v10 = vpop.f32.mrf.mxu0  ;;  %v4550_v49 = vrot.slane %v4548_v58, 2  ;;  %v4563_v54 = vshrl.u32 %v11538_v31, 16  ;;  %v4566_v29 = vshll.u32 %v11538_v31, 16 }
 0x227   : > { %v13125_v0 = vadd.f32 %v10233_v45, %v12839_v62  ;;  %v10316_v2 = vpop.f32.mrf.mxu1  ;;  %v9576_v62 = vcombine.high %v4335_v33, %v4335_v33 }
 0x228   : > { %15041 = vst [vmem:[#allocation31_spill] sm:$0xff] %v13120_v6  ;;  %v10235_v3 = vpop.f32.mrf.mxu0  ;;  %10724 = vmatpush3.bf16.msra.mxu0 %v11543_v39  ;;  %v6283_v39 = vsel %vm1347_vm2, %v6274_v8, %v12974_v38  ;;  %v13147_v8 = vld [vmem:[#allocation2 + $0x60] sm:$0xff]  ;;  %v4568_v31 = vrot.slane %v4566_v29, 2  ;;  %v13197_v38 = vld [vmem:[#allocation2 + $0x70] sm:$0xff] }
 0x229   : > { %v10236_v60 = vadd.f32 %v10235_v3, %v10234_v10  ;;  %v10317_v9 = vpop.f32.mrf.mxu1  ;;  %10837 = vmatprep.subr.bf16.mxu0 %v11547_v50  ;;  %v4551_v10 = vor.u32 %v4550_v49, %v4547_v11  ;;  %v4593_v34 = vshll.u32 %v9576_v62, 16  ;;  %v6257_v3 = vor.u32 %v6256_v32, %v6253_v28  ;;  %v13151_v28 = vld [vmem:[#allocation2 + $0x20] sm:$0xff]  ;;  %v13153_v32 = vld [vmem:[#allocation2 + $0x48] sm:$0xff] }
 0x22a   : > { %v13132_v63 = vadd.f32 %v10317_v9, %v10316_v2  ;;  %v10237_v1 = vpop.f32.mrf.mxu0  ;;  %4775 = vmatmul.mubr.bf16.gmra.mxu0 %v4534_v36  ;;  %v4590_v2 = vshrl.u32 %v9576_v62, 16  ;;  %v4578_v36 = vor.u32 %v4577_v19, %v4574_v53  ;;  %v11554_v53 = vld [vmem:[#allocation3 + $0xf0] sm:$0xff]  }
 0x22b   : > { %v13138_v44 = vadd.f32 %v10236_v60, %v15043_v21  ;;  %v10319_v40 = vpop.f32.mrf.mxu1  ;;  %5797 = vmatmul.mubr.bf16.gmra.mxu1 %v5586_v23  ;;  %4782 = vmatprep.mubr.bf16.mxu0 %v4561_v18  ;;  %v15045_v60 = vld [vmem:[#allocation11_spill] sm:$0xff]  ;;  %v9575_v18 = vcombine.low %v4335_v33, %v4335_v33  ;;  %v4552_v49 = vsel %vm3622_vm3, %v13118_v16, %v4551_v10 }
 0x22c   : > { %15042 = vst [vmem:[#allocation32_spill] sm:$0xff] %v13132_v63  ;;  %6554 = vmatprep.mubr.bf16.mxu1 %v6283_v39  ;;  %v10238_v45 = vpop.f32.mrf.mxu0  ;;  %v4565_v39 = vrot.slane %v4563_v54, 1  ;;  %v4592_v62 = vrot.slane %v4590_v2, 1  ;;  %v6266_v54 = vsel %vm1347_vm2, %v6257_v3, %v12999_v26  ;;  %v4579_v29 = vsel %vm3622_vm3, %v13122_v14, %v4578_v36  ;;  %v11555_v14 = vld [vmem:[#allocation3 + $0xb0] sm:$0xff]  }
 0x22d   : > { %v10239_v58 = vadd.f32 %v10238_v45, %v10237_v1  ;;  %v10320_v50 = vpop.f32.mrf.mxu1  ;;  %v11551_v1 = vld [vmem:[#allocation3 + $0xb8] sm:$0xff]   ;;  %v9647_v16 = vcombine.high %v13153_v32, %v13147_v8  ;;  %v13178_v26 = vld [vmem:[#allocation2 + $0xb0] sm:$0xff] }
 0x22e   : > { %v13142_v48 = vadd.f32 %v10320_v50, %v10319_v40  ;;  %v10240_v30 = vpop.f32.mrf.mxu0  ;;  %v4595_v40 = vrot.slane %v4593_v34, 2  ;;  %v4581_v34 = vshrl.u32 %v9575_v18, 16  ;;  %15052 = vst [vmem:[#allocation34_spill] sm:$0xff] %v13178_v26 }
 0x22f   : > { %v13145_v23 = vadd.f32 %v10239_v58, %v15045_v60  ;;  %v10322_v9 = vpop.f32.mrf.mxu1  ;;  %v15048_v58 = vld [vmem:[#allocation12_spill] sm:$0xff] }
 0x230   : > { %15044 = vst [vmem:[#allocation14_spill] sm:$0xff] %v13142_v48  ;;  %v10241_v21 = vpop.f32.mrf.mxu0  ;;  %v5278_v60 = vld [vmem:[#allocation2 + $0xb8] sm:$0xcc]  ;;  %v15050_v48 = vld [vmem:[#allocation15_spill] sm:$0xff]  ;;  %v4583_v63 = vrot.slane %v4581_v34, 1 }
 0x231   : > { %15046 = vst [vmem:[#allocation11_spill] sm:$0xff] %v13145_v23  ;;  %v10242_v45 = vadd.f32 %v10241_v21, %v10240_v30  ;;  %v10323_v11 = vpop.f32.mrf.mxu1  ;;  %v4584_v30 = vshll.u32 %v9575_v18, 16  ;;  %v13167_v21 = vor.u32 %v4568_v31, %v4565_v39  ;;  %v9645_v3 = vcombine.high %v5278_v60, %v13151_v28 }
 0x232   : > { %v13155_v19 = vadd.f32 %v10323_v11, %v10322_v9  ;;  %v10243_v33 = vpop.f32.mrf.mxu0  ;;  %4783 = vmatmul.mubr.bf16.gmra.mxu0 %v4552_v49 }
 0x233   : > { %v13164_v50 = vadd.f32 %v10242_v45, %v15048_v58  ;;  %v10405_v2 = vpop.f32.mrf.mxu1  ;;  %6555 = vmatmul.mubr.bf16.vlgmr.msra.gmra.mxu1 %v6266_v54  ;;  %4790 = vmatprep.mubr.bf16.mxu0 %v4579_v29  ;;  %v13171_v45 = vcombine.low %v5278_v60, %v13151_v28  ;;  %v11558_v54 = vld [vmem:[#allocation3 + $0xe8] sm:$0xff]   ;;  %v5865_v58 = vshrl.u32 %v9647_v16, 16  ;;  %v5857_v60 = vshrl.u32 %v9645_v3, 16 }
 0x234   : > { %15047 = vst [vmem:[#allocation33_spill] sm:$0xff] %v13155_v19  ;;  %6562 = vmatprep.mubr.bf16.mxu1 %v13023_v61  ;;  %v10244_v9 = vpop.f32.mrf.mxu0  ;;  %10902 = vmatpush3.bf16.msra.mxu1 %v11551_v1  ;;  %v4596_v19 = vor.u32 %v4595_v40, %v4592_v62  ;;  %v5868_v61 = vshll.u32 %v9647_v16, 16  ;;  %v4586_v1 = vrot.slane %v4584_v30, 2  ;;  %v9646_v30 = vcombine.low %v13153_v32, %v13147_v8 }
 0x235   : > { %15049 = vst [vmem:[#allocation12_spill] sm:$0xff] %v13164_v50  ;;  %v10245_v11 = vadd.f32 %v10244_v9, %v10243_v33  ;;  %v10406_v49 = vpop.f32.mrf.mxu1  ;;  %10903 = vmatprep.subr.bf16.mxu1 %v11554_v53  ;;  %v15053_v33 = vld [vmem:[#allocation9_spill] sm:$0xff]  ;;  %v4570_v53 = vsel %vm3622_vm3, %v4551_v10, %v13167_v21  ;;  %v6142_v9 = vld [vmem:[#allocation2 + $0x110] sm:$0xff]  ;;  %v5840_v34 = vshrl.u32 %v13171_v45, 16 }
 0x236   : > { %v13173_v29 = vadd.f32 %v10406_v49, %v10405_v2  ;;  %v10246_v18 = vpop.f32.mrf.mxu0  ;;  %v1000_v62 = vand.u32 15, %v15053_v33  ;;  %v5860_v2 = vshll.u32 %v9645_v3, 16  ;;  %v11559_v49 = vld [vmem:[#allocation3 + $0xa8] sm:$0xff]   ;;  %v5867_v3 = vrot.slane %v5865_v58, 2 }
 0x237   : > { %v13176_v39 = vadd.f32 %v10245_v11, %v15050_v48  ;;  %v10408_v31 = vpop.f32.mrf.mxu1  ;;  %v4597_v48 = vsel %vm3622_vm3, %v4578_v36, %v4596_v19  ;;  %v13187_v11 = vld [vmem:[#allocation2 + $0x130] sm:$0xff] }
 0x238   : > { %v10247_v40 = vpop.f32.mrf.mxu0  ;;  %10904 = vmatpush3.bf16.msra.mxu1 %v11555_v14  ;;  %v5870_v14 = vrot.slane %v5868_v61, 3  ;;  %v5843_v61 = vshll.u32 %v13171_v45, 16 }
 0x239   : > { %15051 = vst [vmem:[#allocation15_spill] sm:$0xff] %v13176_v39  ;;  %v10248_v16 = vadd.f32 %v10247_v40, %v10246_v18  ;;  %v10409_v6 = vpop.f32.mrf.mxu1  ;;  %10905 = vmatprep.subr.bf16.mxu1 %v11558_v54  ;;  %v11560_v39 = vld [vmem:[#allocation3 + $0xe0] sm:$0xff]   ;;  %v9649_v18 = vcombine.high %v13187_v11, %v13178_v26  ;;  %v4587_v40 = vor.u32 %v4586_v1, %v4583_v63  ;;  %v13200_v54 = vadd.s32 4294967293, %v1000_v62  ;;  %v11564_v62 = vld [vmem:[#allocation3 + $0xd8] sm:$0xff]  }
 0x23a   : > { %v13189_v47 = vadd.f32 %v10409_v6, %v10408_v31  ;;  %v10249_v10 = vpop.f32.mrf.mxu0  ;;  %4791 = vmatmul.mubr.bf16.gmra.mxu0 %v4570_v53  ;;  %v9681_v6 = vcombine.high %v6142_v9, %v13197_v38  ;;  %v5859_v31 = vrot.slane %v5857_v60, 2  ;;  %v5862_v53 = vrot.slane %v5860_v2, 3 }
 0x23b   : > { %v13194_v36 = vadd.f32 %v10248_v16, %v12957_v52  ;;  %v10411_v19 = vpop.f32.mrf.mxu1  ;;  %6563 = vmatmul.mubr.bf16.gmra.mxu1 %v13046_v46  ;;  %4798 = vmatprep.mubr.bf16.mxu0 %v4597_v48  ;;  %v11561_v52 = vld [vmem:[#allocation3 + $0xa0] sm:$0xff]   ;;  %v13204_v46 = vrot.slane %v5840_v34, 2  ;;  %v5848_v63 = vshrl.u32 %v9646_v30, 16  ;;  %v5851_v1 = vshll.u32 %v9646_v30, 16 }
 0x23c   : > { %6570 = vmatprep.mubr.bf16.mxu1 %v13056_v55  ;;  %v10250_v58 = vpop.f32.mrf.mxu0  ;;  %10906 = vmatpush3.bf16.msra.mxu1 %v11559_v49  ;;  %v13206_v48 = vld [vmem:[#allocation2 + $0x100] sm:$0xff]  ;;  %v13210_v50 = vor.u32 %v5870_v14, %v5867_v3  ;;  %v5883_v45 = vshrl.u32 %v9649_v18, 16  ;;  %v5886_v60 = vshll.u32 %v9649_v18, 16  ;;  %v4588_v34 = vsel %vm3622_vm3, %v13167_v21, %v4587_v40  ;;  %v11566_v40 = vld [vmem:[#allocation3 + $0xd0] sm:$0xff]  }
 0x23d   : > { %15054 = vst [vmem:[#allocation9_spill] sm:$0xff] %v13194_v36  ;;  %v10251_v16 = vadd.f32 %v10250_v58, %v10249_v10  ;;  %v10412_v36 = vpop.f32.mrf.mxu1  ;;  %10907 = vmatprep.subr.bf16.mxu1 %v11560_v39  ;;  %v6348_v10 = vshrl.u32 %v9681_v6, 16  ;;  %v6351_v30 = vshll.u32 %v9681_v6, 16  ;;  %v5863_v23 = vor.u32 %v5862_v53, %v5859_v31 }
 0x23e   : > { %v13208_v13 = vadd.f32 %v10412_v36, %v10411_v19  ;;  %v10252_v55 = vpop.f32.mrf.mxu0  ;;  %v5845_v39 = vrot.slane %v5843_v61, 3  ;;  %v9648_v36 = vcombine.low %v13187_v11, %v13178_v26  ;;  %v13219_v19 = vld [vmem:[#allocation2 + $0x160] sm:$0xff]  ;;  %v9680_v21 = vcombine.low %v6142_v9, %v13197_v38 }
 0x23f   : > { %v13213_v2 = vadd.f32 %v10251_v16, %v12970_v42  ;;  %v10414_v49 = vpop.f32.mrf.mxu1  ;;  %15056 = vst [vmem:[#allocation36_spill] sm:$0xff] %v13219_v19  ;;  %v9651_v3 = vcombine.high %v13206_v48, %v13219_v19  ;;  %v11565_v42 = vld [vmem:[#allocation3 + $0x98] sm:$0xff]   ;;  %v5850_v16 = vrot.slane %v5848_v63, 2  ;;  %v5872_v31 = vsel %vm1347_vm2, %v5863_v23, %v13210_v50 }
 0x240   : > { %v10253_v58 = vpop.f32.mrf.mxu0  ;;  %10908 = vmatpush3.bf16.msra.mxu1 %v11561_v52  ;;  %v5885_v53 = vrot.slane %v5883_v45, 2  ;;  %v5888_v26 = vrot.slane %v5886_v60, 3  ;;  %v6350_v63 = vrot.slane %v6348_v10, 2  ;;  %v6353_v9 = vrot.slane %v6351_v30, 3  ;;  %v11567_v60 = vld [vmem:[#allocation3 + $0x90] sm:$0xff]   ;;  %v11572_v10 = vld [vmem:[#allocation3 + $0xc8] sm:$0xff]  }
 0x241   : > { %15055 = vst [vmem:[#allocation35_spill] sm:$0xff] %v13213_v2  ;;  %v10254_v14 = vadd.f32 %v10253_v58, %v10252_v55  ;;  %v10415_v18 = vpop.f32.mrf.mxu1  ;;  %v5853_v2 = vrot.slane %v5851_v1, 3  ;;  %10909 = vmatprep.subr.bf16.mxu1 %v11564_v62  ;;  %v9683_v1 = vcombine.high %v13197_v38, %v13197_v38  ;;  %v5901_v23 = vshrl.u32 %v9651_v3, 16 }
 0x242   : > { %v13224_v6 = vadd.f32 %v10415_v18, %v10414_v49  ;;  %v10255_v61 = vpop.f32.mrf.mxu0  ;;  %4799 = vmatmul.mubr.bf16.gmra.mxu0 %v4588_v34  ;;  %v5874_v49 = vshrl.u32 %v9648_v36, 16  ;;  %v5877_v34 = vshll.u32 %v9648_v36, 16  ;;  %v5904_v45 = vshll.u32 %v9651_v3, 16 }
 0x243   : > { %v13229_v52 = vadd.f32 %v10254_v14, %v12988_v41  ;;  %v10417_v55 = vpop.f32.mrf.mxu1  ;;  %6571 = vmatmul.mubr.bf16.gmra.mxu1 %v13072_v20  ;;  %6067 = vmatprep.mubr.bf16.mxu0 %v5872_v31  ;;  %v13235_v14 = vor.u32 %v5853_v2, %v5850_v16  ;;  %v6339_v20 = vshrl.u32 %v9680_v21, 16  ;;  %v6342_v18 = vshll.u32 %v9680_v21, 16 }
 0x244   : > { %6578 = vmatprep.mubr.bf16.mxu1 %v13086_v12  ;;  %v10256_v62 = vpop.f32.mrf.mxu0  ;;  %10910 = vmatpush3.bf16.msra.mxu1 %v11565_v42  ;;  %v5846_v12 = vor.u32 %v5845_v39, %v13204_v46  ;;  %v13244_v36 = vcombine.low %v13206_v48, %v13219_v19  ;;  %v11549_v42 = vld [vmem:[#allocation3 + $0x238] sm:$0xff]   ;;  %v13249_v16 = vor.u32 %v6353_v9, %v6350_v63  ;;  %v6366_v21 = vshrl.u32 %v9683_v1, 16  ;;  %v11552_v19 = vld [vmem:[#allocation3 + $0x270] sm:$0xff]  }
 0x245   : > { %15057 = vst [vmem:[#allocation37_spill] sm:$0xff] %v13229_v52  ;;  %v10257_v41 = vadd.f32 %v10256_v62, %v10255_v61  ;;  %v10418_v58 = vpop.f32.mrf.mxu1  ;;  %10911 = vmatprep.subr.bf16.mxu1 %v11566_v40  ;;  %v13240_v52 = vor.u32 %v5888_v26, %v5885_v53  ;;  %v6369_v40 = vshll.u32 %v9683_v1, 16  ;;  %v5879_v62 = vrot.slane %v5877_v34, 3 }
 0x246   : > { %v13237_v30 = vadd.f32 %v10418_v58, %v10417_v55  ;;  %v10258_v31 = vpop.f32.mrf.mxu0  ;;  %v5876_v55 = vrot.slane %v5874_v49, 2  ;;  %v5903_v58 = vrot.slane %v5901_v23, 2  ;;  %v5906_v46 = vrot.slane %v5904_v45, 3  ;;  %v11575_v23 = vld [vmem:[#allocation3 + $0xc0] sm:$0xff]  }
 0x247   : > { %v13247_v3 = vadd.f32 %v10257_v41, %v13006_v35  ;;  %v10420_v2 = vpop.f32.mrf.mxu1  ;;  %v5855_v53 = vsel %vm1347_vm2, %v5846_v12, %v13235_v14  ;;  %v6341_v35 = vrot.slane %v6339_v20, 2  ;;  %v6344_v41 = vrot.slane %v6342_v18, 3  ;;  %v11553_v18 = vld [vmem:[#allocation3 + $0x230] sm:$0xff]  }
 0x248   : > { %v10259_v61 = vpop.f32.mrf.mxu0  ;;  %10912 = vmatpush3.bf16.msra.mxu1 %v11567_v60  ;;  %v13254_v63 = vadd.s32 16, %v15053_v33  ;;  %v5890_v49 = vsel %vm1347_vm2, %v13210_v50, %v13240_v52  ;;  %v9682_v34 = vcombine.low %v13197_v38, %v13197_v38  ;;  %v6355_v20 = vsel %vm1347_vm2, %v13066_v24, %v13249_v16  ;;  %v11576_v24 = vld [vmem:[#allocation3 + $0x80] sm:$0xff]  }
 0x249   : > { %15058 = vst [vmem:[#allocation38_spill] sm:$0xff] %v13247_v3  ;;  %v10260_v26 = vadd.f32 %v10259_v61, %v10258_v31  ;;  %v10421_v39 = vpop.f32.mrf.mxu1  ;;  %10913 = vmatprep.subr.bf16.mxu1 %v11572_v10  ;;  %v11573_v3 = vld [vmem:[#allocation3 + $0x88] sm:$0xff]   ;;  %v6368_v10 = vrot.slane %v6366_v21, 2  ;;  %v6371_v31 = vrot.slane %v6369_v40, 3  ;;  %v13270_v12 = vor.u32 %v5879_v62, %v5876_v55  ;;  %v6148_v62 = vld [vmem:[#allocation2 + $0xc0] sm:$0x77] }
 0x24a   : > { %v13256_v9 = vadd.f32 %v10421_v39, %v10420_v2  ;;  %v10341_v1 = vpop.f32.mrf.mxu0  ;;  %6068 = vmatmul.mubr.bf16.vlgmr.msra.gmra.mxu0 %v5855_v53  ;;  %v13272_v38 = vor.u32 %v5906_v46, %v5903_v58  ;;  %v5892_v2 = vshrl.u32 %v13244_v36, 16  ;;  %v6357_v39 = vshrl.u32 %v9682_v34, 16  ;;  %v11595_v58 = vld [vmem:[#allocation3 + $0x2f8] sm:$0xff]  }
 0x24b   : > { %v13264_v45 = vadd.f32 %v10260_v26, %v13026_v22  ;;  %v10423_v60 = vpop.f32.mrf.mxu1  ;;  %6579 = vmatmul.mubr.bf16.gmra.mxu1 %v13103_v57  ;;  %10838 = vmatpush3.bf16.msra.mxu0 %v11549_v42  ;;  %v11556_v22 = vld [vmem:[#allocation3 + $0x268] sm:$0xff]   ;;  %v5895_v57 = vshll.u32 %v13244_v36, 16  ;;  %v13276_v26 = vor.u32 %v6344_v41, %v6341_v35  ;;  %v6360_v55 = vshll.u32 %v9682_v34, 16  ;;  %v15059_v36 = vld [vmem:[#allocation16_spill] sm:$0xff] }
 0x24c   : > { %6075 = vmatprep.mubr.bf16.mxu0 %v5890_v49  ;;  %6586 = vmatprep.mubr.bf16.mxu1 %v6355_v20  ;;  %v10342_v50 = vpop.f32.mrf.mxu0  ;;  %vm2564_vm4 = vcmp.ge.s32.totalorder %v13200_v54, 0  ;;  %v1014_v46 = vand.u32 15, %v13254_v63  ;;  %v5881_v35 = vsel %vm1347_vm2, %v13235_v14, %v13270_v12  ;;  %v5908_v41 = vsel %vm1347_vm2, %v13240_v52, %v13272_v38 }
 0x24d   : > { %v10343_v42 = vadd.f32 %v10342_v50, %v10341_v1  ;;  %v10424_v61 = vpop.f32.mrf.mxu1  ;;  %10839 = vmatprep.subr.bf16.mxu0 %v11552_v19  ;;  %10914 = vmatpush3.bf16.msra.mxu1 %v11573_v3  ;;  %v13283_v19 = vor.u32 %v6371_v31, %v6368_v10  ;;  %v5894_v49 = vrot.slane %v5892_v2, 2  ;;  %v5897_v34 = vrot.slane %v5895_v57, 3  ;;  %v11562_v10 = vld [vmem:[#allocation3 + $0x260] sm:$0xff]  }
 0x24e   : > { %v13278_v21 = vadd.f32 %v10424_v61, %v10423_v60  ;;  %v10344_v40 = vpop.f32.mrf.mxu0  ;;  %10915 = vmatprep.subr.bf16.mxu1 %v11575_v23  ;;  %v11557_v23 = vld [vmem:[#allocation3 + $0x228] sm:$0xff]   ;;  %v9687_v31 = vcombine.high %v6148_v62, %v6148_v62  ;;  %v2644_v14 = vsel %vm2564_vm4, %v13033_v7, 0.0  ;;  %v6359_v2 = vrot.slane %v6357_v39, 2 }
 0x24f   : > { %v3106_v53 = vadd.f32 %v10343_v42, %v15059_v36  ;;  %v10426_v1 = vpop.f32.mrf.mxu1  ;;  %10840 = vmatpush3.bf16.msra.mxu0 %v11553_v18  ;;  %v6346_v18 = vsel %vm1347_vm2, %v13090_v5, %v13276_v26  ;;  %v6362_v57 = vrot.slane %v6360_v55, 3  ;;  %v6373_v5 = vsel %vm1347_vm2, %v13249_v16, %v13283_v19 }
 0x250   : > { %v10345_v3 = vpop.f32.mrf.mxu0  ;;  %10841 = vmatprep.subr.bf16.mxu0 %v11556_v22  ;;  %v2550_v54 = vadd.s32 4294967293, %v1014_v46  ;;  %v6405_v36 = vshll.u32 %v9687_v31, 16 }
 0x251   : > { %v3430_v60 = vadd.f32 %v13173_v29, %v3106_v53  ;;  %v10346_v20 = vadd.f32 %v10345_v3, %v10344_v40  ;;  %v10427_v50 = vpop.f32.mrf.mxu1  ;;  %10916 = vmatpush3.bf16.msra.mxu1 %v11576_v24  ;;  %v13306_v24 = vor.u32 %v5897_v34, %v5894_v49  ;;  %v11563_v40 = vld [vmem:[#allocation3 + $0x220] sm:$0xff]   ;;  %v11569_v53 = vld [vmem:[#allocation3 + $0x258] sm:$0xff]   ;;  %v13314_v3 = vor.u32 %v6362_v57, %v6359_v2 }
 0x252   : > { %v13298_v52 = vadd.f32 %v10427_v50, %v10426_v1  ;;  %v10347_v22 = vpop.f32.mrf.mxu0  ;;  %6076 = vmatmul.mubr.bf16.gmra.mxu0 %v5881_v35  ;;  %11029 = vmatprep.subr.bf16.mxu1 %v11595_v58  ;;  %v6402_v58 = vshrl.u32 %v9687_v31, 16  ;;  %v13310_v1 = vadd.s32 32, %v15053_v33  ;;  %vm2566_vm5 = vcmp.ge.s32.totalorder %v2550_v54, 0 }
 0x253   : > { %v3109_v29 = vadd.f32 %v10346_v20, %v12946_v56  ;;  %v10429_v42 = vpop.f32.mrf.mxu1  ;;  %6587 = vmatmul.mubr.bf16.gmra.mxu1 %v6346_v18  ;;  %6083 = vmatprep.mubr.bf16.mxu0 %v5908_v41  ;;  %v13304_v61 = vadd.f32 %v3430_v60, %v2644_v14  ;;  %v5899_v34 = vsel %vm1347_vm2, %v13270_v12, %v13306_v24  ;;  %v11571_v60 = vld [vmem:[#allocation3 + $0x218] sm:$0xff]   ;;  %v6407_v31 = vrot.slane %v6405_v36, 3 }
 0x254   : > { %6594 = vmatprep.mubr.bf16.mxu1 %v6373_v5  ;;  %v10348_v7 = vpop.f32.mrf.mxu0  ;;  %10842 = vmatpush3.bf16.msra.mxu0 %v11557_v23  ;;  %v9686_v23 = vcombine.low %v6148_v62, %v6148_v62  ;;  %v6364_v12 = vsel %vm1347_vm2, %v13276_v26, %v13314_v3  ;;  %v15060_v62 = vld [vmem:[#allocation13_spill] sm:$0xff] }
 0x255   : > { %v3431_v39 = vadd.f32 %v13189_v47, %v3109_v29  ;;  %v10349_v55 = vadd.f32 %v10348_v7, %v10347_v22  ;;  %v10430_v56 = vpop.f32.mrf.mxu1  ;;  %10843 = vmatprep.subr.bf16.mxu0 %v11562_v10  ;;  %v6404_v10 = vrot.slane %v6402_v58, 2  ;;  %v11578_v7 = vld [vmem:[#allocation3 + $0x210] sm:$0xff]   ;;  %v13339_v58 = vadd.s32 48, %v15053_v33 }
 0x256   : > { %v13312_v16 = vadd.f32 %v10430_v56, %v10429_v42  ;;  %v10350_v46 = vpop.f32.mrf.mxu0  ;;  %v6393_v42 = vshrl.u32 %v9686_v23, 16  ;;  %v6396_v5 = vshll.u32 %v9686_v23, 16 }
 0x257   : > { %v13317_v35 = vadd.f32 %v3431_v39, %v13049_v25  ;;  %v3114_v41 = vadd.f32 %v10349_v55, %v12966_v27  ;;  %v10432_v47 = vpop.f32.mrf.mxu1  ;;  %v11577_v25 = vld [vmem:[#allocation3 + $0x250] sm:$0xff]   ;;  %v1028_v27 = vand.u32 15, %v13310_v1  ;;  %15061 = vst [vmem:[#allocation16_spill] sm:$0xff] %v13339_v58 }
 0x258   : > { %v10351_v49 = vpop.f32.mrf.mxu0  ;;  %10844 = vmatpush3.bf16.msra.mxu0 %v11563_v40  ;;  %v2646_v40 = vsel %vm2566_vm5, %v13064_v37, 0.0 }
 0x259   : > { %v3432_v20 = vadd.f32 %v13208_v13, %v3114_v41  ;;  %v10352_v50 = vadd.f32 %v10351_v49, %v10350_v46  ;;  %v10433_v18 = vpop.f32.mrf.mxu1  ;;  %10845 = vmatprep.subr.bf16.mxu0 %v11569_v53  ;;  %v5910_v13 = vsel %vm1347_vm2, %v13272_v38, %v15060_v62  ;;  %v6408_v38 = vor.u32 %v6407_v31, %v6404_v10  ;;  %v11586_v10 = vld [vmem:[#allocation3 + $0x240] sm:$0xff]  }
 0x25a   : > { %v13325_v14 = vadd.f32 %v10433_v18, %v10432_v47  ;;  %v10353_v22 = vpop.f32.mrf.mxu0  ;;  %6084 = vmatmul.mubr.bf16.gmra.mxu0 %v5899_v34  ;;  %v2552_v56 = vadd.s32 4294967293, %v1028_v27  ;;  %v6395_v47 = vrot.slane %v6393_v42, 2  ;;  %v6398_v49 = vrot.slane %v6396_v5, 3  ;;  %v11582_v34 = vld [vmem:[#allocation3 + $0x208] sm:$0xff]   ;;  %v15063_v18 = vld [vmem:[#allocation17_spill] sm:$0xff] }
 0x25b   : > { %v3117_v2 = vadd.f32 %v10352_v50, %v12983_v59  ;;  %v10435_v57 = vpop.f32.mrf.mxu1  ;;  %6595 = vmatmul.mubr.bf16.gmra.mxu1 %v6364_v12  ;;  %6091 = vmatprep.mubr.bf16.mxu0 %v5910_v13  ;;  %v11581_v59 = vld [vmem:[#allocation3 + $0x248] sm:$0xff]   ;;  %v13343_v46 = vadd.f32 %v3432_v20, %v2646_v40  ;;  %v5909_v20 = vsel %vm1347_vm2, %v13306_v24, %v15063_v18  ;;  %v13363_v13 = vadd.s32 64, %v15053_v33 }
 0x25c   : > { %v10354_v29 = vpop.f32.mrf.mxu0  ;;  %6602 = vmatprep.mubr.bf16.mxu1 %v13283_v19  ;;  %10846 = vmatpush3.bf16.msra.mxu0 %v11571_v60  ;;  %vm2568_vm6 = vcmp.ge.s32.totalorder %v2552_v56, 0  ;;  %v6399_v12 = vor.u32 %v6398_v49, %v6395_v47  ;;  %v15069_v47 = vld [vmem:[#allocation23_spill] sm:$0xff]  ;;  %v9737_v49 = vcombine.high %v13151_v28, %v13153_v32 }
 0x25d   : > { %v3433_v26 = vadd.f32 %v13224_v6, %v3117_v2  ;;  %v10355_v39 = vadd.f32 %v10354_v29, %v10353_v22  ;;  %v10436_v55 = vpop.f32.mrf.mxu1  ;;  %10847 = vmatprep.subr.bf16.mxu0 %v11577_v25  ;;  %v15064_v22 = vld [vmem:[#allocation19_spill] sm:$0xff]  ;;  %v2648_v62 = vsel %vm2568_vm6, %v13097_v17, 0.0  ;;  %15065 = vst [vmem:[#allocation17_spill] sm:$0xff] %v13363_v13  ;;  %v1056_v56 = vand.u32 15, %v13363_v13 }
 0x25e   : > { %v13341_v36 = vadd.f32 %v10436_v55, %v10435_v57  ;;  %v10356_v53 = vpop.f32.mrf.mxu0 }
 0x25f   : > { %v13346_v41 = vadd.f32 %v3433_v26, %v13079_v15  ;;  %v3122_v37 = vadd.f32 %v10355_v39, %v13001_v51  ;;  %v10438_v6 = vpop.f32.mrf.mxu1  ;;  %v6409_v15 = vsel %vm1347_vm2, %v13283_v19, %v6408_v38  ;;  %v1042_v51 = vand.u32 15, %v13339_v58  ;;  %v11588_v19 = vld [vmem:[#allocation3 + $0x200] sm:$0xff]   ;;  %v15068_v39 = vld [vmem:[#allocation27_spill] sm:$0xff]  ;;  %v5294_v38 = vld [vmem:[#allocation2 + $0x178] sm:$0x77] }
 0x260   : > { %v10357_v54 = vpop.f32.mrf.mxu0  ;;  %10848 = vmatpush3.bf16.msra.mxu0 %v11578_v7 }
 0x261   : > { %15062 = vst [vmem:[#allocation13_spill] sm:$0xff] %v13346_v41  ;;  %v3434_v23 = vadd.f32 %v13237_v30, %v3122_v37  ;;  %v10358_v60 = vadd.f32 %v10357_v54, %v10356_v53  ;;  %v10439_v50 = vpop.f32.mrf.mxu1  ;;  %10849 = vmatprep.subr.bf16.mxu0 %v11581_v59  ;;  %v2554_v42 = vadd.s32 4294967293, %v1042_v51 }
 0x262   : > { %v13356_v31 = vadd.f32 %v10439_v50, %v10438_v6  ;;  %v10359_v25 = vpop.f32.mrf.mxu0  ;;  %6092 = vmatmul.mubr.bf16.gmra.mxu0 %v5909_v20  ;;  %v15071_v50 = vld [vmem:[#allocation18_spill] sm:$0xff] }
 0x263   : > { %v3125_v30 = vadd.f32 %v10358_v60, %v13018_v4  ;;  %v10441_v27 = vpop.f32.mrf.mxu1  ;;  %6603 = vmatmul.mubr.bf16.gmra.mxu1 %v13314_v3  ;;  %6099 = vmatprep.mubr.bf16.mxu0 %v15064_v22  ;;  %v11591_v4 = vld [vmem:[#allocation3 + $0x3f8] sm:$0xff]   ;;  %v13368_v40 = vadd.f32 %v3434_v23, %v2648_v62  ;;  %vm2570_vm7 = vcmp.ge.s32.totalorder %v2554_v42, 0  ;;  %v15070_v23 = vld [vmem:[#allocation25_spill] sm:$0xff] }
 0x264   : > { %v10360_v24 = vpop.f32.mrf.mxu0  ;;  %6610 = vmatprep.mubr.bf16.mxu1 %v6409_v15  ;;  %10850 = vmatpush3.bf16.msra.mxu0 %v11582_v34  ;;  %v9653_v34 = vcombine.high %v5294_v38, %v5294_v38  ;;  %v2650_v20 = vsel %vm2570_vm7, %v13125_v0, 0.0  ;;  %v2556_v15 = vadd.s32 4294967293, %v1056_v56  ;;  %v15075_v62 = vld [vmem:[#allocation29_spill] sm:$0xff]  ;;  %v9739_v56 = vcombine.high %v13147_v8, %v13187_v11 }
 0x265   : > { %v3435_v2 = vadd.f32 %v13256_v9, %v3125_v30  ;;  %v10361_v57 = vadd.f32 %v10360_v24, %v10359_v25  ;;  %v10442_v29 = vpop.f32.mrf.mxu1  ;;  %10851 = vmatprep.subr.bf16.mxu0 %v11586_v10  ;;  %15066 = vst [vmem:[#allocation19_spill] sm:$0xff] %v13368_v40  ;;  %v6400_v9 = vsel %vm1347_vm2, %v13314_v3, %v6399_v12 }
 0x266   : > { %v13366_v5 = vadd.f32 %v10442_v29, %v10441_v27  ;;  %v10362_v7 = vpop.f32.mrf.mxu0  ;;  %v5921_v22 = vshrl.u32 %v9653_v34, 16  ;;  %v5924_v24 = vshll.u32 %v9653_v34, 16  ;;  %vm2572_vm8 = vcmp.ge.s32.totalorder %v2556_v15, 0  ;;  %v15079_v34 = vld [vmem:[#allocation11_spill] sm:$0xff]  ;;  %v15084_v15 = vld [vmem:[#allocation24_spill] sm:$0xff] }
 0x267   : > { %v13371_v26 = vadd.f32 %v3435_v2, %v13113_v43  ;;  %v3130_v17 = vadd.f32 %v10361_v57, %v15068_v39  ;;  %v10444_v55 = vpop.f32.mrf.mxu1 }
 0x268   : > { %v10363_v59 = vpop.f32.mrf.mxu0  ;;  %10852 = vmatpush3.bf16.msra.mxu0 %v11588_v19 }
 0x269   : > { %15067 = vst [vmem:[#allocation39_spill] sm:$0xff] %v13371_v26  ;;  %v3436_v53 = vadd.f32 %v13278_v21, %v3130_v17  ;;  %v10364_v37 = vadd.f32 %v10363_v59, %v10362_v7  ;;  %v10445_v6 = vpop.f32.mrf.mxu1  ;;  %10965 = vmatprep.subr.bf16.mxu0 %v11591_v4  ;;  %v13386_v21 = vadd.s32 80, %v15053_v33  ;;  %v9652_v4 = vcombine.low %v5294_v38, %v5294_v38 }
 0x26a   : > { %v13378_v54 = vadd.f32 %v10445_v6, %v10444_v55  ;;  %v10365_v43 = vpop.f32.mrf.mxu0  ;;  %6100 = vmatmul.mubr.bf16.gmra.mxu0 %v15069_v47  ;;  %v9736_v17 = vcombine.low %v13151_v28, %v13153_v32  ;;  %v11601_v55 = vld [vmem:[#allocation3 + $0x2f0] sm:$0xff]   ;;  %v5926_v38 = vrot.slane %v5924_v24, 3  ;;  %v15082_v24 = vld [vmem:[#allocation12_spill] sm:$0xff] }
 0x26b   : > { %v3133_v3 = vadd.f32 %v10364_v37, %v15070_v23  ;;  %v10447_v60 = vpop.f32.mrf.mxu1  ;;  %6611 = vmatmul.mubr.bf16.gmra.mxu1 %v6400_v9  ;;  %6107 = vmatprep.mubr.bf16.mxu0 %v15071_v50  ;;  %15072 = vst [vmem:[#allocation27_spill] sm:$0xff] %v13386_v21  ;;  %v13392_v12 = vadd.f32 %v3436_v53, %v2650_v20  ;;  %v1070_v0 = vand.u32 15, %v13386_v21  ;;  %v15076_v9 = vld [vmem:[#allocation10_spill] sm:$0xff]  ;;  %v5923_v53 = vrot.slane %v5921_v22, 2  ;;  %v15077_v37 = vld [vmem:[#allocation20_spill] sm:$0xff] }
 0x26c   : > { %7188 = vmatprep.mubr.bf16.mxu1 %v9737_v49  ;;  %v10366_v18 = vpop.f32.mrf.mxu0  ;;  %v5912_v32 = vshrl.u32 %v9652_v4, 16  ;;  %v11602_v49 = vld [vmem:[#allocation3 + $0x2b0] sm:$0xff]   ;;  %v2652_v23 = vsel %vm2572_vm8, %v15079_v34, 0.0  ;;  %v11606_v20 = vld [vmem:[#allocation3 + $0x2e8] sm:$0xff]  }
 0x26d   : > { %v3437_v10 = vadd.f32 %v13298_v52, %v3133_v3  ;;  %v10367_v51 = vadd.f32 %v10366_v18, %v10365_v43  ;;  %v10448_v25 = vpop.f32.mrf.mxu1  ;;  %15073 = vst [vmem:[#allocation23_spill] sm:$0xff] %v13392_v12  ;;  %v11596_v52 = vld [vmem:[#allocation3 + $0x2b8] sm:$0xff]   ;;  %v2558_v47 = vadd.s32 4294967293, %v1070_v0  ;;  %v5915_v18 = vshll.u32 %v9652_v4, 16 }
 0x26e   : > { %v13390_v30 = vadd.f32 %v10448_v25, %v10447_v60  ;;  %v10368_v27 = vpop.f32.mrf.mxu0  ;;  %v9738_v0 = vcombine.low %v13147_v8, %v13187_v11  ;;  %v15087_v11 = vld [vmem:[#allocation34_spill] sm:$0xff] }
 0x26f   : > { %v13395_v19 = vadd.f32 %v3437_v10, %v13138_v44  ;;  %v3138_v2 = vadd.f32 %v10367_v51, %v15075_v62  ;;  %v10450_v57 = vpop.f32.mrf.mxu1  ;;  %v13413_v10 = vadd.s32 96, %v15053_v33  ;;  %vm2574_vm9 = vcmp.ge.s32.totalorder %v2558_v47, 0 }
 0x270   : > { %v10369_v29 = vpop.f32.mrf.mxu0 }
 0x271   : > { %15074 = vst [vmem:[#allocation25_spill] sm:$0xff] %v13395_v19  ;;  %v3438_v42 = vadd.f32 %v13312_v16, %v3138_v2  ;;  %v10370_v7 = vadd.f32 %v10369_v29, %v10368_v27  ;;  %v10451_v39 = vpop.f32.mrf.mxu1  ;;  %v15078_v16 = vld [vmem:[#allocation21_spill] sm:$0xff]  ;;  %15080 = vst [vmem:[#allocation18_spill] sm:$0xff] %v13413_v10  ;;  %v5927_v27 = vor.u32 %v5926_v38, %v5923_v53  ;;  %v11608_v29 = vld [vmem:[#allocation3 + $0x2a8] sm:$0xff]  }
 0x272   : > { %v13402_v59 = vadd.f32 %v10451_v39, %v10450_v57  ;;  %v10371_v44 = vpop.f32.mrf.mxu0  ;;  %6108 = vmatmul.mubr.bf16.gmra.mxu0 %v15076_v9  ;;  %v5917_v39 = vrot.slane %v5915_v18, 3  ;;  %v15085_v9 = vld [vmem:[#allocation26_spill] sm:$0xff]  ;;  %v9741_v53 = vcombine.high %v15087_v11, %v13206_v48  ;;  %v11649_v19 = vld [vmem:[#allocation3 + $0x178] sm:$0xff]  }
 0x273   : > { %v3141_v6 = vadd.f32 %v10370_v7, %v15077_v37  ;;  %v10533_v43 = vpop.f32.mrf.mxu1  ;;  %7189 = vmatmul.mubr.bf16.vlgmr.msra.gmra.mxu1 %v9736_v17  ;;  %6115 = vmatprep.mubr.bf16.mxu0 %v15078_v16  ;;  %v13417_v22 = vadd.f32 %v3438_v42, %v2652_v23  ;;  %v5914_v42 = vrot.slane %v5912_v32, 2  ;;  %v11609_v17 = vld [vmem:[#allocation3 + $0x2e0] sm:$0xff]   ;;  %v15089_v16 = vld [vmem:[#allocation15_spill] sm:$0xff]  ;;  %v11614_v23 = vld [vmem:[#allocation3 + $0x2d8] sm:$0xff]  }
 0x274   : > { %7196 = vmatprep.mubr.bf16.mxu1 %v9739_v56  ;;  %v10372_v28 = vpop.f32.mrf.mxu0  ;;  %11030 = vmatpush3.bf16.msra.mxu1 %v11596_v52  ;;  %v15086_v56 = vld [vmem:[#allocation22_spill] sm:$0xff]  ;;  %v2654_v47 = vsel %vm2574_vm9, %v15089_v16, 0.0 }
 0x275   : > { %v3439_v3 = vadd.f32 %v13325_v14, %v3141_v6  ;;  %v10373_v60 = vadd.f32 %v10372_v28, %v10371_v44  ;;  %v10534_v50 = vpop.f32.mrf.mxu1  ;;  %11031 = vmatprep.subr.bf16.mxu1 %v11601_v55  ;;  %15081 = vst [vmem:[#allocation29_spill] sm:$0xff] %v13417_v22  ;;  %v1084_v55 = vand.u32 15, %v13413_v10  ;;  %v5928_v8 = vsel %vm1347_vm2, %v15086_v56, %v5927_v27 }
 0x276   : > { %v13415_v51 = vadd.f32 %v10534_v50, %v10533_v43  ;;  %v10374_v25 = vpop.f32.mrf.mxu0  ;;  %v11610_v43 = vld [vmem:[#allocation3 + $0x2a0] sm:$0xff]   ;;  %v5918_v34 = vor.u32 %v5917_v39, %v5914_v42 }
 0x277   : > { %v13420_v62 = vadd.f32 %v3439_v3, %v15082_v24  ;;  %v3146_v2 = vadd.f32 %v10373_v60, %v15084_v15  ;;  %v13423_v14 = vpop.f32.mrf.mxu1  ;;  %v2560_v3 = vadd.s32 4294967293, %v1084_v55  ;;  %v13440_v60 = vadd.s32 112, %v15053_v33  ;;  %v15094_v24 = vld [vmem:[#allocation31_spill] sm:$0xff]  ;;  %v15096_v55 = vld [vmem:[#allocation36_spill] sm:$0xff] }
 0x278   : > { %v10375_v57 = vpop.f32.mrf.mxu0  ;;  %11032 = vmatpush3.bf16.msra.mxu1 %v11602_v49 }
 0x279   : > { %15083 = vst [vmem:[#allocation10_spill] sm:$0xff] %v13420_v62  ;;  %v3440_v4 = vadd.f32 %v13341_v36, %v3146_v2  ;;  %v10376_v52 = vadd.f32 %v10375_v57, %v10374_v25  ;;  %v13428_v7 = vpop.f32.mrf.mxu1  ;;  %11033 = vmatprep.subr.bf16.mxu1 %v11606_v20  ;;  %v15088_v36 = vld [vmem:[#allocation30_spill] sm:$0xff]  ;;  %15090 = vst [vmem:[#allocation20_spill] sm:$0xff] %v13440_v60  ;;  %v15092_v25 = vld [vmem:[#allocation9_spill] sm:$0xff]  ;;  %v9740_v57 = vcombine.low %v15087_v11, %v13206_v48 }
 0x27a   : > { %v10377_v44 = vpop.f32.mrf.mxu0  ;;  %6116 = vmatmul.mubr.bf16.gmra.mxu0 %v15085_v9  ;;  %v11619_v9 = vld [vmem:[#allocation3 + $0x2d0] sm:$0xff]   ;;  %vm2576_vm10 = vcmp.ge.s32.totalorder %v2560_v3, 0  ;;  %v1098_v56 = vand.u32 15, %v13440_v60  ;;  %v15097_v48 = vld [vmem:[#allocation32_spill] sm:$0xff]  ;;  %v11646_v62 = vld [vmem:[#allocation3 + $0x380] sm:$0xff]  }
 0x27b   : > { %v3149_v38 = vadd.f32 %v10376_v52, %v15088_v36  ;;  %v10539_v37 = vpop.f32.mrf.mxu1  ;;  %7197 = vmatmul.mubr.bf16.gmra.mxu1 %v9738_v0  ;;  %6123 = vmatprep.mubr.bf16.mxu0 %v5928_v8  ;;  %v13444_v20 = vadd.f32 %v3440_v4, %v2654_v47  ;;  %v11618_v0 = vld [vmem:[#allocation3 + $0x298] sm:$0xff]   ;;  %v11620_v36 = vld [vmem:[#allocation3 + $0x290] sm:$0xff]   ;;  %v11624_v47 = vld [vmem:[#allocation3 + $0x2c8] sm:$0xff]  }
 0x27c   : > { %7204 = vmatprep.mubr.bf16.mxu1 %v9741_v53  ;;  %v10378_v6 = vpop.f32.mrf.mxu0  ;;  %11034 = vmatpush3.bf16.msra.mxu1 %v11608_v29  ;;  %v15095_v4 = vld [vmem:[#allocation28_spill] sm:$0xff] }
 0x27d   : > { %v3441_v28 = vadd.f32 %v13356_v31, %v3149_v38  ;;  %v10379_v32 = vadd.f32 %v10378_v6, %v10377_v44  ;;  %v10540_v49 = vpop.f32.mrf.mxu1  ;;  %11035 = vmatprep.subr.bf16.mxu1 %v11609_v17  ;;  %15091 = vst [vmem:[#allocation21_spill] sm:$0xff] %v13444_v20  ;;  %v5919_v39 = vsel %vm1347_vm2, %v15095_v4, %v5918_v34  ;;  %v11720_v17 = vld [vmem:[#allocation2 + $0x88] sm:$0xff]  ;;  %v15098_v38 = vld [vmem:[#allocation35_spill] sm:$0xff] }
 0x27e   : > { %v13442_v50 = vadd.f32 %v10540_v49, %v10539_v37  ;;  %v10380_v18 = vpop.f32.mrf.mxu0  ;;  %v9705_v44 = vcombine.high %v15096_v55, %v11720_v17  ;;  %v2656_v37 = vsel %vm2576_vm10, %v15098_v38, 0.0  ;;  %v11597_v4 = vld [vmem:[#allocation3 + $0x3f0] sm:$0xff]  }
 0x27f   : > { %v13447_v27 = vadd.f32 %v3441_v28, %v15092_v25  ;;  %v3154_v15 = vadd.f32 %v10379_v32, %v15094_v24  ;;  %v13450_v31 = vpop.f32.mrf.mxu1  ;;  %v2562_v28 = vadd.s32 4294967293, %v1098_v56 }
 0x280   : > { %v10381_v2 = vpop.f32.mrf.mxu0  ;;  %11036 = vmatpush3.bf16.msra.mxu1 %v11610_v43 }
 0x281   : > { %15093 = vst [vmem:[#allocation11_spill] sm:$0xff] %v13447_v27  ;;  %v3442_v29 = vadd.f32 %v13366_v5, %v3154_v15  ;;  %v10382_v52 = vadd.f32 %v10381_v2, %v10380_v18  ;;  %v13455_v42 = vpop.f32.mrf.mxu1  ;;  %11037 = vmatprep.subr.bf16.mxu1 %v11614_v23  ;;  %v15100_v23 = vld [vmem:[#allocation37_spill] sm:$0xff]  ;;  %v15102_v18 = vld [vmem:[#allocation14_spill] sm:$0xff]  ;;  %v11593_v15 = vld [vmem:[#allocation3 + $0x3b8] sm:$0xff]   ;;  %vm2578_vm11 = vcmp.ge.s32.totalorder %v2562_v28, 0 }
 0x282   : > { %v10383_v8 = vpop.f32.mrf.mxu0  ;;  %6124 = vmatmul.mubr.bf16.gmra.mxu0 %v5919_v39 }
 0x283   : > { %v3157_v11 = vadd.f32 %v10382_v52, %v15097_v48  ;;  %v10545_v53 = vpop.f32.mrf.mxu1  ;;  %7205 = vmatmul.mubr.bf16.gmra.mxu1 %v9740_v57  ;;  %6976 = vmatprep.mubr.bf16.mxu0 %v9705_v44  ;;  %v13466_v34 = vadd.f32 %v3442_v29, %v2656_v37  ;;  %v11626_v29 = vld [vmem:[#allocation3 + $0x288] sm:$0xff]   ;;  %v15105_v48 = vld [vmem:[#allocation33_spill] sm:$0xff] }
 0x284   : > { %7212 = vmatprep.mubr.bf16.mxu1 %v9705_v44  ;;  %v10384_v5 = vpop.f32.mrf.mxu0  ;;  %11038 = vmatpush3.bf16.msra.mxu1 %v11618_v0  ;;  %v11721_v44 = vld [vmem:[#allocation2 + $0x28] sm:$0xff] }
 0x285   : > { %v3443_v6 = vadd.f32 %v13378_v54, %v3157_v11  ;;  %v10385_v43 = vadd.f32 %v10384_v5, %v10383_v8  ;;  %v10546_v16 = vpop.f32.mrf.mxu1  ;;  %11039 = vmatprep.subr.bf16.mxu1 %v11619_v9  ;;  %15099 = vst [vmem:[#allocation12_spill] sm:$0xff] %v13466_v34  ;;  %v9704_v54 = vcombine.low %v15096_v55, %v11720_v17  ;;  %v11722_v9 = vld [vmem:[#allocation2 + $0x38] sm:$0xff]  ;;  %v11632_v8 = vld [vmem:[#allocation3 + $0x2c0] sm:$0xff]   ;;  %v11599_v17 = vld [vmem:[#allocation3 + $0x3b0] sm:$0xff]  }
 0x286   : > { %v13464_v32 = vadd.f32 %v10546_v16, %v10545_v53  ;;  %v10386_v49 = vpop.f32.mrf.mxu0  ;;  %v9707_v56 = vcombine.high %v11721_v44, %v11722_v9  ;;  %v11603_v55 = vld [vmem:[#allocation3 + $0x3e8] sm:$0xff]  }
 0x287   : > { %v13469_v3 = vadd.f32 %v3443_v6, %v15100_v23  ;;  %v3162_v25 = vadd.f32 %v10385_v43, %v15102_v18  ;;  %v13472_v24 = vpop.f32.mrf.mxu1  ;;  %v15106_v5 = vld [vmem:[#allocation38_spill] sm:$0xff]  ;;  %v11633_v43 = vld [vmem:[#allocation3 + $0x280] sm:$0xff]  }
 0x288   : > { %15103 = vst [vmem:[#allocation26_spill] sm:$0xff] %v13472_v24  ;;  %v10387_v2 = vpop.f32.mrf.mxu0  ;;  %11040 = vmatpush3.bf16.msra.mxu1 %v11620_v36  ;;  %v2658_v36 = vsel %vm2578_vm11, %v15106_v5, 0.0  ;;  %v13643_v24 = vld [vmem:[#allocation2 + $0x110] sm:$0xff] }
 0x289   : > { %15101 = vst [vmem:[#allocation24_spill] sm:$0xff] %v13469_v3  ;;  %v3444_v57 = vadd.f32 %v13390_v30, %v3162_v25  ;;  %v10388_v0 = vadd.f32 %v10387_v2, %v10386_v49  ;;  %v13476_v52 = vpop.f32.mrf.mxu1  ;;  %11041 = vmatprep.subr.bf16.mxu1 %v11624_v47  ;;  %v11654_v49 = vld [vmem:[#allocation3 + $0x478] sm:$0xff]   ;;  %v11605_v2 = vld [vmem:[#allocation3 + $0x3a8] sm:$0xff]  }
 0x28a   : > { %15104 = vst [vmem:[#allocation22_spill] sm:$0xff] %v13476_v52  ;;  %v10469_v39 = vpop.f32.mrf.mxu0  ;;  %6977 = vmatmul.mubr.bf16.vlgmr.msra.gmra.mxu0 %v9704_v54  ;;  %v11637_v3 = vld [vmem:[#allocation2 + $0x84] ss:$-104 sps:$4 sm:$0xff]  }
 0x28b   : > { %v3165_v11 = vadd.f32 %v10388_v0, %v15105_v48  ;;  %v10551_v53 = vpop.f32.mrf.mxu1  ;;  %7213 = vmatmul.mubr.bf16.gmra.mxu1 %v9704_v54  ;;  %10966 = vmatpush3.bf16.msra.mxu0 %v11593_v15  ;;  %v13486_v23 = vadd.f32 %v3444_v57, %v2658_v36  ;;  %v9706_v15 = vcombine.low %v11721_v44, %v11722_v9  ;;  %v11723_v0 = vld [vmem:[#allocation2 + $0x80] sm:$0xff]  ;;  %v11623_v36 = vld [vmem:[#allocation3 + $0x398] sm:$0xff]   ;;  %v7748_v12 = vshrl.u32 %v11637_v3, 16 }
 0x28c   : > { %6984 = vmatprep.mubr.bf16.mxu0 %v9707_v56  ;;  %7220 = vmatprep.mubr.bf16.mxu1 %v9707_v56  ;;  %v10470_v30 = vpop.f32.mrf.mxu0  ;;  %v11613_v56 = vld [vmem:[#allocation3 + $0x3a0] sm:$0xff]  }
 0x28d   : > { %v3445_v38 = vadd.f32 %v13402_v59, %v3165_v11  ;;  %v10471_v37 = vadd.f32 %v10470_v30, %v10469_v39  ;;  %v10552_v6 = vpop.f32.mrf.mxu1  ;;  %10967 = vmatprep.subr.bf16.mxu0 %v11597_v4  ;;  %11042 = vmatpush3.bf16.msra.mxu1 %v11626_v29  ;;  %15107 = vst [vmem:[#allocation34_spill] sm:$0xff] %v13486_v23  ;;  %v11724_v4 = vld [vmem:[#allocation2 + $0x18] sm:$0xff]  ;;  %v11611_v29 = vld [vmem:[#allocation3 + $0x3e0] sm:$0xff]  }
 0x28e   : > { %v13482_v16 = vadd.f32 %v10552_v6, %v10551_v53  ;;  %v13484_v47 = vpop.f32.mrf.mxu0  ;;  %11043 = vmatprep.subr.bf16.mxu1 %v11632_v8  ;;  %v9709_v57 = vcombine.high %v11723_v0, %v11724_v4  ;;  %v11621_v8 = vld [vmem:[#allocation3 + $0x3d8] sm:$0xff]   ;;  %v7595_v30 = vld [vmem:[#allocation2 + $0x160] sm:$0xee]  ;;  %v9708_v5 = vcombine.low %v11723_v0, %v11724_v4  ;;  %v11726_v6 = vld [vmem:[#allocation2 + $0x8] sm:$0xff] }
 0x28f   : > { %v13489_v18 = vadd.f32 %v3445_v38, %v13264_v45  ;;  %v13492_v28 = vadd.f32 %v13415_v51, %v10471_v37  ;;  %v13494_v59 = vpop.f32.mrf.mxu1  ;;  %10968 = vmatpush3.bf16.msra.mxu0 %v11599_v17  ;;  %v11725_v37 = vld [vmem:[#allocation2 + $0x58] sm:$0xff] }
 0x290   : > { %15109 = vst [vmem:[#allocation15_spill] sm:$0xff] %v13494_v59  ;;  %v13496_v25 = vpop.f32.mrf.mxu0  ;;  %10969 = vmatprep.subr.bf16.mxu0 %v11603_v55  ;;  %v11631_v0 = vld [vmem:[#allocation2 + $0x2c] ss:$16 sps:$4 sm:$0xff]  }
 0x291   : > { %15108 = vst [vmem:[#allocation30_spill] sm:$0xff] %v13489_v18  ;;  %v13498_v54 = vpop.f32.mrf.mxu1  ;;  %11044 = vmatpush3.bf16.msra.mxu1 %v11633_v43  ;;  %v13513_v43 = vcombine.high %v11725_v37, %v11726_v6  ;;  %v7730_v10 = vshrl.u32 %v11631_v0, 16  ;;  %v7733_v21 = vshll.u32 %v11631_v0, 16 }
 0x292   : > { %15110 = vst [vmem:[#allocation9_spill] sm:$0xff] %v13498_v54  ;;  %v10475_v45 = vpop.f32.mrf.mxu0  ;;  %6985 = vmatmul.mubr.bf16.gmra.mxu0 %v9706_v15  ;;  %11157 = vmatprep.subr.bf16.mxu1 %v11654_v49  ;;  %v13515_v49 = vld [vmem:[#allocation2 + $0x88] sm:$0xff] }
 0x293   : > { %v10557_v51 = vpop.f32.mrf.mxu1  ;;  %7221 = vmatmul.mubr.bf16.gmra.mxu1 %v9706_v15  ;;  %6992 = vmatprep.mubr.bf16.mxu0 %v9709_v57  ;;  %15113 = vst [vmem:[#allocation36_spill] sm:$0xff] %v13515_v49  ;;  %v11634_v15 = vld [vmem:[#allocation3 + $0x3d0] sm:$0xff]   ;;  %v9792_v0 = vcombine.low %v7595_v30, %v13515_v49  ;;  %v7732_v27 = vrot.slane %v7730_v10, 1 }
 0x294   : > { %7228 = vmatprep.mubr.bf16.mxu1 %v9709_v57  ;;  %v10476_v39 = vpop.f32.mrf.mxu0  ;;  %10970 = vmatpush3.bf16.msra.mxu0 %v11605_v2  ;;  %v9793_v2 = vcombine.high %v7595_v30, %v13515_v49  ;;  %v7735_v30 = vrot.slane %v7733_v21, 2  ;;  %v7751_v49 = vshll.u32 %v11637_v3, 16 }
 0x295   : > { %v10477_v44 = vadd.f32 %v10476_v39, %v10475_v45  ;;  %v10558_v9 = vpop.f32.mrf.mxu1  ;;  %10971 = vmatprep.subr.bf16.mxu0 %v11611_v29  ;;  %v11636_v29 = vld [vmem:[#allocation3 + $0x390] sm:$0xff]   ;;  %v11639_v39 = vld [vmem:[#allocation3 + $0x3c8] sm:$0xff]   ;;  %v7705_v22 = vshrl.u32 %v9792_v0, 16 }
 0x296   : > { %v13500_v48 = vadd.f32 %v10558_v9, %v10557_v51  ;;  %v13502_v11 = vpop.f32.mrf.mxu0  ;;  %v7722_v9 = vshrl.u32 %v9793_v2, 16 }
 0x297   : > { %v13505_v53 = vadd.f32 %v13442_v50, %v10477_v44  ;;  %v13507_v17 = vpop.f32.mrf.mxu1 }
 0x298   : > { %15111 = vst [vmem:[#allocation31_spill] sm:$0xff] %v13507_v17  ;;  %v13509_v55 = vpop.f32.mrf.mxu0  ;;  %10972 = vmatpush3.bf16.msra.mxu0 %v11613_v56  ;;  %v7724_v18 = vrot.slane %v7722_v9, 1 }
 0x299   : > { %v13511_v38 = vpop.f32.mrf.mxu1  ;;  %10973 = vmatprep.subr.bf16.mxu0 %v11621_v8  ;;  %v7725_v8 = vshll.u32 %v9793_v2, 16  ;;  %v13539_v2 = vld [vmem:[#allocation2] sm:$0xff] }
 0x29a   : > { %15112 = vst [vmem:[#allocation28_spill] sm:$0xff] %v13511_v38  ;;  %v10481_v50 = vpop.f32.mrf.mxu0  ;;  %6993 = vmatmul.mubr.bf16.gmra.mxu0 %v9708_v5  ;;  %v7708_v38 = vshll.u32 %v9792_v0, 16 }
 0x29b   : > { %v10563_v57 = vpop.f32.mrf.mxu1  ;;  %7229 = vmatmul.mubr.bf16.gmra.mxu1 %v9708_v5  ;;  %7000 = vmatprep.mubr.bf16.mxu0 %v13513_v43  ;;  %v7727_v23 = vrot.slane %v7725_v8, 2 }
 0x29c   : > { %7236 = vmatprep.mubr.bf16.mxu1 %v13513_v43  ;;  %v10482_v4 = vpop.f32.mrf.mxu0  ;;  %10974 = vmatpush3.bf16.msra.mxu0 %v11623_v36  ;;  %v13531_v36 = vcombine.low %v11725_v37, %v11726_v6  ;;  %v13547_v37 = vld [vmem:[#allocation2 + $0x8] sm:$0xff]  ;;  %v11645_v6 = vld [vmem:[#allocation3 + $0x3c0] sm:$0xff]  }
 0x29d   : > { %v10483_v45 = vadd.f32 %v10482_v4, %v10481_v50  ;;  %v10564_v51 = vpop.f32.mrf.mxu1  ;;  %10975 = vmatprep.subr.bf16.mxu0 %v11634_v15  ;;  %v13533_v50 = vld [vmem:[#allocation2 + $0x28] ss:$16 sps:$4 sm:$0xff]  }
 0x29e   : > { %v13520_v56 = vadd.f32 %v10564_v51, %v10563_v57  ;;  %v13522_v44 = vpop.f32.mrf.mxu0  ;;  %v11640_v15 = vld [vmem:[#allocation3 + $0x388] sm:$0xff]   ;;  %v13535_v57 = vld [vmem:[#allocation2 + $0x58] sm:$0xff]  ;;  %v7716_v17 = vshll.u32 %v13533_v50, 16 }
 0x29f   : > { %15114 = vst [vmem:[#allocation32_spill] sm:$0xff] %v13522_v44  ;;  %v13525_v5 = vadd.f32 %v13464_v32, %v10483_v45  ;;  %v13527_v60 = vpop.f32.mrf.mxu1  ;;  %v11728_v32 = vld [vmem:[#allocation2 + $0x178] sm:$0xff] }
 0x2a0   : > { %15116 = vst [vmem:[#allocation37_spill] sm:$0xff] %v13527_v60  ;;  %v13529_v13 = vpop.f32.mrf.mxu0  ;;  %10976 = vmatpush3.bf16.msra.mxu0 %v11636_v29  ;;  %v13542_v45 = vcombine.high %v13539_v2, %v11728_v32  ;;  %v13544_v51 = vld [vmem:[#allocation2 + $0x178] sm:$0xff]  ;;  %v9799_v60 = vcombine.high %v13535_v57, %v13547_v37 }
 0x2a1   : > { %15115 = vst [vmem:[#allocation35_spill] sm:$0xff] %v13525_v5  ;;  %15117 = vst [vmem:[#allocation14_spill] sm:$0xff] %v13529_v13  ;;  %v13537_v4 = vpop.f32.mrf.mxu1  ;;  %10977 = vmatprep.subr.bf16.mxu0 %v11639_v39  ;;  %v9743_v58 = vcombine.high %v13539_v2, %v13544_v51  ;;  %v11641_v39 = vld [vmem:[#allocation2 + $0x80] ss:$-104 sps:$4 sm:$0xff]   ;;  %v9742_v3 = vcombine.low %v13539_v2, %v13544_v51 }
 0x2a2   : > { %15118 = vst [vmem:[#allocation33_spill] sm:$0xff] %v13537_v4  ;;  %v10487_v29 = vpop.f32.mrf.mxu0  ;;  %7001 = vmatmul.mubr.bf16.gmra.mxu0 %v13531_v36  ;;  %v7713_v4 = vshrl.u32 %v13533_v50, 16  ;;  %v7742_v0 = vshll.u32 %v11641_v39, 16  ;;  %v13572_v50 = vcombine.low %v13539_v2, %v11728_v32 }
 0x2a3   : > { %v10569_v34 = vpop.f32.mrf.mxu1  ;;  %7237 = vmatmul.mubr.bf16.gmra.mxu1 %v13531_v36  ;;  %7008 = vmatprep.mubr.bf16.mxu0 %v13542_v45 }
 0x2a4   : > { %7244 = vmatprep.mubr.bf16.mxu1 %v9743_v58  ;;  %v10488_v20 = vpop.f32.mrf.mxu0  ;;  %10978 = vmatpush3.bf16.msra.mxu0 %v11640_v15  ;;  %v7728_v58 = vor.u32 %v7727_v23, %v7724_v18  ;;  %v11730_v18 = vld [vmem:[#allocation2 + $0x168] sm:$0xff]  ;;  %v7715_v32 = vrot.slane %v7713_v4, 1  ;;  %v9798_v4 = vcombine.low %v13535_v57, %v13547_v37 }
 0x2a5   : > { %v10489_v9 = vadd.f32 %v10488_v20, %v10487_v29  ;;  %v10570_v8 = vpop.f32.mrf.mxu1  ;;  %10979 = vmatprep.subr.bf16.mxu0 %v11645_v6  ;;  %v13567_v20 = vor.u32 %v7735_v30, %v7732_v27  ;;  %v7739_v29 = vshrl.u32 %v11641_v39, 16  ;;  %v7769_v6 = vshll.u32 %v9799_v60, 16 }
 0x2a6   : > { %v13558_v10 = vadd.f32 %v10570_v8, %v10569_v34  ;;  %v13560_v21 = vpop.f32.mrf.mxu0  ;;  %v7766_v34 = vshrl.u32 %v9799_v60, 16  ;;  %v7707_v27 = vrot.slane %v7705_v22, 1  ;;  %v7710_v39 = vrot.slane %v7708_v38, 2  ;;  %v13581_v60 = vld [vmem:[#allocation2] sm:$0xff] }
 0x2a7   : > { %15119 = vst [vmem:[#allocation38_spill] sm:$0xff] %v13560_v21  ;;  %v13563_v15 = vadd.f32 %v13482_v16, %v10489_v9  ;;  %v13565_v54 = vpop.f32.mrf.mxu1  ;;  %15122 = vst [vmem:[#allocation42_spill] sm:$0xff] %v13567_v20  ;;  %v11729_v16 = vld [vmem:[#allocation2 + $0x150] sm:$0xff]  ;;  %v7718_v8 = vrot.slane %v7716_v17, 2  ;;  %v7737_v2 = vsel %vm3622_vm3, %v7728_v58, %v13567_v20  ;;  %v7744_v22 = vrot.slane %v7742_v0, 2 }
 0x2a8   : > { %15121 = vst [vmem:[#allocation41_spill] sm:$0xff] %v13565_v54  ;;  %v13569_v59 = vpop.f32.mrf.mxu0  ;;  %10980 = vmatpush3.bf16.msra.mxu0 %v11646_v62  ;;  %v13578_v9 = vcombine.high %v11729_v16, %v11730_v18  ;;  %v7750_v54 = vrot.slane %v7748_v12, 1  ;;  %v7768_v26 = vrot.slane %v7766_v34, 1  ;;  %v13587_v38 = vadd.s32 128, %v13254_v63 }
 0x2a9   : > { %15120 = vst [vmem:[#allocation40_spill] sm:$0xff] %v13563_v15  ;;  %15123 = vst [vmem:[#allocation43_spill] sm:$0xff] %v13569_v59  ;;  %v13576_v23 = vpop.f32.mrf.mxu1  ;;  %11093 = vmatprep.subr.bf16.mxu0 %v11649_v19  ;;  %v7741_v15 = vrot.slane %v7739_v29, 1  ;;  %v7771_v59 = vrot.slane %v7769_v6, 2  ;;  %v7711_v58 = vor.u32 %v7710_v39, %v7707_v27  ;;  %v13597_v29 = vor.u32 %v7718_v8, %v7715_v32  ;;  %v11652_v27 = vld [vmem:[#allocation2 + $0x154] ss:$24 sps:$4 sm:$0xff]  }
 0x2aa   : > { %15124 = vst [vmem:[#allocation44_spill] sm:$0xff] %v13576_v23  ;;  %v10493_v30 = vpop.f32.mrf.mxu0  ;;  %7009 = vmatmul.mubr.bf16.gmra.mxu0 %v13572_v50  ;;  %v7753_v23 = vrot.slane %v7751_v49, 2  ;;  %15125 = vst [vmem:[#allocation45_spill] sm:$0xff] %v13587_v38  ;;  %v9800_v0 = vcombine.low %v13581_v60, %v13544_v51  ;;  %v11655_v39 = vld [vmem:[#allocation3 + $0x438] sm:$0xff]   ;;  %v11731_v8 = vld [vmem:[#allocation2 + $0x170] sm:$0xff] }
 0x2ab   : > { %v10575_v62 = vpop.f32.mrf.mxu1  ;;  %7245 = vmatmul.mubr.bf16.gmra.mxu1 %v9742_v3  ;;  %7016 = vmatprep.mubr.bf16.mxu0 %v13578_v9  ;;  %v9801_v3 = vcombine.high %v13581_v60, %v13544_v51  ;;  %15127 = vst [vmem:[#allocation47_spill] sm:$0xff] %v13597_v29  ;;  %v13606_v57 = vor.u32 %v7744_v22, %v7741_v15  ;;  %v11732_v51 = vld [vmem:[#allocation2 + $0x30] sm:$0xff] }
 0x2ac   : > { %8008 = vmatprep.mubr.bf16.mxu1 %v7737_v2  ;;  %v10494_v19 = vpop.f32.mrf.mxu0  ;;  %v7754_v6 = vor.u32 %v7753_v23, %v7750_v54  ;;  %v13612_v2 = vor.u32 %v7771_v59, %v7768_v26  ;;  %v7598_v54 = vld [vmem:[#allocation2 + $0x170] sm:$0xff]  ;;  %v7720_v26 = vsel %vm3622_vm3, %v7711_v58, %v13597_v29  ;;  %v7778_v38 = vshll.u32 %v9800_v0, 16 }
 0x2ad   : > { %v10495_v12 = vadd.f32 %v10494_v19, %v10493_v30  ;;  %v10576_v17 = vpop.f32.mrf.mxu1  ;;  %v13616_v19 = vcombine.high %v11731_v8, %v11732_v51  ;;  %v7599_v15 = vld [vmem:[#allocation2 + $0x30] sm:$0xff]  ;;  %v7787_v59 = vshll.u32 %v9801_v3, 16  ;;  %v13632_v22 = vsel %vm3622_vm3, %v13597_v29, %v13606_v57 }
 0x2ae   : > { %v13593_v21 = vadd.f32 %v10576_v17, %v10575_v62  ;;  %v13595_v49 = vpop.f32.mrf.mxu0  ;;  %v13610_v62 = vcombine.low %v11729_v16, %v11730_v18  ;;  %v7784_v17 = vshrl.u32 %v9801_v3, 16  ;;  %v11659_v23 = vld [vmem:[#allocation3 + $0x470] sm:$0xff]   ;;  %v7775_v18 = vshrl.u32 %v9800_v0, 16  ;;  %15134 = vst [vmem:[#allocation54_spill] sm:$0xff] %v13632_v22  ;;  %v11663_v0 = vld [vmem:[#allocation3 + $0x468] sm:$0xff]  }
 0x2af   : > { %15126 = vst [vmem:[#allocation46_spill] sm:$0xff] %v13595_v49  ;;  %v13602_v63 = vadd.f32 %v13500_v48, %v10495_v12  ;;  %v13604_v34 = vpop.f32.mrf.mxu1  ;;  %v7757_v48 = vshrl.u32 %v9798_v4, 16  ;;  %v7760_v12 = vshll.u32 %v9798_v4, 16  ;;  %v13625_v4 = vsel %vm3622_vm3, %v13567_v20, %v7754_v6 }
 0x2b0   : > { %15129 = vst [vmem:[#allocation49_spill] sm:$0xff] %v13604_v34  ;;  %v13608_v30 = vpop.f32.mrf.mxu0  ;;  %15132 = vst [vmem:[#allocation52_spill] sm:$0xff] %v13625_v4  ;;  %v13627_v34 = vcombine.low %v11731_v8, %v11732_v51  ;;  %v13637_v58 = vsel %vm3622_vm3, %v7754_v6, %v13612_v2  ;;  %v9805_v20 = vcombine.high %v7598_v54, %v7599_v15  ;;  %v11660_v8 = vld [vmem:[#allocation3 + $0x430] sm:$0xff]   ;;  %v7786_v29 = vrot.slane %v7784_v17, 1  ;;  %v7602_v17 = vld [vmem:[#allocation2 + $0xc8] sm:$0x33] }
 0x2b1   : > { %15128 = vst [vmem:[#allocation48_spill] sm:$0xff] %v13602_v63  ;;  %15130 = vst [vmem:[#allocation50_spill] sm:$0xff] %v13608_v30  ;;  %v13614_v32 = vpop.f32.mrf.mxu1  ;;  %v11657_v63 = vld [vmem:[#allocation2 + $0x150] ss:$24 sps:$4 sm:$0xff]   ;;  %v7805_v30 = vshll.u32 %v11652_v27, 16  ;;  %v7759_v40 = vrot.slane %v7757_v48, 1  ;;  %v9804_v13 = vcombine.low %v7598_v54, %v7599_v15 }
 0x2b2   : > { %15131 = vst [vmem:[#allocation51_spill] sm:$0xff] %v13614_v32  ;;  %v10499_v16 = vpop.f32.mrf.mxu0  ;;  %7017 = vmatmul.mubr.bf16.gmra.mxu0 %v13610_v62  ;;  %15133 = vst [vmem:[#allocation53_spill] sm:$0xff] %v13627_v34  ;;  %v7762_v5 = vrot.slane %v7760_v12, 2  ;;  %v7789_v6 = vrot.slane %v7787_v59, 2  ;;  %v7777_v41 = vrot.slane %v7775_v18, 1  ;;  %v13650_v48 = vld [vmem:[#allocation2 + $0x118] sm:$0xff] }
 0x2b3   : > { %v10661_v32 = vpop.f32.mrf.mxu1  ;;  %8009 = vmatmul.mubr.bf16.vlgmr.msra.gmra.mxu1 %v7720_v26  ;;  %7024 = vmatprep.mubr.bf16.mxu0 %v13616_v19  ;;  %15135 = vst [vmem:[#allocation55_spill] sm:$0xff] %v13637_v58  ;;  %v7802_v26 = vshrl.u32 %v11652_v27, 16  ;;  %v13645_v27 = vld [vmem:[#allocation2 + $0x118] sm:$0xff]  ;;  %v7807_v59 = vrot.slane %v7805_v30, 2  ;;  %v7796_v18 = vshll.u32 %v11657_v63, 16  ;;  %v7820_v54 = vshrl.u32 %v9805_v20, 16 }
 0x2b4   : > { %8016 = vmatprep.mubr.bf16.mxu1 %v13625_v4  ;;  %v10500_v3 = vpop.f32.mrf.mxu0  ;;  %11158 = vmatpush3.bf16.msra.mxu1 %v11655_v39  ;;  %15138 = vst [vmem:[#allocation58_spill] sm:$0xff] %v13645_v27  ;;  %v11665_v15 = vld [vmem:[#allocation3 + $0x428] sm:$0xff]   ;;  %v11666_v12 = vld [vmem:[#allocation3 + $0x460] sm:$0xff]   ;;  %v7814_v30 = vshll.u32 %v9804_v13, 16 }
 0x2b5   : > { %v10501_v51 = vadd.f32 %v10500_v3, %v10499_v16  ;;  %v10662_v49 = vpop.f32.mrf.mxu1  ;;  %11159 = vmatprep.subr.bf16.mxu1 %v11659_v23  ;;  %v7804_v3 = vrot.slane %v7802_v26, 1  ;;  %v9806_v26 = vcombine.low %v13645_v27, %v13643_v24 }
 0x2b6   : > { %v13639_v52 = vadd.f32 %v10662_v49, %v10661_v32  ;;  %v13641_v4 = vpop.f32.mrf.mxu0  ;;  %v7780_v49 = vrot.slane %v7778_v38, 2  ;;  %v7793_v32 = vshrl.u32 %v11657_v63, 16  ;;  %v9807_v38 = vcombine.high %v13645_v27, %v13643_v24 }
 0x2b7   : > { %15137 = vst [vmem:[#allocation57_spill] sm:$0xff] %v13641_v4  ;;  %v13648_v39 = vadd.f32 %v13520_v56, %v10501_v51  ;;  %v10664_v16 = vpop.f32.mrf.mxu1  ;;  %v9719_v56 = vcombine.high %v13650_v48, %v13643_v24  ;;  %v7763_v51 = vor.u32 %v7762_v5, %v7759_v40  ;;  %v7811_v63 = vshrl.u32 %v9804_v13, 16 }
 0x2b8   : > { %15136 = vst [vmem:[#allocation56_spill] sm:$0xff] %v13639_v52  ;;  %v13654_v23 = vpop.f32.mrf.mxu0  ;;  %11160 = vmatpush3.bf16.msra.mxu1 %v11660_v8  ;;  %v13666_v8 = vadd.s32 128, %v13310_v1  ;;  %v13669_v5 = vor.u32 %v7789_v6, %v7786_v29  ;;  %v7795_v13 = vrot.slane %v7793_v32, 1  ;;  %v7822_v27 = vrot.slane %v7820_v54, 1  ;;  %v11667_v1 = vld [vmem:[#allocation3 + $0x420] sm:$0xff]   ;;  %v11671_v29 = vld [vmem:[#allocation3 + $0x458] sm:$0xff]  }
 0x2b9   : > { %15139 = vst [vmem:[#allocation59_spill] sm:$0xff] %v13648_v39  ;;  %15140 = vst [vmem:[#allocation60_spill] sm:$0xff] %v13654_v23  ;;  %v10665_v52 = vpop.f32.mrf.mxu1  ;;  %v7823_v39 = vshll.u32 %v9805_v20, 16  ;;  %11161 = vmatprep.subr.bf16.mxu1 %v11663_v0  ;;  %v13671_v20 = vor.u32 %v7780_v49, %v7777_v41  ;;  %v7813_v49 = vrot.slane %v7811_v63, 1  ;;  %v9808_v63 = vcombine.low %v7602_v17, %v7602_v17 }
 0x2ba   : > { %v13660_v4 = vadd.f32 %v10665_v52, %v10664_v16  ;;  %v10505_v23 = vpop.f32.mrf.mxu0  ;;  %7025 = vmatmul.mubr.bf16.gmra.mxu0 %v13627_v34  ;;  %15142 = vst [vmem:[#allocation62_spill] sm:$0xff] %v13666_v8  ;;  %15143 = vst [vmem:[#allocation63_spill] sm:$0xff] %v13669_v5  ;;  %v9809_v52 = vcombine.high %v7602_v17, %v7602_v17  ;;  %v13674_v16 = vor.u32 %v7807_v59, %v7804_v3  ;;  %v13680_v59 = vld [vmem:[#allocation2 + $0x20] ss:$40 sps:$4 sm:$0xfe]  }
 0x2bb   : > { %v10667_v40 = vpop.f32.mrf.mxu1  ;;  %8017 = vmatmul.mubr.bf16.gmra.mxu1 %v13632_v22  ;;  %7032 = vmatprep.mubr.bf16.mxu0 %v9719_v56  ;;  %15144 = vst [vmem:[#allocation64_spill] sm:$0xff] %v13671_v20  ;;  %v7825_v44 = vrot.slane %v7823_v39, 2  ;;  %v7838_v22 = vshrl.u32 %v9807_v38, 16  ;;  %v7841_v56 = vshll.u32 %v9807_v38, 16  ;;  %v7829_v3 = vshrl.u32 %v9806_v26, 16 }
 0x2bc   : > { %15141 = vst [vmem:[#allocation61_spill] sm:$0xff] %v13660_v4  ;;  %8024 = vmatprep.mubr.bf16.mxu1 %v13637_v58  ;;  %v10506_v0 = vpop.f32.mrf.mxu0  ;;  %v7798_v4 = vrot.slane %v7796_v18, 2  ;;  %11162 = vmatpush3.bf16.msra.mxu1 %v11665_v15  ;;  %v7816_v58 = vrot.slane %v7814_v30, 2  ;;  %v7856_v54 = vshrl.u32 %v9809_v52, 16  ;;  %v7859_v39 = vshll.u32 %v9809_v52, 16  ;;  %v11675_v52 = vld [vmem:[#allocation3 + $0x450] sm:$0xff]  }
 0x2bd   : > { %v10507_v8 = vadd.f32 %v10506_v0, %v10505_v23  ;;  %v10668_v34 = vpop.f32.mrf.mxu1  ;;  %11163 = vmatprep.subr.bf16.mxu1 %v11666_v12  ;;  %v7832_v23 = vshll.u32 %v9806_v26, 16  ;;  %v13694_v12 = vsel %vm3622_vm3, %v13612_v2, %v13669_v5  ;;  %v13700_v26 = vsel %vm3622_vm3, %v7763_v51, %v13671_v20  ;;  %v8400_v0 = vld [vmem:[#allocation2 + $0x58] sm:$0xee] }
 0x2be   : > { %v13676_v41 = vadd.f32 %v10668_v34, %v10667_v40  ;;  %v13678_v6 = vpop.f32.mrf.mxu0  ;;  %v13689_v34 = vsel %vm3622_vm3, %v13606_v57, %v7763_v51  ;;  %15147 = vst [vmem:[#allocation67_spill] sm:$0xff] %v13694_v12  ;;  %v13696_v38 = vor.u32 %v7798_v4, %v7795_v13  ;;  %15148 = vst [vmem:[#allocation68_spill] sm:$0xff] %v13700_v26  ;;  %v7840_v40 = vrot.slane %v7838_v22, 1 }
 0x2bf   : > { %v13683_v32 = vadd.f32 %v13558_v10, %v10507_v8  ;;  %v10670_v18 = vpop.f32.mrf.mxu1  ;;  %15146 = vst [vmem:[#allocation66_spill] sm:$0xff] %v13689_v34  ;;  %v11674_v10 = vld [vmem:[#allocation3 + $0x418] sm:$0xff]   ;;  %v13702_v8 = vor.u32 %v7825_v44, %v7822_v27  ;;  %v7843_v57 = vrot.slane %v7841_v56, 2  ;;  %v15151_v4 = vcombine.low %v13650_v48, %v13643_v24 }
 0x2c0   : > { %15145 = vst [vmem:[#allocation65_spill] sm:$0xff] %v13676_v41  ;;  %v13685_v15 = vpop.f32.mrf.mxu0  ;;  %11164 = vmatpush3.bf16.msra.mxu1 %v11667_v1  ;;  %v13712_v17 = vsel %vm3622_vm3, %v13669_v5, %v13674_v16  ;;  %v13714_v51 = vor.u32 %v7816_v58, %v7813_v49  ;;  %v8403_v44 = vld [vmem:[#allocation2 + $0x178] sm:$0xff]  ;;  %v7831_v13 = vrot.slane %v7829_v3, 1  ;;  %v7834_v1 = vrot.slane %v7832_v23, 2  ;;  %v11676_v49 = vld [vmem:[#allocation3 + $0x410] sm:$0xff]  }
 0x2c1   : > { %v10671_v30 = vpop.f32.mrf.mxu1  ;;  %15149 = vst [vmem:[#allocation69_spill] sm:$0xff] %v13702_v8  ;;  %11165 = vmatprep.subr.bf16.mxu1 %v11671_v29  ;;  %v7858_v56 = vrot.slane %v7856_v54, 1  ;;  %v7861_v24 = vrot.slane %v7859_v39, 2  ;;  %v13723_v58 = vsel %vm3622_vm3, %v13671_v20, %v13696_v38  ;;  %v13729_v3 = vsel %vm3622_vm3, %v13674_v16, %v13702_v8  ;;  %v11681_v54 = vld [vmem:[#allocation3 + $0x448] sm:$0xff]  }
 0x2c2   : > { %v13704_v41 = vadd.f32 %v10671_v30, %v10670_v18  ;;  %v10511_v2 = vpop.f32.mrf.mxu0  ;;  %7033 = vmatmul.mubr.bf16.gmra.mxu0 %v15151_v4  ;;  %15152 = vst [vmem:[#allocation71_spill] sm:$0xff] %v13714_v51  ;;  %v7847_v18 = vshrl.u32 %v9808_v63, 16  ;;  %v7850_v30 = vshll.u32 %v9808_v63, 16  ;;  %v9853_v4 = vcombine.high %v8400_v0, %v13547_v37 }
 0x2c3   : > { %v10673_v27 = vpop.f32.mrf.mxu1  ;;  %8025 = vmatmul.mubr.bf16.gmra.mxu1 %v13689_v34  ;;  %7449 = vmatprep.mubr.bf16.mxu0 %v13513_v43  ;;  %v7844_v23 = vor.u32 %v7843_v57, %v7840_v40  ;;  %v13732_v39 = vcombine.high %v13581_v60, %v8403_v44  ;;  %v13739_v63 = vadd.s32 8, %v15053_v33  ;;  %v13746_v5 = vcombine.low %v8400_v0, %v13547_v37 }
 0x2c4   : > { %15150 = vst [vmem:[#allocation70_spill] sm:$0xff] %v13704_v41  ;;  %8032 = vmatprep.mubr.bf16.mxu1 %v13694_v12  ;;  %v10512_v29 = vpop.f32.mrf.mxu0  ;;  %11166 = vmatpush3.bf16.msra.mxu1 %v11674_v10  ;;  %v7862_v12 = vor.u32 %v7861_v24, %v7858_v56  ;;  %v9854_v37 = vcombine.low %v13581_v60, %v8403_v44  ;;  %v8536_v0 = vshrl.u32 %v9853_v4, 16 }
 0x2c5   : > { %v10513_v22 = vadd.f32 %v10512_v29, %v10511_v2  ;;  %v10674_v43 = vpop.f32.mrf.mxu1  ;;  %11167 = vmatprep.subr.bf16.mxu1 %v11675_v52  ;;  %15155 = vst [vmem:[#allocation74_spill] sm:$0xff] %v13739_v63  ;;  %v13741_v2 = vld [vmem:[#allocation2 + $0x110] sm:$0xff]  ;;  %v11651_v52 = vld [vmem:[#allocation3 + $0x138] sm:$0xff]   ;;  %v7849_v29 = vrot.slane %v7847_v18, 1  ;;  %v13763_v41 = vsel %vm3622_vm3, %v13702_v8, %v7844_v23  ;;  %v1007_v60 = vand.u32 15, %v13739_v63  ;;  %v11687_v18 = vld [vmem:[#allocation3 + $0x440] sm:$0xff]  }
 0x2c6   : > { %v13734_v20 = vadd.f32 %v10674_v43, %v10673_v27  ;;  %v13736_v10 = vpop.f32.mrf.mxu0  ;;  %v13754_v27 = vsel %vm3622_vm3, %v13696_v38, %v13714_v51  ;;  %v13756_v43 = vor.u32 %v7834_v1, %v7831_v13  ;;  %v8544_v13 = vshrl.u32 %v13732_v39, 16  ;;  %v11661_v1 = vld [vmem:[#allocation3 + $0x168] sm:$0xff]  }
 0x2c7   : > { %15154 = vst [vmem:[#allocation73_spill] sm:$0xff] %v13736_v10  ;;  %v13749_v40 = vadd.f32 %v13593_v21, %v10513_v22  ;;  %v10676_v57 = vpop.f32.mrf.mxu1  ;;  %v11656_v22 = vld [vmem:[#allocation3 + $0x170] sm:$0xff]   ;;  %v8539_v10 = vshll.u32 %v9853_v4, 16  ;;  %v13787_v63 = vrot.slane %v8536_v0, 1  ;;  %v4824_v8 = vadd.s32 3, %v1007_v60 }
 0x2c8   : > { %15153 = vst [vmem:[#allocation72_spill] sm:$0xff] %v13734_v20  ;;  %v13758_v34 = vpop.f32.mrf.mxu0  ;;  %11168 = vmatpush3.bf16.msra.mxu1 %v11676_v49  ;;  %v7852_v20 = vrot.slane %v7850_v30, 2  ;;  %v8519_v49 = vshrl.u32 %v13746_v5, 16  ;;  %v11658_v4 = vld [vmem:[#allocation3 + $0x130] sm:$0xff]  }
 0x2c9   : > { %15156 = vst [vmem:[#allocation75_spill] sm:$0xff] %v13749_v40  ;;  %15157 = vst [vmem:[#allocation76_spill] sm:$0xff] %v13758_v34  ;;  %v10677_v21 = vpop.f32.mrf.mxu1  ;;  %11169 = vmatprep.subr.bf16.mxu1 %v11681_v54  ;;  %v11682_v40 = vld [vmem:[#allocation3 + $0x408] sm:$0xff]   ;;  %v13778_v54 = vsel %vm3622_vm3, %v13714_v51, %v13756_v43  ;;  %v10474_v51 = vadd.f32 %v13496_v25, %v13484_v47  ;;  %v10538_v47 = vadd.f32 %v13428_v7, %v13423_v14  ;;  %v13805_v0 = vld [vmem:[#allocation2 + $0x60] ss:$208 sps:$4 sm:$0xff]  }
 0x2ca   : > { %v13767_v56 = vadd.f32 %v10677_v21, %v10676_v57  ;;  %v10597_v24 = vpop.f32.mrf.mxu0  ;;  %7450 = vmatmul.mubr.bf16.vlgmr.msra.gmra.mxu0 %v13531_v36  ;;  %v13781_v36 = vsel %vm3622_vm3, %v7844_v23, %v7862_v12  ;;  %v8522_v57 = vshll.u32 %v13746_v5, 16  ;;  %v8547_v21 = vshll.u32 %v13732_v39, 16  ;;  %v11735_v60 = vld [vmem:[#allocation2 + $0x70] sm:$0xff] }
 0x2cb   : > { %v10679_v30 = vpop.f32.mrf.mxu1  ;;  %8033 = vmatmul.mubr.bf16.gmra.mxu1 %v13700_v26  ;;  %11094 = vmatpush3.bf16.msra.mxu0 %v11651_v52  ;;  %v7853_v52 = vor.u32 %v7852_v20, %v7849_v29  ;;  %v8527_v26 = vshrl.u32 %v9854_v37, 16  ;;  %v13791_v5 = vrot.slane %v8539_v10, 2  ;;  %v8546_v39 = vrot.slane %v8544_v13, 1  ;;  %v11662_v13 = vld [vmem:[#allocation3 + $0x128] sm:$0xff]  }
 0x2cc   : > { %15158 = vst [vmem:[#allocation77_spill] sm:$0xff] %v13767_v56  ;;  %7457 = vmatprep.mubr.bf16.mxu0 %v13542_v45  ;;  %8040 = vmatprep.mubr.bf16.mxu1 %v13712_v17  ;;  %v10598_v44 = vpop.f32.mrf.mxu0  ;;  %v8530_v56 = vshll.u32 %v9854_v37, 16  ;;  %v11688_v45 = vld [vmem:[#allocation3 + $0x400] sm:$0xff]   ;;  %v13796_v20 = vadd.s32 24, %v15053_v33  ;;  %v13798_v29 = vrot.slane %v8519_v49, 1  ;;  %v8549_v10 = vrot.slane %v8547_v21, 2 }
 0x2cd   : > { %v10599_v12 = vadd.f32 %v10598_v44, %v10597_v24  ;;  %v10680_v23 = vpop.f32.mrf.mxu1  ;;  %11095 = vmatprep.subr.bf16.mxu0 %v11656_v22  ;;  %11170 = vmatpush3.bf16.msra.mxu1 %v11682_v40  ;;  %v13803_v37 = vrot.slane %v8522_v57, 2  ;;  %v13809_v24 = vsel %vm3622_vm3, %v13756_v43, %v7853_v52  ;;  %v13811_v44 = vcombine.high %v11735_v60, %v11735_v60  ;;  %v11668_v57 = vld [vmem:[#allocation3 + $0x160] sm:$0xff]  }
 0x2ce   : > { %v13793_v34 = vadd.f32 %v10680_v23, %v10679_v30  ;;  %v10600_v17 = vpop.f32.mrf.mxu0  ;;  %11171 = vmatprep.subr.bf16.mxu1 %v11687_v18  ;;  %v8529_v14 = vrot.slane %v8527_v26, 1  ;;  %v8532_v7 = vrot.slane %v8530_v56, 2  ;;  %v4260_v49 = vadd.f32 %v10538_v47, %v10474_v51 }
 0x2cf   : > { %v4807_v25 = vadd.f32 %v10599_v12, %v13492_v28  ;;  %v10682_v40 = vpop.f32.mrf.mxu1  ;;  %11096 = vmatpush3.bf16.msra.mxu0 %v11658_v4  ;;  %v13813_v28 = vld [vmem:[#allocation2 + $0x24] ss:$40 sps:$4 sm:$0xfe]   ;;  %vm4856_vm12 = vcmp.lt.s32.totalorder %v4824_v8, 16  ;;  %v1021_v26 = vand.u32 15, %v13796_v20  ;;  %v8542_v56 = vor.u32 %v13791_v5, %v13787_v63 }
 0x2d0   : > { %v10601_v22 = vpop.f32.mrf.mxu0  ;;  %11097 = vmatprep.subr.bf16.mxu0 %v11661_v1  ;;  %v13816_v1 = vcombine.low %v11735_v60, %v11735_v60  ;;  %v8550_v12 = vor.u32 %v8549_v10, %v8546_v39  ;;  %v8116_v23 = vshrl.u32 %v13805_v0, 16  ;;  %v11670_v5 = vld [vmem:[#allocation3 + $0x120] sm:$0xff]   ;;  %v8119_v47 = vshll.u32 %v13805_v0, 16 }
 0x2d1   : > { %v4935_v18 = vadd.f32 %v4807_v25, %v13304_v61  ;;  %v10602_v30 = vadd.f32 %v10601_v22, %v10600_v17  ;;  %v10683_v4 = vpop.f32.mrf.mxu1  ;;  %11172 = vmatpush3.bf16.msra.mxu1 %v11688_v45  ;;  %v13827_v61 = vld [vmem:[%s14865_s4] ss:$0 sm:$0xff]  ;;  %v13835_v45 = vor.u32 %v8532_v7, %v8529_v14  ;;  %v13837_v17 = vld [vmem:[#allocation2 + $0x64] ss:$208 sps:$4 sm:$0xff]   ;;  %v10480_v39 = vadd.f32 %v13509_v55, %v13502_v11 }
 0x2d2   : > { %v13818_v21 = vadd.f32 %v10683_v4, %v10682_v40  ;;  %v10603_v43 = vpop.f32.mrf.mxu0  ;;  %7458 = vmatmul.mubr.bf16.gmra.mxu0 %v13572_v50  ;;  %v8525_v50 = vor.u32 %v13803_v37, %v13798_v29  ;;  %v13847_v10 = vadd.s32 40, %v15053_v33  ;;  %v11677_v37 = vld [vmem:[#allocation3 + $0x158] sm:$0xff]   ;;  %v4826_v14 = vadd.s32 3, %v1021_v26  ;;  %v11689_v26 = vld [vmem:[#allocation3 + $0x150] sm:$0xff]  }
 0x2d3   : > { %v4808_v51 = vadd.f32 %v10602_v30, %v4260_v49  ;;  %v10685_v52 = vpop.f32.mrf.mxu1  ;;  %8041 = vmatmul.mubr.bf16.gmra.mxu1 %v13723_v58  ;;  %7465 = vmatprep.mubr.bf16.mxu0 %v13578_v9  ;;  %v8125_v58 = vshrl.u32 %v13813_v28, 16  ;;  %v8128_v9 = vshll.u32 %v13813_v28, 16  ;;  %v4958_v0 = vadd.f32 %v13827_v61, %v4935_v18  ;;  %v11680_v18 = vld [vmem:[#allocation3 + $0x118] sm:$0xff]  }
 0x2d4   : > { %8048 = vmatprep.mubr.bf16.mxu1 %v13729_v3  ;;  %v10604_v63 = vpop.f32.mrf.mxu0  ;;  %11098 = vmatpush3.bf16.msra.mxu0 %v11662_v13  ;;  %v10544_v11 = vadd.f32 %v13455_v42, %v13450_v31  ;;  %v13857_v7 = vsel %vm3622_vm3, %v8542_v56, %v8550_v12  ;;  %v13861_v28 = vsel %vm3622_vm3, %v8550_v12, %v13674_v16  ;;  %vm4858_vm13 = vcmp.lt.s32.totalorder %v4826_v14, 16  ;;  %v15164_v14 = vld [vmem:[#allocation26_spill] sm:$0xff] }
 0x2d5   : > { %v4920_v29 = vsel %vm4856_vm12, %v4808_v51, 0.0  ;;  %v10605_v25 = vadd.f32 %v10604_v63, %v10603_v43  ;;  %v10686_v40 = vpop.f32.mrf.mxu1  ;;  %11099 = vmatprep.subr.bf16.mxu0 %v11668_v57  ;;  %v13870_v31 = vsel %vm3622_vm3, %v8525_v50, %v13835_v45  ;;  %v13872_v42 = vrot.slane %v8125_v58, 1 }
 0x2d6   : > { %v4936_v22 = vadd.f32 %v4920_v29, %v13317_v35  ;;  %v13851_v13 = vadd.f32 %v10686_v40, %v10685_v52  ;;  %v10606_v60 = vpop.f32.mrf.mxu0  ;;  %v4268_v30 = vadd.f32 %v10544_v11, %v10480_v39  ;;  %v1035_v43 = vand.u32 15, %v13847_v10 }
 0x2d7   : > { %v4809_v55 = vadd.f32 %v10605_v25, %v13505_v53  ;;  %v10688_v8 = vpop.f32.mrf.mxu1  ;;  %v8133_v53 = vshrl.u32 %v13837_v17, 16  ;;  %v4974_v56 = vmax.f32 %v4958_v0, 0.0  ;;  %v15159_v58 = vshrl.u32 %v13680_v59, 16 }
 0x2d8   : > { %v4959_v35 = vadd.f32 %v13827_v61, %v4936_v22  ;;  %v10607_v49 = vpop.f32.mrf.mxu0  ;;  %11100 = vmatpush3.bf16.msra.mxu0 %v11670_v5  ;;  %v8136_v5 = vshll.u32 %v13837_v17, 16  ;;  %v15160_v40 = vshll.u32 %v13680_v59, 16  ;;  %v8118_v0 = vrot.slane %v8116_v23, 1  ;;  %v15162_v22 = vld [vmem:[#allocation14_spill] sm:$0xff]  ;;  %v15163_v59 = vld [vmem:[#allocation13_spill] sm:$0xff] }
 0x2d9   : > { %v4937_v16 = vadd.f32 %v4809_v55, %v13343_v46  ;;  %v10608_v4 = vadd.f32 %v10607_v49, %v10606_v60  ;;  %v10689_v57 = vpop.f32.mrf.mxu1  ;;  %11101 = vmatprep.subr.bf16.mxu0 %v11677_v37  ;;  %v13882_v46 = vrot.slane %v8128_v9, 2  ;;  %v13887_v39 = vrot.slane %v15159_v58, 1  ;;  %v15161_v9 = vld [vmem:[#allocation32_spill] sm:$0xff]  ;;  %v11692_v58 = vld [vmem:[#allocation3 + $0x108] sm:$0xff]  }
 0x2da   : > { %v4975_v51 = vmax.f32 %v4959_v35, 0.0  ;;  %v13877_v52 = vadd.f32 %v10689_v57, %v10688_v8  ;;  %v10609_v12 = vpop.f32.mrf.mxu0  ;;  %7466 = vmatmul.mubr.bf16.gmra.mxu0 %v13610_v62  ;;  %v11690_v62 = vld [vmem:[#allocation3 + $0x110] sm:$0xff]   ;;  %v8113_v37 = vrot.slane %v15160_v40, 2  ;;  %v10486_v60 = vadd.f32 %v15162_v22, %v15161_v9  ;;  %v11691_v35 = vld [vmem:[#allocation3 + $0x148] sm:$0xff]  }
 0x2db   : > { %v4810_v50 = vadd.f32 %v10608_v4, %v4268_v30  ;;  %v10691_v63 = vpop.f32.mrf.mxu1  ;;  %8049 = vmatmul.mubr.bf16.gmra.mxu1 %v13754_v27  ;;  %7473 = vmatprep.mubr.bf16.mxu0 %v13616_v19  ;;  %v8121_v19 = vrot.slane %v8119_v47, 2  ;;  %v4828_v8 = vadd.s32 3, %v1035_v43  ;;  %v15165_v30 = vld [vmem:[#allocation22_spill] sm:$0xff]  ;;  %v15166_v57 = vld [vmem:[#allocation35_spill] sm:$0xff] }
 0x2dc   : > { %v9977_v29 = vpack.c.bf16 %v4975_v51, %v4974_v56  ;;  %8056 = vmatprep.mubr.bf16.mxu1 %v13763_v41  ;;  %v10610_v25 = vpop.f32.mrf.mxu0  ;;  %11102 = vmatpush3.bf16.msra.mxu0 %v11680_v18  ;;  %v4960_v41 = vadd.f32 %v13827_v61, %v4937_v16  ;;  %v13904_v18 = vadd.s32 56, %v15053_v33  ;;  %v10550_v4 = vadd.f32 %v15165_v30, %v15164_v14  ;;  %v13918_v40 = vld [vmem:[#allocation2 + $0xb0] ss:$80 sps:$4 sm:$0xff]  }
 0x2dd   : > { %v4922_v17 = vsel %vm4858_vm13, %v4810_v50, 0.0  ;;  %v10611_v11 = vadd.f32 %v10610_v25, %v10609_v12  ;;  %v10692_v55 = vpop.f32.mrf.mxu1  ;;  %11103 = vmatprep.subr.bf16.mxu0 %v11689_v26  ;;  %v8135_v56 = vrot.slane %v8133_v53, 1  ;;  %v8138_v51 = vrot.slane %v8136_v5, 2  ;;  %v11703_v12 = vld [vmem:[#allocation2 + $0xb4] ss:$80 sps:$4 sm:$0xff]  }
 0x2de   : > { %9978 = vst [vmem:[%s13896_s12] sm:$0xff] %v9977_v29   ;;  %v4938_v49 = vadd.f32 %v4922_v17, %v15163_v59  ;;  %v13901_v23 = vadd.f32 %v10692_v55, %v10691_v63  ;;  %v10612_v47 = vpop.f32.mrf.mxu0  ;;  %v13913_v63 = vsel %vm3622_vm3, %v13835_v45, %v13696_v38  ;;  %v8114_v29 = vor.u32 %v8113_v37, %v13887_v39  ;;  %v15167_v53 = vld [vmem:[#allocation19_spill] sm:$0xff]  ;;  %v15168_v45 = vld [vmem:[#allocation53_spill] sm:$0xff] }
 0x2df   : > { %v4811_v43 = vadd.f32 %v10611_v11, %v15166_v57  ;;  %v10694_v26 = vpop.f32.mrf.mxu1  ;;  %v13916_v25 = vor.u32 %v8121_v19, %v8118_v0  ;;  %v4276_v9 = vadd.f32 %v10550_v4, %v10486_v60  ;;  %vm4860_vm14 = vcmp.lt.s32.totalorder %v4828_v8, 16  ;;  %v11694_v14 = vld [vmem:[#allocation3 + $0x100] sm:$0xff]   ;;  %v15175_v8 = vld [vmem:[#allocation40_spill] sm:$0xff] }
 0x2e0   : > { %v4961_v50 = vadd.f32 %v13827_v61, %v4938_v49  ;;  %v10613_v16 = vpop.f32.mrf.mxu0  ;;  %11104 = vmatpush3.bf16.msra.mxu0 %v11690_v62  ;;  %v11693_v62 = vld [vmem:[#allocation3 + $0x140] sm:$0xff]   ;;  %v4976_v11 = vmax.f32 %v4960_v41, 0.0  ;;  %v1049_v39 = vand.u32 15, %v13904_v18  ;;  %v15169_v19 = vcombine.high %v13650_v48, %v13741_v2 }
 0x2e1   : > { %v4939_v5 = vadd.f32 %v4811_v43, %v15167_v53  ;;  %v10614_v22 = vadd.f32 %v10613_v16, %v10612_v47  ;;  %v10695_v17 = vpop.f32.mrf.mxu1  ;;  %11105 = vmatprep.subr.bf16.mxu0 %v11691_v35  ;;  %v8131_v60 = vor.u32 %v13882_v46, %v13872_v42  ;;  %v13931_v35 = vor.u32 %v8138_v51, %v8135_v56  ;;  %v7552_v57 = vld [vmem:[#allocation2 + $0x160] sm:$0xff]  ;;  %v15170_v43 = vld [vmem:[#allocation38_spill] sm:$0xff]  ;;  %v15171_v42 = vld [vmem:[#allocation43_spill] sm:$0xff] }
 0x2e2   : > { %v4977_v55 = vmax.f32 %v4961_v50, 0.0  ;;  %v13921_v59 = vadd.f32 %v10695_v17, %v10694_v26  ;;  %v10615_v38 = vpop.f32.mrf.mxu0  ;;  %7474 = vmatmul.mubr.bf16.gmra.mxu0 %v15168_v45  ;;  %v8151_v41 = vshrl.u32 %v11703_v12, 16  ;;  %v8154_v30 = vshll.u32 %v11703_v12, 16  ;;  %v15172_v16 = vld [vmem:[#allocation39_spill] sm:$0xff]  ;;  %v15176_v45 = vld [vmem:[#allocation36_spill] sm:$0xff] }
 0x2e3   : > { %v4812_v37 = vadd.f32 %v10614_v22, %v4276_v9  ;;  %v10697_v0 = vpop.f32.mrf.mxu1  ;;  %8057 = vmatmul.mubr.bf16.gmra.mxu1 %v13778_v54  ;;  %7481 = vmatprep.mubr.bf16.mxu0 %v15169_v19  ;;  %v13936_v54 = vsel %vm3622_vm3, %v8114_v29, %v13916_v25  ;;  %v8142_v4 = vshrl.u32 %v13918_v40, 16  ;;  %v10492_v46 = vadd.f32 %v15171_v42, %v15170_v43  ;;  %v15173_v53 = vld [vmem:[#allocation15_spill] sm:$0xff]  ;;  %v15174_v22 = vld [vmem:[#allocation9_spill] sm:$0xff] }
 0x2e4   : > { %v9982_v49 = vpack.c.bf16 %v4977_v55, %v4976_v11  ;;  %8064 = vmatprep.mubr.bf16.mxu1 %v13781_v36  ;;  %v10616_v47 = vpop.f32.mrf.mxu0  ;;  %11106 = vmatpush3.bf16.msra.mxu0 %v11692_v58  ;;  %v13943_v36 = vadd.s32 72, %v15053_v33  ;;  %v4962_v50 = vadd.f32 %v13827_v61, %v4939_v5  ;;  %v4830_v9 = vadd.s32 3, %v1049_v39 }
 0x2e5   : > { %v4924_v26 = vsel %vm4860_vm14, %v4812_v37, 0.0  ;;  %v10617_v56 = vadd.f32 %v10616_v47, %v10615_v38  ;;  %v10698_v51 = vpop.f32.mrf.mxu1  ;;  %11107 = vmatprep.subr.bf16.mxu0 %v11693_v62  ;;  %v10556_v17 = vadd.f32 %v15174_v22, %v15173_v53  ;;  %v8145_v38 = vshll.u32 %v13918_v40, 16  ;;  %v15177_v47 = vld [vmem:[#allocation23_spill] sm:$0xff] }
 0x2e6   : > { %10054 = vst [vmem:[%s13896_s12 + $0x8] sm:$0xff] %v9982_v49   ;;  %v4940_v58 = vadd.f32 %v4924_v26, %v15172_v16  ;;  %v13948_v12 = vadd.f32 %v10698_v51, %v10697_v0  ;;  %v10618_v29 = vpop.f32.mrf.mxu0  ;;  %v13955_v37 = vcombine.high %v7552_v57, %v15176_v45  ;;  %v13960_v0 = vsel %vm3622_vm3, %v8131_v60, %v13931_v35 }
 0x2e7   : > { %v4813_v11 = vadd.f32 %v10617_v56, %v15175_v8  ;;  %v10700_v55 = vpop.f32.mrf.mxu1  ;;  %v8153_v39 = vrot.slane %v8151_v41, 1  ;;  %v8156_v19 = vrot.slane %v8154_v30, 2  ;;  %v4284_v49 = vadd.f32 %v10556_v17, %v10492_v46  ;;  %v15179_v8 = vld [vmem:[#allocation46_spill] sm:$0xff] }
 0x2e8   : > { %v4963_v62 = vadd.f32 %v13827_v61, %v4940_v58  ;;  %v10619_v5 = vpop.f32.mrf.mxu0  ;;  %11108 = vmatpush3.bf16.msra.mxu0 %v11694_v14  ;;  %v1063_v40 = vand.u32 15, %v13943_v36  ;;  %v4978_v56 = vmax.f32 %v4962_v50, 0.0  ;;  %vm4862_vm15 = vcmp.lt.s32.totalorder %v4830_v9, 16  ;;  %v15184_v9 = vld [vmem:[#allocation48_spill] sm:$0xff] }
 0x2e9   : > { %v4941_v43 = vadd.f32 %v4813_v11, %v15177_v47  ;;  %v10620_v42 = vadd.f32 %v10619_v5, %v10618_v29  ;;  %v10701_v26 = vpop.f32.mrf.mxu1  ;;  %v15178_v14 = vcombine.low %v13650_v48, %v13741_v2  ;;  %v8144_v30 = vrot.slane %v8142_v4, 1  ;;  %v11736_v2 = vld [vmem:[#allocation2 + $0x88] sm:$0xff]  ;;  %v15183_v47 = vld [vmem:[#allocation28_spill] sm:$0xff] }
 0x2ea   : > { %v4979_v51 = vmax.f32 %v4963_v62, 0.0  ;;  %v13964_v16 = vadd.f32 %v10701_v26, %v10700_v55  ;;  %v10621_v58 = vpop.f32.mrf.mxu0  ;;  %v8147_v46 = vrot.slane %v8145_v38, 2  ;;  %v8169_v50 = vshrl.u32 %v13955_v37, 16  ;;  %v15180_v11 = vld [vmem:[#allocation50_spill] sm:$0xff]  ;;  %v8409_v62 = vld [vmem:[#allocation2 + $0x110] sm:$0xff] }
 0x2eb   : > { %7482 = vmatmul.mubr.bf16.gmra.mxu0 %v15178_v14  ;;  %v4814_v60 = vadd.f32 %v10620_v42, %v4284_v49  ;;  %v10703_v41 = vpop.f32.mrf.mxu1  ;;  %8065 = vmatmul.mubr.bf16.gmra.mxu1 %v13809_v24  ;;  %v13973_v22 = vor.u32 %v8156_v19, %v8153_v39  ;;  %v8172_v48 = vshll.u32 %v13955_v37, 16  ;;  %v9832_v17 = vcombine.low %v7552_v57, %v11736_v2  ;;  %v15182_v57 = vld [vmem:[#allocation31_spill] sm:$0xff]  ;;  %v15185_v14 = vld [vmem:[#allocation58_spill] sm:$0xff]  ;;  %v15186_v2 = vld [vmem:[#allocation29_spill] sm:$0xff] }
 0x2ec   : > { %7489 = vmatprep.mubr.bf16.mxu0 %v13811_v44  ;;  %v9987_v29 = vpack.c.bf16 %v4979_v51, %v4978_v56  ;;  %8822 = vmatprep.mubr.bf16.mxu1 %v13857_v7  ;;  %v10622_v53 = vpop.f32.mrf.mxu0  ;;  %v10498_v24 = vadd.f32 %v15180_v11, %v15179_v8  ;;  %v4832_v38 = vadd.s32 3, %v1063_v40  ;;  %v4964_v5 = vadd.f32 %v13827_v61, %v4941_v43  ;;  %v15181_v7 = vld [vmem:[#allocation25_spill] sm:$0xff] }
 0x2ed   : > { %v4926_v55 = vsel %vm4862_vm15, %v4814_v60, 0.0  ;;  %v10623_v4 = vadd.f32 %v10622_v53, %v10621_v58  ;;  %v10704_v45 = vpop.f32.mrf.mxu1  ;;  %v13985_v37 = vadd.s32 88, %v15053_v33  ;;  %v10562_v42 = vadd.f32 %v15183_v47, %v15182_v57 }
 0x2ee   : > { %10055 = vst [vmem:[%s13896_s12 + $0x10] sm:$0xff] %v9987_v29   ;;  %v4942_v49 = vadd.f32 %v4926_v55, %v15181_v7  ;;  %v13982_v39 = vadd.f32 %v10704_v45, %v10703_v41  ;;  %v10624_v19 = vpop.f32.mrf.mxu0  ;;  %v13990_v51 = vor.u32 %v8147_v46, %v8144_v30  ;;  %v8171_v40 = vrot.slane %v8169_v50, 1 }
 0x2ef   : > { %v4815_v26 = vadd.f32 %v10623_v4, %v15184_v9  ;;  %v10706_v56 = vpop.f32.mrf.mxu1  ;;  %v13994_v60 = vcombine.high %v15185_v14, %v8409_v62  ;;  %v8160_v41 = vshrl.u32 %v9832_v17, 16  ;;  %v8163_v29 = vshll.u32 %v9832_v17, 16 }
 0x2f0   : > { %v4965_v58 = vadd.f32 %v13827_v61, %v4942_v49  ;;  %v10625_v43 = vpop.f32.mrf.mxu0  ;;  %v4292_v53 = vadd.f32 %v10562_v42, %v10498_v24  ;;  %vm4864_vm0 = vcmp.lt.s32.totalorder %v4832_v38, 16  ;;  %v4980_v45 = vmax.f32 %v4964_v5, 0.0 }
 0x2f1   : > { %v4943_v8 = vadd.f32 %v4815_v26, %v15186_v2  ;;  %v10626_v11 = vadd.f32 %v10625_v43, %v10624_v19  ;;  %v10707_v55 = vpop.f32.mrf.mxu1  ;;  %v1077_v46 = vand.u32 15, %v13985_v37  ;;  %v9860_v17 = vcombine.low %v15185_v14, %v8409_v62  ;;  %v15188_v26 = vld [vmem:[#allocation60_spill] sm:$0xff] }
 0x2f2   : > { %v4981_v4 = vmax.f32 %v4965_v58, 0.0  ;;  %v13997_v7 = vadd.f32 %v10707_v55, %v10706_v56  ;;  %v10627_v30 = vpop.f32.mrf.mxu0  ;;  %v14007_v24 = vsel %vm3622_vm3, %v13931_v35, %v13973_v22  ;;  %v8174_v5 = vrot.slane %v8172_v48, 2  ;;  %v15189_v48 = vld [vmem:[#allocation10_spill] sm:$0xff] }
 0x2f3   : > { %7490 = vmatmul.mubr.bf16.gmra.mxu0 %v13816_v1  ;;  %v4816_v50 = vadd.f32 %v10626_v11, %v4292_v53  ;;  %v10789_v49 = vpop.f32.mrf.mxu1  ;;  %8823 = vmatmul.mubr.bf16.vlgmr.msra.gmra.mxu1 %v13870_v31  ;;  %v8598_v47 = vshrl.u32 %v13994_v60, 16  ;;  %v8162_v42 = vrot.slane %v8160_v41, 1  ;;  %v8165_v9 = vrot.slane %v8163_v29, 2  ;;  %v15187_v31 = vld [vmem:[#allocation57_spill] sm:$0xff] }
 0x2f4   : > { %7497 = vmatprep.mubr.bf16.mxu0 %v13811_v44  ;;  %v9992_v19 = vpack.c.bf16 %v4981_v4, %v4980_v45  ;;  %8830 = vmatprep.mubr.bf16.mxu1 %v13861_v28  ;;  %v10628_v57 = vpop.f32.mrf.mxu0  ;;  %v10504_v56 = vadd.f32 %v15188_v26, %v15187_v31  ;;  %v14015_v14 = vadd.s32 104, %v15053_v33  ;;  %v4966_v35 = vadd.f32 %v13827_v61, %v4943_v8  ;;  %v15190_v29 = vld [vmem:[#allocation37_spill] sm:$0xff]  ;;  %v15192_v45 = vld [vmem:[#allocation59_spill] sm:$0xff] }
 0x2f5   : > { %v4928_v58 = vsel %vm4864_vm0, %v4816_v50, 0.0  ;;  %v10629_v62 = vadd.f32 %v10628_v57, %v10627_v30  ;;  %v10790_v43 = vpop.f32.mrf.mxu1  ;;  %v4834_v41 = vadd.s32 3, %v1077_v46  ;;  %v15191_v11 = vld [vmem:[#allocation33_spill] sm:$0xff]  ;;  %v8601_v30 = vshll.u32 %v13994_v60, 16 }
 0x2f6   : > { %10056 = vst [vmem:[%s13896_s12 + $0x18] sm:$0xff] %v9992_v19   ;;  %v4944_v28 = vadd.f32 %v4928_v58, %v15189_v48  ;;  %v14020_v53 = vadd.f32 %v10790_v43, %v10789_v49  ;;  %v10630_v2 = vpop.f32.mrf.mxu0  ;;  %v10568_v55 = vadd.f32 %v15191_v11, %v15190_v29  ;;  %v8589_v50 = vshrl.u32 %v9860_v17, 16  ;;  %v15193_v58 = vld [vmem:[#allocation21_spill] sm:$0xff] }
 0x2f7   : > { %v4817_v38 = vadd.f32 %v10629_v62, %v15192_v45  ;;  %v10792_v4 = vpop.f32.mrf.mxu1  ;;  %v8592_v31 = vshll.u32 %v9860_v17, 16  ;;  %v14027_v8 = vor.u32 %v8174_v5, %v8171_v40  ;;  %v14029_v26 = vor.u32 %v8165_v9, %v8162_v42 }
 0x2f8   : > { %v4967_v57 = vadd.f32 %v13827_v61, %v4944_v28  ;;  %v10631_v19 = vpop.f32.mrf.mxu0  ;;  %v4300_v49 = vadd.f32 %v10568_v55, %v10504_v56  ;;  %v1091_v29 = vand.u32 15, %v14015_v14  ;;  %v4982_v62 = vmax.f32 %v4966_v35, 0.0 }
 0x2f9   : > { %v4945_v46 = vadd.f32 %v4817_v38, %v15193_v58  ;;  %v10632_v43 = vadd.f32 %v10631_v19, %v10630_v2  ;;  %v10793_v48 = vpop.f32.mrf.mxu1  ;;  %vm4866_vm1 = vcmp.lt.s32.totalorder %v4834_v41, 16  ;;  %v8600_v5 = vrot.slane %v8598_v47, 1  ;;  %v15196_v58 = vld [vmem:[#allocation44_spill] sm:$0xff] }
 0x2fa   : > { %v4983_v11 = vmax.f32 %v4967_v57, 0.0  ;;  %v14033_v60 = vadd.f32 %v10793_v48, %v10792_v4  ;;  %v10633_v45 = vpop.f32.mrf.mxu0  ;;  %v8603_v42 = vrot.slane %v8601_v30, 2  ;;  %v8591_v9 = vrot.slane %v8589_v50, 1  ;;  %v15194_v30 = vld [vmem:[#allocation11_spill] sm:$0xff] }
 0x2fb   : > { %7498 = vmatmul.mubr.bf16.gmra.mxu0 %v13816_v1  ;;  %v4818_v17 = vadd.f32 %v10632_v43, %v4300_v49  ;;  %v10795_v40 = vpop.f32.mrf.mxu1  ;;  %8831 = vmatmul.mubr.bf16.gmra.mxu1 %v13913_v63  ;;  %v8594_v28 = vrot.slane %v8592_v31, 2  ;;  %v8616_v2 = vshrl.u32 %v13811_v44, 16  ;;  %v8619_v55 = vshll.u32 %v13811_v44, 16 }
 0x2fc   : > { %7505 = vmatprep.mubr.bf16.mxu0 %v13811_v44  ;;  %v9997_v56 = vpack.c.bf16 %v4983_v11, %v4982_v62  ;;  %8838 = vmatprep.mubr.bf16.mxu1 %v13729_v3  ;;  %v10634_v35 = vpop.f32.mrf.mxu0  ;;  %v10510_v38 = vadd.f32 %v13685_v15, %v13678_v6  ;;  %v4836_v19 = vadd.s32 3, %v1091_v29  ;;  %v4968_v47 = vadd.f32 %v13827_v61, %v4945_v46  ;;  %v15195_v44 = vld [vmem:[#allocation41_spill] sm:$0xff] }
 0x2fd   : > { %v4930_v63 = vsel %vm4866_vm1, %v4818_v17, 0.0  ;;  %v10635_v4 = vadd.f32 %v10634_v35, %v10633_v45  ;;  %v10796_v57 = vpop.f32.mrf.mxu1  ;;  %v14050_v49 = vadd.s32 120, %v15053_v33  ;;  %v10574_v43 = vadd.f32 %v15196_v58, %v15195_v44 }
 0x2fe   : > { %10057 = vst [vmem:[%s13896_s12 + $0x20] sm:$0xff] %v9997_v56   ;;  %v4946_v50 = vadd.f32 %v4930_v63, %v15194_v30  ;;  %v14047_v3 = vadd.f32 %v10796_v57, %v10795_v40  ;;  %v10636_v31 = vpop.f32.mrf.mxu0  ;;  %v8604_v41 = vor.u32 %v8603_v42, %v8600_v5  ;;  %v8607_v48 = vshrl.u32 %v13816_v1, 16  ;;  %v15197_v40 = vld [vmem:[#allocation12_spill] sm:$0xff] }
 0x2ff   : > { %v4819_v6 = vadd.f32 %v10635_v4, %v13683_v32  ;;  %v10798_v15 = vpop.f32.mrf.mxu1  ;;  %v8618_v62 = vrot.slane %v8616_v2, 1  ;;  %v8621_v11 = vrot.slane %v8619_v55, 2  ;;  %v8610_v45 = vshll.u32 %v13816_v1, 16  ;;  %v15198_v55 = vld [vmem:[#allocation69_spill] sm:$0xff] }
 0x300   : > { %v4969_v29 = vadd.f32 %v13827_v61, %v4946_v50  ;;  %v10637_v46 = vpop.f32.mrf.mxu0  ;;  %v4308_v17 = vadd.f32 %v10574_v43, %v10510_v38  ;;  %vm4868_vm2 = vcmp.lt.s32.totalorder %v4836_v19, 16  ;;  %v4984_v57 = vmax.f32 %v4968_v47, 0.0  ;;  %v15199_v43 = vld [vmem:[#allocation73_spill] sm:$0xff] }
 0x301   : > { %v4947_v56 = vadd.f32 %v4819_v6, %v15197_v40  ;;  %v10638_v35 = vadd.f32 %v10637_v46, %v10636_v31  ;;  %v10799_v63 = vpop.f32.mrf.mxu1  ;;  %v1105_v42 = vand.u32 15, %v14050_v49  ;;  %v8605_v38 = vsel %vm3622_vm3, %v15198_v55, %v8604_v41  ;;  %v15200_v6 = vld [vmem:[#allocation76_spill] sm:$0xff] }
 0x302   : > { %v4985_v30 = vmax.f32 %v4969_v29, 0.0  ;;  %v14059_v32 = vadd.f32 %v10799_v63, %v10798_v15  ;;  %v10639_v5 = vpop.f32.mrf.mxu0  ;;  %v8595_v50 = vor.u32 %v8594_v28, %v8591_v9  ;;  %v8609_v47 = vrot.slane %v8607_v48, 1 }
 0x303   : > { %7506 = vmatmul.mubr.bf16.gmra.mxu0 %v13816_v1  ;;  %v4820_v4 = vadd.f32 %v10638_v35, %v4308_v17  ;;  %v10801_v2 = vpop.f32.mrf.mxu1  ;;  %8839 = vmatmul.mubr.bf16.gmra.mxu1 %v13754_v27  ;;  %v14067_v58 = vor.u32 %v8621_v11, %v8618_v62  ;;  %v8612_v1 = vrot.slane %v8610_v45, 2  ;;  %v10516_v15 = vadd.f32 %v15200_v6, %v15199_v43  ;;  %v15201_v17 = vld [vmem:[#allocation24_spill] sm:$0xff]  ;;  %v15202_v35 = vld [vmem:[#allocation49_spill] sm:$0xff]  ;;  %v15203_v62 = vld [vmem:[#allocation51_spill] sm:$0xff] }
 0x304   : > { %8335 = vmatprep.mubr.bf16.mxu0 %v13960_v0  ;;  %v10002_v31 = vpack.c.bf16 %v4985_v30, %v4984_v57  ;;  %8846 = vmatprep.mubr.bf16.mxu1 %v8605_v38  ;;  %v10640_v44 = vpop.f32.mrf.mxu0  ;;  %v4970_v0 = vadd.f32 %v13827_v61, %v4947_v56  ;;  %v4838_v48 = vadd.s32 3, %v1105_v42  ;;  %v10580_v11 = vadd.f32 %v15203_v62, %v15202_v35  ;;  %v15204_v45 = vld [vmem:[#allocation75_spill] sm:$0xff]  ;;  %v15206_v38 = vld [vmem:[#allocation34_spill] sm:$0xff]  ;;  %v8416_v35 = vld [vmem:[#allocation2 + $0x158] sm:$0x33] }
 0x305   : > { %v4932_v29 = vsel %vm4868_vm2, %v4820_v4, 0.0  ;;  %v10641_v46 = vadd.f32 %v10640_v44, %v10639_v5  ;;  %v10802_v27 = vpop.f32.mrf.mxu1  ;;  %v15205_v5 = vld [vmem:[#allocation71_spill] sm:$0xff]  ;;  %v14083_v55 = vor.u32 %v8612_v1, %v8609_v47  ;;  %v8623_v47 = vsel %vm3622_vm3, %v8604_v41, %v14067_v58  ;;  %v15209_v62 = vld [vmem:[#allocation30_spill] sm:$0xff] }
 0x306   : > { %10058 = vst [vmem:[%s13896_s12 + $0x28] sm:$0xff] %v10002_v31   ;;  %v4948_v40 = vadd.f32 %v4932_v29, %v15201_v17  ;;  %v14075_v9 = vadd.f32 %v10802_v27, %v10801_v2  ;;  %v10642_v28 = vpop.f32.mrf.mxu0  ;;  %v8596_v4 = vsel %vm3622_vm3, %v15205_v5, %v8595_v50  ;;  %v4316_v56 = vadd.f32 %v10580_v11, %v10516_v15  ;;  %v15207_v17 = vld [vmem:[#allocation74_spill] sm:$0xff] }
 0x307   : > { %v4821_v63 = vadd.f32 %v10641_v46, %v15204_v45  ;;  %v10804_v57 = vpop.f32.mrf.mxu1  ;;  %v4986_v42 = vmax.f32 %v4970_v0, 0.0  ;;  %vm4870_vm4 = vcmp.lt.s32.totalorder %v4838_v48, 16  ;;  %v8149_v0 = vsel %vm3622_vm3, %v13916_v25, %v13990_v51  ;;  %v15210_v25 = vld [vmem:[#allocation56_spill] sm:$0xff] }
 0x308   : > { %v4971_v19 = vadd.f32 %v13827_v61, %v4948_v40  ;;  %v10643_v30 = vpop.f32.mrf.mxu0  ;;  %v14096_v40 = vadd.s32 128, %v15207_v17  ;;  %v8167_v5 = vsel %vm3622_vm3, %v13990_v51, %v14029_v26 }
 0x309   : > { %v4949_v2 = vadd.f32 %v4821_v63, %v15206_v38  ;;  %v10644_v31 = vadd.f32 %v10643_v30, %v10642_v28  ;;  %v10805_v44 = vpop.f32.mrf.mxu1  ;;  %v8176_v63 = vsel %vm3622_vm3, %v13973_v22, %v14027_v8  ;;  %v8614_v30 = vsel %vm3622_vm3, %v8595_v50, %v14083_v55 }
 0x30a   : > { %v4987_v43 = vmax.f32 %v4971_v19, 0.0  ;;  %v14086_v6 = vadd.f32 %v10805_v44, %v10804_v57  ;;  %v10725_v29 = vpop.f32.mrf.mxu0  ;;  %15208 = vst [vmem:[#allocation32_spill] sm:$0xff] %v14096_v40  ;;  %v9869_v38 = vcombine.high %v8416_v35, %v8416_v35  ;;  %v8641_v22 = vsel %vm3622_vm3, %v14067_v58, %v14067_v58 }
 0x30b   : > { %8336 = vmatmul.mubr.bf16.vlgmr.msra.gmra.mxu0 %v13936_v54  ;;  %v4822_v46 = vadd.f32 %v10644_v31, %v4316_v56  ;;  %v10807_v27 = vpop.f32.mrf.mxu1  ;;  %8847 = vmatmul.mubr.bf16.gmra.mxu1 %v8596_v4 }
 0x30c   : > { %8343 = vmatprep.mubr.bf16.mxu0 %v14007_v24  ;;  %v10007_v1 = vpack.c.bf16 %v4987_v43, %v4986_v42  ;;  %8854 = vmatprep.mubr.bf16.mxu1 %v8623_v47  ;;  %v10726_v15 = vpop.f32.mrf.mxu0  ;;  %v4972_v24 = vadd.f32 %v13827_v61, %v4949_v2  ;;  %v14936_v42 = vand.u32 15, %v14096_v40  ;;  %v8670_v17 = vshrl.u32 %v9869_v38, 16 }
 0x30d   : > { %v4934_v28 = vsel %vm4870_vm4, %v4822_v46, 0.0  ;;  %v10727_v54 = vadd.f32 %v10726_v15, %v10725_v29  ;;  %v10808_v48 = vpop.f32.mrf.mxu1  ;;  %v15212_v46 = vld [vmem:[#allocation61_spill] sm:$0xff] }
 0x30e   : > { %10059 = vst [vmem:[%s13896_s12 + $0x30] sm:$0xff] %v10007_v1   ;;  %v4950_v11 = vadd.f32 %v4934_v28, %v15209_v62  ;;  %v14101_v41 = vadd.f32 %v10808_v48, %v10807_v27  ;;  %v10728_v45 = vpop.f32.mrf.mxu0  ;;  %v4988_v50 = vmax.f32 %v4972_v24, 0.0  ;;  %v6636_v47 = vadd.s32 4294967293, %v14936_v42 }
 0x30f   : > { %v6070_v57 = vadd.f32 %v10727_v54, %v15210_v25  ;;  %v10810_v19 = vpop.f32.mrf.mxu1  ;;  %v8673_v28 = vshll.u32 %v9869_v38, 16  ;;  %v14137_v62 = vsel %vm3622_vm3, %v14083_v55, %v14083_v55  ;;  %v15217_v25 = vld [vmem:[#allocation65_spill] sm:$0xff]  ;;  %v8672_v38 = vrot.slane %v8670_v17, 1 }
 0x310   : > { %v4973_v4 = vadd.f32 %v13827_v61, %v4950_v11  ;;  %v10729_v56 = vpop.f32.mrf.mxu0  ;;  %v14123_v61 = vadd.s32 128, %v13796_v20  ;;  %vm6652_vm5 = vcmp.ge.s32.totalorder %v6636_v47, 0  ;;  %vm6668_vm6 = vcmp.lt.s32.totalorder %v6636_v47, 16 }
 0x311   : > { %v14114_v2 = vadd.f32 %v14020_v53, %v6070_v57  ;;  %v10730_v31 = vadd.f32 %v10729_v56, %v10728_v45  ;;  %v10811_v44 = vpop.f32.mrf.mxu1  ;;  %vm14139_vm7 = vmand %vm6652_vm5, %vm6668_vm6  ;;  %v15215_v45 = vld [vmem:[#allocation45_spill] sm:$0xff] }
 0x312   : > { %v4989_v43 = vmax.f32 %v4973_v4, 0.0  ;;  %v14120_v29 = vadd.f32 %v10811_v44, %v10810_v19  ;;  %v10731_v51 = vpop.f32.mrf.mxu0  ;;  %15211 = vst [vmem:[#allocation14_spill] sm:$0xff] %v14123_v61 }
 0x313   : > { %8344 = vmatmul.mubr.bf16.gmra.mxu0 %v8149_v0  ;;  %v6073_v53 = vadd.f32 %v10730_v31, %v15212_v46  ;;  %v10813_v27 = vpop.f32.mrf.mxu1  ;;  %8855 = vmatmul.mubr.bf16.gmra.mxu1 %v8614_v30  ;;  %v9868_v30 = vcombine.low %v8416_v35, %v8416_v35  ;;  %v8675_v31 = vrot.slane %v8673_v28, 2  ;;  %v14935_v35 = vand.u32 15, %v14123_v61  ;;  %v15220_v46 = vld [vmem:[#allocation62_spill] sm:$0xff] }
 0x314   : > { %8351 = vmatprep.mubr.bf16.mxu0 %v8176_v63  ;;  %v10012_v1 = vpack.c.bf16 %v4989_v43, %v4988_v50  ;;  %v10732_v15 = vpop.f32.mrf.mxu0  ;;  %8862 = vmatprep.mubr.bf16.mxu1 %v8641_v22 }
 0x315   : > { %v14129_v54 = vadd.f32 %v14033_v60, %v6073_v53  ;;  %v10733_v0 = vadd.f32 %v10732_v15, %v10731_v51  ;;  %v10814_v20 = vpop.f32.mrf.mxu1  ;;  %v15216_v60 = vand.u32 15, %v15215_v45  ;;  %v14932_v53 = vand.u32 15, %v15220_v46 }
 0x316   : > { %10060 = vst [vmem:[%s13896_s12 + $0x38] sm:$0xff] %v10012_v1   ;;  %v14132_v48 = vadd.f32 %v10814_v20, %v10813_v27  ;;  %v10734_v24 = vpop.f32.mrf.mxu0  ;;  %v15221_v1 = vld [vmem:[#allocation42_spill] sm:$0xff]  ;;  %v6638_v20 = vadd.s32 4294967293, %v14935_v35 }
 0x317   : > { %v6637_v63 = vadd.s32 4294967293, %v15216_v60  ;;  %v6078_v57 = vadd.f32 %v10733_v0, %v15217_v25  ;;  %v10816_v19 = vpop.f32.mrf.mxu1  ;;  %v8178_v15 = vsel %vm3622_vm3, %v14027_v8, %v15221_v1  ;;  %v8676_v60 = vor.u32 %v8675_v31, %v8672_v38  ;;  %v15229_v31 = vld [vmem:[#allocation47_spill] sm:$0xff]  ;;  %v15241_v35 = vld [vmem:[#allocation54_spill] sm:$0xff] }
 0x318   : > { %v10735_v56 = vpop.f32.mrf.mxu0  ;;  %v8661_v8 = vshrl.u32 %v9868_v30, 16  ;;  %vm6654_vm11 = vcmp.ge.s32.totalorder %v6638_v20, 0  ;;  %vm6670_vm12 = vcmp.lt.s32.totalorder %v6638_v20, 16 }
 0x319   : > { %vm6653_vm8 = vcmp.ge.s32.totalorder %v6637_v63, 0  ;;  %vm6669_vm9 = vcmp.lt.s32.totalorder %v6637_v63, 16  ;;  %v14150_v44 = vadd.f32 %v14047_v3, %v6078_v57  ;;  %v10736_v50 = vadd.f32 %v10735_v56, %v10734_v24  ;;  %v10817_v43 = vpop.f32.mrf.mxu1  ;;  %v15222_v3 = vld [vmem:[#allocation70_spill] sm:$0xff]  ;;  %v15224_v56 = vld [vmem:[#allocation16_spill] sm:$0xff]  ;;  %vm14181_vm13 = vmand %vm6654_vm11, %vm6670_vm12 }
 0x31a   : > { %vm14152_vm10 = vmand %vm6653_vm8, %vm6669_vm9  ;;  %v14158_v27 = vadd.f32 %v10817_v43, %v10816_v19  ;;  %v10737_v47 = vpop.f32.mrf.mxu0  ;;  %v14171_v24 = vadd.s32 128, %v13847_v10  ;;  %v8664_v63 = vshll.u32 %v9868_v30, 16  ;;  %v15228_v30 = vld [vmem:[#allocation72_spill] sm:$0xff] }
 0x31b   : > { %8352 = vmatmul.mubr.bf16.gmra.mxu0 %v8167_v5  ;;  %v6081_v17 = vadd.f32 %v10736_v50, %v15222_v3  ;;  %v10819_v28 = vpop.f32.mrf.mxu1  ;;  %8863 = vmatmul.mubr.bf16.gmra.mxu1 %v14137_v62  ;;  %v14177_v50 = vadd.s32 128, %v15224_v56 }
 0x31c   : > { %8359 = vmatprep.mubr.bf16.mxu0 %v8178_v15  ;;  %15223 = vst [vmem:[#allocation13_spill] sm:$0xff] %v14171_v24  ;;  %v10738_v5 = vpop.f32.mrf.mxu0  ;;  %8870 = vmatprep.mubr.bf16.mxu1 %v8641_v22  ;;  %v6639_v22 = vadd.s32 4294967293, %v14932_v53 }
 0x31d   : > { %v14174_v25 = vadd.f32 %v14059_v32, %v6081_v17  ;;  %v10739_v57 = vadd.f32 %v10738_v5, %v10737_v47  ;;  %v10820_v19 = vpop.f32.mrf.mxu1  ;;  %15225 = vst [vmem:[#allocation26_spill] sm:$0xff] %v14177_v50  ;;  %v8177_v47 = vsel %vm3622_vm3, %v14029_v26, %v15229_v31  ;;  %v8663_v17 = vrot.slane %v8661_v8, 1 }
 0x31e   : > { %v14179_v43 = vadd.f32 %v10820_v19, %v10819_v28  ;;  %v10740_v1 = vpop.f32.mrf.mxu0  ;;  %v8666_v28 = vrot.slane %v8664_v63, 2  ;;  %vm6655_vm14 = vcmp.ge.s32.totalorder %v6639_v22, 0  ;;  %vm6671_vm15 = vcmp.lt.s32.totalorder %v6639_v22, 16  ;;  %v15232_v22 = vld [vmem:[#allocation77_spill] sm:$0xff] }
 0x31f   : > { %v6086_v32 = vadd.f32 %v10739_v57, %v15228_v30  ;;  %v10822_v38 = vpop.f32.mrf.mxu1  ;;  %v8677_v57 = vsel %vm3622_vm3, %v14067_v58, %v8676_v60  ;;  %vm14199_vm0 = vmand %vm6655_vm14, %vm6671_vm15  ;;  %v14933_v26 = vand.u32 15, %v14171_v24  ;;  %v14934_v30 = vand.u32 15, %v14177_v50  ;;  %v15250_v58 = vld [vmem:[#allocation66_spill] sm:$0xff] }
 0x320   : > { %v10741_v3 = vpop.f32.mrf.mxu0  ;;  %v14216_v31 = vadd.s32 128, %v13904_v18 }
 0x321   : > { %v14195_v20 = vadd.f32 %v14075_v9, %v6086_v32  ;;  %v10742_v5 = vadd.f32 %v10741_v3, %v10740_v1  ;;  %v10823_v19 = vpop.f32.mrf.mxu1  ;;  %v15233_v1 = vld [vmem:[#allocation52_spill] sm:$0xff]  ;;  %v6640_v60 = vadd.s32 4294967293, %v14933_v26  ;;  %v6641_v18 = vadd.s32 4294967293, %v14934_v30 }
 0x322   : > { %v14205_v8 = vadd.f32 %v10823_v19, %v10822_v38  ;;  %v10743_v63 = vpop.f32.mrf.mxu0  ;;  %15234 = vst [vmem:[#allocation22_spill] sm:$0xff] %v14216_v31 }
 0x323   : > { %8360 = vmatmul.mubr.bf16.gmra.mxu0 %v8177_v47  ;;  %v6089_v9 = vadd.f32 %v10742_v5, %v15232_v22  ;;  %v10825_v32 = vpop.f32.mrf.mxu1  ;;  %8871 = vmatmul.mubr.bf16.gmra.mxu1 %v14137_v62  ;;  %v8667_v47 = vor.u32 %v8666_v28, %v8663_v17  ;;  %vm6656_vm1 = vcmp.ge.s32.totalorder %v6640_v60, 0  ;;  %vm6672_vm2 = vcmp.lt.s32.totalorder %v6640_v60, 16  ;;  %v15235_v62 = vld [vmem:[#allocation17_spill] sm:$0xff]  ;;  %v7562_v28 = vld [vmem:[#allocation2 + $0x150] sm:$0x33] }
 0x324   : > { %8367 = vmatprep.mubr.bf16.mxu0 %v15233_v1  ;;  %v10744_v38 = vpop.f32.mrf.mxu0  ;;  %8878 = vmatprep.mubr.bf16.mxu1 %v8677_v57  ;;  %v14222_v22 = vadd.s32 128, %v15235_v62  ;;  %vm14226_vm4 = vmand %vm6656_vm1, %vm6672_vm2  ;;  %vm6657_vm5 = vcmp.ge.s32.totalorder %v6641_v18, 0  ;;  %vm6673_vm6 = vcmp.lt.s32.totalorder %v6641_v18, 16  ;;  %v15242_v18 = vld [vmem:[#allocation55_spill] sm:$0xff] }
 0x325   : > { %v14219_v3 = vadd.f32 %v14086_v6, %v6089_v9  ;;  %v10745_v5 = vadd.f32 %v10744_v38, %v10743_v63  ;;  %v10826_v19 = vpop.f32.mrf.mxu1  ;;  %v8668_v9 = vsel %vm3622_vm3, %v14083_v55, %v8667_v47  ;;  %vm14241_vm8 = vmand %vm6657_vm5, %vm6673_vm6  ;;  %v9835_v55 = vcombine.high %v7562_v28, %v7562_v28 }
 0x326   : > { %15236 = vst [vmem:[#allocation35_spill] sm:$0xff] %v14222_v22  ;;  %v14224_v1 = vadd.f32 %v10826_v19, %v10825_v32  ;;  %v10746_v53 = vpop.f32.mrf.mxu0 }
 0x327   : > { %v6094_v6 = vadd.f32 %v10745_v5, %v13793_v34  ;;  %v10828_v17 = vpop.f32.mrf.mxu1  ;;  %v14937_v34 = vand.u32 15, %v14216_v31  ;;  %v14938_v5 = vand.u32 15, %v14222_v22  ;;  %v8192_v57 = vshll.u32 %v9835_v55, 16 }
 0x328   : > { %v10747_v63 = vpop.f32.mrf.mxu0 }
 0x329   : > { %v14239_v32 = vadd.f32 %v14101_v41, %v6094_v6  ;;  %v10748_v60 = vadd.f32 %v10747_v63, %v10746_v53  ;;  %v10829_v38 = vpop.f32.mrf.mxu1  ;;  %v6642_v6 = vadd.s32 4294967293, %v14937_v34  ;;  %v15243_v63 = vld [vmem:[#allocation27_spill] sm:$0xff]  ;;  %v8189_v53 = vshrl.u32 %v9835_v55, 16 }
 0x32a   : > { %v14247_v62 = vadd.f32 %v10829_v38, %v10828_v17  ;;  %v10749_v30 = vpop.f32.mrf.mxu0  ;;  %v14258_v17 = vadd.s32 128, %v15243_v63  ;;  %v14261_v38 = vadd.s32 128, %v13943_v36  ;;  %v6643_v36 = vadd.s32 4294967293, %v14938_v5 }
 0x32b   : > { %8368 = vmatmul.mubr.bf16.gmra.mxu0 %v15241_v35  ;;  %v6097_v47 = vadd.f32 %v10748_v60, %v13818_v21  ;;  %v10831_v41 = vpop.f32.mrf.mxu1  ;;  %8879 = vmatmul.mubr.bf16.gmra.mxu1 %v8668_v9  ;;  %vm6658_vm9 = vcmp.ge.s32.totalorder %v6642_v6, 0  ;;  %vm6674_vm11 = vcmp.lt.s32.totalorder %v6642_v6, 16 }
 0x32c   : > { %8375 = vmatprep.mubr.bf16.mxu0 %v15242_v18  ;;  %15244 = vst [vmem:[#allocation19_spill] sm:$0xff] %v14258_v17  ;;  %15245 = vst [vmem:[#allocation53_spill] sm:$0xff] %v14261_v38  ;;  %v10750_v35 = vpop.f32.mrf.mxu0  ;;  %vm6659_vm14 = vcmp.ge.s32.totalorder %v6643_v36, 0  ;;  %vm6675_vm15 = vcmp.lt.s32.totalorder %v6643_v36, 16  ;;  %v8194_v36 = vrot.slane %v8192_v57, 2 }
 0x32d   : > { %v14264_v21 = vadd.f32 %v14120_v29, %v6097_v47  ;;  %v10751_v60 = vadd.f32 %v10750_v35, %v10749_v30  ;;  %v10832_v18 = vpop.f32.mrf.mxu1  ;;  %vm14268_vm12 = vmand %vm6658_vm9, %vm6674_vm11 }
 0x32e   : > { %v14266_v9 = vadd.f32 %v10832_v18, %v10831_v41  ;;  %v10752_v42 = vpop.f32.mrf.mxu0  ;;  %v9834_v41 = vcombine.low %v7562_v28, %v7562_v28  ;;  %vm14281_vm1 = vmand %vm6659_vm14, %vm6675_vm15  ;;  %v8191_v28 = vrot.slane %v8189_v53, 1 }
 0x32f   : > { %v6102_v63 = vadd.f32 %v10751_v60, %v13851_v13  ;;  %v10834_v29 = vpop.f32.mrf.mxu1  ;;  %v14939_v13 = vand.u32 15, %v14261_v38  ;;  %v14940_v60 = vand.u32 15, %v14258_v17 }
 0x330   : > { %v10753_v47 = vpop.f32.mrf.mxu0  ;;  %v8180_v0 = vshrl.u32 %v9834_v41, 16 }
 0x331   : > { %v14279_v55 = vadd.f32 %v14132_v48, %v6102_v63  ;;  %v10754_v6 = vadd.f32 %v10753_v47, %v10752_v42  ;;  %v10835_v35 = vpop.f32.mrf.mxu1  ;;  %v15251_v42 = vld [vmem:[#allocation67_spill] sm:$0xff]  ;;  %v6644_v15 = vadd.s32 4294967293, %v14939_v13  ;;  %v8195_v13 = vor.u32 %v8194_v36, %v8191_v28 }
 0x332   : > { %v14287_v5 = vadd.f32 %v10835_v35, %v10834_v29  ;;  %v10755_v30 = vpop.f32.mrf.mxu0  ;;  %v14298_v29 = vadd.s32 128, %v13985_v37 }
 0x333   : > { %8376 = vmatmul.mubr.bf16.gmra.mxu0 %v15250_v58  ;;  %v6105_v48 = vadd.f32 %v10754_v6, %v13877_v52  ;;  %v10917_v63 = vpop.f32.mrf.mxu1  ;;  %v8183_v58 = vshll.u32 %v9834_v41, 16  ;;  %vm6660_vm2 = vcmp.ge.s32.totalorder %v6644_v15, 0  ;;  %vm6676_vm5 = vcmp.lt.s32.totalorder %v6644_v15, 16  ;;  %v15253_v6 = vld [vmem:[#allocation18_spill] sm:$0xff] }
 0x334   : > { %8383 = vmatprep.mubr.bf16.mxu0 %v15251_v42  ;;  %15252 = vst [vmem:[#allocation38_spill] sm:$0xff] %v14298_v29  ;;  %v10756_v35 = vpop.f32.mrf.mxu0  ;;  %v14304_v42 = vadd.s32 128, %v15253_v6  ;;  %vm14308_vm6 = vmand %vm6660_vm2, %vm6676_vm5  ;;  %v6645_v41 = vadd.s32 4294967293, %v14940_v60 }
 0x335   : > { %v14301_v57 = vadd.f32 %v14158_v27, %v6105_v48  ;;  %v10757_v52 = vadd.f32 %v10756_v35, %v10755_v30  ;;  %v10918_v53 = vpop.f32.mrf.mxu1  ;;  %v8182_v35 = vrot.slane %v8180_v0, 1  ;;  %v15259_v0 = vld [vmem:[#allocation68_spill] sm:$0xff] }
 0x336   : > { %15254 = vst [vmem:[#allocation43_spill] sm:$0xff] %v14304_v42  ;;  %v14306_v47 = vadd.f32 %v10918_v53, %v10917_v63  ;;  %v10758_v4 = vpop.f32.mrf.mxu0  ;;  %v8185_v63 = vrot.slane %v8183_v58, 2  ;;  %vm6661_vm9 = vcmp.ge.s32.totalorder %v6645_v41, 0  ;;  %vm6677_vm11 = vcmp.lt.s32.totalorder %v6645_v41, 16  ;;  %v15260_v58 = vld [vmem:[#allocation63_spill] sm:$0xff] }
 0x337   : > { %v6110_v27 = vadd.f32 %v10757_v52, %v13901_v23  ;;  %v10920_v30 = vpop.f32.mrf.mxu1  ;;  %vm14321_vm14 = vmand %vm6661_vm9, %vm6677_vm11  ;;  %v14941_v23 = vand.u32 15, %v14298_v29  ;;  %v8196_v41 = vsel %vm3622_vm3, %v15260_v58, %v8195_v13 }
 0x338   : > { %v10759_v48 = vpop.f32.mrf.mxu0  ;;  %v8186_v52 = vor.u32 %v8185_v63, %v8182_v35 }
 0x339   : > { %v14319_v28 = vadd.f32 %v14179_v43, %v6110_v27  ;;  %v10760_v36 = vadd.f32 %v10759_v48, %v10758_v4  ;;  %v10921_v53 = vpop.f32.mrf.mxu1  ;;  %v6646_v48 = vadd.s32 4294967293, %v14941_v23 }
 0x33a   : > { %v14327_v60 = vadd.f32 %v10921_v53, %v10920_v30  ;;  %v10761_v15 = vpop.f32.mrf.mxu0  ;;  %v14339_v30 = vadd.s32 128, %v14015_v14  ;;  %v15266_v14 = vand.u32 15, %v14304_v42 }
 0x33b   : > { %8384 = vmatmul.mubr.bf16.gmra.mxu0 %v15259_v0  ;;  %v6113_v43 = vadd.f32 %v10760_v36, %v13921_v59  ;;  %v10923_v4 = vpop.f32.mrf.mxu1  ;;  %vm6662_vm15 = vcmp.ge.s32.totalorder %v6646_v48, 0  ;;  %vm6678_vm2 = vcmp.lt.s32.totalorder %v6646_v48, 16  ;;  %v15262_v59 = vld [vmem:[#allocation20_spill] sm:$0xff] }
 0x33c   : > { %8391 = vmatprep.mubr.bf16.mxu0 %v8196_v41  ;;  %15261 = vst [vmem:[#allocation39_spill] sm:$0xff] %v14339_v30  ;;  %v10762_v53 = vpop.f32.mrf.mxu0  ;;  %v14345_v36 = vadd.s32 128, %v15262_v59  ;;  %vm14349_vm5 = vmand %vm6662_vm15, %vm6678_vm2  ;;  %v6647_v35 = vadd.s32 4294967293, %v15266_v14  ;;  %v15268_v14 = vmov 0 }
 0x33d   : > { %v14342_v0 = vadd.f32 %v14205_v8, %v6113_v43  ;;  %v10763_v13 = vadd.f32 %v10762_v53, %v10761_v15  ;;  %v10924_v58 = vpop.f32.mrf.mxu1 }
 0x33e   : > { %15263 = vst [vmem:[#allocation15_spill] sm:$0xff] %v14345_v36  ;;  %v14347_v41 = vadd.f32 %v10924_v58, %v10923_v4  ;;  %v10764_v27 = vpop.f32.mrf.mxu0  ;;  %vm6663_vm9 = vcmp.ge.s32.totalorder %v6647_v35, 0  ;;  %vm6679_vm11 = vcmp.lt.s32.totalorder %v6647_v35, 16  ;;  %v15267_v58 = vld [vmem:[#allocation64_spill] sm:$0xff] }
 0x33f   : > { %v6118_v8 = vadd.f32 %v10763_v13, %v13948_v12  ;;  %v10926_v63 = vpop.f32.mrf.mxu1  ;;  %v8187_v59 = vsel %vm3622_vm3, %v15267_v58, %v8186_v52  ;;  %vm14364_vm15 = vmand %vm6663_vm9, %vm6679_vm11  ;;  %v14943_v12 = vand.u32 15, %v14339_v30  ;;  %v14945_v13 = vand.u32 15, %v14345_v36 }
 0x340   : > { %v10765_v43 = vpop.f32.mrf.mxu0  ;;  %v15269_v14 = vsel %vm14364_vm15, 4294967295, %v15268_v14 }
 0x341   : > { %v14360_v4 = vadd.f32 %v14224_v1, %v6118_v8  ;;  %v10766_v48 = vadd.f32 %v10765_v43, %v10764_v27  ;;  %v10927_v53 = vpop.f32.mrf.mxu1  ;;  %v6648_v52 = vadd.s32 4294967293, %v14943_v12  ;;  %v14379_v8 = vadd.s32 128, %v14050_v49 }
 0x342   : > { %v14370_v15 = vadd.f32 %v10927_v53, %v10926_v63  ;;  %v10767_v42 = vpop.f32.mrf.mxu0  ;;  %v6649_v12 = vadd.s32 4294967293, %v14945_v13 }
 0x343   : > { %8392 = vmatmul.mubr.bf16.gmra.mxu0 %v8187_v59  ;;  %v6121_v1 = vadd.f32 %v10766_v48, %v13964_v16  ;;  %v10929_v35 = vpop.f32.mrf.mxu1  ;;  %15270 = vst [vmem:[#allocation9_spill] sm:$0xff] %v14379_v8  ;;  %vm6664_vm3 = vcmp.ge.s32.totalorder %v6648_v52, 0  ;;  %vm6680_vm2 = vcmp.lt.s32.totalorder %v6648_v52, 16 }
 0x344   : > { %v10768_v43 = vpop.f32.mrf.mxu0  ;;  %vm14384_vm9 = vmand %vm6664_vm3, %vm6680_vm2  ;;  %vm6665_vm11 = vcmp.ge.s32.totalorder %v6649_v12, 0  ;;  %vm6681_vm15 = vcmp.lt.s32.totalorder %v6649_v12, 16 }
 0x345   : > { %v14382_v58 = vadd.f32 %v14247_v62, %v6121_v1  ;;  %v10769_v63 = vadd.f32 %v10768_v43, %v10767_v42  ;;  %v10930_v53 = vpop.f32.mrf.mxu1  ;;  %vm14397_vm3 = vmand %vm6665_vm11, %vm6681_vm15 }
 0x346   : > { %v10931_v16 = vadd.f32 %v10930_v53, %v10929_v35  ;;  %v10770_v48 = vpop.f32.mrf.mxu0  ;;  %v14947_v53 = vand.u32 15, %v14379_v8 }
 0x347   : > { %v6126_v49 = vadd.f32 %v10769_v63, %v13982_v39  ;;  %v10932_v27 = vpop.f32.mrf.mxu1 }
 0x348   : > { %v10771_v42 = vpop.f32.mrf.mxu0 }
 0x349   : > { %v14395_v1 = vadd.f32 %v14266_v9, %v6126_v49  ;;  %v10772_v35 = vadd.f32 %v10771_v42, %v10770_v48  ;;  %v10933_v52 = vpop.f32.mrf.mxu1  ;;  %v6650_v9 = vadd.s32 4294967293, %v14947_v53 }
 0x34a   : > { %v10934_v39 = vadd.f32 %v10933_v52, %v10932_v27  ;;  %v10853_v63 = vpop.f32.mrf.mxu0 }
 0x34b   : > { %v6129_v13 = vadd.f32 %v10772_v35, %v13997_v7  ;;  %v10935_v36 = vpop.f32.mrf.mxu1  ;;  %vm6666_vm15 = vcmp.ge.s32.totalorder %v6650_v9, 0  ;;  %vm6682_vm2 = vcmp.lt.s32.totalorder %v6650_v9, 16  ;;  %v15276_v7 = vmov 0 }
 0x34c   : > { %v10854_v48 = vpop.f32.mrf.mxu0  ;;  %vm14411_vm11 = vmand %vm6666_vm15, %vm6682_vm2 }
 0x34d   : > { %v14409_v49 = vadd.f32 %v14287_v5, %v6129_v13  ;;  %v10855_v42 = vadd.f32 %v10854_v48, %v10853_v63  ;;  %v10936_v62 = vpop.f32.mrf.mxu1  ;;  %v15277_v7 = vsel %vm14411_vm11, 4294967295, %v15276_v7 }
 0x34e   : > { %v10937_v27 = vadd.f32 %v10936_v62, %v10935_v36  ;;  %v10856_v52 = vpop.f32.mrf.mxu0  ;;  %15278 = vst [vmem:[#allocation36_spill] sm:$0xff] %v15277_v7 }
 0x34f   : > { %15275 = vst [vmem:[#allocation40_spill] sm:$0xff] %v14409_v49  ;;  %v14416_v35 = vadd.f32 %v14306_v47, %v10855_v42  ;;  %v10938_v12 = vpop.f32.mrf.mxu1 }
 0x350   : > { %v10857_v5 = vpop.f32.mrf.mxu0 }
 0x351   : > { %v10858_v13 = vadd.f32 %v10857_v5, %v10856_v52  ;;  %v10939_v63 = vpop.f32.mrf.mxu1 }
 0x352   : > { %v10940_v48 = vadd.f32 %v10939_v63, %v10938_v12  ;;  %v10859_v8 = vpop.f32.mrf.mxu0 }
 0x353   : > { %v14422_v36 = vadd.f32 %v14327_v60, %v10858_v13  ;;  %v10941_v62 = vpop.f32.mrf.mxu1 }
 0x354   : > { %v10860_v9 = vpop.f32.mrf.mxu0 }
 0x355   : > { %v10861_v30 = vadd.f32 %v10860_v9, %v10859_v8  ;;  %v10942_v29 = vpop.f32.mrf.mxu1 }
 0x356   : > { %v10943_v17 = vadd.f32 %v10942_v29, %v10941_v62  ;;  %v10862_v47 = vpop.f32.mrf.mxu0 }
 0x357   : > { %v14425_v42 = vadd.f32 %v14347_v41, %v10861_v30  ;;  %v10944_v38 = vpop.f32.mrf.mxu1 }
 0x358   : > { %v10863_v22 = vpop.f32.mrf.mxu0 }
 0x359   : > { %v10864_v53 = vadd.f32 %v10863_v22, %v10862_v47  ;;  %v10945_v31 = vpop.f32.mrf.mxu1 }
 0x35a   : > { %v10946_v52 = vadd.f32 %v10945_v31, %v10944_v38  ;;  %v10865_v5 = vpop.f32.mrf.mxu0 }
 0x35b   : > { %v14428_v12 = vadd.f32 %v14370_v15, %v10864_v53  ;;  %v10947_v60 = vpop.f32.mrf.mxu1 }
 0x35c   : > { %v10866_v13 = vpop.f32.mrf.mxu0 }
 0x35d   : > { %v10867_v63 = vadd.f32 %v10866_v13, %v10865_v5  ;;  %v10948_v50 = vpop.f32.mrf.mxu1 }
 0x35e   : > { %v10949_v8 = vadd.f32 %v10948_v50, %v10947_v60  ;;  %v10868_v9 = vpop.f32.mrf.mxu0 }
 0x35f   : > { %v14430_v29 = vadd.f32 %v10931_v16, %v10867_v63  ;;  %v10950_v62 = vpop.f32.mrf.mxu1 }
 0x360   : > { %v10869_v30 = vpop.f32.mrf.mxu0 }
 0x361   : > { %v10870_v41 = vadd.f32 %v10869_v30, %v10868_v9  ;;  %v10951_v24 = vpop.f32.mrf.mxu1 }
 0x362   : > { %v10952_v46 = vadd.f32 %v10951_v24, %v10950_v62  ;;  %v10871_v22 = vpop.f32.mrf.mxu0 }
 0x363   : > { %v14432_v47 = vadd.f32 %v10934_v39, %v10870_v41  ;;  %v10953_v31 = vpop.f32.mrf.mxu1 }
 0x364   : > { %v10872_v38 = vpop.f32.mrf.mxu0 }
 0x365   : > { %v10873_v15 = vadd.f32 %v10872_v38, %v10871_v22  ;;  %v10954_v53 = vpop.f32.mrf.mxu1 }
 0x366   : > { %v10955_v61 = vadd.f32 %v10954_v53, %v10953_v31  ;;  %v10874_v45 = vpop.f32.mrf.mxu0 }
 0x367   : > { %v14434_v5 = vadd.f32 %v10937_v27, %v10873_v15  ;;  %v10956_v50 = vpop.f32.mrf.mxu1 }
 0x368   : > { %v10875_v60 = vpop.f32.mrf.mxu0 }
 0x369   : > { %v10876_v16 = vadd.f32 %v10875_v60, %v10874_v45  ;;  %v10957_v13 = vpop.f32.mrf.mxu1 }
 0x36a   : > { %v10958_v63 = vadd.f32 %v10957_v13, %v10956_v50  ;;  %v10877_v49 = vpop.f32.mrf.mxu0 }
 0x36b   : > { %v14436_v9 = vadd.f32 %v10940_v48, %v10876_v16  ;;  %v10959_v24 = vpop.f32.mrf.mxu1 }
 0x36c   : > { %v10878_v62 = vpop.f32.mrf.mxu0 }
 0x36d   : > { %v10879_v39 = vadd.f32 %v10878_v62, %v10877_v49  ;;  %v10960_v30 = vpop.f32.mrf.mxu1 }
 0x36e   : > { %v10961_v41 = vadd.f32 %v10960_v30, %v10959_v24  ;;  %v10880_v7 = vpop.f32.mrf.mxu0 }
 0x36f   : > { %v14438_v22 = vadd.f32 %v10943_v17, %v10879_v39  ;;  %v10962_v31 = vpop.f32.mrf.mxu1 }
 0x370   : > { %v10881_v38 = vpop.f32.mrf.mxu0 }
 0x371   : > { %v10882_v27 = vadd.f32 %v10881_v38, %v10880_v7  ;;  %v10963_v15 = vpop.f32.mrf.mxu1 }
 0x372   : > { %v10964_v53 = vadd.f32 %v10963_v15, %v10962_v31  ;;  %v10883_v40 = vpop.f32.mrf.mxu0 }
 0x373   : > { %v14440_v45 = vadd.f32 %v10946_v52, %v10882_v27  ;;  %v11045_v50 = vpop.f32.mrf.mxu1 }
 0x374   : > { %v10884_v60 = vpop.f32.mrf.mxu0 }
 0x375   : > { %v10885_v48 = vadd.f32 %v10884_v60, %v10883_v40  ;;  %v11046_v16 = vpop.f32.mrf.mxu1 }
 0x376   : > { %v14442_v13 = vadd.f32 %v11046_v16, %v11045_v50  ;;  %v10886_v49 = vpop.f32.mrf.mxu0 }
 0x377   : > { %v14444_v62 = vadd.f32 %v10949_v8, %v10885_v48  ;;  %v14446_v24 = vpop.f32.mrf.mxu1 }
 0x378   : > { %15279 = vst [vmem:[#allocation23_spill] sm:$0xff] %v14442_v13  ;;  %15280 = vst [vmem:[#allocation46_spill] sm:$0xff] %v14446_v24  ;;  %v10887_v17 = vpop.f32.mrf.mxu0 }
 0x379   : > { %v10888_v39 = vadd.f32 %v10887_v17, %v10886_v49  ;;  %v14448_v30 = vpop.f32.mrf.mxu1  ;;  %v5070_v49 = vadd.s32 128, %v15053_v33 }
 0x37a   : > { %15281 = vst [vmem:[#allocation50_spill] sm:$0xff] %v14448_v30  ;;  %v10889_v7 = vpop.f32.mrf.mxu0 }
 0x37b   : > { %v14450_v31 = vadd.f32 %v10952_v46, %v10888_v39  ;;  %v11051_v52 = vpop.f32.mrf.mxu1 }
 0x37c   : > { %v10890_v38 = vpop.f32.mrf.mxu0 }
 0x37d   : > { %v10891_v27 = vadd.f32 %v10890_v38, %v10889_v7  ;;  %v11052_v15 = vpop.f32.mrf.mxu1 }
 0x37e   : > { %v14452_v40 = vadd.f32 %v11052_v15, %v11051_v52  ;;  %v10892_v50 = vpop.f32.mrf.mxu0  ;;  %v5090_v52 = vand.u32 15, %v5070_v49 }
 0x37f   : > { %v14454_v60 = vadd.f32 %v10955_v61, %v10891_v27  ;;  %v14456_v8 = vpop.f32.mrf.mxu1 }
 0x380   : > { %15282 = vst [vmem:[#allocation25_spill] sm:$0xff] %v14452_v40  ;;  %15283 = vst [vmem:[#allocation31_spill] sm:$0xff] %v14456_v8  ;;  %v10893_v48 = vpop.f32.mrf.mxu0  ;;  %v6635_v33 = vadd.s32 4294967293, %v5090_v52 }
 0x381   : > { %v10894_v16 = vadd.f32 %v10893_v48, %v10892_v50  ;;  %v14458_v24 = vpop.f32.mrf.mxu1 }
 0x382   : > { %15284 = vst [vmem:[#allocation28_spill] sm:$0xff] %v14458_v24  ;;  %v10895_v17 = vpop.f32.mrf.mxu0  ;;  %vm6651_vm15 = vcmp.ge.s32.totalorder %v6635_v33, 0 }
 0x383   : > { %v14461_v46 = vadd.f32 %v10958_v63, %v10894_v16  ;;  %v11057_v39 = vpop.f32.mrf.mxu1 }
 0x384   : > { %v10896_v30 = vpop.f32.mrf.mxu0 }
 0x385   : > { %v10897_v7 = vadd.f32 %v10896_v30, %v10895_v17  ;;  %v11058_v38 = vpop.f32.mrf.mxu1 }
 0x386   : > { %v14463_v15 = vadd.f32 %v11058_v38, %v11057_v39  ;;  %v10898_v61 = vpop.f32.mrf.mxu0  ;;  %v6731_v38 = vsel %vm6651_vm15, %v14114_v2, 0.0 }
 0x387   : > { %v14465_v27 = vadd.f32 %v10961_v41, %v10897_v7  ;;  %v14467_v8 = vpop.f32.mrf.mxu1 }
 0x388   : > { %v10899_v50 = vpop.f32.mrf.mxu0 }
 0x389   : > { %v10900_v48 = vadd.f32 %v10899_v50, %v10898_v61  ;;  %v14469_v24 = vpop.f32.mrf.mxu1 }
 0x38a   : > { %v10981_v40 = vpop.f32.mrf.mxu0 }
 0x38b   : > { %v14471_v63 = vadd.f32 %v10964_v53, %v10900_v48  ;;  %v11063_v16 = vpop.f32.mrf.mxu1 }
 0x38c   : > { %v10982_v13 = vpop.f32.mrf.mxu0 }
 0x38d   : > { %v10983_v30 = vadd.f32 %v10982_v13, %v10981_v40  ;;  %v11064_v49 = vpop.f32.mrf.mxu1 }
 0x38e   : > { %v14473_v17 = vadd.f32 %v11064_v49, %v11063_v16  ;;  %v10984_v39 = vpop.f32.mrf.mxu0  ;;  %v15285_v16 = vsel %vm14139_vm7, %v14129_v54, 0.0  ;;  %vm15298_vm7 = vnez %v15269_v14 }
 0x38f   : > { %v7514_v41 = vadd.f32 %v10983_v30, %v14416_v35  ;;  %v14476_v7 = vpop.f32.mrf.mxu1 }
 0x390   : > { %v10985_v61 = vpop.f32.mrf.mxu0 }
 0x391   : > { %v14479_v50 = vadd.f32 %v7514_v41, %v6731_v38  ;;  %v10986_v52 = vadd.f32 %v10985_v61, %v10984_v39  ;;  %v14481_v53 = vpop.f32.mrf.mxu1 }
 0x392   : > { %v10987_v48 = vpop.f32.mrf.mxu0 }
 0x393   : > { %v7515_v33 = vadd.f32 %v10986_v52, %v14422_v36  ;;  %v11069_v13 = vpop.f32.mrf.mxu1  ;;  %v15286_v36 = vsel %vm14152_vm10, %v14150_v44, 0.0 }
 0x394   : > { %v10988_v40 = vpop.f32.mrf.mxu0 }
 0x395   : > { %v14488_v35 = vadd.f32 %v7515_v33, %v15285_v16  ;;  %v10989_v30 = vadd.f32 %v10988_v40, %v10987_v48  ;;  %v11070_v49 = vpop.f32.mrf.mxu1 }
 0x396   : > { %v14490_v2 = vadd.f32 %v11070_v49, %v11069_v13  ;;  %v10990_v41 = vpop.f32.mrf.mxu0 }
 0x397   : > { %v7516_v39 = vadd.f32 %v10989_v30, %v14425_v42  ;;  %v14493_v38 = vpop.f32.mrf.mxu1  ;;  %v15287_v42 = vsel %vm14181_vm13, %v14174_v25, 0.0 }
 0x398   : > { %v10991_v61 = vpop.f32.mrf.mxu0 }
 0x399   : > { %v14499_v52 = vadd.f32 %v7516_v39, %v15286_v36  ;;  %v10992_v11 = vadd.f32 %v10991_v61, %v10990_v41  ;;  %v14501_v54 = vpop.f32.mrf.mxu1 }
 0x39a   : > { %v10993_v33 = vpop.f32.mrf.mxu0 }
 0x39b   : > { %v7517_v48 = vadd.f32 %v10992_v11, %v14428_v12  ;;  %v11075_v13 = vpop.f32.mrf.mxu1  ;;  %v15288_v12 = vsel %vm14199_vm0, %v14195_v20, 0.0 }
 0x39c   : > { %v10994_v40 = vpop.f32.mrf.mxu0 }
 0x39d   : > { %v14508_v16 = vadd.f32 %v7517_v48, %v15287_v42  ;;  %v10995_v30 = vadd.f32 %v10994_v40, %v10993_v33  ;;  %v11076_v51 = vpop.f32.mrf.mxu1 }
 0x39e   : > { %v14510_v49 = vadd.f32 %v11076_v51, %v11075_v13  ;;  %v10996_v44 = vpop.f32.mrf.mxu0 }
 0x39f   : > { %v7518_v41 = vadd.f32 %v10995_v30, %v14430_v29  ;;  %v14513_v39 = vpop.f32.mrf.mxu1  ;;  %v15289_v29 = vsel %vm14226_vm4, %v14219_v3, 0.0 }
 0x3a0   : > { %v10997_v61 = vpop.f32.mrf.mxu0 }
 0x3a1   : > { %v14519_v36 = vadd.f32 %v7518_v41, %v15288_v12  ;;  %v10998_v10 = vadd.f32 %v10997_v61, %v10996_v44  ;;  %v14521_v25 = vpop.f32.mrf.mxu1 }
 0x3a2   : > { %v10999_v11 = vpop.f32.mrf.mxu0 }
 0x3a3   : > { %v7519_v33 = vadd.f32 %v10998_v10, %v14432_v47  ;;  %v11081_v48 = vpop.f32.mrf.mxu1  ;;  %v15290_v47 = vsel %vm14241_vm8, %v14239_v32, 0.0 }
 0x3a4   : > { %v11000_v13 = vpop.f32.mrf.mxu0 }
 0x3a5   : > { %v14528_v40 = vadd.f32 %v7519_v33, %v15289_v29  ;;  %v11001_v42 = vadd.f32 %v11000_v13, %v10999_v11  ;;  %v11082_v56 = vpop.f32.mrf.mxu1 }
 0x3a6   : > { %v14530_v30 = vadd.f32 %v11082_v56, %v11081_v48  ;;  %v11002_v20 = vpop.f32.mrf.mxu0 }
 0x3a7   : > { %v7520_v51 = vadd.f32 %v11001_v42, %v14434_v5  ;;  %v14533_v44 = vpop.f32.mrf.mxu1  ;;  %v15291_v5 = vsel %vm14268_vm12, %v14264_v21, 0.0 }
 0x3a8   : > { %v11003_v41 = vpop.f32.mrf.mxu0 }
 0x3a9   : > { %v14539_v61 = vadd.f32 %v7520_v51, %v15290_v47  ;;  %v11004_v26 = vadd.f32 %v11003_v41, %v11002_v20  ;;  %v14541_v3 = vpop.f32.mrf.mxu1 }
 0x3ab   : > { %v11005_v12 = vpop.f32.mrf.mxu0  ;;  %v7521_v10 = vadd.f32 %v11004_v26, %v14436_v9  ;;  %v11087_v11 = vpop.f32.mrf.mxu1  ;;  %v15293_v9 = vsel %vm14281_vm1, %v14279_v55, 0.0 }
 0x3ad   : > { %v11006_v33 = vpop.f32.mrf.mxu0  ;;  %v14548_v48 = vadd.f32 %v7521_v10, %v15291_v5  ;;  %v11088_v19 = vpop.f32.mrf.mxu1 }
 0x3ae   : > { %v11007_v13 = vadd.f32 %v11006_v33, %v11005_v12  ;;  %v14550_v29 = vadd.f32 %v11088_v19, %v11087_v11  ;;  %v15296_v19 = vsel %vm14321_vm14, %v14319_v28, 0.0 }
 0x3af   : > { %v11008_v32 = vpop.f32.mrf.mxu0  ;;  %v14553_v56 = vpop.f32.mrf.mxu1 }
 0x3b0   : > { %v7522_v42 = vadd.f32 %v11007_v13, %v14438_v22  ;;  %15292 = vst [vmem:[#allocation48_spill] sm:$0xff] %v14553_v56  ;;  %v15295_v22 = vsel %vm14308_vm6, %v14301_v57, 0.0 }
 0x3b1   : > { %v11009_v20 = vpop.f32.mrf.mxu0  ;;  %v14561_v21 = vpop.f32.mrf.mxu1 }
 0x3b2   : > { %v14559_v51 = vadd.f32 %v7522_v42, %v15293_v9  ;;  %v11010_v34 = vadd.f32 %v11009_v20, %v11008_v32  ;;  %15294 = vst [vmem:[#allocation58_spill] sm:$0xff] %v14561_v21 }
 0x3b3   : > { %v11011_v41 = vpop.f32.mrf.mxu0  ;;  %v11173_v26 = vpop.f32.mrf.mxu1 }
 0x3b4   : > { %v7523_v47 = vadd.f32 %v11010_v34, %v14440_v45  ;;  %v15297_v34 = vsel %vm14349_vm5, %v14342_v0, 0.0 }
 0x3b5   : > { %v11012_v12 = vpop.f32.mrf.mxu0  ;;  %v11174_v18 = vpop.f32.mrf.mxu1 }
 0x3b6   : > { %v14568_v10 = vadd.f32 %v7523_v47, %v15295_v22  ;;  %v11013_v11 = vadd.f32 %v11012_v12, %v11011_v41 }
 0x3b7   : > { %v11014_v33 = vpop.f32.mrf.mxu0  ;;  %v11176_v5 = vpop.f32.mrf.mxu1 }
 0x3b8   : > { %v7524_v55 = vadd.f32 %v11013_v11, %v14444_v62 }
 0x3b9   : > { %v11015_v13 = vpop.f32.mrf.mxu0  ;;  %v11177_v42 = vpop.f32.mrf.mxu1 }
 0x3ba   : > { %v14575_v45 = vadd.f32 %v7524_v55, %v15296_v19  ;;  %v11016_v32 = vadd.f32 %v11015_v13, %v11014_v33 }
 0x3bb   : > { %v11017_v37 = vpop.f32.mrf.mxu0  ;;  %v11179_v20 = vpop.f32.mrf.mxu1 }
 0x3bc   : > { %v7525_v57 = vadd.f32 %v11016_v32, %v14450_v31  ;;  %v15299_v31 = vsel %vm15298_vm7, %v14360_v4, 0.0 }
 0x3bd   : > { %v11018_v9 = vpop.f32.mrf.mxu0  ;;  %v11180_v47 = vpop.f32.mrf.mxu1 }
 0x3be   : > { %v14582_v62 = vadd.f32 %v7525_v57, %v15297_v34  ;;  %v11019_v41 = vadd.f32 %v11018_v9, %v11017_v37 }
 0x3bf   : > { %v11020_v6 = vpop.f32.mrf.mxu0  ;;  %v14585_v12 = vpop.f32.mrf.mxu1 }
 0x3c0   : > { %v7526_v28 = vadd.f32 %v11019_v41, %v14454_v60  ;;  %v15300_v60 = vsel %vm14384_vm9, %v14382_v58, 0.0 }
 0x3c1   : > { %v11021_v22 = vpop.f32.mrf.mxu0  ;;  %v14593_v23 = vpop.f32.mrf.mxu1 }
 0x3c2   : > { %v14591_v11 = vadd.f32 %v7526_v28, %v15299_v31  ;;  %v11022_v33 = vadd.f32 %v11021_v22, %v11020_v6 }
 0x3c3   : > { %v11023_v0 = vpop.f32.mrf.mxu0  ;;  %v14596_v13 = vpop.f32.mrf.mxu1 }
 0x3c4   : > { %v7527_v55 = vadd.f32 %v11022_v33, %v14461_v46  ;;  %v15302_v46 = vsel %vm14397_vm3, %v14395_v1, 0.0  ;;  %v15304_v33 = vld [vmem:[#allocation32_spill] sm:$0xff] }
 0x3c5   : > { %v11024_v19 = vpop.f32.mrf.mxu0  ;;  %v14604_v37 = vpop.f32.mrf.mxu1 }
 0x3c6   : > { %v14602_v32 = vadd.f32 %v7527_v55, %v15300_v60  ;;  %v11025_v14 = vadd.f32 %v11024_v19, %v11023_v0  ;;  %v15307_v19 = vld [vmem:[#allocation40_spill] sm:$0xff] }
 0x3c7   : > { %v11026_v4 = vpop.f32.mrf.mxu0  ;;  %v14607_v9 = vpop.f32.mrf.mxu1  ;;  %v15308_v43 = vsel %vm14411_vm11, %v15307_v19, 0.0 }
 0x3c8   : > { %15301 = vst [vmem:[#allocation29_spill] sm:$0xff] %v14602_v32  ;;  %v7528_v57 = vadd.f32 %v11025_v14, %v14465_v27  ;;  %v15305_v27 = vand.u32 15, %v15304_v33  ;;  %v15311_v33 = vld [vmem:[#allocation46_spill] sm:$0xff] }
 0x3c9   : > { %v11027_v34 = vpop.f32.mrf.mxu0  ;;  %v14615_v6 = vpop.f32.mrf.mxu1 }
 0x3ca   : > { %v14613_v41 = vadd.f32 %v7528_v57, %v15302_v46  ;;  %v11028_v59 = vadd.f32 %v11027_v34, %v11026_v4  ;;  %v8904_v0 = vadd.s32 3, %v15305_v27  ;;  %v11175_v57 = vadd.f32 %v11174_v18, %v11173_v26  ;;  %v15310_v34 = vld [vmem:[#allocation23_spill] sm:$0xff]  ;;  %v15312_v27 = vld [vmem:[#allocation50_spill] sm:$0xff] }
 0x3cb   : > { %v11109_v58 = vpop.f32.mrf.mxu0  ;;  %v14618_v22 = vpop.f32.mrf.mxu1 }
 0x3cc   : > { %15303 = vst [vmem:[#allocation57_spill] sm:$0xff] %v14613_v41  ;;  %v7529_v28 = vadd.f32 %v11028_v59, %v14471_v63  ;;  %vm8920_vm10 = vcmp.ge.s32.totalorder %v8904_v0, 0  ;;  %vm8936_vm13 = vcmp.lt.s32.totalorder %v8904_v0, 16  ;;  %v11050_v41 = vadd.f32 %v15312_v27, %v15311_v33  ;;  %v15315_v0 = vld [vmem:[#allocation14_spill] sm:$0xff] }
 0x3cd   : > { %v11110_v31 = vpop.f32.mrf.mxu0  ;;  %v14628_v14 = vpop.f32.mrf.mxu1  ;;  %vm8952_vm0 = vmand %vm8920_vm10, %vm8936_vm13  ;;  %v15316_v56 = vand.u32 15, %v15315_v0 }
 0x3ce   : > { %v14626_v60 = vadd.f32 %v7529_v28, %v15308_v43  ;;  %v11111_v1 = vadd.f32 %v11110_v31, %v11109_v58  ;;  %v15313_v28 = vld [vmem:[#allocation45_spill] sm:$0xff] }
 0x3cf   : > { %v11112_v4 = vpop.f32.mrf.mxu0  ;;  %v14631_v63 = vpop.f32.mrf.mxu1  ;;  %v15314_v58 = vand.u32 15, %v15313_v28  ;;  %v8906_v32 = vadd.s32 3, %v15316_v56  ;;  %v15320_v28 = vld [vmem:[#allocation31_spill] sm:$0xff] }
 0x3d0   : > { %15309 = vst [vmem:[#allocation60_spill] sm:$0xff] %v14626_v60  ;;  %v8338_v46 = vadd.f32 %v11111_v1, %v15310_v34  ;;  %v11178_v60 = vadd.f32 %v11177_v42, %v11176_v5 }
 0x3d1   : > { %v11113_v59 = vpop.f32.mrf.mxu0  ;;  %v14635_v19 = vpop.f32.mrf.mxu1  ;;  %v8905_v31 = vadd.s32 3, %v15314_v58  ;;  %vm8922_vm1 = vcmp.ge.s32.totalorder %v8906_v32, 0  ;;  %vm8938_vm6 = vcmp.lt.s32.totalorder %v8906_v32, 16  ;;  %v15321_v58 = vld [vmem:[#allocation28_spill] sm:$0xff] }
 0x3d2   : > { %v8887_v55 = vadd.f32 %v11175_v57, %v8338_v46  ;;  %v11114_v21 = vadd.f32 %v11113_v59, %v11112_v4  ;;  %v14647_v4 = vld [vmem:[%s14865_s4] ss:$0 sm:$0xff]  ;;  %vm8954_vm14 = vmand %vm8922_vm1, %vm8938_vm6 }
 0x3d3   : > { %v11115_v43 = vpop.f32.mrf.mxu0  ;;  %v14640_v1 = vpop.f32.mrf.mxu1  ;;  %vm8921_vm4 = vcmp.ge.s32.totalorder %v8905_v31, 0  ;;  %vm8937_vm8 = vcmp.lt.s32.totalorder %v8905_v31, 16  ;;  %v11056_v31 = vadd.f32 %v15321_v58, %v15320_v28 }
 0x3d4   : > { %v9015_v26 = vadd.f32 %v8887_v55, %v14479_v50  ;;  %v8341_v18 = vadd.f32 %v11114_v21, %v11050_v41  ;;  %v11181_v21 = vadd.f32 %v11180_v47, %v11179_v20  ;;  %v15317_v41 = vld [vmem:[#allocation25_spill] sm:$0xff]  ;;  %vm14656_vm12 = vmand %vm8921_vm4, %vm8937_vm8 }
 0x3d5   : > { %v11116_v34 = vpop.f32.mrf.mxu0  ;;  %v14649_v5 = vpop.f32.mrf.mxu1 }
 0x3d6   : > { %v8888_v57 = vadd.f32 %v11178_v60, %v8341_v18  ;;  %v11117_v46 = vadd.f32 %v11116_v34, %v11115_v43  ;;  %v9038_v56 = vadd.f32 %v14647_v4, %v9015_v26  ;;  %v15322_v43 = vld [vmem:[#allocation62_spill] sm:$0xff] }
 0x3d7   : > { %v11118_v50 = vpop.f32.mrf.mxu0  ;;  %v14652_v33 = vpop.f32.mrf.mxu1  ;;  %v15323_v18 = vand.u32 15, %v15322_v43 }
 0x3d8   : > { %v9000_v42 = vsel %vm8952_vm0, %v8888_v57, 0.0  ;;  %v8346_v59 = vadd.f32 %v11117_v46, %v15317_v41  ;;  %v11184_v57 = vadd.f32 %v14593_v23, %v14585_v12  ;;  %v9054_v41 = vmax.f32 %v9038_v56, 0.0 }
 0x3d9   : > { %v9016_v27 = vadd.f32 %v9000_v42, %v14488_v35  ;;  %v11119_v60 = vpop.f32.mrf.mxu0  ;;  %v8907_v34 = vadd.s32 3, %v15323_v18  ;;  %v14665_v26 = vpop.f32.mrf.mxu1  ;;  %v11187_v56 = vadd.f32 %v14604_v37, %v14596_v13  ;;  %v11062_v13 = vadd.f32 %v14469_v24, %v14467_v8 }
 0x3da   : > { %v8889_v20 = vadd.f32 %v11181_v21, %v8346_v59  ;;  %v11120_v47 = vadd.f32 %v11119_v60, %v11118_v50  ;;  %v15324_v59 = vld [vmem:[#allocation13_spill] sm:$0xff] }
 0x3db   : > { %v9039_v0 = vadd.f32 %v14647_v4, %v9016_v27  ;;  %v11121_v35 = vpop.f32.mrf.mxu0  ;;  %v15325_v27 = vand.u32 15, %v15324_v59  ;;  %v14675_v58 = vpop.f32.mrf.mxu1  ;;  %vm8923_vm5 = vcmp.ge.s32.totalorder %v8907_v34, 0  ;;  %vm8939_vm9 = vcmp.lt.s32.totalorder %v8907_v34, 16  ;;  %v15330_v59 = vld [vmem:[#allocation22_spill] sm:$0xff] }
 0x3dc   : > { %v9001_v46 = vsel %vm14656_vm12, %v8889_v20, 0.0  ;;  %v8349_v42 = vadd.f32 %v11120_v47, %v11056_v31  ;;  %vm14683_vm3 = vmand %vm8923_vm5, %vm8939_vm9 }
 0x3dd   : > { %v9055_v28 = vmax.f32 %v9039_v0, 0.0  ;;  %v9017_v50 = vadd.f32 %v9001_v46, %v14499_v52  ;;  %v11122_v21 = vpop.f32.mrf.mxu0  ;;  %v8908_v60 = vadd.s32 3, %v15325_v27  ;;  %v14687_v34 = vpop.f32.mrf.mxu1  ;;  %v15331_v27 = vand.u32 15, %v15330_v59 }
 0x3de   : > { %v8890_v43 = vadd.f32 %v11184_v57, %v8349_v42  ;;  %v11123_v18 = vadd.f32 %v11122_v21, %v11121_v35  ;;  %v11190_v42 = vadd.f32 %v14615_v6, %v14607_v9 }
 0x3df   : > { %v10017_v12 = vpack.c.bf16 %v9055_v28, %v9054_v41  ;;  %v11124_v23 = vpop.f32.mrf.mxu0  ;;  %v9040_v32 = vadd.f32 %v14647_v4, %v9017_v50  ;;  %vm8924_vm2 = vcmp.ge.s32.totalorder %v8908_v60, 0  ;;  %vm8940_vm11 = vcmp.lt.s32.totalorder %v8908_v60, 16 }
 0x3e0   : > { %v9002_v55 = vsel %vm8954_vm14, %v8890_v43, 0.0  ;;  %v8354_v52 = vadd.f32 %v11123_v18, %v14463_v15  ;;  %v15328_v15 = vld [vmem:[#allocation26_spill] sm:$0xff]  ;;  %vm8956_vm15 = vmand %vm8924_vm2, %vm8940_vm11  ;;  %v8910_v43 = vadd.s32 3, %v15331_v27  ;;  %v14702_v18 = vpop.f32.mrf.mxu1 }
 0x3e1   : > { %10061 = vst [vmem:[%s13896_s12 + $0x40] sm:$0xff] %v10017_v12   ;;  %v9018_v31 = vadd.f32 %v9002_v55, %v14508_v16  ;;  %v11125_v47 = vpop.f32.mrf.mxu0  ;;  %v15329_v35 = vand.u32 15, %v15328_v15  ;;  %v9056_v50 = vmax.f32 %v9040_v32, 0.0  ;;  %v11196_v15 = vadd.f32 %v14635_v19, %v14631_v63 }
 0x3e2   : > { %v8891_v37 = vadd.f32 %v11187_v56, %v8354_v52  ;;  %v11126_v0 = vadd.f32 %v11125_v47, %v11124_v23  ;;  %v11193_v56 = vadd.f32 %v14628_v14, %v14618_v22  ;;  %vm8926_vm0 = vcmp.ge.s32.totalorder %v8910_v43, 0  ;;  %v14714_v20 = vpop.f32.mrf.mxu1 }
 0x3e3   : > { %v8909_v57 = vadd.s32 3, %v15329_v35  ;;  %v9041_v46 = vadd.f32 %v14647_v4, %v9018_v31  ;;  %v11127_v16 = vpop.f32.mrf.mxu0  ;;  %vm8942_vm4 = vcmp.lt.s32.totalorder %v8910_v43, 16  ;;  %v11068_v22 = vadd.f32 %v14481_v53, %v14476_v7 }
 0x3e4   : > { %v9003_v41 = vsel %vm14683_vm3, %v8891_v37, 0.0  ;;  %v8357_v28 = vadd.f32 %v11126_v0, %v11062_v13  ;;  %vm8958_vm8 = vmand %vm8926_vm0, %vm8942_vm4 }
 0x3e5   : > { %v9057_v21 = vmax.f32 %v9041_v46, 0.0  ;;  %v9019_v24 = vadd.f32 %v9003_v41, %v14519_v36  ;;  %v11128_v8 = vpop.f32.mrf.mxu0  ;;  %vm8925_vm7 = vcmp.ge.s32.totalorder %v8909_v57, 0  ;;  %vm8941_vm10 = vcmp.lt.s32.totalorder %v8909_v57, 16 }
 0x3e6   : > { %v8892_v12 = vadd.f32 %v11190_v42, %v8357_v28  ;;  %v11129_v23 = vadd.f32 %v11128_v8, %v11127_v16  ;;  %vm14710_vm13 = vmand %vm8925_vm7, %vm8941_vm10  ;;  %v15336_v42 = vld [vmem:[#allocation53_spill] sm:$0xff]  ;;  %v11199_v8 = vadd.f32 %v14649_v5, %v14640_v1 }
 0x3e7   : > { %v10022_v9 = vpack.c.bf16 %v9057_v21, %v9056_v50  ;;  %v11130_v6 = vpop.f32.mrf.mxu0  ;;  %v9042_v60 = vadd.f32 %v14647_v4, %v9019_v24  ;;  %v15337_v41 = vand.u32 15, %v15336_v42  ;;  %v14729_v50 = vpop.f32.mrf.mxu1 }
 0x3e8   : > { %v9004_v55 = vsel %vm8956_vm15, %v8892_v12, 0.0  ;;  %v8362_v36 = vadd.f32 %v11129_v23, %v14473_v17  ;;  %v15334_v17 = vld [vmem:[#allocation35_spill] sm:$0xff] }
 0x3e9   : > { %10062 = vst [vmem:[%s13896_s12 + $0x48] sm:$0xff] %v10022_v9   ;;  %v9020_v52 = vadd.f32 %v9004_v55, %v14528_v40  ;;  %v11131_v31 = vpop.f32.mrf.mxu0  ;;  %v15335_v13 = vand.u32 15, %v15334_v17  ;;  %v9058_v46 = vmax.f32 %v9042_v60, 0.0  ;;  %v8912_v28 = vadd.s32 3, %v15337_v41  ;;  %v11210_v9 = vpop.f32.mrf.mxu1 }
 0x3ea   : > { %v8893_v14 = vadd.f32 %v11193_v56, %v8362_v36  ;;  %v11132_v47 = vadd.f32 %v11131_v31, %v11130_v6  ;;  %v11074_v6 = vadd.f32 %v14501_v54, %v14493_v38  ;;  %v15340_v56 = vld [vmem:[#allocation19_spill] sm:$0xff] }
 0x3eb   : > { %v8911_v37 = vadd.s32 3, %v15335_v13  ;;  %v9043_v0 = vadd.f32 %v14647_v4, %v9020_v52  ;;  %v11133_v40 = vpop.f32.mrf.mxu0  ;;  %vm8928_vm14 = vcmp.ge.s32.totalorder %v8912_v28, 0  ;;  %vm8944_vm5 = vcmp.lt.s32.totalorder %v8912_v28, 16  ;;  %v11212_v13 = vpop.f32.mrf.mxu1 }
 0x3ec   : > { %v9005_v35 = vsel %vm14710_vm13, %v8893_v14, 0.0  ;;  %v8365_v57 = vadd.f32 %v11132_v47, %v11068_v22  ;;  %vm8960_vm9 = vmand %vm8928_vm14, %vm8944_vm5  ;;  %v15342_v14 = vld [vmem:[#allocation38_spill] sm:$0xff] }
 0x3ed   : > { %v9059_v16 = vmax.f32 %v9043_v0, 0.0  ;;  %v9021_v7 = vadd.f32 %v9005_v35, %v14539_v61  ;;  %v11134_v53 = vpop.f32.mrf.mxu0  ;;  %vm8927_vm12 = vcmp.ge.s32.totalorder %v8911_v37, 0  ;;  %vm8943_vm1 = vcmp.lt.s32.totalorder %v8911_v37, 16 }
 0x3ee   : > { %v8894_v21 = vadd.f32 %v11196_v15, %v8365_v57  ;;  %v11135_v24 = vadd.f32 %v11134_v53, %v11133_v40  ;;  %vm14737_vm6 = vmand %vm8927_vm12, %vm8943_vm1  ;;  %v15343_v47 = vand.u32 15, %v15342_v14  ;;  %v11205_v15 = vadd.f32 %v14687_v34, %v14675_v58  ;;  %v15346_v34 = vld [vmem:[#allocation43_spill] sm:$0xff] }
 0x3ef   : > { %v10027_v63 = vpack.c.bf16 %v9059_v16, %v9058_v46  ;;  %v11136_v19 = vpop.f32.mrf.mxu0  ;;  %v9044_v27 = vadd.f32 %v14647_v4, %v9021_v7  ;;  %v11213_v7 = vpop.f32.mrf.mxu1  ;;  %v11080_v53 = vadd.f32 %v14521_v25, %v14513_v39 }
 0x3f0   : > { %v9006_v59 = vsel %vm8958_vm8, %v8894_v21, 0.0  ;;  %v8370_v61 = vadd.f32 %v11135_v24, %v14490_v2  ;;  %v15341_v2 = vand.u32 15, %v15340_v56  ;;  %v8914_v17 = vadd.s32 3, %v15343_v47 }
 0x3f1   : > { %10063 = vst [vmem:[%s13896_s12 + $0x50] sm:$0xff] %v10027_v63   ;;  %v9022_v43 = vadd.f32 %v9006_v59, %v14548_v48  ;;  %v11137_v23 = vpop.f32.mrf.mxu0  ;;  %v11202_v48 = vadd.f32 %v14665_v26, %v14652_v33  ;;  %v9060_v31 = vmax.f32 %v9044_v27, 0.0  ;;  %v11208_v24 = vadd.f32 %v14714_v20, %v14702_v18  ;;  %v11215_v59 = vpop.f32.mrf.mxu1 }
 0x3f2   : > { %v8895_v1 = vadd.f32 %v11199_v8, %v8370_v61  ;;  %v11138_v5 = vadd.f32 %v11137_v23, %v11136_v19  ;;  %v8913_v55 = vadd.s32 3, %v15341_v2  ;;  %vm8930_vm15 = vcmp.ge.s32.totalorder %v8914_v17, 0  ;;  %v15348_v61 = vld [vmem:[#allocation39_spill] sm:$0xff] }
 0x3f3   : > { %v9045_v36 = vadd.f32 %v14647_v4, %v9022_v43  ;;  %v11139_v60 = vpop.f32.mrf.mxu0  ;;  %vm8946_vm7 = vcmp.lt.s32.totalorder %v8914_v17, 16  ;;  %v15349_v27 = vand.u32 15, %v15348_v61  ;;  %v11211_v20 = vadd.f32 %v11210_v9, %v14729_v50  ;;  %v15352_v9 = vld [vmem:[#allocation15_spill] sm:$0xff]  ;;  %v15354_v17 = vld [vmem:[#allocation9_spill] sm:$0xff]  ;;  %v15360_v61 = vld [vmem:[#allocation60_spill] sm:$0xff] }
 0x3f4   : > { %v9007_v52 = vsel %vm14737_vm6, %v8895_v1, 0.0  ;;  %v8373_v32 = vadd.f32 %v11138_v5, %v11074_v6  ;;  %vm8929_vm3 = vcmp.ge.s32.totalorder %v8913_v55, 0  ;;  %vm8945_vm2 = vcmp.lt.s32.totalorder %v8913_v55, 16  ;;  %vm8962_vm10 = vmand %vm8930_vm15, %vm8946_vm7 }
 0x3f5   : > { %v9061_v22 = vmax.f32 %v9045_v36, 0.0  ;;  %v9023_v38 = vadd.f32 %v9007_v52, %v14559_v51  ;;  %v11140_v54 = vpop.f32.mrf.mxu0  ;;  %vm14760_vm11 = vmand %vm8929_vm3, %vm8945_vm2  ;;  %v8916_v43 = vadd.s32 3, %v15349_v27  ;;  %v11216_v36 = vpop.f32.mrf.mxu1 }
 0x3f6   : > { %v8896_v37 = vadd.f32 %v11202_v48, %v8373_v32  ;;  %v11141_v0 = vadd.f32 %v11140_v54, %v11139_v60  ;;  %v11086_v60 = vadd.f32 %v14541_v3, %v14533_v44 }
 0x3f7   : > { %v10032_v33 = vpack.c.bf16 %v9061_v22, %v9060_v31  ;;  %v11142_v26 = vpop.f32.mrf.mxu0  ;;  %v9046_v51 = vadd.f32 %v14647_v4, %v9023_v38  ;;  %vm8932_vm8 = vcmp.ge.s32.totalorder %v8916_v43, 0  ;;  %vm8948_vm12 = vcmp.lt.s32.totalorder %v8916_v43, 16  ;;  %v11218_v44 = vpop.f32.mrf.mxu1 }
 0x3f8   : > { %v9008_v40 = vsel %vm8960_vm9, %v8896_v37, 0.0  ;;  %v8378_v35 = vadd.f32 %v11141_v0, %v14510_v49  ;;  %v15347_v49 = vand.u32 15, %v15346_v34  ;;  %v11214_v22 = vadd.f32 %v11213_v7, %v11212_v13  ;;  %vm8964_vm1 = vmand %vm8932_vm8, %vm8948_vm12 }
 0x3f9   : > { %10064 = vst [vmem:[%s13896_s12 + $0x58] sm:$0xff] %v10032_v33   ;;  %v9024_v57 = vadd.f32 %v9008_v40, %v14568_v10  ;;  %v11143_v16 = vpop.f32.mrf.mxu0  ;;  %v9062_v19 = vmax.f32 %v9046_v51, 0.0  ;;  %v15355_v37 = vand.u32 15, %v15354_v17 }
 0x3fa   : > { %v8897_v42 = vadd.f32 %v11205_v15, %v8378_v35  ;;  %v11144_v58 = vadd.f32 %v11143_v16, %v11142_v26  ;;  %v8915_v41 = vadd.s32 3, %v15347_v49  ;;  %v11217_v35 = vadd.f32 %v11216_v36, %v11215_v59  ;;  %v11219_v16 = vpop.f32.mrf.mxu1 }
 0x3fb   : > { %v9047_v28 = vadd.f32 %v14647_v4, %v9024_v57  ;;  %v11145_v21 = vpop.f32.mrf.mxu0  ;;  %v8918_v0 = vadd.s32 3, %v15355_v37  ;;  %v15356_v57 = vld [vmem:[#allocation29_spill] sm:$0xff] }
 0x3fc   : > { %v9009_v10 = vsel %vm14760_vm11, %v8897_v42, 0.0  ;;  %v8381_v63 = vadd.f32 %v11144_v58, %v11080_v53  ;;  %vm8931_vm13 = vcmp.ge.s32.totalorder %v8915_v41, 0  ;;  %vm8947_vm0 = vcmp.lt.s32.totalorder %v8915_v41, 16  ;;  %v15357_v53 = vld [vmem:[#allocation48_spill] sm:$0xff]  ;;  %v15358_v42 = vld [vmem:[#allocation58_spill] sm:$0xff] }
 0x3fd   : > { %v9063_v8 = vmax.f32 %v9047_v28, 0.0  ;;  %v9025_v39 = vadd.f32 %v9009_v10, %v14575_v45  ;;  %v11146_v25 = vpop.f32.mrf.mxu0  ;;  %vm14782_vm4 = vmand %vm8931_vm13, %vm8947_vm0  ;;  %vm8934_vm9 = vcmp.ge.s32.totalorder %v8918_v0, 0  ;;  %v11092_v58 = vadd.f32 %v15358_v42, %v15357_v53 }
 0x3fe   : > { %v8898_v12 = vadd.f32 %v11208_v24, %v8381_v63  ;;  %v11147_v23 = vadd.f32 %v11146_v25, %v11145_v21  ;;  %vm8950_vm3 = vcmp.lt.s32.totalorder %v8918_v0, 16  ;;  %v11220_v28 = vadd.f32 %v11219_v16, %v11218_v44  ;;  %v15359_v63 = vld [vmem:[#allocation57_spill] sm:$0xff] }
 0x3ff   : > { %v10037_v6 = vpack.c.bf16 %v9063_v8, %v9062_v19  ;;  %v11148_v1 = vpop.f32.mrf.mxu0  ;;  %v9048_v45 = vadd.f32 %v14647_v4, %v9025_v39  ;;  %vm8966_vm2 = vmand %vm8934_vm9, %vm8950_vm3 }
 0x400   : > { %v9010_v18 = vsel %vm8962_vm10, %v8898_v12, 0.0  ;;  %v8386_v5 = vadd.f32 %v11147_v23, %v14530_v30  ;;  %v15353_v30 = vand.u32 15, %v15352_v9 }
 0x401   : > { %10065 = vst [vmem:[%s13896_s12 + $0x60] sm:$0xff] %v10037_v6   ;;  %v9026_v56 = vadd.f32 %v9010_v18, %v14582_v62  ;;  %v11149_v55 = vpop.f32.mrf.mxu0  ;;  %v9064_v54 = vmax.f32 %v9048_v45, 0.0 }
 0x402   : > { %v8899_v48 = vadd.f32 %v11211_v20, %v8386_v5  ;;  %v11150_v50 = vadd.f32 %v11149_v55, %v11148_v1  ;;  %v8917_v52 = vadd.s32 3, %v15353_v30 }
 0x403   : > { %v9049_v32 = vadd.f32 %v14647_v4, %v9026_v56  ;;  %v11151_v31 = vpop.f32.mrf.mxu0 }
 0x404   : > { %v9011_v62 = vsel %vm14782_vm4, %v8899_v48, 0.0  ;;  %v8389_v38 = vadd.f32 %v11150_v50, %v11086_v60  ;;  %vm8933_vm6 = vcmp.ge.s32.totalorder %v8917_v52, 0  ;;  %vm8949_vm14 = vcmp.lt.s32.totalorder %v8917_v52, 16 }
 0x405   : > { %v9065_v14 = vmax.f32 %v9049_v32, 0.0  ;;  %v9027_v47 = vadd.f32 %v9011_v62, %v14591_v11  ;;  %v11152_v3 = vpop.f32.mrf.mxu0  ;;  %vm8965_vm5 = vmand %vm8933_vm6, %vm8949_vm14 }
 0x406   : > { %v8900_v33 = vadd.f32 %v11214_v22, %v8389_v38  ;;  %v11153_v26 = vadd.f32 %v11152_v3, %v11151_v31 }
 0x407   : > { %v10042_v40 = vpack.c.bf16 %v9065_v14, %v9064_v54  ;;  %v11154_v15 = vpop.f32.mrf.mxu0  ;;  %v9050_v11 = vadd.f32 %v14647_v4, %v9027_v47 }
 0x408   : > { %v9012_v13 = vsel %vm8964_vm1, %v8900_v33, 0.0  ;;  %v8394_v51 = vadd.f32 %v11153_v26, %v14550_v29 }
 0x409   : > { %10066 = vst [vmem:[%s13896_s12 + $0x68] sm:$0xff] %v10042_v40   ;;  %v9028_v46 = vadd.f32 %v9012_v13, %v15356_v57  ;;  %v11155_v7 = vpop.f32.mrf.mxu0  ;;  %v9066_v10 = vmax.f32 %v9050_v11, 0.0 }
 0x40a   : > { %v8901_v34 = vadd.f32 %v11217_v35, %v8394_v51  ;;  %v11156_v49 = vadd.f32 %v11155_v7, %v11154_v15 }
 0x40b   : > { %v9051_v41 = vadd.f32 %v14647_v4, %v9028_v46 }
 0x40c   : > { %v9013_v29 = vsel %vm8965_vm5, %v8901_v34, 0.0  ;;  %v8397_v21 = vadd.f32 %v11156_v49, %v11092_v58 }
 0x40d   : > { %v9067_v24 = vmax.f32 %v9051_v41, 0.0  ;;  %v9029_v19 = vadd.f32 %v9013_v29, %v15359_v63 }
 0x40e   : > { %v8902_v8 = vadd.f32 %v11220_v28, %v8397_v21 }
 0x40f   : > { %v10047_v39 = vpack.c.bf16 %v9067_v24, %v9066_v10  ;;  %v9052_v59 = vadd.f32 %v14647_v4, %v9029_v19 }
 0x410   : > { %v9014_v25 = vsel %vm8966_vm2, %v8902_v8, 0.0 }
 0x411   : > { %10067 = vst [vmem:[%s13896_s12 + $0x70] sm:$0xff] %v10047_v39   ;;  %v9030_v27 = vadd.f32 %v9014_v25, %v15360_v61  ;;  %v9068_v12 = vmax.f32 %v9052_v59, 0.0 }
 0x413   : > { %v9053_v43 = vadd.f32 %v14647_v4, %v9030_v27 }
 0x415   : > { %v9069_v23 = vmax.f32 %v9053_v43, 0.0 }
 0x417   : > { %v10052_v6 = vpack.c.bf16 %v9069_v23, %v9068_v12 }
 0x419   : > { %10068 = vst [vmem:[%s13896_s12 + $0x78] sm:$0xff] %v10052_v6  }
 0x41a   : > { %11810 = shalt.err (!%p11807_p0)
}
 0x41b   : > { %s11811_s8 = scalar_lea.hbm %s14814_s25, 2048  ;;  %s11815_s11 = scalar_lea.hbm %s14866_s5, 4096 }
 0x41c   : > { %p11812_p1 = scmp.ne.s32.totalorder %s14814_s25, %s11811_s8  ;;  %p11816_p4 = scmp.lt.s32.totalorder %s14814_s25, %s14866_s5 }
 0x41d   : > { %p11817_p7 = scmp.lt.s32.totalorder %s11815_s11, %s11811_s8 }
 0x41e   : > { %p11813_p2 = pnand %p11812_p1, %p11938_p5 }
 0x41f   : > { %p11818_p8 = por %p11817_p7, %p11816_p4 }
 0x420   : > { %p11814_p3 = pneg %p11813_p2 }
 0x422   : > { %p11819_p6 = pnand %p11818_p8, %p11814_p3 }
 0x424   : > { %11822 = shalt.err (!%p11819_p6)
}
 0x425   : > { %s11868_s14 = smov 64   ;;  %s11869_s15 = smov 4  }
 0x426   : > { %11225 = dma.vmem_to_hbm [thread:$0]  (%p11938_p5), %s14816_s16, 2048, %s14814_s25, %s14821_s26, %s11868_s14, %s11868_s14, %s11869_s15  }
 0x427 PF: > { %p11237_p9 = scmp.ge.s32.totalorder %s11861_s21, 2  ;;  %s9179_s17 = sand.u32 1, %s11849_s18  }
 0x428   : > { %p15361_p10 = scmp.ne.s32.totalorder %s14963_s29, 0  ;;  %s9180_s23 = scalar_lea.sflag [#allocation5], %s9179_s17 }
 0x42a   : > { %p11232_p11 = pnand %p11237_p9, %p15361_p10 }
 0x42c   : > { %p11233_p12 = pneg %p11232_p11 }
 0x42e   : > { %11844 = dma.done.wait (%p11233_p12), %s9180_s23, 2048  }
 0x42f   : > { %11846 = vsyncadd (%p11233_p12), %s9180_s23, 4294965248  ;;  %p16_p13 = scmp.ge.s32.totalorder %s11925_s24, 4   ;;  %s15362_s18 = smov %s11853_s19 }
 0x430   : > { %s15363_s19 = smov %s11857_s20  ;;  %s15364_s20 = smov %s11936_s27 }
 0x431   : > { %s15365_s21 = smov %s11925_s24  ;;  %18 = sbr.rel (!%p16_p13) target bundleno = 4 (0x4), region = 88 }
 0x436   :  { %9185 = vsyncpa [#allocation4], 1 }
 0x437   :  { %9187 = vsyncpa [#allocation4 + $0x1], 1 }
 0x438   :  { %9188 = vsyncpa [#allocation5], 1 }
 0x439   :  { %9190 = vsyncpa [#allocation5 + $0x1], 1 }

</bundles_post_ra>
